<compile_context>
chip_gen: v5e
topology: v5e:2x2
jax: 0.10.0
libtpu: 0.0.40
codegen_flags: <defaults>
</compile_context>

<pallas_src>
import functools

import jax
import jax.numpy as jnp
from jax.experimental import pallas as pl
from jax.experimental.pallas import tpu as pltpu


def _attention_sigmoid_kernel(x_ref, w_ref, s_ref, b_ref, o_ref):
    # x_ref : (M, K)          bf16/f32   M = N*HW, K = 9*Cin  (im2col LHS)
    # w_ref : (1, K, 2*TCo)   int8/bf16/f32   [..., :TCo]->conv1, [..., TCo:]->conv2
    # s_ref : (1, 1, 2*TCo)   f32   per-output-channel dequant scale (ones if unquantized)
    # b_ref : (1, 1, 2*TCo)   f32   fused bias
    # o_ref : (N, HW, TCo)    f32
    n, hw, tco = o_ref.shape

    w = w_ref[0]
    if w.dtype != x_ref.dtype:
        # int8 weight storage -> MXU operand dtype (exact: |int8| <= 127).
        w = w.astype(x_ref.dtype)

    # One fused long-K MXU matmul for both convolutions, f32 accumulation.
    z = jnp.dot(x_ref[...], w, preferred_element_type=jnp.float32)
    z = z * s_ref[0] + b_ref[0]                        # dequant scale + bias

    c1 = z[:, :tco].reshape(n, hw, tco)                # conv1 output
    c2 = z[:, tco:].reshape(n, hw, tco)                # conv2 output

    # InstanceNorm2d (affine=False, eps=1e-5): per (sample, channel) over HW.
    # Two-pass variance — matches the reference, no E[x^2]-mean^2 cancellation.
    mean = jnp.mean(c2, axis=1, keepdims=True)         # (N, 1, TCo)
    d = c2 - mean
    var = jnp.mean(d * d, axis=1, keepdims=True)
    yn = d * jax.lax.rsqrt(var + 1e-5)

    # sigmoid(x) = 0.5*tanh(0.5*x) + 0.5  (single exact EUP op).
    y = 0.5 * jnp.tanh(0.5 * yn) + 0.5

    o_ref[...] = jnp.maximum(c1 * y, 0.0).astype(o_ref.dtype)


@functools.partial(jax.jit, static_argnames=("weight_mode",))
def attention_sigmoid_pallas(x, w1, b1, w2, b2, weight_mode="int8"):
    """x: (N, C, H, W) NCHW float32. w*: (Cout, Cin, 3, 3). b*: (Cout,).

    weight_mode: "int8" (fast path, int8-stored weights), "bf16", or "f32"
    (validation path, f32 MXU operands).
    """
    N, C, H, W = x.shape
    Cout = w1.shape[0]
    HW = H * W
    M = N * HW
    K = 9 * C

    # Cout tile of 128: lane-dense output blocks and nco=4 grid steps, so each
    # v7x TensorCore gets >=2 steps (weight DMA overlaps compute/epilogue).
    TCo = 128 if Cout % 128 == 0 else Cout
    nco = Cout // TCo

    if weight_mode == "f32":
        lhs_dtype = jnp.float32
    else:
        lhs_dtype = jnp.bfloat16

    # ---- im2col LHS: (M, 9*Cin), tap-major K ordering ----
    x_nhwc = jnp.transpose(x, (0, 2, 3, 1))
    x_pad = jnp.pad(x_nhwc, ((0, 0), (1, 1), (1, 1), (0, 0)))
    taps = [x_pad[:, kh:kh + H, kw:kw + W, :].reshape(N, HW, C)
            for kh in range(3) for kw in range(3)]
    lhs = jnp.stack(taps, axis=2).reshape(M, K).astype(lhs_dtype)

    # ---- weights: (Cout, Cin, 3, 3) -> (K, Cout), same tap-major K ordering ----
    def to_k_major(w):
        return jnp.transpose(w, (2, 3, 1, 0)).reshape(K, Cout)

    w1k = to_k_major(w1).reshape(K, nco, TCo)
    w2k = to_k_major(w2).reshape(K, nco, TCo)
    # Fused weight slab: per Cout tile j -> [w1 tile | w2 tile] => (nco, K, 2*TCo)
    wf = jnp.transpose(jnp.concatenate([w1k, w2k], axis=2), (1, 0, 2))

    if weight_mode == "int8":
        # Per-output-channel symmetric int8 quantization; dequant scale is
        # applied to the f32 accumulator in the kernel epilogue.
        amax = jnp.max(jnp.abs(wf), axis=1, keepdims=True)        # (nco, 1, 2*TCo)
        scale = jnp.maximum(amax, 1e-20) / 127.0
        w_arg = jnp.clip(jnp.round(wf / scale), -127, 127).astype(jnp.int8)
        s_arg = scale.astype(jnp.float32)
    else:
        w_arg = wf.astype(lhs_dtype)
        s_arg = jnp.ones((nco, 1, 2 * TCo), jnp.float32)

    # Fused bias, same per-tile layout: (nco, 1, 2*TCo), kept in f32.
    bf = jnp.concatenate([b1.reshape(nco, TCo), b2.reshape(nco, TCo)], axis=1)
    bf = bf.reshape(nco, 1, 2 * TCo).astype(jnp.float32)

    # ---- right-size the VMEM limit from the actual block shapes ----
    bpe = lambda dt: jnp.dtype(dt).itemsize
    lhs_bytes = M * K * bpe(lhs_dtype) * 2                       # (double-buffered)
    w_bytes = K * (2 * TCo) * bpe(w_arg.dtype) * 2
    vec_bytes = 2 * (2 * TCo) * 4 * 2 * 2                        # scale + bias
    out_bytes = N * HW * TCo * 4 * 2
    dequant_bytes = K * (2 * TCo) * bpe(lhs_dtype) if w_arg.dtype != lhs_dtype else 0
    tmp_bytes = 4 * (M * (2 * TCo) * 4)                          # z / c1 / c2 / epilogue
    vmem_limit = int(1.25 * (lhs_bytes + w_bytes + vec_bytes + out_bytes
                             + dequant_bytes + tmp_bytes)) + (2 << 20)

    out = pl.pallas_call(
        _attention_sigmoid_kernel,
        out_shape=jax.ShapeDtypeStruct((N, HW, Cout), x.dtype),
        grid_spec=pltpu.PrefetchScalarGridSpec(
            num_scalar_prefetch=0,
            grid=(nco,),
            in_specs=[
                # LHS is small (~1.2 MiB bf16): constant block index, fetched once.
                pl.BlockSpec((M, K), lambda j: (0, 0)),
                # Weights: one (K, 2*TCo) slab per Cout tile, never per sample.
                pl.BlockSpec((1, K, 2 * TCo), lambda j: (j, 0, 0)),
                pl.BlockSpec((1, 1, 2 * TCo), lambda j: (j, 0, 0)),
                pl.BlockSpec((1, 1, 2 * TCo), lambda j: (j, 0, 0)),
            ],
            out_specs=pl.BlockSpec((N, HW, TCo), lambda j: (0, 0, j)),
        ),
        compiler_params=pltpu.CompilerParams(
            dimension_semantics=("parallel",),
            vmem_limit_bytes=vmem_limit,
        ),
    )(lhs, w_arg, s_arg, bf)

    # (N, HW, Cout) -> (N, Cout, H, W).  (If the consumer accepts NHWC, this
    # transpose can be dropped for free latency.)
    return jnp.transpose(out.reshape(N, H, W, Cout), (0, 3, 1, 2))


def _reference_forward(x, w1, b1, w2, b2):
    dn = ("NCHW", "OIHW", "NCHW")
    hp = jax.lax.Precision.HIGHEST
    c1 = jax.lax.conv_general_dilated(x, w1, (1, 1), "SAME", dimension_numbers=dn,
                                      precision=hp) + b1[None, :, None, None]
    c2 = jax.lax.conv_general_dilated(x, w2, (1, 1), "SAME", dimension_numbers=dn,
                                      precision=hp) + b2[None, :, None, None]
    mean = c2.mean(axis=(2, 3), keepdims=True)
    var = ((c2 - mean) ** 2).mean(axis=(2, 3), keepdims=True)
    y = jax.nn.sigmoid((c2 - mean) / jnp.sqrt(var + 1e-5))
    return jnp.maximum(c1 * y, 0.0)


if __name__ == "__main__":
    # Module fixes channels at 512; keep batch/spatial small.
    N, C, H, W = 2, 512, 8, 8

    key = jax.random.PRNGKey(0)
    kx, kw1, kb1, kw2, kb2 = jax.random.split(key, 5)

    x = jax.random.normal(kx, (N, C, H, W), dtype=jnp.float32)
    w1 = jax.random.normal(kw1, (C, C, 3, 3), dtype=jnp.float32) * 0.02
    b1 = jax.random.normal(kb1, (C,), dtype=jnp.float32) * 0.02
    w2 = jax.random.normal(kw2, (C, C, 3, 3), dtype=jnp.float32) * 0.02
    b2 = jax.random.normal(kb2, (C,), dtype=jnp.float32) * 0.02

    ref = jax.block_until_ready(_reference_forward(x, w1, b1, w2, b2))

    def check(mode, tol):
        out = jax.block_until_ready(
            attention_sigmoid_pallas(x, w1, b1, w2, b2, weight_mode=mode))
        assert out.shape == (N, C, H, W)
        err = float(jnp.max(jnp.abs(out - ref)))
        assert err < tol, (mode, err)

    # Validation path: f32 MXU operands, exact epilogue (no approx ops).
    check("f32", 5e-2)
    # bf16 operands + f32 accumulation over K = 4608.
    check("bf16", 1.2e-1)
    # Fast path: int8-stored weights (half the weight-HBM bytes), bf16 MXU.
    check("int8", 2.5e-1)

    print("KERNEL_OK")
</pallas_src>

<mosaic_0001>
module attributes {stable_mosaic.version = 11 : i64} {
  func.func @_attention_sigmoid_kernel(%arg0: i32, %arg1: memref<128x4608xf32, #tpu.memory_space<vmem>>, %arg2: memref<1x4608x256xf32, #tpu.memory_space<vmem>>, %arg3: memref<1x1x256xf32, #tpu.memory_space<vmem>>, %arg4: memref<1x1x256xf32, #tpu.memory_space<vmem>>, %arg5: memref<2x64x128xf32, #tpu.memory_space<vmem>>) attributes {dimension_semantics = [#tpu.dimension_semantics<parallel>], iteration_bounds = array<i64: 4>, scalar_prefetch = 0 : i64, scratch_operands = 0 : i64, tpu.core_type = #tpu.core_type<tc>, window_params = [{pipeline_mode = #tpu.pipeline_mode<synchronous>, transform_indices = @transform_0, window_bounds = array<i64: 128, 4608>}, {transform_indices = @transform_1, window_bounds = array<i64: 1, 4608, 256>}, {transform_indices = @transform_2, window_bounds = array<i64: 1, 1, 256>}, {transform_indices = @transform_3, window_bounds = array<i64: 1, 1, 256>}, {transform_indices = @transform_4, window_bounds = array<i64: 2, 64, 128>}]} {
    %c0 = arith.constant 0 : index
    %c0_0 = arith.constant 0 : index
    %c0_1 = arith.constant 0 : index
    %0 = vector.load %arg2[%c0, %c0_0, %c0_1] : memref<1x4608x256xf32, #tpu.memory_space<vmem>>, vector<1x4608x256xf32>
    %1 = vector.shape_cast %0 : vector<1x4608x256xf32> to vector<4608x256xf32>
    %c0_2 = arith.constant 0 : index
    %c0_3 = arith.constant 0 : index
    %2 = vector.load %arg1[%c0_2, %c0_3] : memref<128x4608xf32, #tpu.memory_space<vmem>>, vector<128x4608xf32>
    %cst = arith.constant dense<0.000000e+00> : vector<128x256xf32>
    %3 = tpu.matmul %2, %1, %cst {dimension_numbers = #tpu.dot_dimension_numbers<[1], [0], [0], [1], [0, 0, 1, 1], [], []>} : vector<128x4608xf32>, vector<4608x256xf32>, vector<128x256xf32> -> vector<128x256xf32>
    %c0_4 = arith.constant 0 : index
    %c0_5 = arith.constant 0 : index
    %c0_6 = arith.constant 0 : index
    %4 = vector.load %arg3[%c0_4, %c0_5, %c0_6] : memref<1x1x256xf32, #tpu.memory_space<vmem>>, vector<1x1x256xf32>
    %5 = vector.shape_cast %4 : vector<1x1x256xf32> to vector<1x256xf32>
    %6 = vector.broadcast %5 : vector<1x256xf32> to vector<128x256xf32>
    %7 = arith.mulf %3, %6 : vector<128x256xf32>
    %c0_7 = arith.constant 0 : index
    %c0_8 = arith.constant 0 : index
    %c0_9 = arith.constant 0 : index
    %8 = vector.load %arg4[%c0_7, %c0_8, %c0_9] : memref<1x1x256xf32, #tpu.memory_space<vmem>>, vector<1x1x256xf32>
    %9 = vector.shape_cast %8 : vector<1x1x256xf32> to vector<1x256xf32>
    %10 = vector.broadcast %9 : vector<1x256xf32> to vector<128x256xf32>
    %11 = arith.addf %7, %10 : vector<128x256xf32>
    %12 = vector.extract_strided_slice %11 {offsets = [0, 0], sizes = [128, 128], strides = [1, 1]} : vector<128x256xf32> to vector<128x128xf32>
    %13 = vector.shape_cast %12 : vector<128x128xf32> to vector<2x64x128xf32>
    %14 = vector.extract_strided_slice %11 {offsets = [0, 128], sizes = [128, 128], strides = [1, 1]} : vector<128x256xf32> to vector<128x128xf32>
    %15 = vector.shape_cast %14 : vector<128x128xf32> to vector<2x64x128xf32>
    %cst_10 = arith.constant dense<0.000000e+00> : vector<2x128xf32>
    %16 = vector.multi_reduction <add>, %15, %cst_10 [1] : vector<2x64x128xf32> to vector<2x128xf32>
    %17 = vector.shape_cast %16 : vector<2x128xf32> to vector<2x1x128xf32>
    %cst_11 = arith.constant 6.400000e+01 : f32
    %18 = vector.broadcast %cst_11 : f32 to vector<2x1x128xf32>
    %19 = arith.divf %17, %18 : vector<2x1x128xf32>
    %20 = vector.broadcast %19 : vector<2x1x128xf32> to vector<2x64x128xf32>
    %21 = arith.subf %15, %20 : vector<2x64x128xf32>
    %22 = arith.mulf %21, %21 : vector<2x64x128xf32>
    %cst_12 = arith.constant dense<0.000000e+00> : vector<2x128xf32>
    %23 = vector.multi_reduction <add>, %22, %cst_12 [1] : vector<2x64x128xf32> to vector<2x128xf32>
    %24 = vector.shape_cast %23 : vector<2x128xf32> to vector<2x1x128xf32>
    %cst_13 = arith.constant 6.400000e+01 : f32
    %25 = vector.broadcast %cst_13 : f32 to vector<2x1x128xf32>
    %26 = arith.divf %24, %25 : vector<2x1x128xf32>
    %cst_14 = arith.constant 9.99999974E-6 : f32
    %27 = vector.broadcast %cst_14 : f32 to vector<2x1x128xf32>
    %28 = arith.addf %26, %27 : vector<2x1x128xf32>
    %29 = math.rsqrt %28 : vector<2x1x128xf32>
    %30 = vector.broadcast %29 : vector<2x1x128xf32> to vector<2x64x128xf32>
    %31 = arith.mulf %21, %30 : vector<2x64x128xf32>
    %cst_15 = arith.constant 5.000000e-01 : f32
    %32 = vector.broadcast %cst_15 : f32 to vector<2x64x128xf32>
    %33 = arith.mulf %32, %31 : vector<2x64x128xf32>
    %34 = math.tanh %33 : vector<2x64x128xf32>
    %cst_16 = arith.constant 5.000000e-01 : f32
    %35 = vector.broadcast %cst_16 : f32 to vector<2x64x128xf32>
    %36 = arith.mulf %35, %34 : vector<2x64x128xf32>
    %cst_17 = arith.constant 5.000000e-01 : f32
    %37 = vector.broadcast %cst_17 : f32 to vector<2x64x128xf32>
    %38 = arith.addf %36, %37 : vector<2x64x128xf32>
    %39 = arith.mulf %13, %38 : vector<2x64x128xf32>
    %cst_18 = arith.constant 0.000000e+00 : f32
    %40 = vector.broadcast %cst_18 : f32 to vector<2x64x128xf32>
    %41 = arith.maximumf %39, %40 : vector<2x64x128xf32>
    %c0_19 = arith.constant 0 : index
    %c0_20 = arith.constant 0 : index
    %c0_21 = arith.constant 0 : index
    %42 = vector.load %arg5[%c0_19, %c0_20, %c0_21] : memref<2x64x128xf32, #tpu.memory_space<vmem>>, vector<2x64x128xf32>
    tpu.vector_store %arg5[%c0_19, %c0_20, %c0_21], %41 {strides = array<i32>} : memref<2x64x128xf32, #tpu.memory_space<vmem>>, vector<2x64x128xf32>,
    return
  }
  func.func @transform_0(%arg0: i32) -> (i32, i32) {
    %c0_i32 = arith.constant 0 : i32
    %c0_i32_0 = arith.constant 0 : i32
    %c0_i32_1 = arith.constant 0 : i32
    return %c0_i32, %c0_i32_0 : i32, i32
  }
  func.func @transform_1(%arg0: i32) -> (i32, i32, i32) {
    %c0_i32 = arith.constant 0 : i32
    %c0_i32_0 = arith.constant 0 : i32
    %c0_i32_1 = arith.constant 0 : i32
    return %arg0, %c0_i32, %c0_i32_0 : i32, i32, i32
  }
  func.func @transform_2(%arg0: i32) -> (i32, i32, i32) {
    %c0_i32 = arith.constant 0 : i32
    %c0_i32_0 = arith.constant 0 : i32
    %c0_i32_1 = arith.constant 0 : i32
    return %arg0, %c0_i32, %c0_i32_0 : i32, i32, i32
  }
  func.func @transform_3(%arg0: i32) -> (i32, i32, i32) {
    %c0_i32 = arith.constant 0 : i32
    %c0_i32_0 = arith.constant 0 : i32
    %c0_i32_1 = arith.constant 0 : i32
    return %arg0, %c0_i32, %c0_i32_0 : i32, i32, i32
  }
  func.func @transform_4(%arg0: i32) -> (i32, i32, i32) {
    %c0_i32 = arith.constant 0 : i32
    %c0_i32_0 = arith.constant 0 : i32
    %c0_i32_1 = arith.constant 0 : i32
    return %c0_i32, %c0_i32_0, %arg0 : i32, i32, i32
  }
}

</mosaic_0001>

<bundles_post_ra>
// kernel: attention_sigmoid_pallas.1
= control target key start
LH: loop header
LB: loop body
LE: loop exit
PB: predicated region body
PF: predicated region fallthrough
CT: control target
= control target key end

     0   :  { %9 = vsyncpa [#allocation3], 0  ;;  %s13554_s0 = inlined_call_operand.vmem [shape: f32[128,4608], index: 0, kind: input, shape index: {}]   ;;  %s13555_s1 = inlined_call_operand.vmem [shape: f32[4,4608,256], index: 1, kind: input, shape index: {}]   ;;  %s13556_s2 = inlined_call_operand.vmem [shape: f32[4,1,256], index: 2, kind: input, shape index: {}]   ;;  %s13557_s3 = inlined_call_operand.vmem [shape: f32[4,1,256], index: 3, kind: input, shape index: {}]   ;;  %s13558_s4 = inlined_call_operand.hbm [shape: f32[2,64,512], index: 4, kind: output, shape index: {}]  }
   0x1   :  { %11 = vsyncpa [#allocation3 + $0x1], 0  ;;  %s7823_s15 = smov 0   ;;  %s7825_s16 = smov 0  }
   0x2   :  { %s7827_s17 = smov 0   ;;  %s7829_s18 = smov 0  }
   0x3 LB: > { %s7844_s19 = sadd.s32 4294967295, %s7792_s18   ;;  %s7060_s20 = sadd.s32 4294967294, %s7792_s18   ;;  %s7792_s18 = sphi %s7829_s18, %s13564_s18   ;;  %s7788_s17 = sphi %s7827_s17, %s13563_s17   ;;  %s7784_s16 = sphi %s7825_s16, %s13562_s16   ;;  %s7780_s15 = sphi %s7823_s15, %s13561_s15  }
   0x4   : > { %s7848_s21 = sadd.s32 1, %s7792_s18   ;;  %s123_s22 = sadd.s32 1, %s7788_s17 }
   0x5   : > { %s120_s23 = ssub.s32 %s7792_s18, %s7848_s21  ;;  %p133_p0 = scmp.ne.s32.totalorder %s7788_s17, %s7784_s16 }
   0x6   : > { %p121_p1 = scmp.eq.s32.totalorder %s120_s23, 0  ;;  %p134_p2 = scmp.eq.s32.totalorder %s7844_s19, 3 }
   0x7   : > { %p139_p3 = scmp.ne.s32.totalorder %s7784_s16, %s7780_s15  ;;  %p140_p4 = scmp.eq.s32.totalorder %s7060_s20, 3 }
   0x8   : > { %s7859_s24 = scalar_select %p121_p1, %s7788_s17, %s123_s22  }
   0x9   : > { %p7861_p5 = por %p134_p2, %p133_p0  ;;  %p7865_p6 = por %p140_p4, %p139_p3 }
   0xa   : > { %p7063_p7 = scmp.ge.s32.totalorder %s7792_s18, 1  ;;  %p183_p8 = scmp.lt.s32.totalorder %s7792_s18, 5 }
   0xc   : > { %p184_p9 = pnand %p7063_p7, %p183_p8 }
   0xd   : > { %p217_p10 = scmp.lt.s32.totalorder (!%p184_p9), %s7844_s19, 3  ;;  %s7069_s13 = sshll.u32 (!%p184_p9), %s7844_s19, 3 }
   0xe   : > { %187 = sbr.rel (%p184_p9) target bundleno = 2602 (0xa2a), region = 36  ;;  %s6970_s20 = scalar_lea.hbm (!%p184_p9), %s13558_s4, %s7069_s13 }
   0xf   : > { %s6973_s23 = sshll.u32 (!%p184_p9), %s6970_s20, 4  ;;  %s6974_s23 = int_to_ptr.hbm [resolvable:$true] %s6973_s23 }
  0x10   : > { %s7744_s29 = sshra.s32 (!%p184_p9), %s6974_s23, 4  ;;  %s7745_s29 = int_to_ptr.hbm [resolvable:$true] %s7744_s29 }
  0x11   : > { %p7751_p0 = scmp.lt.s32.totalorder (!%p184_p9), %s7745_s29, %s13558_s4 }
  0x13   : > { %s7873_s27 = scalar_select %p217_p10, %s7844_s19, 3  ;;  %v1382_v62 = vld [vmem:[%s13554_s0] sm:$0xff]  ;;  %v1384_v63 = vld [vmem:[%s13554_s0 + $0x10] sm:$0xff] }
  0x15   : > { %s7072_s28 = smul.u32 9216, %s7873_s27  ;;  %s7066_s30 = sshll.u32 %s7873_s27, 1 }
  0x16   : > { %s225_s8 = scalar_lea.vmem %s13556_s2, %s7066_s30  ;;  %s229_s10 = scalar_lea.vmem %s13557_s3, %s7066_s30 }
  0x17   : > { %s7879_s5 = scalar_lea.vmem %s13555_s1, %s7072_s28  ;;  %s214_s27 = sand.u32 1, %s7784_s16  }
  0x18   : > { %v260_v0 = vld [vmem:[%s7879_s5 + $0xf0] sm:$0xff]  ;;  %v258_v2 = vld [vmem:[%s7879_s5 + $0xe0] sm:$0xff]  ;;  %s7064_s11 = sshll.u32 %s214_s27, 7  ;;  %s6960_s28 = scalar_lea.sflag [#allocation3], %s214_s27 }
  0x19   : > { %v324_v1 = vld [vmem:[%s7879_s5 + $0x2f0] sm:$0xff]  ;;  %1958 = vmatpush.msra.mxu0 %v260_v0  ;;  %v322_v4 = vld [vmem:[%s7879_s5 + $0x2e0] sm:$0xff]  ;;  %s13467_s12 = scalar_lea.vmem [#allocation2], %s7064_s11  ;;  %s7746_s30 = scalar_lea.hbm %s7745_s29, 128 }
  0x1a   : > { %2088 = vmatpush.msra.mxu2 %v324_v1  ;;  %v292_v3 = vld [vmem:[%s7879_s5 + $0x1f0] sm:$0xff]  ;;  %v290_v7 = vld [vmem:[%s7879_s5 + $0x1e0] sm:$0xff]  ;;  %s6971_s22 = sshll.u32 %s13467_s12, 4  ;;  %p7747_p11 = scmp.ne.s32.totalorder %s7745_s29, %s7746_s30  ;;  %s6972_s22 = int_to_ptr.vmem [resolvable:$true] %s6971_s22 }
  0x1b   : > { %v356_v5 = vld [vmem:[%s7879_s5 + $0x3f0] sm:$0xff]  ;;  %2023 = vmatpush.msra.mxu1 %v292_v3  ;;  %1959 = vmatpush.msra.mxu0 %v258_v2  ;;  %v354_v9 = vld [vmem:[%s7879_s5 + $0x3e0] sm:$0xff]  ;;  %v1383_v3 = vld [vmem:[%s13554_s0 + $0x8] sm:$0xff] }
  0x1c   : > { %2153 = vmatpush.msra.mxu3 %v356_v5  ;;  %v256_v6 = vld [vmem:[%s7879_s5 + $0xd0] sm:$0xff]  ;;  %2089 = vmatpush.msra.mxu2 %v322_v4  ;;  %v254_v11 = vld [vmem:[%s7879_s5 + $0xc0] sm:$0xff]  ;;  %v1385_v4 = vld [vmem:[%s13554_s0 + $0x18] sm:$0xff]  ;;  %p7748_p12 = pnand %p7747_p11, %p7861_p5 }
  0x1d   : > { %v320_v8 = vld [vmem:[%s7879_s5 + $0x2d0] sm:$0xff]  ;;  %2024 = vmatpush.msra.mxu1 %v290_v7  ;;  %v318_v12 = vld [vmem:[%s7879_s5 + $0x2c0] sm:$0xff]  ;;  %1960 = vmatpush.msra.mxu0 %v256_v6 }
  0x1e   : > { %v288_v10 = vld [vmem:[%s7879_s5 + $0x1d0] sm:$0xff]  ;;  %2154 = vmatpush.msra.mxu3 %v354_v9  ;;  %2090 = vmatpush.msra.mxu2 %v320_v8  ;;  %v286_v14 = vld [vmem:[%s7879_s5 + $0x1c0] sm:$0xff]  ;;  %p7749_p13 = pneg %p7748_p12 }
  0x1f   : > { %v352_v13 = vld [vmem:[%s7879_s5 + $0x3d0] sm:$0xff]  ;;  %v350_v15 = vld [vmem:[%s7879_s5 + $0x3c0] sm:$0xff]  ;;  %2025 = vmatpush.msra.mxu1 %v288_v10  ;;  %1961 = vmatpush.msra.mxu0 %v254_v11 }
  0x20   : > { %2155 = vmatpush.msra.mxu3 %v352_v13  ;;  %v252_v16 = vld [vmem:[%s7879_s5 + $0xb0] sm:$0xff]  ;;  %2091 = vmatpush.msra.mxu2 %v318_v12  ;;  %v250_v20 = vld [vmem:[%s7879_s5 + $0xa0] sm:$0xff] }
  0x21   : > { %v316_v17 = vld [vmem:[%s7879_s5 + $0x2b0] sm:$0xff]  ;;  %2026 = vmatpush.msra.mxu1 %v286_v14  ;;  %v314_v21 = vld [vmem:[%s7879_s5 + $0x2a0] sm:$0xff]  ;;  %1962 = vmatpush.msra.mxu0 %v252_v16 }
  0x22   : > { %v284_v18 = vld [vmem:[%s7879_s5 + $0x1b0] sm:$0xff]  ;;  %2156 = vmatpush.msra.mxu3 %v350_v15  ;;  %2092 = vmatpush.msra.mxu2 %v316_v17  ;;  %v282_v22 = vld [vmem:[%s7879_s5 + $0x1a0] sm:$0xff] }
  0x23   : > { %v348_v19 = vld [vmem:[%s7879_s5 + $0x3b0] sm:$0xff]  ;;  %v346_v23 = vld [vmem:[%s7879_s5 + $0x3a0] sm:$0xff]  ;;  %2027 = vmatpush.msra.mxu1 %v284_v18  ;;  %1963 = vmatpush.msra.mxu0 %v250_v20  ;;  %v1419_v18 = vld [vmem:[%s13554_s0 + $0x128] sm:$0xff] }
  0x24   : > { %2157 = vmatpush.msra.mxu3 %v348_v19  ;;  %v248_v24 = vld [vmem:[%s7879_s5 + $0x90] sm:$0xff]  ;;  %2093 = vmatpush.msra.mxu2 %v314_v21  ;;  %v246_v28 = vld [vmem:[%s7879_s5 + $0x80] sm:$0xff]  ;;  %v1421_v20 = vld [vmem:[%s13554_s0 + $0x138] sm:$0xff] }
  0x25   : > { %v312_v25 = vld [vmem:[%s7879_s5 + $0x290] sm:$0xff]  ;;  %2028 = vmatpush.msra.mxu1 %v282_v22  ;;  %v310_v29 = vld [vmem:[%s7879_s5 + $0x280] sm:$0xff]  ;;  %1964 = vmatpush.msra.mxu0 %v248_v24 }
  0x26   : > { %v280_v26 = vld [vmem:[%s7879_s5 + $0x190] sm:$0xff]  ;;  %2158 = vmatpush.msra.mxu3 %v346_v23  ;;  %2094 = vmatpush.msra.mxu2 %v312_v25  ;;  %v278_v30 = vld [vmem:[%s7879_s5 + $0x180] sm:$0xff] }
  0x27   : > { %v344_v27 = vld [vmem:[%s7879_s5 + $0x390] sm:$0xff]  ;;  %v342_v31 = vld [vmem:[%s7879_s5 + $0x380] sm:$0xff]  ;;  %2029 = vmatpush.msra.mxu1 %v280_v26  ;;  %1965 = vmatpush.msra.mxu0 %v246_v28 }
  0x28   : > { %2159 = vmatpush.msra.mxu3 %v344_v27  ;;  %v244_v32 = vld [vmem:[%s7879_s5 + $0x70] sm:$0xff]  ;;  %2095 = vmatpush.msra.mxu2 %v310_v29  ;;  %v242_v36 = vld [vmem:[%s7879_s5 + $0x60] sm:$0xff] }
  0x29   : > { %v308_v33 = vld [vmem:[%s7879_s5 + $0x270] sm:$0xff]  ;;  %2030 = vmatpush.msra.mxu1 %v278_v30  ;;  %v306_v37 = vld [vmem:[%s7879_s5 + $0x260] sm:$0xff]  ;;  %1966 = vmatpush.msra.mxu0 %v244_v32 }
  0x2a   : > { %v276_v34 = vld [vmem:[%s7879_s5 + $0x170] sm:$0xff]  ;;  %2160 = vmatpush.msra.mxu3 %v342_v31  ;;  %2096 = vmatpush.msra.mxu2 %v308_v33  ;;  %v274_v38 = vld [vmem:[%s7879_s5 + $0x160] sm:$0xff] }
  0x2b   : > { %v340_v35 = vld [vmem:[%s7879_s5 + $0x370] sm:$0xff]  ;;  %v338_v39 = vld [vmem:[%s7879_s5 + $0x360] sm:$0xff]  ;;  %2031 = vmatpush.msra.mxu1 %v276_v34  ;;  %1967 = vmatpush.msra.mxu0 %v242_v36  ;;  %v1455_v34 = vld [vmem:[%s13554_s0 + $0x248] sm:$0xff] }
  0x2c   : > { %2161 = vmatpush.msra.mxu3 %v340_v35  ;;  %v240_v40 = vld [vmem:[%s7879_s5 + $0x50] sm:$0xff]  ;;  %2097 = vmatpush.msra.mxu2 %v306_v37  ;;  %v238_v44 = vld [vmem:[%s7879_s5 + $0x40] sm:$0xff]  ;;  %v1457_v35 = vld [vmem:[%s13554_s0 + $0x258] sm:$0xff] }
  0x2d   : > { %v304_v41 = vld [vmem:[%s7879_s5 + $0x250] sm:$0xff]  ;;  %2032 = vmatpush.msra.mxu1 %v274_v38  ;;  %v302_v45 = vld [vmem:[%s7879_s5 + $0x240] sm:$0xff]  ;;  %1968 = vmatpush.msra.mxu0 %v240_v40 }
  0x2e   : > { %v272_v42 = vld [vmem:[%s7879_s5 + $0x150] sm:$0xff]  ;;  %2162 = vmatpush.msra.mxu3 %v338_v39  ;;  %2098 = vmatpush.msra.mxu2 %v304_v41  ;;  %v270_v46 = vld [vmem:[%s7879_s5 + $0x140] sm:$0xff] }
  0x2f   : > { %v336_v43 = vld [vmem:[%s7879_s5 + $0x350] sm:$0xff]  ;;  %v334_v47 = vld [vmem:[%s7879_s5 + $0x340] sm:$0xff]  ;;  %2033 = vmatpush.msra.mxu1 %v272_v42  ;;  %1969 = vmatpush.msra.mxu0 %v238_v44  ;;  %v1491_v42 = vld [vmem:[%s13554_s0 + $0x368] sm:$0xff] }
  0x30   : > { %2163 = vmatpush.msra.mxu3 %v336_v43  ;;  %v236_v48 = vld [vmem:[%s7879_s5 + $0x30] sm:$0xff]  ;;  %2099 = vmatpush.msra.mxu2 %v302_v45  ;;  %v234_v52 = vld [vmem:[%s7879_s5 + $0x20] sm:$0xff]  ;;  %v1493_v43 = vld [vmem:[%s13554_s0 + $0x378] sm:$0xff] }
  0x31   : > { %v300_v49 = vld [vmem:[%s7879_s5 + $0x230] sm:$0xff]  ;;  %2034 = vmatpush.msra.mxu1 %v270_v46  ;;  %v298_v53 = vld [vmem:[%s7879_s5 + $0x220] sm:$0xff]  ;;  %1970 = vmatpush.msra.mxu0 %v236_v48 }
  0x32   : > { %v268_v50 = vld [vmem:[%s7879_s5 + $0x130] sm:$0xff]  ;;  %2164 = vmatpush.msra.mxu3 %v334_v47  ;;  %2100 = vmatpush.msra.mxu2 %v300_v49  ;;  %v266_v54 = vld [vmem:[%s7879_s5 + $0x120] sm:$0xff] }
  0x33   : > { %v332_v51 = vld [vmem:[%s7879_s5 + $0x330] sm:$0xff]  ;;  %v330_v55 = vld [vmem:[%s7879_s5 + $0x320] sm:$0xff]  ;;  %2035 = vmatpush.msra.mxu1 %v268_v50  ;;  %1971 = vmatpush.msra.mxu0 %v234_v52  ;;  %v1527_v50 = vld [vmem:[%s13554_s0 + $0x488] sm:$0xff] }
  0x34   : > { %2165 = vmatpush.msra.mxu3 %v332_v51  ;;  %v232_v56 = vld [vmem:[%s7879_s5 + $0x10] sm:$0xff]  ;;  %2101 = vmatpush.msra.mxu2 %v298_v53  ;;  %v230_v60 = vld [vmem:[%s7879_s5] sm:$0xff]  ;;  %v1529_v51 = vld [vmem:[%s13554_s0 + $0x498] sm:$0xff] }
  0x35   : > { %v296_v57 = vld [vmem:[%s7879_s5 + $0x210] sm:$0xff]  ;;  %2036 = vmatpush.msra.mxu1 %v266_v54  ;;  %v294_v61 = vld [vmem:[%s7879_s5 + $0x200] sm:$0xff]  ;;  %1972 = vmatpush.msra.mxu0 %v232_v56 }
  0x36   : > { %v264_v58 = vld [vmem:[%s7879_s5 + $0x110] sm:$0xff]  ;;  %2166 = vmatpush.msra.mxu3 %v330_v55  ;;  %2102 = vmatpush.msra.mxu2 %v296_v57  ;;  %v262_v1 = vld [vmem:[%s7879_s5 + $0x100] sm:$0xff] }
  0x37   : > { %v328_v59 = vld [vmem:[%s7879_s5 + $0x310] sm:$0xff]  ;;  %2037 = vmatpush.msra.mxu1 %v264_v58  ;;  %1973 = vmatpush.msra.mxu0 %v230_v60  ;;  %v326_v2 = vld [vmem:[%s7879_s5 + $0x300] sm:$0xff]  ;;  %v1563_v58 = vld [vmem:[%s13554_s0 + $0x5a8] sm:$0xff] }
  0x38   : > { %2167 = vmatpush.msra.mxu3 %v328_v59  ;;  %v452_v0 = vld [vmem:[%s7879_s5 + $0x6f0] sm:$0xff]  ;;  %2103 = vmatpush.msra.mxu2 %v294_v61  ;;  %v450_v8 = vld [vmem:[%s7879_s5 + $0x6e0] sm:$0xff]  ;;  %v1565_v59 = vld [vmem:[%s13554_s0 + $0x5b8] sm:$0xff] }
  0x39   : > { %1974 = vmatmul.f32.vlgmr.msra.gmra.mxu0 %v1382_v62  ;;  %2104 = vmatmul.f32.vlgmr.msra.gmra.mxu2 %v1384_v63  ;;  %v388_v5 = vld [vmem:[%s7879_s5 + $0x4f0] sm:$0xff]  ;;  %v386_v9 = vld [vmem:[%s7879_s5 + $0x4e0] sm:$0xff] }
  0x3a   : > { %2348 = vmatpush.msrb.mxu2 %v452_v0  ;;  %2038 = vmatpush.msra.mxu1 %v262_v1  ;;  %v484_v6 = vld [vmem:[%s7879_s5 + $0x7f0] sm:$0xff]  ;;  %v482_v10 = vld [vmem:[%s7879_s5 + $0x7e0] sm:$0xff] }
  0x3b   : > { %v420_v7 = vld [vmem:[%s7879_s5 + $0x5f0] sm:$0xff]  ;;  %2168 = vmatpush.msra.mxu3 %v326_v2  ;;  %2039 = vmatmul.f32.vlgmr.msra.gmra.mxu1 %v1383_v3  ;;  %v418_v11 = vld [vmem:[%s7879_s5 + $0x5e0] sm:$0xff]  ;;  %v1599_v2 = vld [vmem:[%s13554_s0 + $0x6c8] sm:$0xff] }
  0x3c   : > { %2169 = vmatmul.f32.vlgmr.msra.gmra.mxu3 %v1385_v4  ;;  %2218 = vmatpush.msrb.mxu0 %v388_v5  ;;  %v448_v12 = vld [vmem:[%s7879_s5 + $0x6d0] sm:$0xff]  ;;  %v1418_v14 = vld [vmem:[%s13554_s0 + $0x120] sm:$0xff]  ;;  %v1601_v3 = vld [vmem:[%s13554_s0 + $0x6d8] sm:$0xff] }
  0x3d   : > { %2413 = vmatpush.msrb.mxu3 %v484_v6  ;;  %2283 = vmatpush.msrb.mxu1 %v420_v7  ;;  %v384_v13 = vld [vmem:[%s7879_s5 + $0x4d0] sm:$0xff]  ;;  %v446_v19 = vld [vmem:[%s7879_s5 + $0x6c0] sm:$0xff] }
  0x3e   : > { %v1420_v15 = vld [vmem:[%s13554_s0 + $0x130] sm:$0xff]  ;;  %2349 = vmatpush.msrb.mxu2 %v450_v8  ;;  %2219 = vmatpush.msrb.mxu0 %v386_v9  ;;  %v382_v21 = vld [vmem:[%s7879_s5 + $0x4c0] sm:$0xff] }
  0x3f   : > { %2414 = vmatpush.msrb.mxu3 %v482_v10  ;;  %2284 = vmatpush.msrb.mxu1 %v418_v11  ;;  %v480_v16 = vld [vmem:[%s7879_s5 + $0x7d0] sm:$0xff]  ;;  %v478_v22 = vld [vmem:[%s7879_s5 + $0x7c0] sm:$0xff]  ;;  %v1635_v10 = vld [vmem:[%s13554_s0 + $0x7e8] sm:$0xff] }
  0x40   : > { %v416_v17 = vld [vmem:[%s7879_s5 + $0x5d0] sm:$0xff]  ;;  %2350 = vmatpush.msrb.mxu2 %v448_v12  ;;  %2220 = vmatpush.msrb.mxu0 %v384_v13  ;;  %v414_v23 = vld [vmem:[%s7879_s5 + $0x5c0] sm:$0xff]  ;;  %v1637_v11 = vld [vmem:[%s13554_s0 + $0x7f8] sm:$0xff] }
  0x41   : > { %1977 = vmatmul.f32.gmra.mxu0 %v1418_v14  ;;  %2107 = vmatmul.f32.gmra.mxu2 %v1420_v15  ;;  %v444_v24 = vld [vmem:[%s7879_s5 + $0x6b0] sm:$0xff]  ;;  %v442_v28 = vld [vmem:[%s7879_s5 + $0x6a0] sm:$0xff] }
  0x42   : > { %2415 = vmatpush.msrb.mxu3 %v480_v16  ;;  %2285 = vmatpush.msrb.mxu1 %v416_v17  ;;  %v380_v25 = vld [vmem:[%s7879_s5 + $0x4b0] sm:$0xff]  ;;  %v378_v29 = vld [vmem:[%s7879_s5 + $0x4a0] sm:$0xff] }
  0x43   : > { %2042 = vmatmul.f32.gmra.mxu1 %v1419_v18  ;;  %2351 = vmatpush.msrb.mxu2 %v446_v19  ;;  %v476_v26 = vld [vmem:[%s7879_s5 + $0x7b0] sm:$0xff]  ;;  %v1454_v30 = vld [vmem:[%s13554_s0 + $0x240] sm:$0xff]  ;;  %v1671_v18 = vld [vmem:[%s13554_s0 + $0x908] sm:$0xff] }
  0x44   : > { %2172 = vmatmul.f32.gmra.mxu3 %v1421_v20  ;;  %2221 = vmatpush.msrb.mxu0 %v382_v21  ;;  %v412_v27 = vld [vmem:[%s7879_s5 + $0x5b0] sm:$0xff]  ;;  %v474_v32 = vld [vmem:[%s7879_s5 + $0x7a0] sm:$0xff]  ;;  %v1673_v19 = vld [vmem:[%s13554_s0 + $0x918] sm:$0xff] }
  0x45   : > { %2416 = vmatpush.msrb.mxu3 %v478_v22  ;;  %2286 = vmatpush.msrb.mxu1 %v414_v23  ;;  %v1456_v31 = vld [vmem:[%s13554_s0 + $0x250] sm:$0xff]  ;;  %v410_v33 = vld [vmem:[%s7879_s5 + $0x5a0] sm:$0xff] }
  0x46   : > { %2352 = vmatpush.msrb.mxu2 %v444_v24  ;;  %2222 = vmatpush.msrb.mxu0 %v380_v25  ;;  %v440_v36 = vld [vmem:[%s7879_s5 + $0x690] sm:$0xff]  ;;  %v1490_v40 = vld [vmem:[%s13554_s0 + $0x360] sm:$0xff] }
  0x47   : > { %2417 = vmatpush.msrb.mxu3 %v476_v26  ;;  %2287 = vmatpush.msrb.mxu1 %v412_v27  ;;  %v376_v37 = vld [vmem:[%s7879_s5 + $0x490] sm:$0xff]  ;;  %v438_v44 = vld [vmem:[%s7879_s5 + $0x680] sm:$0xff]  ;;  %v1707_v26 = vld [vmem:[%s13554_s0 + $0xa28] sm:$0xff] }
  0x48   : > { %2353 = vmatpush.msrb.mxu2 %v442_v28  ;;  %2223 = vmatpush.msrb.mxu0 %v378_v29  ;;  %v472_v38 = vld [vmem:[%s7879_s5 + $0x790] sm:$0xff]  ;;  %v374_v45 = vld [vmem:[%s7879_s5 + $0x480] sm:$0xff]  ;;  %v1709_v27 = vld [vmem:[%s13554_s0 + $0xa38] sm:$0xff] }
  0x49   : > { %1980 = vmatmul.f32.gmra.mxu0 %v1454_v30  ;;  %2110 = vmatmul.f32.gmra.mxu2 %v1456_v31  ;;  %v408_v39 = vld [vmem:[%s7879_s5 + $0x590] sm:$0xff]  ;;  %v470_v46 = vld [vmem:[%s7879_s5 + $0x780] sm:$0xff] }
  0x4a   : > { %2418 = vmatpush.msrb.mxu3 %v474_v32  ;;  %2288 = vmatpush.msrb.mxu1 %v410_v33  ;;  %v1492_v41 = vld [vmem:[%s13554_s0 + $0x370] sm:$0xff]  ;;  %v406_v47 = vld [vmem:[%s7879_s5 + $0x580] sm:$0xff] }
  0x4b   : > { %2045 = vmatmul.f32.gmra.mxu1 %v1455_v34  ;;  %2354 = vmatpush.msrb.mxu2 %v440_v36  ;;  %v1526_v48 = vld [vmem:[%s13554_s0 + $0x480] sm:$0xff]  ;;  %v1528_v49 = vld [vmem:[%s13554_s0 + $0x490] sm:$0xff]  ;;  %v1743_v34 = vld [vmem:[%s13554_s0 + $0xb48] sm:$0xff] }
  0x4c   : > { %2175 = vmatmul.f32.gmra.mxu3 %v1457_v35  ;;  %2224 = vmatpush.msrb.mxu0 %v376_v37  ;;  %v436_v52 = vld [vmem:[%s7879_s5 + $0x670] sm:$0xff]  ;;  %v1562_v56 = vld [vmem:[%s13554_s0 + $0x5a0] sm:$0xff]  ;;  %v1745_v35 = vld [vmem:[%s13554_s0 + $0xb58] sm:$0xff] }
  0x4d   : > { %2419 = vmatpush.msrb.mxu3 %v472_v38  ;;  %2289 = vmatpush.msrb.mxu1 %v408_v39  ;;  %v372_v53 = vld [vmem:[%s7879_s5 + $0x470] sm:$0xff]  ;;  %v434_v60 = vld [vmem:[%s7879_s5 + $0x660] sm:$0xff] }
  0x4e   : > { %2355 = vmatpush.msrb.mxu2 %v438_v44  ;;  %2225 = vmatpush.msrb.mxu0 %v374_v45  ;;  %v468_v54 = vld [vmem:[%s7879_s5 + $0x770] sm:$0xff]  ;;  %v370_v61 = vld [vmem:[%s7879_s5 + $0x460] sm:$0xff] }
  0x4f   : > { %2420 = vmatpush.msrb.mxu3 %v470_v46  ;;  %2290 = vmatpush.msrb.mxu1 %v406_v47  ;;  %v404_v55 = vld [vmem:[%s7879_s5 + $0x570] sm:$0xff]  ;;  %v466_v62 = vld [vmem:[%s7879_s5 + $0x760] sm:$0xff] }
  0x50   : > { %2356 = vmatpush.msrb.mxu2 %v436_v52  ;;  %2226 = vmatpush.msrb.mxu0 %v372_v53  ;;  %v1564_v57 = vld [vmem:[%s13554_s0 + $0x5b0] sm:$0xff]  ;;  %v402_v63 = vld [vmem:[%s7879_s5 + $0x560] sm:$0xff] }
  0x51   : > { %1983 = vmatmul.f32.gmra.mxu0 %v1490_v40  ;;  %2113 = vmatmul.f32.gmra.mxu2 %v1492_v41  ;;  %v1598_v0 = vld [vmem:[%s13554_s0 + $0x6c0] sm:$0xff]  ;;  %v1600_v1 = vld [vmem:[%s13554_s0 + $0x6d0] sm:$0xff] }
  0x52   : > { %2421 = vmatpush.msrb.mxu3 %v468_v54  ;;  %2291 = vmatpush.msrb.mxu1 %v404_v55  ;;  %v432_v4 = vld [vmem:[%s7879_s5 + $0x650] sm:$0xff]  ;;  %v1634_v8 = vld [vmem:[%s13554_s0 + $0x7e0] sm:$0xff] }
  0x53   : > { %2048 = vmatmul.f32.gmra.mxu1 %v1491_v42  ;;  %2357 = vmatpush.msrb.mxu2 %v434_v60  ;;  %v368_v5 = vld [vmem:[%s7879_s5 + $0x450] sm:$0xff]  ;;  %v430_v12 = vld [vmem:[%s7879_s5 + $0x640] sm:$0xff]  ;;  %v1779_v42 = vld [vmem:[%s13554_s0 + $0xc68] sm:$0xff] }
  0x54   : > { %2178 = vmatmul.f32.gmra.mxu3 %v1493_v43  ;;  %2227 = vmatpush.msrb.mxu0 %v370_v61  ;;  %v464_v6 = vld [vmem:[%s7879_s5 + $0x750] sm:$0xff]  ;;  %v366_v13 = vld [vmem:[%s7879_s5 + $0x440] sm:$0xff]  ;;  %v1781_v43 = vld [vmem:[%s13554_s0 + $0xc78] sm:$0xff] }
  0x55   : > { %2422 = vmatpush.msrb.mxu3 %v466_v62  ;;  %2292 = vmatpush.msrb.mxu1 %v402_v63  ;;  %v400_v7 = vld [vmem:[%s7879_s5 + $0x550] sm:$0xff]  ;;  %v462_v14 = vld [vmem:[%s7879_s5 + $0x740] sm:$0xff] }
  0x56   : > { %2358 = vmatpush.msrb.mxu2 %v432_v4  ;;  %2228 = vmatpush.msrb.mxu0 %v368_v5  ;;  %v1636_v9 = vld [vmem:[%s13554_s0 + $0x7f0] sm:$0xff]  ;;  %v398_v15 = vld [vmem:[%s7879_s5 + $0x540] sm:$0xff] }
  0x57   : > { %2423 = vmatpush.msrb.mxu3 %v464_v6  ;;  %2293 = vmatpush.msrb.mxu1 %v400_v7  ;;  %v1670_v16 = vld [vmem:[%s13554_s0 + $0x900] sm:$0xff]  ;;  %v1672_v17 = vld [vmem:[%s13554_s0 + $0x910] sm:$0xff] }
  0x58   : > { %2359 = vmatpush.msrb.mxu2 %v430_v12  ;;  %2229 = vmatpush.msrb.mxu0 %v366_v13  ;;  %v428_v20 = vld [vmem:[%s7879_s5 + $0x630] sm:$0xff]  ;;  %v1706_v24 = vld [vmem:[%s13554_s0 + $0xa20] sm:$0xff] }
  0x59   : > { %1986 = vmatmul.f32.gmra.mxu0 %v1526_v48  ;;  %2116 = vmatmul.f32.gmra.mxu2 %v1528_v49  ;;  %v364_v21 = vld [vmem:[%s7879_s5 + $0x430] sm:$0xff]  ;;  %v426_v28 = vld [vmem:[%s7879_s5 + $0x620] sm:$0xff] }
  0x5a   : > { %2424 = vmatpush.msrb.mxu3 %v462_v14  ;;  %2294 = vmatpush.msrb.mxu1 %v398_v15  ;;  %v460_v22 = vld [vmem:[%s7879_s5 + $0x730] sm:$0xff]  ;;  %v362_v29 = vld [vmem:[%s7879_s5 + $0x420] sm:$0xff] }
  0x5b   : > { %2051 = vmatmul.f32.gmra.mxu1 %v1527_v50  ;;  %2360 = vmatpush.msrb.mxu2 %v428_v20  ;;  %v396_v23 = vld [vmem:[%s7879_s5 + $0x530] sm:$0xff]  ;;  %v458_v30 = vld [vmem:[%s7879_s5 + $0x720] sm:$0xff]  ;;  %v1815_v50 = vld [vmem:[%s13554_s0 + $0xd88] sm:$0xff] }
  0x5c   : > { %2181 = vmatmul.f32.gmra.mxu3 %v1529_v51  ;;  %2230 = vmatpush.msrb.mxu0 %v364_v21  ;;  %v1708_v25 = vld [vmem:[%s13554_s0 + $0xa30] sm:$0xff]  ;;  %v394_v31 = vld [vmem:[%s7879_s5 + $0x520] sm:$0xff]  ;;  %v1817_v51 = vld [vmem:[%s13554_s0 + $0xd98] sm:$0xff] }
  0x5d   : > { %2425 = vmatpush.msrb.mxu3 %v460_v22  ;;  %2295 = vmatpush.msrb.mxu1 %v396_v23  ;;  %v1742_v32 = vld [vmem:[%s13554_s0 + $0xb40] sm:$0xff]  ;;  %v1744_v33 = vld [vmem:[%s13554_s0 + $0xb50] sm:$0xff]  ;;  %v1387_v20 = vld [vmem:[%s13554_s0 + $0x28] sm:$0xff] }
  0x5e   : > { %2361 = vmatpush.msrb.mxu2 %v426_v28  ;;  %2231 = vmatpush.msrb.mxu0 %v362_v29  ;;  %v424_v36 = vld [vmem:[%s7879_s5 + $0x610] sm:$0xff]  ;;  %v1778_v40 = vld [vmem:[%s13554_s0 + $0xc60] sm:$0xff]  ;;  %v1389_v21 = vld [vmem:[%s13554_s0 + $0x38] sm:$0xff] }
  0x5f   : > { %2426 = vmatpush.msrb.mxu3 %v458_v30  ;;  %2296 = vmatpush.msrb.mxu1 %v394_v31  ;;  %v360_v37 = vld [vmem:[%s7879_s5 + $0x410] sm:$0xff]  ;;  %v422_v44 = vld [vmem:[%s7879_s5 + $0x600] sm:$0xff] }
  0x60   : > { %2362 = vmatpush.msrb.mxu2 %v424_v36  ;;  %v456_v38 = vld [vmem:[%s7879_s5 + $0x710] sm:$0xff]  ;;  %2232 = vmatpush.msrb.mxu0 %v360_v37  ;;  %v358_v45 = vld [vmem:[%s7879_s5 + $0x400] sm:$0xff]  ;;  %v1425_v36 = vld [vmem:[%s13554_s0 + $0x158] sm:$0xff] }
  0x61   : > { %1989 = vmatmul.f32.gmra.mxu0 %v1562_v56  ;;  %2119 = vmatmul.f32.gmra.mxu2 %v1564_v57  ;;  %v392_v39 = vld [vmem:[%s7879_s5 + $0x510] sm:$0xff]  ;;  %v454_v46 = vld [vmem:[%s7879_s5 + $0x700] sm:$0xff] }
  0x62   : > { %2427 = vmatpush.msrb.mxu3 %v456_v38  ;;  %v1780_v41 = vld [vmem:[%s13554_s0 + $0xc70] sm:$0xff]  ;;  %2297 = vmatpush.msrb.mxu1 %v392_v39  ;;  %v390_v47 = vld [vmem:[%s7879_s5 + $0x500] sm:$0xff] }
  0x63   : > { %2054 = vmatmul.f32.gmra.mxu1 %v1563_v58  ;;  %2363 = vmatpush.msrb.mxu2 %v422_v44  ;;  %v1814_v48 = vld [vmem:[%s13554_s0 + $0xd80] sm:$0xff]  ;;  %v1816_v49 = vld [vmem:[%s13554_s0 + $0xd90] sm:$0xff]  ;;  %v1851_v58 = vld [vmem:[%s13554_s0 + $0xea8] sm:$0xff] }
  0x64   : > { %2184 = vmatmul.f32.gmra.mxu3 %v1565_v59  ;;  %2233 = vmatpush.msrb.mxu0 %v358_v45  ;;  %v580_v52 = vld [vmem:[%s7879_s5 + $0xaf0] sm:$0xff]  ;;  %v1850_v56 = vld [vmem:[%s13554_s0 + $0xea0] sm:$0xff]  ;;  %v1853_v59 = vld [vmem:[%s13554_s0 + $0xeb8] sm:$0xff] }
  0x65   : > { %2428 = vmatpush.msrb.mxu3 %v454_v46  ;;  %2298 = vmatpush.msrb.mxu1 %v390_v47  ;;  %v516_v53 = vld [vmem:[%s7879_s5 + $0x8f0] sm:$0xff]  ;;  %v578_v60 = vld [vmem:[%s7879_s5 + $0xae0] sm:$0xff] }
  0x66   : > { %2608 = vmatpush.msra.mxu2 %v580_v52  ;;  %v612_v54 = vld [vmem:[%s7879_s5 + $0xbf0] sm:$0xff]  ;;  %2478 = vmatpush.msra.mxu0 %v516_v53  ;;  %v514_v61 = vld [vmem:[%s7879_s5 + $0x8e0] sm:$0xff] }
  0x67   : > { %2673 = vmatpush.msra.mxu3 %v612_v54  ;;  %v548_v55 = vld [vmem:[%s7879_s5 + $0x9f0] sm:$0xff]  ;;  %v610_v62 = vld [vmem:[%s7879_s5 + $0xbe0] sm:$0xff] }
  0x68   : > { %v1852_v57 = vld [vmem:[%s13554_s0 + $0xeb0] sm:$0xff]  ;;  %2543 = vmatpush.msra.mxu1 %v548_v55  ;;  %2609 = vmatpush.msra.mxu2 %v578_v60  ;;  %v546_v63 = vld [vmem:[%s7879_s5 + $0x9e0] sm:$0xff] }
  0x69   : > { %1992 = vmatmul.f32.gmra.mxu0 %v1598_v0  ;;  %2122 = vmatmul.f32.gmra.mxu2 %v1600_v1  ;;  %v1886_v0 = vld [vmem:[%s13554_s0 + $0xfc0] sm:$0xff]  ;;  %v1888_v1 = vld [vmem:[%s13554_s0 + $0xfd0] sm:$0xff] }
  0x6a   : > { %2479 = vmatpush.msra.mxu0 %v514_v61  ;;  %2674 = vmatpush.msra.mxu3 %v610_v62  ;;  %v576_v4 = vld [vmem:[%s7879_s5 + $0xad0] sm:$0xff]  ;;  %v574_v12 = vld [vmem:[%s7879_s5 + $0xac0] sm:$0xff] }
  0x6b   : > { %2057 = vmatmul.f32.gmra.mxu1 %v1599_v2  ;;  %v1887_v2 = vld [vmem:[%s13554_s0 + $0xfc8] sm:$0xff]  ;;  %2610 = vmatpush.msra.mxu2 %v576_v4  ;;  %v512_v5 = vld [vmem:[%s7879_s5 + $0x8d0] sm:$0xff]  ;;  %v510_v13 = vld [vmem:[%s7879_s5 + $0x8c0] sm:$0xff] }
  0x6c   : > { %2187 = vmatmul.f32.gmra.mxu3 %v1601_v3  ;;  %2544 = vmatpush.msra.mxu1 %v546_v63  ;;  %v1889_v3 = vld [vmem:[%s13554_s0 + $0xfd8] sm:$0xff]  ;;  %v608_v6 = vld [vmem:[%s7879_s5 + $0xbd0] sm:$0xff]  ;;  %v606_v14 = vld [vmem:[%s7879_s5 + $0xbc0] sm:$0xff] }
  0x6d   : > { %2480 = vmatpush.msra.mxu0 %v512_v5  ;;  %2675 = vmatpush.msra.mxu3 %v608_v6  ;;  %v544_v7 = vld [vmem:[%s7879_s5 + $0x9d0] sm:$0xff]  ;;  %v542_v15 = vld [vmem:[%s7879_s5 + $0x9c0] sm:$0xff] }
  0x6e   : > { %2545 = vmatpush.msra.mxu1 %v544_v7  ;;  %2611 = vmatpush.msra.mxu2 %v574_v12  ;;  %v572_v22 = vld [vmem:[%s7879_s5 + $0xab0] sm:$0xff]  ;;  %v1422_v30 = vld [vmem:[%s13554_s0 + $0x140] sm:$0xff] }
  0x6f   : > { %2481 = vmatpush.msra.mxu0 %v510_v13  ;;  %2676 = vmatpush.msra.mxu3 %v606_v14  ;;  %v540_v28 = vld [vmem:[%s7879_s5 + $0x9b0] sm:$0xff]  ;;  %v570_v37 = vld [vmem:[%s7879_s5 + $0xaa0] sm:$0xff] }
  0x70   : > { %2546 = vmatpush.msra.mxu1 %v542_v15  ;;  %2612 = vmatpush.msra.mxu2 %v572_v22  ;;  %v1424_v31 = vld [vmem:[%s13554_s0 + $0x150] sm:$0xff]  ;;  %v1458_v45 = vld [vmem:[%s13554_s0 + $0x260] sm:$0xff] }
  0x71   : > { %1995 = vmatmul.f32.gmra.mxu0 %v1634_v8  ;;  %2125 = vmatmul.f32.gmra.mxu2 %v1636_v9  ;;  %v1922_v8 = vld [vmem:[%s13554_s0 + $0x10e0] sm:$0xff]  ;;  %v1924_v9 = vld [vmem:[%s13554_s0 + $0x10f0] sm:$0xff] }
  0x72   : > { %2547 = vmatpush.msra.mxu1 %v540_v28  ;;  %2613 = vmatpush.msra.mxu2 %v570_v37  ;;  %v1460_v46 = vld [vmem:[%s13554_s0 + $0x270] sm:$0xff]  ;;  %v1494_v60 = vld [vmem:[%s13554_s0 + $0x380] sm:$0xff] }
  0x73   : > { %2060 = vmatmul.f32.gmra.mxu1 %v1635_v10  ;;  %v1923_v10 = vld [vmem:[%s13554_s0 + $0x10e8] sm:$0xff]  ;;  %v568_v52 = vld [vmem:[%s7879_s5 + $0xa90] sm:$0xff]  ;;  %v502_v6 = vld [vmem:[%s7879_s5 + $0x880] sm:$0xff] }
  0x74   : > { %2190 = vmatmul.f32.gmra.mxu3 %v1637_v11  ;;  %v1925_v11 = vld [vmem:[%s13554_s0 + $0x10f8] sm:$0xff]  ;;  %2614 = vmatpush.msra.mxu2 %v568_v52  ;;  %v504_v55 = vld [vmem:[%s7879_s5 + $0x890] sm:$0xff]  ;;  %v598_v7 = vld [vmem:[%s7879_s5 + $0xb80] sm:$0xff] }
  0x75   : > { %v1496_v61 = vld [vmem:[%s13554_s0 + $0x390] sm:$0xff]  ;;  %v498_v37 = vld [vmem:[%s7879_s5 + $0x860] sm:$0xff] }
  0x76   : > { %v1532_v12 = vld [vmem:[%s13554_s0 + $0x4b0] sm:$0xff] }
  0x77   : > { %v596_v22 = vld [vmem:[%s7879_s5 + $0xb70] sm:$0xff] }
  0x79   : > { %1998 = vmatmul.f32.gmra.mxu0 %v1670_v16  ;;  %2128 = vmatmul.f32.gmra.mxu2 %v1672_v17  ;;  %v1386_v17 = vld [vmem:[%s13554_s0 + $0x20] sm:$0xff] }
  0x7b   : > { %2063 = vmatmul.f32.gmra.mxu1 %v1671_v18  ;;  %v1388_v18 = vld [vmem:[%s13554_s0 + $0x30] sm:$0xff] }
  0x7c   : > { %2193 = vmatmul.f32.gmra.mxu3 %v1673_v19 }
  0x81   : > { %2001 = vmatmul.f32.gmra.mxu0 %v1706_v24  ;;  %2131 = vmatmul.f32.gmra.mxu2 %v1708_v25  ;;  %v508_v25 = vld [vmem:[%s7879_s5 + $0x8b0] sm:$0xff] }
  0x82   : > { %2482 = vmatpush.msra.mxu0 %v508_v25 }
  0x83   : > { %2066 = vmatmul.f32.gmra.mxu1 %v1707_v26  ;;  %v604_v26 = vld [vmem:[%s7879_s5 + $0xbb0] sm:$0xff] }
  0x84   : > { %2196 = vmatmul.f32.gmra.mxu3 %v1709_v27 }
  0x85   : > { %2677 = vmatpush.msra.mxu3 %v604_v26  ;;  %v1566_v26 = vld [vmem:[%s13554_s0 + $0x5c0] sm:$0xff] }
  0x89   : > { %2004 = vmatmul.f32.gmra.mxu0 %v1742_v32  ;;  %2134 = vmatmul.f32.gmra.mxu2 %v1744_v33 }
  0x8b   : > { %2069 = vmatmul.f32.gmra.mxu1 %v1743_v34 }
  0x8c   : > { %2199 = vmatmul.f32.gmra.mxu3 %v1745_v35  ;;  %v1423_v35 = vld [vmem:[%s13554_s0 + $0x148] sm:$0xff] }
  0x91   : > { %2007 = vmatmul.f32.gmra.mxu0 %v1778_v40  ;;  %2137 = vmatmul.f32.gmra.mxu2 %v1780_v41  ;;  %v506_v40 = vld [vmem:[%s7879_s5 + $0x8a0] sm:$0xff] }
  0x92   : > { %v602_v41 = vld [vmem:[%s7879_s5 + $0xba0] sm:$0xff]  ;;  %2483 = vmatpush.msra.mxu0 %v506_v40 }
  0x93   : > { %2072 = vmatmul.f32.gmra.mxu1 %v1779_v42  ;;  %2678 = vmatpush.msra.mxu3 %v602_v41  ;;  %v530_v40 = vld [vmem:[%s7879_s5 + $0x960] sm:$0xff] }
  0x94   : > { %2202 = vmatmul.f32.gmra.mxu3 %v1781_v43  ;;  %v538_v43 = vld [vmem:[%s7879_s5 + $0x9a0] sm:$0xff]  ;;  %2484 = vmatpush.msra.mxu0 %v504_v55 }
  0x95   : > { %2548 = vmatpush.msra.mxu1 %v538_v43  ;;  %v1604_v43 = vld [vmem:[%s13554_s0 + $0x6f0] sm:$0xff] }
  0x96   : > { %2485 = vmatpush.msra.mxu0 %v502_v6  ;;  %v590_v6 = vld [vmem:[%s7879_s5 + $0xb40] sm:$0xff] }
  0x99   : > { %2010 = vmatmul.f32.gmra.mxu0 %v1814_v48  ;;  %2140 = vmatmul.f32.gmra.mxu2 %v1816_v49 }
  0x9b   : > { %2075 = vmatmul.f32.gmra.mxu1 %v1815_v50  ;;  %v1459_v50 = vld [vmem:[%s13554_s0 + $0x268] sm:$0xff] }
  0x9c   : > { %2205 = vmatmul.f32.gmra.mxu3 %v1817_v51  ;;  %v1461_v51 = vld [vmem:[%s13554_s0 + $0x278] sm:$0xff] }
  0xa1   : > { %2013 = vmatmul.f32.gmra.mxu0 %v1850_v56  ;;  %2143 = vmatmul.f32.gmra.mxu2 %v1852_v57  ;;  %v600_v56 = vld [vmem:[%s7879_s5 + $0xb90] sm:$0xff] }
  0xa2   : > { %2679 = vmatpush.msra.mxu3 %v600_v56  ;;  %v528_v56 = vld [vmem:[%s7879_s5 + $0x950] sm:$0xff] }
  0xa3   : > { %2078 = vmatmul.f32.gmra.mxu1 %v1851_v58  ;;  %v536_v58 = vld [vmem:[%s7879_s5 + $0x990] sm:$0xff] }
  0xa4   : > { %2208 = vmatmul.f32.gmra.mxu3 %v1853_v59  ;;  %2549 = vmatpush.msra.mxu1 %v536_v58  ;;  %v1638_v58 = vld [vmem:[%s13554_s0 + $0x800] sm:$0xff] }
  0xa5   : > { %2680 = vmatpush.msra.mxu3 %v598_v7 }
  0xa7   : > { %2681 = vmatpush.msra.mxu3 %v596_v22  ;;  %v588_v22 = vld [vmem:[%s7879_s5 + $0xb30] sm:$0xff] }
  0xa9   : > { %2016 = vmatmul.f32.gmra.mxu0 %v1886_v0  ;;  %2146 = vmatmul.f32.gmra.mxu2 %v1888_v1  ;;  %v1495_v1 = vld [vmem:[%s13554_s0 + $0x388] sm:$0xff] }
  0xab   : > { %2081 = vmatmul.f32.gmra.mxu1 %v1887_v2  ;;  %v1497_v2 = vld [vmem:[%s13554_s0 + $0x398] sm:$0xff] }
  0xac   : > { %2211 = vmatmul.f32.gmra.mxu3 %v1889_v3  ;;  %v566_v3 = vld [vmem:[%s7879_s5 + $0xa80] sm:$0xff] }
  0xad   : > { %2615 = vmatpush.msra.mxu2 %v566_v3 }
  0xb1   : > { %2019 = vmatmul.f32.gmra.mxu0 %v1922_v8  ;;  %2149 = vmatmul.f32.gmra.mxu2 %v1924_v9  ;;  %v534_v9 = vld [vmem:[%s7879_s5 + $0x980] sm:$0xff] }
  0xb2   : > { %2550 = vmatpush.msra.mxu1 %v534_v9 }
  0xb3   : > { %2084 = vmatmul.f32.gmra.mxu1 %v1923_v10 }
  0xb4   : > { %2214 = vmatmul.f32.gmra.mxu3 %v1925_v11  ;;  %v1530_v11 = vld [vmem:[%s13554_s0 + $0x4a0] sm:$0xff] }
  0xb6   : > { %v1975_v16 = vpop.f32.mrf.mxu0 }
  0xb8   : > { %v2040_v19 = vpop.f32.mrf.mxu1 }
  0xb9   : > { %2234 = vmatmul.f32.vlgmr.msrb.gmra.mxu0 %v1386_v17  ;;  %2364 = vmatmul.f32.vlgmr.msrb.gmra.mxu2 %v1388_v18  ;;  %v2041_v23 = vadd.f32 %v2040_v19, %v1975_v16  ;;  %v1531_v16 = vld [vmem:[%s13554_s0 + $0x4a8] sm:$0xff]  ;;  %v1533_v17 = vld [vmem:[%s13554_s0 + $0x4b8] sm:$0xff]  ;;  %v564_v18 = vld [vmem:[%s7879_s5 + $0xa70] sm:$0xff] }
  0xba   : > { %2616 = vmatpush.msra.mxu2 %v564_v18  ;;  %v556_v18 = vld [vmem:[%s7879_s5 + $0xa30] sm:$0xff] }
  0xbb   : > { %2299 = vmatmul.f32.vlgmr.msrb.gmra.mxu1 %v1387_v20 }
  0xbc   : > { %2429 = vmatmul.f32.vlgmr.msrb.gmra.mxu3 %v1389_v21  ;;  %v2105_v24 = vpop.f32.mrf.mxu2  ;;  %v500_v21 = vld [vmem:[%s7879_s5 + $0x870] sm:$0xff] }
  0xbd   : > { %v2106_v27 = vadd.f32 %v2105_v24, %v2041_v23  ;;  %2486 = vmatpush.msra.mxu0 %v500_v21  ;;  %v532_v24 = vld [vmem:[%s7879_s5 + $0x970] sm:$0xff] }
  0xbe   : > { %v1978_v29 = vpop.f32.mrf.mxu0  ;;  %2551 = vmatpush.msra.mxu1 %v532_v24  ;;  %v492_v21 = vld [vmem:[%s7879_s5 + $0x830] sm:$0xff] }
  0xbf   : > { %v2170_v32 = vpop.f32.mrf.mxu3  ;;  %2487 = vmatpush.msra.mxu0 %v498_v37  ;;  %v524_v24 = vld [vmem:[%s7879_s5 + $0x930] sm:$0xff] }
  0xc0   : > { %v8239_v33 = vadd.f32 %v2170_v32, %v2106_v27  ;;  %v2043_v34 = vpop.f32.mrf.mxu1  ;;  %v1568_v27 = vld [vmem:[%s13554_s0 + $0x5d0] sm:$0xff]  ;;  %v1569_v32 = vld [vmem:[%s13554_s0 + $0x5d8] sm:$0xff]  ;;  %2552 = vmatpush.msra.mxu1 %v530_v40 }
  0xc1   : > { %2237 = vmatmul.f32.gmra.mxu0 %v1422_v30  ;;  %2367 = vmatmul.f32.gmra.mxu2 %v1424_v31  ;;  %v2044_v38 = vadd.f32 %v2043_v34, %v1978_v29  ;;  %v1567_v31 = vld [vmem:[%s13554_s0 + $0x5c8] sm:$0xff]  ;;  %v562_v34 = vld [vmem:[%s7879_s5 + $0xa60] sm:$0xff] }
  0xc2   : > { %2617 = vmatpush.msra.mxu2 %v562_v34  ;;  %2553 = vmatpush.msra.mxu1 %v528_v56  ;;  %v1713_v34 = vld [vmem:[%s13554_s0 + $0xa58] sm:$0xff]  ;;  %v584_v56 = vld [vmem:[%s7879_s5 + $0xb10] sm:$0xff] }
  0xc3   : > { %2302 = vmatmul.f32.gmra.mxu1 %v1423_v35 }
  0xc4   : > { %2432 = vmatmul.f32.gmra.mxu3 %v1425_v36  ;;  %v2108_v39 = vpop.f32.mrf.mxu2 }
  0xc5   : > { %v2109_v42 = vadd.f32 %v2108_v39, %v2044_v38  ;;  %v594_v38 = vld [vmem:[%s7879_s5 + $0xb60] sm:$0xff] }
  0xc6   : > { %v1981_v44 = vpop.f32.mrf.mxu0  ;;  %2682 = vmatpush.msra.mxu3 %v594_v38  ;;  %v490_v38 = vld [vmem:[%s7879_s5 + $0x820] sm:$0xff] }
  0xc7   : > { %v2173_v47 = vpop.f32.mrf.mxu3 }
  0xc8   : > { %v8257_v48 = vadd.f32 %v2173_v47, %v2109_v42  ;;  %v2046_v49 = vpop.f32.mrf.mxu1  ;;  %v1602_v42 = vld [vmem:[%s13554_s0 + $0x6e0] sm:$0xff]  ;;  %v1603_v47 = vld [vmem:[%s13554_s0 + $0x6e8] sm:$0xff] }
  0xc9   : > { %2240 = vmatmul.f32.gmra.mxu0 %v1458_v45  ;;  %2370 = vmatmul.f32.gmra.mxu2 %v1460_v46  ;;  %v2047_v53 = vadd.f32 %v2046_v49, %v1981_v44  ;;  %v1605_v49 = vld [vmem:[%s13554_s0 + $0x6f8] sm:$0xff] }
  0xcb   : > { %2305 = vmatmul.f32.gmra.mxu1 %v1459_v50  ;;  %v560_v50 = vld [vmem:[%s7879_s5 + $0xa50] sm:$0xff] }
  0xcc   : > { %2435 = vmatmul.f32.gmra.mxu3 %v1461_v51  ;;  %v2111_v54 = vpop.f32.mrf.mxu2  ;;  %2618 = vmatpush.msra.mxu2 %v560_v50  ;;  %v1747_v50 = vld [vmem:[%s13554_s0 + $0xb68] sm:$0xff] }
  0xcd   : > { %v2112_v57 = vadd.f32 %v2111_v54, %v2047_v53  ;;  %v496_v53 = vld [vmem:[%s7879_s5 + $0x850] sm:$0xff] }
  0xce   : > { %v1984_v59 = vpop.f32.mrf.mxu0  ;;  %v592_v54 = vld [vmem:[%s7879_s5 + $0xb50] sm:$0xff]  ;;  %2488 = vmatpush.msra.mxu0 %v496_v53 }
  0xcf   : > { %v2176_v62 = vpop.f32.mrf.mxu3  ;;  %2683 = vmatpush.msra.mxu3 %v592_v54 }
  0xd0   : > { %v8275_v63 = vadd.f32 %v2176_v62, %v2112_v57  ;;  %v2049_v0 = vpop.f32.mrf.mxu1 }
  0xd1   : > { %2243 = vmatmul.f32.gmra.mxu0 %v1494_v60  ;;  %2373 = vmatmul.f32.gmra.mxu2 %v1496_v61  ;;  %v2050_v4 = vadd.f32 %v2049_v0, %v1984_v59  ;;  %v1640_v59 = vld [vmem:[%s13554_s0 + $0x810] sm:$0xff]  ;;  %v1639_v0 = vld [vmem:[%s13554_s0 + $0x808] sm:$0xff] }
  0xd2   : > { %2684 = vmatpush.msra.mxu3 %v590_v6 }
  0xd3   : > { %2308 = vmatmul.f32.gmra.mxu1 %v1495_v1  ;;  %v1641_v1 = vld [vmem:[%s13554_s0 + $0x818] sm:$0xff] }
  0xd4   : > { %2438 = vmatmul.f32.gmra.mxu3 %v1497_v2  ;;  %v2114_v5 = vpop.f32.mrf.mxu2  ;;  %v558_v2 = vld [vmem:[%s7879_s5 + $0xa40] sm:$0xff] }
  0xd5   : > { %v2115_v8 = vadd.f32 %v2114_v5, %v2050_v4  ;;  %2619 = vmatpush.msra.mxu2 %v558_v2  ;;  %v494_v5 = vld [vmem:[%s7879_s5 + $0x840] sm:$0xff]  ;;  %2685 = vmatpush.msra.mxu3 %v588_v22  ;;  %v708_v22 = vld [vmem:[%s7879_s5 + $0xef0] sm:$0xff] }
  0xd6   : > { %v1987_v10 = vpop.f32.mrf.mxu0  ;;  %2489 = vmatpush.msra.mxu0 %v494_v5  ;;  %v550_v5 = vld [vmem:[%s7879_s5 + $0xa00] sm:$0xff] }
  0xd7   : > { %v2179_v13 = vpop.f32.mrf.mxu3  ;;  %2620 = vmatpush.msra.mxu2 %v556_v18 }
  0xd8   : > { %v8293_v14 = vadd.f32 %v2179_v13, %v2115_v8  ;;  %v2052_v15 = vpop.f32.mrf.mxu1  ;;  %v526_v8 = vld [vmem:[%s7879_s5 + $0x940] sm:$0xff]  ;;  %2490 = vmatpush.msra.mxu0 %v492_v21  ;;  %v1821_v21 = vld [vmem:[%s13554_s0 + $0xdb8] sm:$0xff] }
  0xd9   : > { %2246 = vmatmul.f32.gmra.mxu0 %v1530_v11  ;;  %2376 = vmatmul.f32.gmra.mxu2 %v1532_v12  ;;  %v2053_v19 = vadd.f32 %v2052_v15, %v1987_v10  ;;  %v1674_v10 = vld [vmem:[%s13554_s0 + $0x920] sm:$0xff]  ;;  %v1676_v11 = vld [vmem:[%s13554_s0 + $0x930] sm:$0xff] }
  0xda   : > { %2554 = vmatpush.msra.mxu1 %v526_v8  ;;  %2491 = vmatpush.msra.mxu0 %v490_v38  ;;  %v486_v8 = vld [vmem:[%s7879_s5 + $0x800] sm:$0xff]  ;;  %v1855_v38 = vld [vmem:[%s13554_s0 + $0xec8] sm:$0xff] }
  0xdb   : > { %2311 = vmatmul.f32.gmra.mxu1 %v1531_v16  ;;  %v1675_v16 = vld [vmem:[%s13554_s0 + $0x928] sm:$0xff] }
  0xdc   : > { %2441 = vmatmul.f32.gmra.mxu3 %v1533_v17  ;;  %v2117_v20 = vpop.f32.mrf.mxu2  ;;  %v1677_v17 = vld [vmem:[%s13554_s0 + $0x938] sm:$0xff]  ;;  %2555 = vmatpush.msra.mxu1 %v524_v24 }
  0xdd   : > { %v2118_v23 = vadd.f32 %v2117_v20, %v2053_v19 }
  0xde   : > { %v1990_v25 = vpop.f32.mrf.mxu0 }
  0xdf   : > { %v2182_v28 = vpop.f32.mrf.mxu3 }
  0xe0   : > { %v8311_v29 = vadd.f32 %v2182_v28, %v2118_v23  ;;  %v2055_v30 = vpop.f32.mrf.mxu1 }
  0xe1   : > { %2249 = vmatmul.f32.gmra.mxu0 %v1566_v26  ;;  %2379 = vmatmul.f32.gmra.mxu2 %v1568_v27  ;;  %v2056_v35 = vadd.f32 %v2055_v30, %v1990_v25  ;;  %v1710_v26 = vld [vmem:[%s13554_s0 + $0xa40] sm:$0xff]  ;;  %v1712_v27 = vld [vmem:[%s13554_s0 + $0xa50] sm:$0xff] }
  0xe3   : > { %2314 = vmatmul.f32.gmra.mxu1 %v1567_v31 }
  0xe4   : > { %2444 = vmatmul.f32.gmra.mxu3 %v1569_v32  ;;  %v2120_v36 = vpop.f32.mrf.mxu2  ;;  %v1711_v32 = vld [vmem:[%s13554_s0 + $0xa48] sm:$0xff] }
  0xe5   : > { %v2121_v39 = vadd.f32 %v2120_v36, %v2056_v35  ;;  %v554_v35 = vld [vmem:[%s7879_s5 + $0xa20] sm:$0xff] }
  0xe6   : > { %v1993_v41 = vpop.f32.mrf.mxu0  ;;  %2621 = vmatpush.msra.mxu2 %v554_v35 }
  0xe7   : > { %v2185_v44 = vpop.f32.mrf.mxu3 }
  0xe8   : > { %v8329_v45 = vadd.f32 %v2185_v44, %v2121_v39  ;;  %v2058_v46 = vpop.f32.mrf.mxu1  ;;  %v586_v39 = vld [vmem:[%s7879_s5 + $0xb20] sm:$0xff]  ;;  %v1748_v44 = vld [vmem:[%s13554_s0 + $0xb70] sm:$0xff] }
  0xe9   : > { %2252 = vmatmul.f32.gmra.mxu0 %v1602_v42  ;;  %2382 = vmatmul.f32.gmra.mxu2 %v1604_v43  ;;  %v2059_v51 = vadd.f32 %v2058_v46, %v1993_v41  ;;  %v522_v41 = vld [vmem:[%s7879_s5 + $0x920] sm:$0xff] }
  0xea   : > { %2686 = vmatpush.msra.mxu3 %v586_v39  ;;  %v1746_v43 = vld [vmem:[%s13554_s0 + $0xb60] sm:$0xff]  ;;  %2556 = vmatpush.msra.mxu1 %v522_v41  ;;  %v1857_v39 = vld [vmem:[%s13554_s0 + $0xed8] sm:$0xff] }
  0xeb   : > { %2317 = vmatmul.f32.gmra.mxu1 %v1603_v47 }
  0xec   : > { %2447 = vmatmul.f32.gmra.mxu3 %v1605_v49  ;;  %v2123_v52 = vpop.f32.mrf.mxu2 }
  0xed   : > { %v2124_v55 = vadd.f32 %v2123_v52, %v2059_v51  ;;  %v1749_v51 = vld [vmem:[%s13554_s0 + $0xb78] sm:$0xff]  ;;  %v552_v52 = vld [vmem:[%s7879_s5 + $0xa10] sm:$0xff]  ;;  %2687 = vmatpush.msra.mxu3 %v584_v56  ;;  %v1891_v56 = vld [vmem:[%s13554_s0 + $0xfe8] sm:$0xff] }
  0xee   : > { %v1996_v57 = vpop.f32.mrf.mxu0  ;;  %2622 = vmatpush.msra.mxu2 %v552_v52  ;;  %v1892_v52 = vld [vmem:[%s13554_s0 + $0xff0] sm:$0xff] }
  0xef   : > { %v2188_v60 = vpop.f32.mrf.mxu3 }
  0xf0   : > { %v8347_v61 = vadd.f32 %v2188_v60, %v2124_v55  ;;  %v2061_v62 = vpop.f32.mrf.mxu1  ;;  %v488_v55 = vld [vmem:[%s7879_s5 + $0x810] sm:$0xff]  ;;  %v1782_v60 = vld [vmem:[%s13554_s0 + $0xc80] sm:$0xff]  ;;  %2623 = vmatpush.msra.mxu2 %v550_v5 }
  0xf1   : > { %2255 = vmatmul.f32.gmra.mxu0 %v1638_v58  ;;  %2385 = vmatmul.f32.gmra.mxu2 %v1640_v59  ;;  %v2062_v3 = vadd.f32 %v2061_v62, %v1996_v57  ;;  %v520_v58 = vld [vmem:[%s7879_s5 + $0x910] sm:$0xff]  ;;  %v1926_v5 = vld [vmem:[%s13554_s0 + $0x1100] sm:$0xff] }
  0xf2   : > { %2492 = vmatpush.msra.mxu0 %v488_v55  ;;  %v1784_v62 = vld [vmem:[%s13554_s0 + $0xc90] sm:$0xff]  ;;  %2557 = vmatpush.msra.mxu1 %v520_v58 }
  0xf3   : > { %2320 = vmatmul.f32.gmra.mxu1 %v1639_v0  ;;  %2868 = vmatpush.msrb.mxu2 %v708_v22  ;;  %v704_v58 = vld [vmem:[%s7879_s5 + $0xed0] sm:$0xff] }
  0xf4   : > { %2450 = vmatmul.f32.gmra.mxu3 %v1641_v1  ;;  %v2126_v4 = vpop.f32.mrf.mxu2  ;;  %2493 = vmatpush.msra.mxu0 %v486_v8 }
  0xf5   : > { %v2127_v7 = vadd.f32 %v2126_v4, %v2062_v3  ;;  %v1783_v3 = vld [vmem:[%s13554_s0 + $0xc88] sm:$0xff]  ;;  %v1785_v4 = vld [vmem:[%s13554_s0 + $0xc98] sm:$0xff] }
  0xf6   : > { %v1999_v9 = vpop.f32.mrf.mxu0 }
  0xf7   : > { %v2191_v12 = vpop.f32.mrf.mxu3 }
  0xf8   : > { %v8365_v13 = vadd.f32 %v2191_v12, %v2127_v7  ;;  %v2064_v15 = vpop.f32.mrf.mxu1 }
  0xf9   : > { %2258 = vmatmul.f32.gmra.mxu0 %v1674_v10  ;;  %2388 = vmatmul.f32.gmra.mxu2 %v1676_v11  ;;  %v2065_v19 = vadd.f32 %v2064_v15, %v1999_v9  ;;  %v582_v9 = vld [vmem:[%s7879_s5 + $0xb00] sm:$0xff] }
  0xfa   : > { %2688 = vmatpush.msra.mxu3 %v582_v9  ;;  %v518_v11 = vld [vmem:[%s7879_s5 + $0x900] sm:$0xff] }
  0xfb   : > { %2323 = vmatmul.f32.gmra.mxu1 %v1675_v16  ;;  %v1818_v15 = vld [vmem:[%s13554_s0 + $0xda0] sm:$0xff]  ;;  %v1820_v16 = vld [vmem:[%s13554_s0 + $0xdb0] sm:$0xff] }
  0xfc   : > { %2453 = vmatmul.f32.gmra.mxu3 %v1677_v17  ;;  %v2129_v20 = vpop.f32.mrf.mxu2  ;;  %2558 = vmatpush.msra.mxu1 %v518_v11  ;;  %v1929_v11 = vld [vmem:[%s13554_s0 + $0x1118] sm:$0xff] }
  0xfd   : > { %v2130_v23 = vadd.f32 %v2129_v20, %v2065_v19  ;;  %v1819_v20 = vld [vmem:[%s13554_s0 + $0xda8] sm:$0xff] }
  0xfe   : > { %v2002_v25 = vpop.f32.mrf.mxu0 }
  0xff   : > { %v2194_v28 = vpop.f32.mrf.mxu3 }
 0x100   : > { %v8383_v30 = vadd.f32 %v2194_v28, %v2130_v23  ;;  %v2067_v31 = vpop.f32.mrf.mxu1  ;;  %v676_v28 = vld [vmem:[%s7879_s5 + $0xdf0] sm:$0xff] }
 0x101   : > { %2261 = vmatmul.f32.gmra.mxu0 %v1710_v26  ;;  %2391 = vmatmul.f32.gmra.mxu2 %v1712_v27  ;;  %v2068_v36 = vadd.f32 %v2067_v31, %v2002_v25  ;;  %v644_v25 = vld [vmem:[%s7879_s5 + $0xcf0] sm:$0xff] }
 0x102   : > { %v740_v26 = vld [vmem:[%s7879_s5 + $0xff0] sm:$0xff]  ;;  %2738 = vmatpush.msrb.mxu0 %v644_v25  ;;  %2803 = vmatpush.msrb.mxu1 %v676_v28 }
 0x103   : > { %2326 = vmatmul.f32.gmra.mxu1 %v1711_v32  ;;  %2933 = vmatpush.msrb.mxu3 %v740_v26  ;;  %v1854_v32 = vld [vmem:[%s13554_s0 + $0xec0] sm:$0xff] }
 0x104   : > { %2456 = vmatmul.f32.gmra.mxu3 %v1713_v34  ;;  %v2132_v37 = vpop.f32.mrf.mxu2  ;;  %v1856_v34 = vld [vmem:[%s13554_s0 + $0xed0] sm:$0xff] }
 0x105   : > { %v2133_v40 = vadd.f32 %v2132_v37, %v2068_v36 }
 0x106   : > { %v2005_v42 = vpop.f32.mrf.mxu0 }
 0x107   : > { %v2197_v46 = vpop.f32.mrf.mxu3 }
 0x108   : > { %v8401_v47 = vadd.f32 %v2197_v46, %v2133_v40  ;;  %v2070_v49 = vpop.f32.mrf.mxu1  ;;  %v706_v40 = vld [vmem:[%s7879_s5 + $0xee0] sm:$0xff] }
 0x109   : > { %2264 = vmatmul.f32.gmra.mxu0 %v1746_v43  ;;  %2394 = vmatmul.f32.gmra.mxu2 %v1748_v44  ;;  %v2071_v53 = vadd.f32 %v2070_v49, %v2005_v42  ;;  %v642_v43 = vld [vmem:[%s7879_s5 + $0xce0] sm:$0xff] }
 0x10a   : > { %2869 = vmatpush.msrb.mxu2 %v706_v40  ;;  %v738_v44 = vld [vmem:[%s7879_s5 + $0xfe0] sm:$0xff]  ;;  %2739 = vmatpush.msrb.mxu0 %v642_v43  ;;  %v668_v40 = vld [vmem:[%s7879_s5 + $0xdb0] sm:$0xff] }
 0x10b   : > { %2329 = vmatmul.f32.gmra.mxu1 %v1747_v50  ;;  %2934 = vmatpush.msrb.mxu3 %v738_v44  ;;  %v674_v49 = vld [vmem:[%s7879_s5 + $0xde0] sm:$0xff]  ;;  %v1428_v43 = vld [vmem:[%s13554_s0 + $0x170] sm:$0xff] }
 0x10c   : > { %2459 = vmatmul.f32.gmra.mxu3 %v1749_v51  ;;  %v2135_v54 = vpop.f32.mrf.mxu2  ;;  %v1890_v51 = vld [vmem:[%s13554_s0 + $0xfe0] sm:$0xff]  ;;  %2804 = vmatpush.msrb.mxu1 %v674_v49 }
 0x10d   : > { %v2136_v57 = vadd.f32 %v2135_v54, %v2071_v53  ;;  %2870 = vmatpush.msrb.mxu2 %v704_v58 }
 0x10e   : > { %v2008_v59 = vpop.f32.mrf.mxu0 }
 0x10f   : > { %v2200_v0 = vpop.f32.mrf.mxu3 }
 0x110   : > { %v8419_v1 = vadd.f32 %v2200_v0, %v2136_v57  ;;  %v2073_v2 = vpop.f32.mrf.mxu1  ;;  %v1893_v57 = vld [vmem:[%s13554_s0 + $0xff8] sm:$0xff]  ;;  %v736_v0 = vld [vmem:[%s7879_s5 + $0xfd0] sm:$0xff] }
 0x111   : > { %2267 = vmatmul.f32.gmra.mxu0 %v1782_v60  ;;  %2397 = vmatmul.f32.gmra.mxu2 %v1784_v62  ;;  %v2074_v6 = vadd.f32 %v2073_v2, %v2008_v59  ;;  %v640_v62 = vld [vmem:[%s7879_s5 + $0xcd0] sm:$0xff] }
 0x112   : > { %2740 = vmatpush.msrb.mxu0 %v640_v62  ;;  %2935 = vmatpush.msrb.mxu3 %v736_v0  ;;  %v1462_v62 = vld [vmem:[%s13554_s0 + $0x280] sm:$0xff]  ;;  %v1464_v0 = vld [vmem:[%s13554_s0 + $0x290] sm:$0xff] }
 0x113   : > { %2332 = vmatmul.f32.gmra.mxu1 %v1783_v3  ;;  %v672_v3 = vld [vmem:[%s7879_s5 + $0xdd0] sm:$0xff] }
 0x114   : > { %2462 = vmatmul.f32.gmra.mxu3 %v1785_v4  ;;  %v2138_v7 = vpop.f32.mrf.mxu2  ;;  %2805 = vmatpush.msrb.mxu1 %v672_v3 }
 0x115   : > { %v2139_v10 = vadd.f32 %v2138_v7, %v2074_v6  ;;  %v1928_v6 = vld [vmem:[%s13554_s0 + $0x1110] sm:$0xff] }
 0x116   : > { %v2011_v12 = vpop.f32.mrf.mxu0 }
 0x117   : > { %v2203_v17 = vpop.f32.mrf.mxu3 }
 0x118   : > { %v8437_v18 = vadd.f32 %v2203_v17, %v2139_v10  ;;  %v2076_v19 = vpop.f32.mrf.mxu1  ;;  %v1927_v10 = vld [vmem:[%s13554_s0 + $0x1108] sm:$0xff]  ;;  %v638_v17 = vld [vmem:[%s7879_s5 + $0xcc0] sm:$0xff] }
 0x119   : > { %2270 = vmatmul.f32.gmra.mxu0 %v1818_v15  ;;  %2400 = vmatmul.f32.gmra.mxu2 %v1820_v16  ;;  %v2077_v23 = vadd.f32 %v2076_v19, %v2011_v12  ;;  %v702_v12 = vld [vmem:[%s7879_s5 + $0xec0] sm:$0xff] }
 0x11a   : > { %2871 = vmatpush.msrb.mxu2 %v702_v12  ;;  %v734_v19 = vld [vmem:[%s7879_s5 + $0xfc0] sm:$0xff]  ;;  %2741 = vmatpush.msrb.mxu0 %v638_v17  ;;  %v728_v12 = vld [vmem:[%s7879_s5 + $0xf90] sm:$0xff] }
 0x11b   : > { %2335 = vmatmul.f32.gmra.mxu1 %v1819_v20  ;;  %2936 = vmatpush.msrb.mxu3 %v734_v19  ;;  %v1498_v19 = vld [vmem:[%s13554_s0 + $0x3a0] sm:$0xff] }
 0x11c   : > { %2465 = vmatmul.f32.gmra.mxu3 %v1821_v21  ;;  %v2141_v24 = vpop.f32.mrf.mxu2  ;;  %v670_v21 = vld [vmem:[%s7879_s5 + $0xdc0] sm:$0xff] }
 0x11d   : > { %v2142_v27 = vadd.f32 %v2141_v24, %v2077_v23  ;;  %v1390_v23 = vld [vmem:[%s13554_s0 + $0x40] sm:$0xff]  ;;  %v1392_v24 = vld [vmem:[%s13554_s0 + $0x50] sm:$0xff]  ;;  %2806 = vmatpush.msrb.mxu1 %v670_v21 }
 0x11e   : > { %v2014_v31 = vpop.f32.mrf.mxu0 }
 0x11f   : > { %v2206_v35 = vpop.f32.mrf.mxu3  ;;  %2807 = vmatpush.msrb.mxu1 %v668_v40 }
 0x120   : > { %v8455_v36 = vadd.f32 %v2206_v35, %v2142_v27  ;;  %v2079_v37 = vpop.f32.mrf.mxu1 }
 0x121   : > { %2273 = vmatmul.f32.gmra.mxu0 %v1854_v32  ;;  %2403 = vmatmul.f32.gmra.mxu2 %v1856_v34  ;;  %v2080_v41 = vadd.f32 %v2079_v37, %v2014_v31  ;;  %v1391_v31 = vld [vmem:[%s13554_s0 + $0x48] sm:$0xff]  ;;  %v1393_v32 = vld [vmem:[%s13554_s0 + $0x58] sm:$0xff]  ;;  %v700_v34 = vld [vmem:[%s7879_s5 + $0xeb0] sm:$0xff] }
 0x122   : > { %2872 = vmatpush.msrb.mxu2 %v700_v34  ;;  %v636_v37 = vld [vmem:[%s7879_s5 + $0xcb0] sm:$0xff]  ;;  %v726_v34 = vld [vmem:[%s7879_s5 + $0xf80] sm:$0xff] }
 0x123   : > { %2338 = vmatmul.f32.gmra.mxu1 %v1855_v38  ;;  %v732_v38 = vld [vmem:[%s7879_s5 + $0xfb0] sm:$0xff]  ;;  %2742 = vmatpush.msrb.mxu0 %v636_v37 }
 0x124   : > { %2468 = vmatmul.f32.gmra.mxu3 %v1857_v39  ;;  %v2144_v42 = vpop.f32.mrf.mxu2 }
 0x125   : > { %v2145_v46 = vadd.f32 %v2144_v42, %v2080_v41  ;;  %2937 = vmatpush.msrb.mxu3 %v732_v38  ;;  %v1426_v42 = vld [vmem:[%s13554_s0 + $0x160] sm:$0xff] }
 0x126   : > { %v2017_v50 = vpop.f32.mrf.mxu0  ;;  %v1534_v38 = vld [vmem:[%s13554_s0 + $0x4c0] sm:$0xff] }
 0x127   : > { %v2209_v53 = vpop.f32.mrf.mxu3 }
 0x128   : > { %v8473_v54 = vadd.f32 %v2209_v53, %v2145_v46  ;;  %v2082_v55 = vpop.f32.mrf.mxu1  ;;  %v698_v53 = vld [vmem:[%s7879_s5 + $0xea0] sm:$0xff] }
 0x129   : > { %2276 = vmatmul.f32.gmra.mxu0 %v1890_v51  ;;  %2406 = vmatmul.f32.gmra.mxu2 %v1892_v52  ;;  %v2083_v59 = vadd.f32 %v2082_v55, %v2017_v50  ;;  %v1427_v51 = vld [vmem:[%s13554_s0 + $0x168] sm:$0xff]  ;;  %v1429_v52 = vld [vmem:[%s13554_s0 + $0x178] sm:$0xff] }
 0x12a   : > { %2873 = vmatpush.msrb.mxu2 %v698_v53  ;;  %v724_v53 = vld [vmem:[%s7879_s5 + $0xf70] sm:$0xff] }
 0x12b   : > { %2341 = vmatmul.f32.gmra.mxu1 %v1891_v56  ;;  %v634_v56 = vld [vmem:[%s7879_s5 + $0xca0] sm:$0xff] }
 0x12c   : > { %2471 = vmatmul.f32.gmra.mxu3 %v1893_v57  ;;  %v2147_v60 = vpop.f32.mrf.mxu2  ;;  %v730_v57 = vld [vmem:[%s7879_s5 + $0xfa0] sm:$0xff]  ;;  %2743 = vmatpush.msrb.mxu0 %v634_v56 }
 0x12d   : > { %v2148_v2 = vadd.f32 %v2147_v60, %v2083_v59  ;;  %2938 = vmatpush.msrb.mxu3 %v730_v57  ;;  %v666_v59 = vld [vmem:[%s7879_s5 + $0xda0] sm:$0xff] }
 0x12e   : > { %v2020_v4 = vpop.f32.mrf.mxu0  ;;  %2808 = vmatpush.msrb.mxu1 %v666_v59  ;;  %v1570_v57 = vld [vmem:[%s13554_s0 + $0x5e0] sm:$0xff] }
 0x12f   : > { %v2212_v7 = vpop.f32.mrf.mxu3  ;;  %2939 = vmatpush.msrb.mxu3 %v728_v12  ;;  %v1606_v12 = vld [vmem:[%s13554_s0 + $0x700] sm:$0xff] }
 0x130   : > { %v8491_v8 = vadd.f32 %v2212_v7, %v2148_v2  ;;  %v2085_v9 = vpop.f32.mrf.mxu1  ;;  %v1465_v7 = vld [vmem:[%s13554_s0 + $0x298] sm:$0xff] }
 0x131   : > { %2279 = vmatmul.f32.gmra.mxu0 %v1926_v5  ;;  %2409 = vmatmul.f32.gmra.mxu2 %v1928_v6  ;;  %v2086_v15 = vadd.f32 %v2085_v9, %v2020_v4  ;;  %v1463_v6 = vld [vmem:[%s13554_s0 + $0x288] sm:$0xff]  ;;  %v696_v9 = vld [vmem:[%s7879_s5 + $0xe90] sm:$0xff] }
 0x132   : > { %2874 = vmatpush.msrb.mxu2 %v696_v9  ;;  %2940 = vmatpush.msrb.mxu3 %v726_v34  ;;  %v722_v9 = vld [vmem:[%s7879_s5 + $0xf60] sm:$0xff] }
 0x133   : > { %2344 = vmatmul.f32.gmra.mxu1 %v1927_v10  ;;  %v1642_v34 = vld [vmem:[%s13554_s0 + $0x820] sm:$0xff] }
 0x134   : > { %2474 = vmatmul.f32.gmra.mxu3 %v1929_v11  ;;  %v2150_v16 = vpop.f32.mrf.mxu2  ;;  %v632_v11 = vld [vmem:[%s7879_s5 + $0xc90] sm:$0xff] }
 0x135   : > { %v2151_v20 = vadd.f32 %v2150_v16, %v2086_v15  ;;  %2744 = vmatpush.msrb.mxu0 %v632_v11  ;;  %v664_v16 = vld [vmem:[%s7879_s5 + $0xd90] sm:$0xff]  ;;  %2941 = vmatpush.msrb.mxu3 %v724_v53  ;;  %v1678_v53 = vld [vmem:[%s13554_s0 + $0x940] sm:$0xff] }
 0x136   : > { %v2235_v22 = vpop.f32.mrf.mxu0  ;;  %2809 = vmatpush.msrb.mxu1 %v664_v16 }
 0x137   : > { %v2215_v25 = vpop.f32.mrf.mxu3  ;;  %v2236_v26 = vadd.f32 %v2235_v22, %v8239_v33  ;;  %2942 = vmatpush.msrb.mxu3 %v722_v9  ;;  %v1714_v9 = vld [vmem:[%s13554_s0 + $0xa60] sm:$0xff] }
 0x138   : > { %v8510_v27 = vadd.f32 %v2215_v25, %v2151_v20  ;;  %v2300_v28 = vpop.f32.mrf.mxu1  ;;  %v1500_v20 = vld [vmem:[%s13554_s0 + $0x3b0] sm:$0xff]  ;;  %v1499_v25 = vld [vmem:[%s13554_s0 + $0x3a8] sm:$0xff] }
 0x139   : > { %2494 = vmatmul.f32.vlgmr.msra.gmra.mxu0 %v1390_v23  ;;  %2624 = vmatmul.f32.vlgmr.msra.gmra.mxu2 %v1392_v24  ;;  %v2301_v35 = vadd.f32 %v2300_v28, %v2236_v26  ;;  %v1501_v26 = vld [vmem:[%s13554_s0 + $0x3b8] sm:$0xff]  ;;  %v694_v28 = vld [vmem:[%s7879_s5 + $0xe80] sm:$0xff] }
 0x13a   : > { %2875 = vmatpush.msrb.mxu2 %v694_v28  ;;  %v720_v28 = vld [vmem:[%s7879_s5 + $0xf50] sm:$0xff] }
 0x13b   : > { %2559 = vmatmul.f32.vlgmr.msra.gmra.mxu1 %v1391_v31  ;;  %2943 = vmatpush.msrb.mxu3 %v720_v28  ;;  %v1750_v28 = vld [vmem:[%s13554_s0 + $0xb80] sm:$0xff] }
 0x13c   : > { %2689 = vmatmul.f32.vlgmr.msra.gmra.mxu3 %v1393_v32  ;;  %v2365_v33 = vpop.f32.mrf.mxu2  ;;  %v630_v32 = vld [vmem:[%s7879_s5 + $0xc80] sm:$0xff] }
 0x13d   : > { %v2366_v39 = vadd.f32 %v2365_v33, %v2301_v35  ;;  %2745 = vmatpush.msrb.mxu0 %v630_v32  ;;  %v662_v33 = vld [vmem:[%s7879_s5 + $0xd80] sm:$0xff] }
 0x13e   : > { %v2238_v41 = vpop.f32.mrf.mxu0  ;;  %2810 = vmatpush.msrb.mxu1 %v662_v33 }
 0x13f   : > { %v2239_v44 = vadd.f32 %v2238_v41, %v8257_v48  ;;  %v2430_v46 = vpop.f32.mrf.mxu3 }
 0x140   : > { %v8529_v49 = vadd.f32 %v2430_v46, %v2366_v39  ;;  %v2303_v50 = vpop.f32.mrf.mxu1  ;;  %v1536_v39 = vld [vmem:[%s13554_s0 + $0x4d0] sm:$0xff]  ;;  %v1537_v46 = vld [vmem:[%s13554_s0 + $0x4d8] sm:$0xff] }
 0x141   : > { %2497 = vmatmul.f32.gmra.mxu0 %v1426_v42  ;;  %2627 = vmatmul.f32.gmra.mxu2 %v1428_v43  ;;  %v2304_v55 = vadd.f32 %v2303_v50, %v2239_v44  ;;  %v1535_v44 = vld [vmem:[%s13554_s0 + $0x4c8] sm:$0xff]  ;;  %v692_v50 = vld [vmem:[%s7879_s5 + $0xe70] sm:$0xff] }
 0x142   : > { %2876 = vmatpush.msrb.mxu2 %v692_v50  ;;  %v718_v50 = vld [vmem:[%s7879_s5 + $0xf40] sm:$0xff] }
 0x143   : > { %2562 = vmatmul.f32.gmra.mxu1 %v1427_v51  ;;  %2944 = vmatpush.msrb.mxu3 %v718_v50  ;;  %v1786_v50 = vld [vmem:[%s13554_s0 + $0xca0] sm:$0xff] }
 0x144   : > { %2692 = vmatmul.f32.gmra.mxu3 %v1429_v52  ;;  %v2368_v48 = vpop.f32.mrf.mxu2  ;;  %v628_v52 = vld [vmem:[%s7879_s5 + $0xc70] sm:$0xff] }
 0x145   : > { %v2369_v58 = vadd.f32 %v2368_v48, %v2304_v55  ;;  %2746 = vmatpush.msrb.mxu0 %v628_v52  ;;  %v660_v48 = vld [vmem:[%s7879_s5 + $0xd70] sm:$0xff] }
 0x146   : > { %v2241_v60 = vpop.f32.mrf.mxu0  ;;  %2811 = vmatpush.msrb.mxu1 %v660_v48 }
 0x147   : > { %v2242_v2 = vadd.f32 %v2241_v60, %v8275_v63  ;;  %v2433_v3 = vpop.f32.mrf.mxu3 }
 0x148   : > { %v8548_v4 = vadd.f32 %v2433_v3, %v2369_v58  ;;  %v2306_v5 = vpop.f32.mrf.mxu1  ;;  %v1572_v58 = vld [vmem:[%s13554_s0 + $0x5f0] sm:$0xff]  ;;  %v1573_v3 = vld [vmem:[%s13554_s0 + $0x5f8] sm:$0xff] }
 0x149   : > { %2500 = vmatmul.f32.gmra.mxu0 %v1462_v62  ;;  %2630 = vmatmul.f32.gmra.mxu2 %v1464_v0  ;;  %v2307_v10 = vadd.f32 %v2306_v5, %v2242_v2  ;;  %v1571_v2 = vld [vmem:[%s13554_s0 + $0x5e8] sm:$0xff]  ;;  %v690_v5 = vld [vmem:[%s7879_s5 + $0xe60] sm:$0xff] }
 0x14a   : > { %2877 = vmatpush.msrb.mxu2 %v690_v5  ;;  %v716_v5 = vld [vmem:[%s7879_s5 + $0xf30] sm:$0xff] }
 0x14b   : > { %2565 = vmatmul.f32.gmra.mxu1 %v1463_v6  ;;  %2945 = vmatpush.msrb.mxu3 %v716_v5  ;;  %v1822_v5 = vld [vmem:[%s13554_s0 + $0xdc0] sm:$0xff] }
 0x14c   : > { %2695 = vmatmul.f32.gmra.mxu3 %v1465_v7  ;;  %v2371_v63 = vpop.f32.mrf.mxu2  ;;  %v626_v7 = vld [vmem:[%s7879_s5 + $0xc60] sm:$0xff] }
 0x14d   : > { %v2372_v15 = vadd.f32 %v2371_v63, %v2307_v10  ;;  %2747 = vmatpush.msrb.mxu0 %v626_v7  ;;  %v658_v63 = vld [vmem:[%s7879_s5 + $0xd60] sm:$0xff] }
 0x14e   : > { %v2244_v17 = vpop.f32.mrf.mxu0  ;;  %2812 = vmatpush.msrb.mxu1 %v658_v63 }
 0x14f   : > { %v2245_v21 = vadd.f32 %v2244_v17, %v8293_v14  ;;  %v2436_v22 = vpop.f32.mrf.mxu3 }
 0x150   : > { %v8567_v23 = vadd.f32 %v2436_v22, %v2372_v15  ;;  %v2309_v24 = vpop.f32.mrf.mxu1  ;;  %v1608_v15 = vld [vmem:[%s13554_s0 + $0x710] sm:$0xff]  ;;  %v1609_v22 = vld [vmem:[%s13554_s0 + $0x718] sm:$0xff] }
 0x151   : > { %2503 = vmatmul.f32.gmra.mxu0 %v1498_v19  ;;  %2633 = vmatmul.f32.gmra.mxu2 %v1500_v20  ;;  %v2310_v31 = vadd.f32 %v2309_v24, %v2245_v21  ;;  %v1607_v21 = vld [vmem:[%s13554_s0 + $0x708] sm:$0xff]  ;;  %v688_v24 = vld [vmem:[%s7879_s5 + $0xe50] sm:$0xff] }
 0x152   : > { %2878 = vmatpush.msrb.mxu2 %v688_v24  ;;  %v714_v24 = vld [vmem:[%s7879_s5 + $0xf20] sm:$0xff] }
 0x153   : > { %2568 = vmatmul.f32.gmra.mxu1 %v1499_v25  ;;  %2946 = vmatpush.msrb.mxu3 %v714_v24  ;;  %v1858_v24 = vld [vmem:[%s13554_s0 + $0xee0] sm:$0xff] }
 0x154   : > { %2698 = vmatmul.f32.gmra.mxu3 %v1501_v26  ;;  %v2374_v14 = vpop.f32.mrf.mxu2  ;;  %v624_v26 = vld [vmem:[%s7879_s5 + $0xc50] sm:$0xff] }
 0x155   : > { %v2375_v35 = vadd.f32 %v2374_v14, %v2310_v31  ;;  %2748 = vmatpush.msrb.mxu0 %v624_v26  ;;  %v656_v14 = vld [vmem:[%s7879_s5 + $0xd50] sm:$0xff] }
 0x156   : > { %v2247_v37 = vpop.f32.mrf.mxu0  ;;  %2813 = vmatpush.msrb.mxu1 %v656_v14 }
 0x157   : > { %v2248_v40 = vadd.f32 %v2247_v37, %v8311_v29  ;;  %v2439_v41 = vpop.f32.mrf.mxu3 }
 0x158   : > { %v8586_v42 = vadd.f32 %v2439_v41, %v2375_v35  ;;  %v2312_v43 = vpop.f32.mrf.mxu1  ;;  %v1644_v35 = vld [vmem:[%s13554_s0 + $0x830] sm:$0xff]  ;;  %v1645_v41 = vld [vmem:[%s13554_s0 + $0x838] sm:$0xff] }
 0x159   : > { %2506 = vmatmul.f32.gmra.mxu0 %v1534_v38  ;;  %2636 = vmatmul.f32.gmra.mxu2 %v1536_v39  ;;  %v2313_v51 = vadd.f32 %v2312_v43, %v2248_v40  ;;  %v1643_v40 = vld [vmem:[%s13554_s0 + $0x828] sm:$0xff]  ;;  %v686_v43 = vld [vmem:[%s7879_s5 + $0xe40] sm:$0xff] }
 0x15a   : > { %2879 = vmatpush.msrb.mxu2 %v686_v43  ;;  %v712_v43 = vld [vmem:[%s7879_s5 + $0xf10] sm:$0xff] }
 0x15b   : > { %2571 = vmatmul.f32.gmra.mxu1 %v1535_v44  ;;  %2947 = vmatpush.msrb.mxu3 %v712_v43  ;;  %v1894_v43 = vld [vmem:[%s13554_s0 + $0x1000] sm:$0xff] }
 0x15c   : > { %2701 = vmatmul.f32.gmra.mxu3 %v1537_v46  ;;  %v2377_v29 = vpop.f32.mrf.mxu2  ;;  %v622_v46 = vld [vmem:[%s7879_s5 + $0xc40] sm:$0xff] }
 0x15d   : > { %v2378_v55 = vadd.f32 %v2377_v29, %v2313_v51  ;;  %2749 = vmatpush.msrb.mxu0 %v622_v46  ;;  %v654_v29 = vld [vmem:[%s7879_s5 + $0xd40] sm:$0xff] }
 0x15e   : > { %v2250_v56 = vpop.f32.mrf.mxu0  ;;  %2814 = vmatpush.msrb.mxu1 %v654_v29 }
 0x15f   : > { %v2251_v59 = vadd.f32 %v2250_v56, %v8329_v45  ;;  %v2442_v60 = vpop.f32.mrf.mxu3 }
 0x160   : > { %v8605_v62 = vadd.f32 %v2442_v60, %v2378_v55  ;;  %v2315_v0 = vpop.f32.mrf.mxu1  ;;  %v1680_v55 = vld [vmem:[%s13554_s0 + $0x950] sm:$0xff]  ;;  %v1681_v60 = vld [vmem:[%s13554_s0 + $0x958] sm:$0xff] }
 0x161   : > { %2509 = vmatmul.f32.gmra.mxu0 %v1570_v57  ;;  %2639 = vmatmul.f32.gmra.mxu2 %v1572_v58  ;;  %v2316_v6 = vadd.f32 %v2315_v0, %v2251_v59  ;;  %v1679_v59 = vld [vmem:[%s13554_s0 + $0x948] sm:$0xff]  ;;  %v684_v0 = vld [vmem:[%s7879_s5 + $0xe30] sm:$0xff] }
 0x162   : > { %2880 = vmatpush.msrb.mxu2 %v684_v0  ;;  %v710_v0 = vld [vmem:[%s7879_s5 + $0xf00] sm:$0xff] }
 0x163   : > { %2574 = vmatmul.f32.gmra.mxu1 %v1571_v2  ;;  %2948 = vmatpush.msrb.mxu3 %v710_v0  ;;  %v1930_v0 = vld [vmem:[%s13554_s0 + $0x1120] sm:$0xff] }
 0x164   : > { %2704 = vmatmul.f32.gmra.mxu3 %v1573_v3  ;;  %v2380_v45 = vpop.f32.mrf.mxu2  ;;  %v620_v3 = vld [vmem:[%s7879_s5 + $0xc30] sm:$0xff] }
 0x165   : > { %v2381_v10 = vadd.f32 %v2380_v45, %v2316_v6  ;;  %2750 = vmatpush.msrb.mxu0 %v620_v3  ;;  %v652_v45 = vld [vmem:[%s7879_s5 + $0xd30] sm:$0xff] }
 0x166   : > { %v2253_v11 = vpop.f32.mrf.mxu0  ;;  %2815 = vmatpush.msrb.mxu1 %v652_v45 }
 0x167   : > { %v2254_v16 = vadd.f32 %v2253_v11, %v8347_v61  ;;  %v2445_v17 = vpop.f32.mrf.mxu3 }
 0x168   : > { %v8624_v19 = vadd.f32 %v2445_v17, %v2381_v10  ;;  %v2318_v20 = vpop.f32.mrf.mxu1  ;;  %v1716_v10 = vld [vmem:[%s13554_s0 + $0xa70] sm:$0xff]  ;;  %v1717_v17 = vld [vmem:[%s13554_s0 + $0xa78] sm:$0xff] }
 0x169   : > { %2512 = vmatmul.f32.gmra.mxu0 %v1606_v12  ;;  %2642 = vmatmul.f32.gmra.mxu2 %v1608_v15  ;;  %v2319_v25 = vadd.f32 %v2318_v20, %v2254_v16  ;;  %v1715_v16 = vld [vmem:[%s13554_s0 + $0xa68] sm:$0xff]  ;;  %v682_v20 = vld [vmem:[%s7879_s5 + $0xe20] sm:$0xff] }
 0x16a   : > { %2881 = vmatpush.msrb.mxu2 %v682_v20  ;;  %v868_v20 = vld [vmem:[%s7879_s5 + $0x13f0] sm:$0xff] }
 0x16b   : > { %2577 = vmatmul.f32.gmra.mxu1 %v1607_v21  ;;  %3193 = vmatpush.msra.mxu3 %v868_v20  ;;  %v1394_v20 = vld [vmem:[%s13554_s0 + $0x60] sm:$0xff] }
 0x16c   : > { %2707 = vmatmul.f32.gmra.mxu3 %v1609_v22  ;;  %v2383_v61 = vpop.f32.mrf.mxu2  ;;  %v618_v22 = vld [vmem:[%s7879_s5 + $0xc20] sm:$0xff] }
 0x16d   : > { %v2384_v31 = vadd.f32 %v2383_v61, %v2319_v25  ;;  %2751 = vmatpush.msrb.mxu0 %v618_v22  ;;  %v650_v61 = vld [vmem:[%s7879_s5 + $0xd20] sm:$0xff] }
 0x16e   : > { %v2256_v32 = vpop.f32.mrf.mxu0  ;;  %2816 = vmatpush.msrb.mxu1 %v650_v61 }
 0x16f   : > { %v2257_v33 = vadd.f32 %v2256_v32, %v8365_v13  ;;  %v2448_v37 = vpop.f32.mrf.mxu3 }
 0x170   : > { %v8643_v38 = vadd.f32 %v2448_v37, %v2384_v31  ;;  %v2321_v39 = vpop.f32.mrf.mxu1  ;;  %v1752_v31 = vld [vmem:[%s13554_s0 + $0xb90] sm:$0xff]  ;;  %v1753_v37 = vld [vmem:[%s13554_s0 + $0xb98] sm:$0xff] }
 0x171   : > { %2515 = vmatmul.f32.gmra.mxu0 %v1642_v34  ;;  %2645 = vmatmul.f32.gmra.mxu2 %v1644_v35  ;;  %v2322_v44 = vadd.f32 %v2321_v39, %v2257_v33  ;;  %v1751_v33 = vld [vmem:[%s13554_s0 + $0xb88] sm:$0xff]  ;;  %v680_v39 = vld [vmem:[%s7879_s5 + $0xe10] sm:$0xff] }
 0x172   : > { %2882 = vmatpush.msrb.mxu2 %v680_v39  ;;  %v866_v39 = vld [vmem:[%s7879_s5 + $0x13e0] sm:$0xff] }
 0x173   : > { %2580 = vmatmul.f32.gmra.mxu1 %v1643_v40  ;;  %3194 = vmatpush.msra.mxu3 %v866_v39  ;;  %v1430_v39 = vld [vmem:[%s13554_s0 + $0x180] sm:$0xff] }
 0x174   : > { %2710 = vmatmul.f32.gmra.mxu3 %v1645_v41  ;;  %v2386_v13 = vpop.f32.mrf.mxu2  ;;  %v616_v41 = vld [vmem:[%s7879_s5 + $0xc10] sm:$0xff] }
 0x175   : > { %v2387_v51 = vadd.f32 %v2386_v13, %v2322_v44  ;;  %2752 = vmatpush.msrb.mxu0 %v616_v41  ;;  %v648_v13 = vld [vmem:[%s7879_s5 + $0xd10] sm:$0xff] }
 0x176   : > { %v2259_v52 = vpop.f32.mrf.mxu0  ;;  %2817 = vmatpush.msrb.mxu1 %v648_v13 }
 0x177   : > { %v2260_v48 = vadd.f32 %v2259_v52, %v8383_v30  ;;  %v2451_v56 = vpop.f32.mrf.mxu3 }
 0x178   : > { %v8662_v57 = vadd.f32 %v2451_v56, %v2387_v51  ;;  %v2324_v58 = vpop.f32.mrf.mxu1  ;;  %v1788_v51 = vld [vmem:[%s13554_s0 + $0xcb0] sm:$0xff]  ;;  %v1789_v56 = vld [vmem:[%s13554_s0 + $0xcb8] sm:$0xff] }
 0x179   : > { %2518 = vmatmul.f32.gmra.mxu0 %v1678_v53  ;;  %2648 = vmatmul.f32.gmra.mxu2 %v1680_v55  ;;  %v2325_v2 = vadd.f32 %v2324_v58, %v2260_v48  ;;  %v1787_v48 = vld [vmem:[%s13554_s0 + $0xca8] sm:$0xff]  ;;  %v678_v58 = vld [vmem:[%s7879_s5 + $0xe00] sm:$0xff] }
 0x17a   : > { %2883 = vmatpush.msrb.mxu2 %v678_v58  ;;  %v864_v58 = vld [vmem:[%s7879_s5 + $0x13d0] sm:$0xff] }
 0x17b   : > { %2583 = vmatmul.f32.gmra.mxu1 %v1679_v59  ;;  %3195 = vmatpush.msra.mxu3 %v864_v58  ;;  %v1466_v58 = vld [vmem:[%s13554_s0 + $0x2a0] sm:$0xff] }
 0x17c   : > { %2713 = vmatmul.f32.gmra.mxu3 %v1681_v60  ;;  %v2389_v30 = vpop.f32.mrf.mxu2  ;;  %v614_v60 = vld [vmem:[%s7879_s5 + $0xc00] sm:$0xff] }
 0x17d   : > { %v2390_v6 = vadd.f32 %v2389_v30, %v2325_v2  ;;  %2753 = vmatpush.msrb.mxu0 %v614_v60  ;;  %v646_v30 = vld [vmem:[%s7879_s5 + $0xd00] sm:$0xff] }
 0x17e   : > { %v2262_v7 = vpop.f32.mrf.mxu0  ;;  %2818 = vmatpush.msrb.mxu1 %v646_v30 }
 0x17f   : > { %v2263_v63 = vadd.f32 %v2262_v7, %v8401_v47  ;;  %v2454_v11 = vpop.f32.mrf.mxu3 }
 0x180   : > { %v8681_v12 = vadd.f32 %v2454_v11, %v2390_v6  ;;  %v2327_v15 = vpop.f32.mrf.mxu1  ;;  %v1824_v6 = vld [vmem:[%s13554_s0 + $0xdd0] sm:$0xff]  ;;  %v1825_v11 = vld [vmem:[%s13554_s0 + $0xdd8] sm:$0xff] }
 0x181   : > { %2521 = vmatmul.f32.gmra.mxu0 %v1714_v9  ;;  %2651 = vmatmul.f32.gmra.mxu2 %v1716_v10  ;;  %v2328_v21 = vadd.f32 %v2327_v15, %v2263_v63  ;;  %v1823_v63 = vld [vmem:[%s13554_s0 + $0xdc8] sm:$0xff]  ;;  %v836_v15 = vld [vmem:[%s7879_s5 + $0x12f0] sm:$0xff] }
 0x182   : > { %3128 = vmatpush.msra.mxu2 %v836_v15  ;;  %v862_v15 = vld [vmem:[%s7879_s5 + $0x13c0] sm:$0xff] }
 0x183   : > { %2586 = vmatmul.f32.gmra.mxu1 %v1715_v16  ;;  %3196 = vmatpush.msra.mxu3 %v862_v15  ;;  %v1502_v15 = vld [vmem:[%s13554_s0 + $0x3c0] sm:$0xff] }
 0x184   : > { %2716 = vmatmul.f32.gmra.mxu3 %v1717_v17  ;;  %v2392_v47 = vpop.f32.mrf.mxu2  ;;  %v772_v17 = vld [vmem:[%s7879_s5 + $0x10f0] sm:$0xff] }
 0x185   : > { %v2393_v25 = vadd.f32 %v2392_v47, %v2328_v21  ;;  %2998 = vmatpush.msra.mxu0 %v772_v17  ;;  %v804_v47 = vld [vmem:[%s7879_s5 + $0x11f0] sm:$0xff] }
 0x186   : > { %v2265_v26 = vpop.f32.mrf.mxu0  ;;  %3063 = vmatpush.msra.mxu1 %v804_v47 }
 0x187   : > { %v2266_v14 = vadd.f32 %v2265_v26, %v8419_v1  ;;  %v2457_v32 = vpop.f32.mrf.mxu3 }
 0x188   : > { %v8700_v34 = vadd.f32 %v2457_v32, %v2393_v25  ;;  %v2330_v35 = vpop.f32.mrf.mxu1  ;;  %v1860_v25 = vld [vmem:[%s13554_s0 + $0xef0] sm:$0xff]  ;;  %v1861_v32 = vld [vmem:[%s13554_s0 + $0xef8] sm:$0xff] }
 0x189   : > { %2524 = vmatmul.f32.gmra.mxu0 %v1750_v28  ;;  %2654 = vmatmul.f32.gmra.mxu2 %v1752_v31  ;;  %v2331_v40 = vadd.f32 %v2330_v35, %v2266_v14  ;;  %v1859_v14 = vld [vmem:[%s13554_s0 + $0xee8] sm:$0xff]  ;;  %v834_v35 = vld [vmem:[%s7879_s5 + $0x12e0] sm:$0xff] }
 0x18a   : > { %3129 = vmatpush.msra.mxu2 %v834_v35  ;;  %v860_v35 = vld [vmem:[%s7879_s5 + $0x13b0] sm:$0xff] }
 0x18b   : > { %2589 = vmatmul.f32.gmra.mxu1 %v1751_v33  ;;  %3197 = vmatpush.msra.mxu3 %v860_v35  ;;  %v1538_v35 = vld [vmem:[%s13554_s0 + $0x4e0] sm:$0xff] }
 0x18c   : > { %2719 = vmatmul.f32.gmra.mxu3 %v1753_v37  ;;  %v2395_v1 = vpop.f32.mrf.mxu2  ;;  %v770_v37 = vld [vmem:[%s7879_s5 + $0x10e0] sm:$0xff] }
 0x18d   : > { %v2396_v44 = vadd.f32 %v2395_v1, %v2331_v40  ;;  %2999 = vmatpush.msra.mxu0 %v770_v37  ;;  %v802_v1 = vld [vmem:[%s7879_s5 + $0x11e0] sm:$0xff] }
 0x18e   : > { %v2268_v46 = vpop.f32.mrf.mxu0  ;;  %3064 = vmatpush.msra.mxu1 %v802_v1 }
 0x18f   : > { %v2269_v29 = vadd.f32 %v2268_v46, %v8437_v18  ;;  %v2460_v52 = vpop.f32.mrf.mxu3 }
 0x190   : > { %v8719_v53 = vadd.f32 %v2460_v52, %v2396_v44  ;;  %v2333_v55 = vpop.f32.mrf.mxu1  ;;  %v1896_v44 = vld [vmem:[%s13554_s0 + $0x1010] sm:$0xff]  ;;  %v1897_v52 = vld [vmem:[%s13554_s0 + $0x1018] sm:$0xff] }
 0x191   : > { %2527 = vmatmul.f32.gmra.mxu0 %v1786_v50  ;;  %2657 = vmatmul.f32.gmra.mxu2 %v1788_v51  ;;  %v2334_v59 = vadd.f32 %v2333_v55, %v2269_v29  ;;  %v1895_v29 = vld [vmem:[%s13554_s0 + $0x1008] sm:$0xff]  ;;  %v832_v55 = vld [vmem:[%s7879_s5 + $0x12d0] sm:$0xff] }
 0x192   : > { %3130 = vmatpush.msra.mxu2 %v832_v55  ;;  %v858_v55 = vld [vmem:[%s7879_s5 + $0x13a0] sm:$0xff] }
 0x193   : > { %2592 = vmatmul.f32.gmra.mxu1 %v1787_v48  ;;  %3198 = vmatpush.msra.mxu3 %v858_v55  ;;  %v1574_v55 = vld [vmem:[%s13554_s0 + $0x600] sm:$0xff] }
 0x194   : > { %2722 = vmatmul.f32.gmra.mxu3 %v1789_v56  ;;  %v2398_v18 = vpop.f32.mrf.mxu2  ;;  %v768_v56 = vld [vmem:[%s7879_s5 + $0x10d0] sm:$0xff] }
 0x195   : > { %v2399_v2 = vadd.f32 %v2398_v18, %v2334_v59  ;;  %3000 = vmatpush.msra.mxu0 %v768_v56  ;;  %v800_v18 = vld [vmem:[%s7879_s5 + $0x11d0] sm:$0xff] }
 0x196   : > { %v2271_v3 = vpop.f32.mrf.mxu0  ;;  %3065 = vmatpush.msra.mxu1 %v800_v18 }
 0x197   : > { %v2272_v45 = vadd.f32 %v2271_v3, %v8455_v36  ;;  %v2463_v7 = vpop.f32.mrf.mxu3 }
 0x198   : > { %v8738_v9 = vadd.f32 %v2463_v7, %v2399_v2  ;;  %v2336_v10 = vpop.f32.mrf.mxu1  ;;  %v1932_v2 = vld [vmem:[%s13554_s0 + $0x1130] sm:$0xff]  ;;  %v1933_v7 = vld [vmem:[%s13554_s0 + $0x1138] sm:$0xff] }
 0x199   : > { %2530 = vmatmul.f32.gmra.mxu0 %v1822_v5  ;;  %2660 = vmatmul.f32.gmra.mxu2 %v1824_v6  ;;  %v2337_v16 = vadd.f32 %v2336_v10, %v2272_v45  ;;  %v1931_v45 = vld [vmem:[%s13554_s0 + $0x1128] sm:$0xff]  ;;  %v830_v10 = vld [vmem:[%s7879_s5 + $0x12c0] sm:$0xff] }
 0x19a   : > { %3131 = vmatpush.msra.mxu2 %v830_v10  ;;  %v856_v10 = vld [vmem:[%s7879_s5 + $0x1390] sm:$0xff] }
 0x19b   : > { %2595 = vmatmul.f32.gmra.mxu1 %v1823_v63  ;;  %3199 = vmatpush.msra.mxu3 %v856_v10  ;;  %v1610_v10 = vld [vmem:[%s13554_s0 + $0x720] sm:$0xff] }
 0x19c   : > { %2725 = vmatmul.f32.gmra.mxu3 %v1825_v11  ;;  %v2401_v36 = vpop.f32.mrf.mxu2  ;;  %v766_v11 = vld [vmem:[%s7879_s5 + $0x10c0] sm:$0xff] }
 0x19d   : > { %v2402_v21 = vadd.f32 %v2401_v36, %v2337_v16  ;;  %3001 = vmatpush.msra.mxu0 %v766_v11  ;;  %v798_v36 = vld [vmem:[%s7879_s5 + $0x11c0] sm:$0xff] }
 0x19e   : > { %v2274_v22 = vpop.f32.mrf.mxu0  ;;  %3066 = vmatpush.msra.mxu1 %v798_v36 }
 0x19f   : > { %v2275_v61 = vadd.f32 %v2274_v22, %v8473_v54  ;;  %v2466_v26 = vpop.f32.mrf.mxu3 }
 0x1a0   : > { %v8757_v28 = vadd.f32 %v2466_v26, %v2402_v21  ;;  %v2339_v31 = vpop.f32.mrf.mxu1  ;;  %v1396_v21 = vld [vmem:[%s13554_s0 + $0x70] sm:$0xff]  ;;  %v1397_v26 = vld [vmem:[%s13554_s0 + $0x78] sm:$0xff] }
 0x1a1   : > { %2533 = vmatmul.f32.gmra.mxu0 %v1858_v24  ;;  %2663 = vmatmul.f32.gmra.mxu2 %v1860_v25  ;;  %v2340_v33 = vadd.f32 %v2339_v31, %v2275_v61  ;;  %v1395_v61 = vld [vmem:[%s13554_s0 + $0x68] sm:$0xff]  ;;  %v828_v31 = vld [vmem:[%s7879_s5 + $0x12b0] sm:$0xff] }
 0x1a2   : > { %3132 = vmatpush.msra.mxu2 %v828_v31  ;;  %v854_v31 = vld [vmem:[%s7879_s5 + $0x1380] sm:$0xff] }
 0x1a3   : > { %2598 = vmatmul.f32.gmra.mxu1 %v1859_v14  ;;  %3200 = vmatpush.msra.mxu3 %v854_v31  ;;  %v1646_v31 = vld [vmem:[%s13554_s0 + $0x840] sm:$0xff] }
 0x1a4   : > { %2728 = vmatmul.f32.gmra.mxu3 %v1861_v32  ;;  %v2404_v54 = vpop.f32.mrf.mxu2  ;;  %v764_v32 = vld [vmem:[%s7879_s5 + $0x10b0] sm:$0xff] }
 0x1a5   : > { %v2405_v40 = vadd.f32 %v2404_v54, %v2340_v33  ;;  %3002 = vmatpush.msra.mxu0 %v764_v32  ;;  %v796_v54 = vld [vmem:[%s7879_s5 + $0x11b0] sm:$0xff] }
 0x1a6   : > { %v2277_v41 = vpop.f32.mrf.mxu0  ;;  %3067 = vmatpush.msra.mxu1 %v796_v54 }
 0x1a7   : > { %v2278_v13 = vadd.f32 %v2277_v41, %v8491_v8  ;;  %v2469_v46 = vpop.f32.mrf.mxu3 }
 0x1a8   : > { %v8776_v50 = vadd.f32 %v2469_v46, %v2405_v40  ;;  %v2342_v51 = vpop.f32.mrf.mxu1  ;;  %v1432_v40 = vld [vmem:[%s13554_s0 + $0x190] sm:$0xff]  ;;  %v1433_v46 = vld [vmem:[%s13554_s0 + $0x198] sm:$0xff] }
 0x1a9   : > { %2536 = vmatmul.f32.gmra.mxu0 %v1894_v43  ;;  %2666 = vmatmul.f32.gmra.mxu2 %v1896_v44  ;;  %v2343_v48 = vadd.f32 %v2342_v51, %v2278_v13  ;;  %v1431_v13 = vld [vmem:[%s13554_s0 + $0x188] sm:$0xff]  ;;  %v826_v51 = vld [vmem:[%s7879_s5 + $0x12a0] sm:$0xff] }
 0x1aa   : > { %3133 = vmatpush.msra.mxu2 %v826_v51  ;;  %v852_v51 = vld [vmem:[%s7879_s5 + $0x1370] sm:$0xff] }
 0x1ab   : > { %2601 = vmatmul.f32.gmra.mxu1 %v1895_v29  ;;  %3201 = vmatpush.msra.mxu3 %v852_v51  ;;  %v1682_v51 = vld [vmem:[%s13554_s0 + $0x960] sm:$0xff] }
 0x1ac   : > { %2731 = vmatmul.f32.gmra.mxu3 %v1897_v52  ;;  %v2407_v8 = vpop.f32.mrf.mxu2  ;;  %v762_v52 = vld [vmem:[%s7879_s5 + $0x10a0] sm:$0xff] }
 0x1ad   : > { %v2408_v59 = vadd.f32 %v2407_v8, %v2343_v48  ;;  %3003 = vmatpush.msra.mxu0 %v762_v52  ;;  %v794_v8 = vld [vmem:[%s7879_s5 + $0x11a0] sm:$0xff] }
 0x1ae   : > { %v2280_v60 = vpop.f32.mrf.mxu0  ;;  %3068 = vmatpush.msra.mxu1 %v794_v8 }
 0x1af   : > { %v2281_v30 = vadd.f32 %v2280_v60, %v8510_v27  ;;  %v2472_v3 = vpop.f32.mrf.mxu3 }
 0x1b0   : > { %v8795_v5 = vadd.f32 %v2472_v3, %v2408_v59  ;;  %v2345_v6 = vpop.f32.mrf.mxu1  ;;  %v1468_v59 = vld [vmem:[%s13554_s0 + $0x2b0] sm:$0xff]  ;;  %v1469_v3 = vld [vmem:[%s13554_s0 + $0x2b8] sm:$0xff] }
 0x1b1   : > { %2539 = vmatmul.f32.gmra.mxu0 %v1930_v0  ;;  %2669 = vmatmul.f32.gmra.mxu2 %v1932_v2  ;;  %v2346_v63 = vadd.f32 %v2345_v6, %v2281_v30  ;;  %v1467_v30 = vld [vmem:[%s13554_s0 + $0x2a8] sm:$0xff]  ;;  %v824_v6 = vld [vmem:[%s7879_s5 + $0x1290] sm:$0xff] }
 0x1b2   : > { %3134 = vmatpush.msra.mxu2 %v824_v6  ;;  %v850_v6 = vld [vmem:[%s7879_s5 + $0x1360] sm:$0xff] }
 0x1b3   : > { %2604 = vmatmul.f32.gmra.mxu1 %v1931_v45  ;;  %3202 = vmatpush.msra.mxu3 %v850_v6  ;;  %v1718_v6 = vld [vmem:[%s13554_s0 + $0xa80] sm:$0xff] }
 0x1b4   : > { %2734 = vmatmul.f32.gmra.mxu3 %v1933_v7  ;;  %v2410_v27 = vpop.f32.mrf.mxu2  ;;  %v760_v7 = vld [vmem:[%s7879_s5 + $0x1090] sm:$0xff] }
 0x1b5   : > { %v2411_v16 = vadd.f32 %v2410_v27, %v2346_v63  ;;  %3004 = vmatpush.msra.mxu0 %v760_v7  ;;  %v792_v27 = vld [vmem:[%s7879_s5 + $0x1190] sm:$0xff] }
 0x1b6   : > { %v2495_v17 = vpop.f32.mrf.mxu0  ;;  %3069 = vmatpush.msra.mxu1 %v792_v27 }
 0x1b7   : > { %v2475_v47 = vpop.f32.mrf.mxu3  ;;  %v2496_v22 = vadd.f32 %v2495_v17, %v8529_v49 }
 0x1b8   : > { %v8814_v24 = vadd.f32 %v2475_v47, %v2411_v16  ;;  %v2560_v25 = vpop.f32.mrf.mxu1  ;;  %v1504_v16 = vld [vmem:[%s13554_s0 + $0x3d0] sm:$0xff]  ;;  %v1503_v47 = vld [vmem:[%s13554_s0 + $0x3c8] sm:$0xff] }
 0x1b9   : > { %2754 = vmatmul.f32.vlgmr.msrb.gmra.mxu0 %v1394_v20  ;;  %2884 = vmatmul.f32.vlgmr.msrb.gmra.mxu2 %v1396_v21  ;;  %v2561_v14 = vadd.f32 %v2560_v25, %v2496_v22  ;;  %v1505_v22 = vld [vmem:[%s13554_s0 + $0x3d8] sm:$0xff]  ;;  %v822_v25 = vld [vmem:[%s7879_s5 + $0x1280] sm:$0xff] }
 0x1ba   : > { %3135 = vmatpush.msra.mxu2 %v822_v25  ;;  %v848_v25 = vld [vmem:[%s7879_s5 + $0x1350] sm:$0xff] }
 0x1bb   : > { %2819 = vmatmul.f32.vlgmr.msrb.gmra.mxu1 %v1395_v61  ;;  %3203 = vmatpush.msra.mxu3 %v848_v25  ;;  %v1754_v25 = vld [vmem:[%s13554_s0 + $0xba0] sm:$0xff] }
 0x1bc   : > { %2949 = vmatmul.f32.vlgmr.msrb.gmra.mxu3 %v1397_v26  ;;  %v2625_v49 = vpop.f32.mrf.mxu2  ;;  %v758_v26 = vld [vmem:[%s7879_s5 + $0x1080] sm:$0xff] }
 0x1bd   : > { %v2626_v33 = vadd.f32 %v2625_v49, %v2561_v14  ;;  %3005 = vmatpush.msra.mxu0 %v758_v26  ;;  %v790_v49 = vld [vmem:[%s7879_s5 + $0x1180] sm:$0xff] }
 0x1be   : > { %v2498_v37 = vpop.f32.mrf.mxu0  ;;  %3070 = vmatpush.msra.mxu1 %v790_v49 }
 0x1bf   : > { %v2499_v1 = vadd.f32 %v2498_v37, %v8548_v4  ;;  %v2690_v41 = vpop.f32.mrf.mxu3 }
 0x1c0   : > { %v8833_v43 = vadd.f32 %v2690_v41, %v2626_v33  ;;  %v2563_v44 = vpop.f32.mrf.mxu1  ;;  %v1540_v33 = vld [vmem:[%s13554_s0 + $0x4f0] sm:$0xff]  ;;  %v1541_v41 = vld [vmem:[%s13554_s0 + $0x4f8] sm:$0xff] }
 0x1c1   : > { %2757 = vmatmul.f32.gmra.mxu0 %v1430_v39  ;;  %2887 = vmatmul.f32.gmra.mxu2 %v1432_v40  ;;  %v2564_v29 = vadd.f32 %v2563_v44, %v2499_v1  ;;  %v1539_v1 = vld [vmem:[%s13554_s0 + $0x4e8] sm:$0xff]  ;;  %v820_v44 = vld [vmem:[%s7879_s5 + $0x1270] sm:$0xff] }
 0x1c2   : > { %3136 = vmatpush.msra.mxu2 %v820_v44  ;;  %v846_v44 = vld [vmem:[%s7879_s5 + $0x1340] sm:$0xff] }
 0x1c3   : > { %2822 = vmatmul.f32.gmra.mxu1 %v1431_v13  ;;  %3204 = vmatpush.msra.mxu3 %v846_v44  ;;  %v1790_v44 = vld [vmem:[%s13554_s0 + $0xcc0] sm:$0xff] }
 0x1c4   : > { %2952 = vmatmul.f32.gmra.mxu3 %v1433_v46  ;;  %v2628_v4 = vpop.f32.mrf.mxu2  ;;  %v756_v46 = vld [vmem:[%s7879_s5 + $0x1070] sm:$0xff] }
 0x1c5   : > { %v2629_v48 = vadd.f32 %v2628_v4, %v2564_v29  ;;  %3006 = vmatpush.msra.mxu0 %v756_v46  ;;  %v788_v4 = vld [vmem:[%s7879_s5 + $0x1170] sm:$0xff] }
 0x1c6   : > { %v2501_v56 = vpop.f32.mrf.mxu0  ;;  %3071 = vmatpush.msra.mxu1 %v788_v4 }
 0x1c7   : > { %v2502_v18 = vadd.f32 %v2501_v56, %v8567_v23  ;;  %v2693_v60 = vpop.f32.mrf.mxu3 }
 0x1c8   : > { %v8852_v0 = vadd.f32 %v2693_v60, %v2629_v48  ;;  %v2566_v2 = vpop.f32.mrf.mxu1  ;;  %v1576_v48 = vld [vmem:[%s13554_s0 + $0x610] sm:$0xff]  ;;  %v1577_v60 = vld [vmem:[%s13554_s0 + $0x618] sm:$0xff] }
 0x1c9   : > { %2760 = vmatmul.f32.gmra.mxu0 %v1466_v58  ;;  %2890 = vmatmul.f32.gmra.mxu2 %v1468_v59  ;;  %v2567_v45 = vadd.f32 %v2566_v2, %v2502_v18  ;;  %v1575_v18 = vld [vmem:[%s13554_s0 + $0x608] sm:$0xff]  ;;  %v818_v2 = vld [vmem:[%s7879_s5 + $0x1260] sm:$0xff] }
 0x1ca   : > { %3137 = vmatpush.msra.mxu2 %v818_v2  ;;  %v844_v2 = vld [vmem:[%s7879_s5 + $0x1330] sm:$0xff] }
 0x1cb   : > { %2825 = vmatmul.f32.gmra.mxu1 %v1467_v30  ;;  %3205 = vmatpush.msra.mxu3 %v844_v2  ;;  %v1826_v2 = vld [vmem:[%s13554_s0 + $0xde0] sm:$0xff] }
 0x1cc   : > { %2955 = vmatmul.f32.gmra.mxu3 %v1469_v3  ;;  %v2631_v23 = vpop.f32.mrf.mxu2  ;;  %v754_v3 = vld [vmem:[%s7879_s5 + $0x1060] sm:$0xff] }
 0x1cd   : > { %v2632_v63 = vadd.f32 %v2631_v23, %v2567_v45  ;;  %3007 = vmatpush.msra.mxu0 %v754_v3  ;;  %v786_v23 = vld [vmem:[%s7879_s5 + $0x1160] sm:$0xff] }
 0x1ce   : > { %v2504_v11 = vpop.f32.mrf.mxu0  ;;  %3072 = vmatpush.msra.mxu1 %v786_v23 }
 0x1cf   : > { %v2505_v36 = vadd.f32 %v2504_v11, %v8586_v42  ;;  %v2696_v17 = vpop.f32.mrf.mxu3 }
 0x1d0   : > { %v8871_v20 = vadd.f32 %v2696_v17, %v2632_v63  ;;  %v2569_v21 = vpop.f32.mrf.mxu1  ;;  %v1612_v63 = vld [vmem:[%s13554_s0 + $0x730] sm:$0xff]  ;;  %v1613_v17 = vld [vmem:[%s13554_s0 + $0x738] sm:$0xff] }
 0x1d1   : > { %2763 = vmatmul.f32.gmra.mxu0 %v1502_v15  ;;  %2893 = vmatmul.f32.gmra.mxu2 %v1504_v16  ;;  %v2570_v61 = vadd.f32 %v2569_v21, %v2505_v36  ;;  %v1611_v36 = vld [vmem:[%s13554_s0 + $0x728] sm:$0xff]  ;;  %v816_v21 = vld [vmem:[%s7879_s5 + $0x1250] sm:$0xff] }
 0x1d2   : > { %3138 = vmatpush.msra.mxu2 %v816_v21  ;;  %v842_v21 = vld [vmem:[%s7879_s5 + $0x1320] sm:$0xff] }
 0x1d3   : > { %2828 = vmatmul.f32.gmra.mxu1 %v1503_v47  ;;  %3206 = vmatpush.msra.mxu3 %v842_v21  ;;  %v1862_v21 = vld [vmem:[%s13554_s0 + $0xf00] sm:$0xff] }
 0x1d4   : > { %2958 = vmatmul.f32.gmra.mxu3 %v1505_v22  ;;  %v2634_v42 = vpop.f32.mrf.mxu2  ;;  %v752_v22 = vld [vmem:[%s7879_s5 + $0x1050] sm:$0xff] }
 0x1d5   : > { %v2635_v14 = vadd.f32 %v2634_v42, %v2570_v61  ;;  %3008 = vmatpush.msra.mxu0 %v752_v22  ;;  %v784_v42 = vld [vmem:[%s7879_s5 + $0x1150] sm:$0xff] }
 0x1d6   : > { %v2507_v32 = vpop.f32.mrf.mxu0  ;;  %3073 = vmatpush.msra.mxu1 %v784_v42 }
 0x1d7   : > { %v2508_v54 = vadd.f32 %v2507_v32, %v8605_v62  ;;  %v2699_v37 = vpop.f32.mrf.mxu3 }
 0x1d8   : > { %v8890_v39 = vadd.f32 %v2699_v37, %v2635_v14  ;;  %v2572_v40 = vpop.f32.mrf.mxu1  ;;  %v1648_v14 = vld [vmem:[%s13554_s0 + $0x850] sm:$0xff]  ;;  %v1649_v37 = vld [vmem:[%s13554_s0 + $0x858] sm:$0xff] }
 0x1d9   : > { %2766 = vmatmul.f32.gmra.mxu0 %v1538_v35  ;;  %2896 = vmatmul.f32.gmra.mxu2 %v1540_v33  ;;  %v2573_v13 = vadd.f32 %v2572_v40, %v2508_v54  ;;  %v1647_v54 = vld [vmem:[%s13554_s0 + $0x848] sm:$0xff]  ;;  %v814_v40 = vld [vmem:[%s7879_s5 + $0x1240] sm:$0xff] }
 0x1da   : > { %3139 = vmatpush.msra.mxu2 %v814_v40  ;;  %v840_v40 = vld [vmem:[%s7879_s5 + $0x1310] sm:$0xff] }
 0x1db   : > { %2831 = vmatmul.f32.gmra.mxu1 %v1539_v1  ;;  %3207 = vmatpush.msra.mxu3 %v840_v40  ;;  %v1898_v40 = vld [vmem:[%s13554_s0 + $0x1020] sm:$0xff] }
 0x1dc   : > { %2961 = vmatmul.f32.gmra.mxu3 %v1541_v41  ;;  %v2637_v62 = vpop.f32.mrf.mxu2  ;;  %v750_v41 = vld [vmem:[%s7879_s5 + $0x1040] sm:$0xff] }
 0x1dd   : > { %v2638_v29 = vadd.f32 %v2637_v62, %v2573_v13  ;;  %3009 = vmatpush.msra.mxu0 %v750_v41  ;;  %v782_v62 = vld [vmem:[%s7879_s5 + $0x1140] sm:$0xff] }
 0x1de   : > { %v2510_v52 = vpop.f32.mrf.mxu0  ;;  %3074 = vmatpush.msra.mxu1 %v782_v62 }
 0x1df   : > { %v2511_v8 = vadd.f32 %v2510_v52, %v8624_v19  ;;  %v2702_v56 = vpop.f32.mrf.mxu3 }
 0x1e0   : > { %v8909_v58 = vadd.f32 %v2702_v56, %v2638_v29  ;;  %v2575_v59 = vpop.f32.mrf.mxu1  ;;  %v1684_v29 = vld [vmem:[%s13554_s0 + $0x970] sm:$0xff]  ;;  %v1685_v56 = vld [vmem:[%s13554_s0 + $0x978] sm:$0xff] }
 0x1e1   : > { %2769 = vmatmul.f32.gmra.mxu0 %v1574_v55  ;;  %2899 = vmatmul.f32.gmra.mxu2 %v1576_v48  ;;  %v2576_v30 = vadd.f32 %v2575_v59, %v2511_v8  ;;  %v1683_v8 = vld [vmem:[%s13554_s0 + $0x968] sm:$0xff]  ;;  %v812_v59 = vld [vmem:[%s7879_s5 + $0x1230] sm:$0xff] }
 0x1e2   : > { %3140 = vmatpush.msra.mxu2 %v812_v59  ;;  %v838_v59 = vld [vmem:[%s7879_s5 + $0x1300] sm:$0xff] }
 0x1e3   : > { %2834 = vmatmul.f32.gmra.mxu1 %v1575_v18  ;;  %3208 = vmatpush.msra.mxu3 %v838_v59  ;;  %v1934_v59 = vld [vmem:[%s13554_s0 + $0x1140] sm:$0xff] }
 0x1e4   : > { %2964 = vmatmul.f32.gmra.mxu3 %v1577_v60  ;;  %v2640_v19 = vpop.f32.mrf.mxu2  ;;  %v748_v60 = vld [vmem:[%s7879_s5 + $0x1030] sm:$0xff] }
 0x1e5   : > { %v2641_v45 = vadd.f32 %v2640_v19, %v2576_v30  ;;  %3010 = vmatpush.msra.mxu0 %v748_v60  ;;  %v780_v19 = vld [vmem:[%s7879_s5 + $0x1130] sm:$0xff] }
 0x1e6   : > { %v2513_v7 = vpop.f32.mrf.mxu0  ;;  %3075 = vmatpush.msra.mxu1 %v780_v19 }
 0x1e7   : > { %v2514_v27 = vadd.f32 %v2513_v7, %v8643_v38  ;;  %v2705_v11 = vpop.f32.mrf.mxu3 }
 0x1e8   : > { %v8928_v15 = vadd.f32 %v2705_v11, %v2641_v45  ;;  %v2578_v16 = vpop.f32.mrf.mxu1  ;;  %v1720_v45 = vld [vmem:[%s13554_s0 + $0xa90] sm:$0xff]  ;;  %v1721_v11 = vld [vmem:[%s13554_s0 + $0xa98] sm:$0xff] }
 0x1e9   : > { %2772 = vmatmul.f32.gmra.mxu0 %v1610_v10  ;;  %2902 = vmatmul.f32.gmra.mxu2 %v1612_v63  ;;  %v2579_v47 = vadd.f32 %v2578_v16, %v2514_v27  ;;  %v1719_v27 = vld [vmem:[%s13554_s0 + $0xa88] sm:$0xff]  ;;  %v810_v16 = vld [vmem:[%s7879_s5 + $0x1220] sm:$0xff] }
 0x1ea   : > { %3141 = vmatpush.msra.mxu2 %v810_v16  ;;  %v996_v16 = vld [vmem:[%s7879_s5 + $0x17f0] sm:$0xff] }
 0x1eb   : > { %2837 = vmatmul.f32.gmra.mxu1 %v1611_v36  ;;  %3453 = vmatpush.msrb.mxu3 %v996_v16  ;;  %v1398_v16 = vld [vmem:[%s13554_s0 + $0x80] sm:$0xff] }
 0x1ec   : > { %2967 = vmatmul.f32.gmra.mxu3 %v1613_v17  ;;  %v2643_v38 = vpop.f32.mrf.mxu2  ;;  %v746_v17 = vld [vmem:[%s7879_s5 + $0x1020] sm:$0xff] }
 0x1ed   : > { %v2644_v61 = vadd.f32 %v2643_v38, %v2579_v47  ;;  %3011 = vmatpush.msra.mxu0 %v746_v17  ;;  %v778_v38 = vld [vmem:[%s7879_s5 + $0x1120] sm:$0xff] }
 0x1ee   : > { %v2516_v26 = vpop.f32.mrf.mxu0  ;;  %3076 = vmatpush.msra.mxu1 %v778_v38 }
 0x1ef   : > { %v2517_v49 = vadd.f32 %v2516_v26, %v8662_v57  ;;  %v2708_v32 = vpop.f32.mrf.mxu3 }
 0x1f0   : > { %v8947_v35 = vadd.f32 %v2708_v32, %v2644_v61  ;;  %v2581_v33 = vpop.f32.mrf.mxu1  ;;  %v1756_v61 = vld [vmem:[%s13554_s0 + $0xbb0] sm:$0xff]  ;;  %v1757_v32 = vld [vmem:[%s13554_s0 + $0xbb8] sm:$0xff] }
 0x1f1   : > { %2775 = vmatmul.f32.gmra.mxu0 %v1646_v31  ;;  %2905 = vmatmul.f32.gmra.mxu2 %v1648_v14  ;;  %v2582_v1 = vadd.f32 %v2581_v33, %v2517_v49  ;;  %v1755_v49 = vld [vmem:[%s13554_s0 + $0xba8] sm:$0xff]  ;;  %v808_v33 = vld [vmem:[%s7879_s5 + $0x1210] sm:$0xff] }
 0x1f2   : > { %3142 = vmatpush.msra.mxu2 %v808_v33  ;;  %v994_v33 = vld [vmem:[%s7879_s5 + $0x17e0] sm:$0xff] }
 0x1f3   : > { %2840 = vmatmul.f32.gmra.mxu1 %v1647_v54  ;;  %3454 = vmatpush.msrb.mxu3 %v994_v33  ;;  %v1434_v33 = vld [vmem:[%s13554_s0 + $0x1a0] sm:$0xff] }
 0x1f4   : > { %2970 = vmatmul.f32.gmra.mxu3 %v1649_v37  ;;  %v2646_v57 = vpop.f32.mrf.mxu2  ;;  %v744_v37 = vld [vmem:[%s7879_s5 + $0x1010] sm:$0xff] }
 0x1f5   : > { %v2647_v13 = vadd.f32 %v2646_v57, %v2582_v1  ;;  %3012 = vmatpush.msra.mxu0 %v744_v37  ;;  %v776_v57 = vld [vmem:[%s7879_s5 + $0x1110] sm:$0xff] }
 0x1f6   : > { %v2519_v46 = vpop.f32.mrf.mxu0  ;;  %3077 = vmatpush.msra.mxu1 %v776_v57 }
 0x1f7   : > { %v2520_v4 = vadd.f32 %v2519_v46, %v8681_v12  ;;  %v2711_v52 = vpop.f32.mrf.mxu3 }
 0x1f8   : > { %v8966_v55 = vadd.f32 %v2711_v52, %v2647_v13  ;;  %v2584_v48 = vpop.f32.mrf.mxu1  ;;  %v1792_v13 = vld [vmem:[%s13554_s0 + $0xcd0] sm:$0xff]  ;;  %v1793_v52 = vld [vmem:[%s13554_s0 + $0xcd8] sm:$0xff] }
 0x1f9   : > { %2778 = vmatmul.f32.gmra.mxu0 %v1682_v51  ;;  %2908 = vmatmul.f32.gmra.mxu2 %v1684_v29  ;;  %v2585_v18 = vadd.f32 %v2584_v48, %v2520_v4  ;;  %v1791_v4 = vld [vmem:[%s13554_s0 + $0xcc8] sm:$0xff]  ;;  %v806_v48 = vld [vmem:[%s7879_s5 + $0x1200] sm:$0xff] }
 0x1fa   : > { %3143 = vmatpush.msra.mxu2 %v806_v48  ;;  %v992_v48 = vld [vmem:[%s7879_s5 + $0x17d0] sm:$0xff] }
 0x1fb   : > { %2843 = vmatmul.f32.gmra.mxu1 %v1683_v8  ;;  %3455 = vmatpush.msrb.mxu3 %v992_v48  ;;  %v1470_v48 = vld [vmem:[%s13554_s0 + $0x2c0] sm:$0xff] }
 0x1fc   : > { %2973 = vmatmul.f32.gmra.mxu3 %v1685_v56  ;;  %v2649_v12 = vpop.f32.mrf.mxu2  ;;  %v742_v56 = vld [vmem:[%s7879_s5 + $0x1000] sm:$0xff] }
 0x1fd   : > { %v2650_v30 = vadd.f32 %v2649_v12, %v2585_v18  ;;  %3013 = vmatpush.msra.mxu0 %v742_v56  ;;  %v774_v12 = vld [vmem:[%s7879_s5 + $0x1100] sm:$0xff] }
 0x1fe   : > { %v2522_v3 = vpop.f32.mrf.mxu0  ;;  %3078 = vmatpush.msra.mxu1 %v774_v12 }
 0x1ff   : > { %v2523_v23 = vadd.f32 %v2522_v3, %v8700_v34  ;;  %v2714_v7 = vpop.f32.mrf.mxu3 }
 0x200   : > { %v8985_v10 = vadd.f32 %v2714_v7, %v2650_v30  ;;  %v2587_v63 = vpop.f32.mrf.mxu1  ;;  %v1828_v30 = vld [vmem:[%s13554_s0 + $0xdf0] sm:$0xff]  ;;  %v1829_v7 = vld [vmem:[%s13554_s0 + $0xdf8] sm:$0xff] }
 0x201   : > { %2781 = vmatmul.f32.gmra.mxu0 %v1718_v6  ;;  %2911 = vmatmul.f32.gmra.mxu2 %v1720_v45  ;;  %v2588_v36 = vadd.f32 %v2587_v63, %v2523_v23  ;;  %v1827_v23 = vld [vmem:[%s13554_s0 + $0xde8] sm:$0xff]  ;;  %v964_v63 = vld [vmem:[%s7879_s5 + $0x16f0] sm:$0xff] }
 0x202   : > { %3388 = vmatpush.msrb.mxu2 %v964_v63  ;;  %v990_v63 = vld [vmem:[%s7879_s5 + $0x17c0] sm:$0xff] }
 0x203   : > { %2846 = vmatmul.f32.gmra.mxu1 %v1719_v27  ;;  %3456 = vmatpush.msrb.mxu3 %v990_v63  ;;  %v1506_v63 = vld [vmem:[%s13554_s0 + $0x3e0] sm:$0xff] }
 0x204   : > { %2976 = vmatmul.f32.gmra.mxu3 %v1721_v11  ;;  %v2652_v34 = vpop.f32.mrf.mxu2  ;;  %v900_v11 = vld [vmem:[%s7879_s5 + $0x14f0] sm:$0xff] }
 0x205   : > { %v2653_v47 = vadd.f32 %v2652_v34, %v2588_v36  ;;  %3258 = vmatpush.msrb.mxu0 %v900_v11  ;;  %v932_v34 = vld [vmem:[%s7879_s5 + $0x15f0] sm:$0xff] }
 0x206   : > { %v2525_v22 = vpop.f32.mrf.mxu0  ;;  %3323 = vmatpush.msrb.mxu1 %v932_v34 }
 0x207   : > { %v2526_v42 = vadd.f32 %v2525_v22, %v8719_v53  ;;  %v2717_v26 = vpop.f32.mrf.mxu3 }
 0x208   : > { %v9004_v31 = vadd.f32 %v2717_v26, %v2653_v47  ;;  %v2590_v14 = vpop.f32.mrf.mxu1  ;;  %v1864_v47 = vld [vmem:[%s13554_s0 + $0xf10] sm:$0xff]  ;;  %v1865_v26 = vld [vmem:[%s13554_s0 + $0xf18] sm:$0xff] }
 0x209   : > { %2784 = vmatmul.f32.gmra.mxu0 %v1754_v25  ;;  %2914 = vmatmul.f32.gmra.mxu2 %v1756_v61  ;;  %v2591_v54 = vadd.f32 %v2590_v14, %v2526_v42  ;;  %v1863_v42 = vld [vmem:[%s13554_s0 + $0xf08] sm:$0xff]  ;;  %v962_v14 = vld [vmem:[%s7879_s5 + $0x16e0] sm:$0xff] }
 0x20a   : > { %3389 = vmatpush.msrb.mxu2 %v962_v14  ;;  %v988_v14 = vld [vmem:[%s7879_s5 + $0x17b0] sm:$0xff] }
 0x20b   : > { %2849 = vmatmul.f32.gmra.mxu1 %v1755_v49  ;;  %3457 = vmatpush.msrb.mxu3 %v988_v14  ;;  %v1542_v14 = vld [vmem:[%s13554_s0 + $0x500] sm:$0xff] }
 0x20c   : > { %2979 = vmatmul.f32.gmra.mxu3 %v1757_v32  ;;  %v2655_v53 = vpop.f32.mrf.mxu2  ;;  %v898_v32 = vld [vmem:[%s7879_s5 + $0x14e0] sm:$0xff] }
 0x20d   : > { %v2656_v1 = vadd.f32 %v2655_v53, %v2591_v54  ;;  %3259 = vmatpush.msrb.mxu0 %v898_v32  ;;  %v930_v53 = vld [vmem:[%s7879_s5 + $0x15e0] sm:$0xff] }
 0x20e   : > { %v2528_v41 = vpop.f32.mrf.mxu0  ;;  %3324 = vmatpush.msrb.mxu1 %v930_v53 }
 0x20f   : > { %v2529_v62 = vadd.f32 %v2528_v41, %v8738_v9  ;;  %v2720_v46 = vpop.f32.mrf.mxu3 }
 0x210   : > { %v9023_v51 = vadd.f32 %v2720_v46, %v2656_v1  ;;  %v2593_v29 = vpop.f32.mrf.mxu1  ;;  %v1900_v1 = vld [vmem:[%s13554_s0 + $0x1030] sm:$0xff]  ;;  %v1901_v46 = vld [vmem:[%s13554_s0 + $0x1038] sm:$0xff] }
 0x211   : > { %2787 = vmatmul.f32.gmra.mxu0 %v1790_v44  ;;  %2917 = vmatmul.f32.gmra.mxu2 %v1792_v13  ;;  %v2594_v8 = vadd.f32 %v2593_v29, %v2529_v62  ;;  %v1899_v62 = vld [vmem:[%s13554_s0 + $0x1028] sm:$0xff]  ;;  %v960_v29 = vld [vmem:[%s7879_s5 + $0x16d0] sm:$0xff] }
 0x212   : > { %3390 = vmatpush.msrb.mxu2 %v960_v29  ;;  %v986_v29 = vld [vmem:[%s7879_s5 + $0x17a0] sm:$0xff] }
 0x213   : > { %2852 = vmatmul.f32.gmra.mxu1 %v1791_v4  ;;  %3458 = vmatpush.msrb.mxu3 %v986_v29  ;;  %v1578_v29 = vld [vmem:[%s13554_s0 + $0x620] sm:$0xff] }
 0x214   : > { %2982 = vmatmul.f32.gmra.mxu3 %v1793_v52  ;;  %v2658_v9 = vpop.f32.mrf.mxu2  ;;  %v896_v52 = vld [vmem:[%s7879_s5 + $0x14d0] sm:$0xff] }
 0x215   : > { %v2659_v18 = vadd.f32 %v2658_v9, %v2594_v8  ;;  %3260 = vmatpush.msrb.mxu0 %v896_v52  ;;  %v928_v9 = vld [vmem:[%s7879_s5 + $0x15d0] sm:$0xff] }
 0x216   : > { %v2531_v60 = vpop.f32.mrf.mxu0  ;;  %3325 = vmatpush.msrb.mxu1 %v928_v9 }
 0x217   : > { %v2532_v19 = vadd.f32 %v2531_v60, %v8757_v28  ;;  %v2723_v3 = vpop.f32.mrf.mxu3 }
 0x218   : > { %v9042_v6 = vadd.f32 %v2723_v3, %v2659_v18  ;;  %v2596_v45 = vpop.f32.mrf.mxu1  ;;  %v1936_v18 = vld [vmem:[%s13554_s0 + $0x1150] sm:$0xff]  ;;  %v1937_v3 = vld [vmem:[%s13554_s0 + $0x1158] sm:$0xff] }
 0x219   : > { %2790 = vmatmul.f32.gmra.mxu0 %v1826_v2  ;;  %2920 = vmatmul.f32.gmra.mxu2 %v1828_v30  ;;  %v2597_v27 = vadd.f32 %v2596_v45, %v2532_v19  ;;  %v1935_v19 = vld [vmem:[%s13554_s0 + $0x1148] sm:$0xff]  ;;  %v958_v45 = vld [vmem:[%s7879_s5 + $0x16c0] sm:$0xff] }
 0x21a   : > { %3391 = vmatpush.msrb.mxu2 %v958_v45  ;;  %v984_v45 = vld [vmem:[%s7879_s5 + $0x1790] sm:$0xff] }
 0x21b   : > { %2855 = vmatmul.f32.gmra.mxu1 %v1827_v23  ;;  %3459 = vmatpush.msrb.mxu3 %v984_v45  ;;  %v1614_v45 = vld [vmem:[%s13554_s0 + $0x740] sm:$0xff] }
 0x21c   : > { %2985 = vmatmul.f32.gmra.mxu3 %v1829_v7  ;;  %v2661_v28 = vpop.f32.mrf.mxu2  ;;  %v894_v7 = vld [vmem:[%s7879_s5 + $0x14c0] sm:$0xff] }
 0x21d   : > { %v2662_v36 = vadd.f32 %v2661_v28, %v2597_v27  ;;  %3261 = vmatpush.msrb.mxu0 %v894_v7  ;;  %v926_v28 = vld [vmem:[%s7879_s5 + $0x15c0] sm:$0xff] }
 0x21e   : > { %v2534_v17 = vpop.f32.mrf.mxu0  ;;  %3326 = vmatpush.msrb.mxu1 %v926_v28 }
 0x21f   : > { %v2535_v38 = vadd.f32 %v2534_v17, %v8776_v50  ;;  %v2726_v22 = vpop.f32.mrf.mxu3 }
 0x220   : > { %v9061_v25 = vadd.f32 %v2726_v22, %v2662_v36  ;;  %v2599_v61 = vpop.f32.mrf.mxu1  ;;  %v1400_v36 = vld [vmem:[%s13554_s0 + $0x90] sm:$0xff]  ;;  %v1401_v22 = vld [vmem:[%s13554_s0 + $0x98] sm:$0xff] }
 0x221   : > { %2793 = vmatmul.f32.gmra.mxu0 %v1862_v21  ;;  %2923 = vmatmul.f32.gmra.mxu2 %v1864_v47  ;;  %v2600_v49 = vadd.f32 %v2599_v61, %v2535_v38  ;;  %v1399_v38 = vld [vmem:[%s13554_s0 + $0x88] sm:$0xff]  ;;  %v956_v61 = vld [vmem:[%s7879_s5 + $0x16b0] sm:$0xff] }
 0x222   : > { %3392 = vmatpush.msrb.mxu2 %v956_v61  ;;  %v982_v61 = vld [vmem:[%s7879_s5 + $0x1780] sm:$0xff] }
 0x223   : > { %2858 = vmatmul.f32.gmra.mxu1 %v1863_v42  ;;  %3460 = vmatpush.msrb.mxu3 %v982_v61  ;;  %v1650_v61 = vld [vmem:[%s13554_s0 + $0x860] sm:$0xff] }
 0x224   : > { %2988 = vmatmul.f32.gmra.mxu3 %v1865_v26  ;;  %v2664_v50 = vpop.f32.mrf.mxu2  ;;  %v892_v26 = vld [vmem:[%s7879_s5 + $0x14b0] sm:$0xff] }
 0x225   : > { %v2665_v54 = vadd.f32 %v2664_v50, %v2600_v49  ;;  %3262 = vmatpush.msrb.mxu0 %v892_v26  ;;  %v924_v50 = vld [vmem:[%s7879_s5 + $0x15b0] sm:$0xff] }
 0x226   : > { %v2537_v37 = vpop.f32.mrf.mxu0  ;;  %3327 = vmatpush.msrb.mxu1 %v924_v50 }
 0x227   : > { %v2538_v57 = vadd.f32 %v2537_v37, %v8795_v5  ;;  %v2729_v41 = vpop.f32.mrf.mxu3 }
 0x228   : > { %v9080_v44 = vadd.f32 %v2729_v41, %v2665_v54  ;;  %v2602_v13 = vpop.f32.mrf.mxu1  ;;  %v1436_v54 = vld [vmem:[%s13554_s0 + $0x1b0] sm:$0xff]  ;;  %v1437_v41 = vld [vmem:[%s13554_s0 + $0x1b8] sm:$0xff] }
 0x229   : > { %2796 = vmatmul.f32.gmra.mxu0 %v1898_v40  ;;  %2926 = vmatmul.f32.gmra.mxu2 %v1900_v1  ;;  %v2603_v4 = vadd.f32 %v2602_v13, %v2538_v57  ;;  %v1435_v57 = vld [vmem:[%s13554_s0 + $0x1a8] sm:$0xff]  ;;  %v954_v13 = vld [vmem:[%s7879_s5 + $0x16a0] sm:$0xff] }
 0x22a   : > { %3393 = vmatpush.msrb.mxu2 %v954_v13  ;;  %v980_v13 = vld [vmem:[%s7879_s5 + $0x1770] sm:$0xff] }
 0x22b   : > { %2861 = vmatmul.f32.gmra.mxu1 %v1899_v62  ;;  %3461 = vmatpush.msrb.mxu3 %v980_v13  ;;  %v1686_v13 = vld [vmem:[%s13554_s0 + $0x980] sm:$0xff] }
 0x22c   : > { %2991 = vmatmul.f32.gmra.mxu3 %v1901_v46  ;;  %v2667_v5 = vpop.f32.mrf.mxu2  ;;  %v890_v46 = vld [vmem:[%s7879_s5 + $0x14a0] sm:$0xff] }
 0x22d   : > { %v2668_v8 = vadd.f32 %v2667_v5, %v2603_v4  ;;  %3263 = vmatpush.msrb.mxu0 %v890_v46  ;;  %v922_v5 = vld [vmem:[%s7879_s5 + $0x15a0] sm:$0xff] }
 0x22e   : > { %v2540_v56 = vpop.f32.mrf.mxu0  ;;  %3328 = vmatpush.msrb.mxu1 %v922_v5 }
 0x22f   : > { %v2541_v12 = vadd.f32 %v2540_v56, %v8814_v24  ;;  %v2732_v60 = vpop.f32.mrf.mxu3 }
 0x230   : > { %v9099_v2 = vadd.f32 %v2732_v60, %v2668_v8  ;;  %v2605_v30 = vpop.f32.mrf.mxu1  ;;  %v1472_v8 = vld [vmem:[%s13554_s0 + $0x2d0] sm:$0xff]  ;;  %v1473_v60 = vld [vmem:[%s13554_s0 + $0x2d8] sm:$0xff] }
 0x231   : > { %2799 = vmatmul.f32.gmra.mxu0 %v1934_v59  ;;  %2929 = vmatmul.f32.gmra.mxu2 %v1936_v18  ;;  %v2606_v23 = vadd.f32 %v2605_v30, %v2541_v12  ;;  %v1471_v12 = vld [vmem:[%s13554_s0 + $0x2c8] sm:$0xff]  ;;  %v952_v30 = vld [vmem:[%s7879_s5 + $0x1690] sm:$0xff] }
 0x232   : > { %3394 = vmatpush.msrb.mxu2 %v952_v30  ;;  %v978_v30 = vld [vmem:[%s7879_s5 + $0x1760] sm:$0xff] }
 0x233   : > { %2864 = vmatmul.f32.gmra.mxu1 %v1935_v19  ;;  %3462 = vmatpush.msrb.mxu3 %v978_v30  ;;  %v1722_v30 = vld [vmem:[%s13554_s0 + $0xaa0] sm:$0xff] }
 0x234   : > { %2994 = vmatmul.f32.gmra.mxu3 %v1937_v3  ;;  %v2670_v24 = vpop.f32.mrf.mxu2  ;;  %v888_v3 = vld [vmem:[%s7879_s5 + $0x1490] sm:$0xff] }
 0x235   : > { %v2671_v27 = vadd.f32 %v2670_v24, %v2606_v23  ;;  %3264 = vmatpush.msrb.mxu0 %v888_v3  ;;  %v920_v24 = vld [vmem:[%s7879_s5 + $0x1590] sm:$0xff] }
 0x236   : > { %v2755_v11 = vpop.f32.mrf.mxu0  ;;  %3329 = vmatpush.msrb.mxu1 %v920_v24 }
 0x237   : > { %v2735_v34 = vpop.f32.mrf.mxu3  ;;  %v2756_v17 = vadd.f32 %v2755_v11, %v8833_v43 }
 0x238   : > { %v9118_v21 = vadd.f32 %v2735_v34, %v2671_v27  ;;  %v2820_v47 = vpop.f32.mrf.mxu1  ;;  %v1508_v27 = vld [vmem:[%s13554_s0 + $0x3f0] sm:$0xff]  ;;  %v1507_v34 = vld [vmem:[%s13554_s0 + $0x3e8] sm:$0xff] }
 0x239   : > { %3014 = vmatmul.f32.vlgmr.msra.gmra.mxu0 %v1398_v16  ;;  %3144 = vmatmul.f32.vlgmr.msra.gmra.mxu2 %v1400_v36  ;;  %v2821_v42 = vadd.f32 %v2820_v47, %v2756_v17  ;;  %v1509_v17 = vld [vmem:[%s13554_s0 + $0x3f8] sm:$0xff]  ;;  %v950_v47 = vld [vmem:[%s7879_s5 + $0x1680] sm:$0xff] }
 0x23a   : > { %3395 = vmatpush.msrb.mxu2 %v950_v47  ;;  %v976_v47 = vld [vmem:[%s7879_s5 + $0x1750] sm:$0xff] }
 0x23b   : > { %3079 = vmatmul.f32.vlgmr.msra.gmra.mxu1 %v1399_v38  ;;  %3463 = vmatpush.msrb.mxu3 %v976_v47  ;;  %v1758_v47 = vld [vmem:[%s13554_s0 + $0xbc0] sm:$0xff] }
 0x23c   : > { %3209 = vmatmul.f32.vlgmr.msra.gmra.mxu3 %v1401_v22  ;;  %v2885_v43 = vpop.f32.mrf.mxu2  ;;  %v886_v22 = vld [vmem:[%s7879_s5 + $0x1480] sm:$0xff] }
 0x23d   : > { %v2886_v49 = vadd.f32 %v2885_v43, %v2821_v42  ;;  %3265 = vmatpush.msrb.mxu0 %v886_v22  ;;  %v918_v43 = vld [vmem:[%s7879_s5 + $0x1580] sm:$0xff] }
 0x23e   : > { %v2758_v32 = vpop.f32.mrf.mxu0  ;;  %3330 = vmatpush.msrb.mxu1 %v918_v43 }
 0x23f   : > { %v2759_v53 = vadd.f32 %v2758_v32, %v8852_v0  ;;  %v2950_v37 = vpop.f32.mrf.mxu3 }
 0x240   : > { %v9137_v40 = vadd.f32 %v2950_v37, %v2886_v49  ;;  %v2823_v1 = vpop.f32.mrf.mxu1  ;;  %v1544_v49 = vld [vmem:[%s13554_s0 + $0x510] sm:$0xff]  ;;  %v1545_v37 = vld [vmem:[%s13554_s0 + $0x518] sm:$0xff] }
 0x241   : > { %3017 = vmatmul.f32.gmra.mxu0 %v1434_v33  ;;  %3147 = vmatmul.f32.gmra.mxu2 %v1436_v54  ;;  %v2824_v62 = vadd.f32 %v2823_v1, %v2759_v53  ;;  %v1543_v53 = vld [vmem:[%s13554_s0 + $0x508] sm:$0xff]  ;;  %v948_v1 = vld [vmem:[%s7879_s5 + $0x1670] sm:$0xff] }
 0x242   : > { %3396 = vmatpush.msrb.mxu2 %v948_v1  ;;  %v974_v1 = vld [vmem:[%s7879_s5 + $0x1740] sm:$0xff] }
 0x243   : > { %3082 = vmatmul.f32.gmra.mxu1 %v1435_v57  ;;  %3464 = vmatpush.msrb.mxu3 %v974_v1  ;;  %v1794_v1 = vld [vmem:[%s13554_s0 + $0xce0] sm:$0xff] }
 0x244   : > { %3212 = vmatmul.f32.gmra.mxu3 %v1437_v41  ;;  %v2888_v0 = vpop.f32.mrf.mxu2  ;;  %v884_v41 = vld [vmem:[%s7879_s5 + $0x1470] sm:$0xff] }
 0x245   : > { %v2889_v4 = vadd.f32 %v2888_v0, %v2824_v62  ;;  %3266 = vmatpush.msrb.mxu0 %v884_v41  ;;  %v916_v0 = vld [vmem:[%s7879_s5 + $0x1570] sm:$0xff] }
 0x246   : > { %v2761_v52 = vpop.f32.mrf.mxu0  ;;  %3331 = vmatpush.msrb.mxu1 %v916_v0 }
 0x247   : > { %v2762_v9 = vadd.f32 %v2761_v52, %v8871_v20  ;;  %v2953_v56 = vpop.f32.mrf.mxu3 }
 0x248   : > { %v9156_v59 = vadd.f32 %v2953_v56, %v2889_v4  ;;  %v2826_v18 = vpop.f32.mrf.mxu1  ;;  %v1580_v4 = vld [vmem:[%s13554_s0 + $0x630] sm:$0xff]  ;;  %v1581_v56 = vld [vmem:[%s13554_s0 + $0x638] sm:$0xff] }
 0x249   : > { %3020 = vmatmul.f32.gmra.mxu0 %v1470_v48  ;;  %3150 = vmatmul.f32.gmra.mxu2 %v1472_v8  ;;  %v2827_v19 = vadd.f32 %v2826_v18, %v2762_v9  ;;  %v1579_v9 = vld [vmem:[%s13554_s0 + $0x628] sm:$0xff]  ;;  %v946_v18 = vld [vmem:[%s7879_s5 + $0x1660] sm:$0xff] }
 0x24a   : > { %3397 = vmatpush.msrb.mxu2 %v946_v18  ;;  %v972_v18 = vld [vmem:[%s7879_s5 + $0x1730] sm:$0xff] }
 0x24b   : > { %3085 = vmatmul.f32.gmra.mxu1 %v1471_v12  ;;  %3465 = vmatpush.msrb.mxu3 %v972_v18  ;;  %v1830_v18 = vld [vmem:[%s13554_s0 + $0xe00] sm:$0xff] }
 0x24c   : > { %3215 = vmatmul.f32.gmra.mxu3 %v1473_v60  ;;  %v2891_v20 = vpop.f32.mrf.mxu2  ;;  %v882_v60 = vld [vmem:[%s7879_s5 + $0x1460] sm:$0xff] }
 0x24d   : > { %v2892_v23 = vadd.f32 %v2891_v20, %v2827_v19  ;;  %3267 = vmatpush.msrb.mxu0 %v882_v60  ;;  %v914_v20 = vld [vmem:[%s7879_s5 + $0x1560] sm:$0xff] }
 0x24e   : > { %v2764_v7 = vpop.f32.mrf.mxu0  ;;  %3332 = vmatpush.msrb.mxu1 %v914_v20 }
 0x24f   : > { %v2765_v28 = vadd.f32 %v2764_v7, %v8890_v39  ;;  %v2956_v11 = vpop.f32.mrf.mxu3 }
 0x250   : > { %v9175_v16 = vadd.f32 %v2956_v11, %v2892_v23  ;;  %v2829_v36 = vpop.f32.mrf.mxu1  ;;  %v1616_v23 = vld [vmem:[%s13554_s0 + $0x750] sm:$0xff]  ;;  %v1617_v11 = vld [vmem:[%s13554_s0 + $0x758] sm:$0xff] }
 0x251   : > { %3023 = vmatmul.f32.gmra.mxu0 %v1506_v63  ;;  %3153 = vmatmul.f32.gmra.mxu2 %v1508_v27  ;;  %v2830_v38 = vadd.f32 %v2829_v36, %v2765_v28  ;;  %v1615_v28 = vld [vmem:[%s13554_s0 + $0x748] sm:$0xff]  ;;  %v944_v36 = vld [vmem:[%s7879_s5 + $0x1650] sm:$0xff] }
 0x252   : > { %3398 = vmatpush.msrb.mxu2 %v944_v36  ;;  %v970_v36 = vld [vmem:[%s7879_s5 + $0x1720] sm:$0xff] }
 0x253   : > { %3088 = vmatmul.f32.gmra.mxu1 %v1507_v34  ;;  %3466 = vmatpush.msrb.mxu3 %v970_v36  ;;  %v1866_v36 = vld [vmem:[%s13554_s0 + $0xf20] sm:$0xff] }
 0x254   : > { %3218 = vmatmul.f32.gmra.mxu3 %v1509_v17  ;;  %v2894_v39 = vpop.f32.mrf.mxu2  ;;  %v880_v17 = vld [vmem:[%s7879_s5 + $0x1450] sm:$0xff] }
 0x255   : > { %v2895_v42 = vadd.f32 %v2894_v39, %v2830_v38  ;;  %3268 = vmatpush.msrb.mxu0 %v880_v17  ;;  %v912_v39 = vld [vmem:[%s7879_s5 + $0x1550] sm:$0xff] }
 0x256   : > { %v2767_v26 = vpop.f32.mrf.mxu0  ;;  %3333 = vmatpush.msrb.mxu1 %v912_v39 }
 0x257   : > { %v2768_v50 = vadd.f32 %v2767_v26, %v8909_v58  ;;  %v2959_v32 = vpop.f32.mrf.mxu3 }
 0x258   : > { %v9194_v33 = vadd.f32 %v2959_v32, %v2895_v42  ;;  %v2832_v54 = vpop.f32.mrf.mxu1  ;;  %v1652_v42 = vld [vmem:[%s13554_s0 + $0x870] sm:$0xff]  ;;  %v1653_v32 = vld [vmem:[%s13554_s0 + $0x878] sm:$0xff] }
 0x259   : > { %3026 = vmatmul.f32.gmra.mxu0 %v1542_v14  ;;  %3156 = vmatmul.f32.gmra.mxu2 %v1544_v49  ;;  %v2833_v57 = vadd.f32 %v2832_v54, %v2768_v50  ;;  %v1651_v50 = vld [vmem:[%s13554_s0 + $0x868] sm:$0xff]  ;;  %v942_v54 = vld [vmem:[%s7879_s5 + $0x1640] sm:$0xff] }
 0x25a   : > { %3399 = vmatpush.msrb.mxu2 %v942_v54  ;;  %v968_v54 = vld [vmem:[%s7879_s5 + $0x1710] sm:$0xff] }
 0x25b   : > { %3091 = vmatmul.f32.gmra.mxu1 %v1543_v53  ;;  %3467 = vmatpush.msrb.mxu3 %v968_v54  ;;  %v1902_v54 = vld [vmem:[%s13554_s0 + $0x1040] sm:$0xff] }
 0x25c   : > { %3221 = vmatmul.f32.gmra.mxu3 %v1545_v37  ;;  %v2897_v58 = vpop.f32.mrf.mxu2  ;;  %v878_v37 = vld [vmem:[%s7879_s5 + $0x1440] sm:$0xff] }
 0x25d   : > { %v2898_v62 = vadd.f32 %v2897_v58, %v2833_v57  ;;  %3269 = vmatpush.msrb.mxu0 %v878_v37  ;;  %v910_v58 = vld [vmem:[%s7879_s5 + $0x1540] sm:$0xff] }
 0x25e   : > { %v2770_v46 = vpop.f32.mrf.mxu0  ;;  %3334 = vmatpush.msrb.mxu1 %v910_v58 }
 0x25f   : > { %v2771_v5 = vadd.f32 %v2770_v46, %v8928_v15  ;;  %v2962_v52 = vpop.f32.mrf.mxu3 }
 0x260   : > { %v9213_v48 = vadd.f32 %v2962_v52, %v2898_v62  ;;  %v2835_v8 = vpop.f32.mrf.mxu1  ;;  %v1688_v62 = vld [vmem:[%s13554_s0 + $0x990] sm:$0xff]  ;;  %v1689_v52 = vld [vmem:[%s13554_s0 + $0x998] sm:$0xff] }
 0x261   : > { %3029 = vmatmul.f32.gmra.mxu0 %v1578_v29  ;;  %3159 = vmatmul.f32.gmra.mxu2 %v1580_v4  ;;  %v2836_v12 = vadd.f32 %v2835_v8, %v2771_v5  ;;  %v1687_v5 = vld [vmem:[%s13554_s0 + $0x988] sm:$0xff]  ;;  %v940_v8 = vld [vmem:[%s7879_s5 + $0x1630] sm:$0xff] }
 0x262   : > { %3400 = vmatpush.msrb.mxu2 %v940_v8  ;;  %v966_v8 = vld [vmem:[%s7879_s5 + $0x1700] sm:$0xff] }
 0x263   : > { %3094 = vmatmul.f32.gmra.mxu1 %v1579_v9  ;;  %3468 = vmatpush.msrb.mxu3 %v966_v8  ;;  %v1938_v8 = vld [vmem:[%s13554_s0 + $0x1160] sm:$0xff] }
 0x264   : > { %3224 = vmatmul.f32.gmra.mxu3 %v1581_v56  ;;  %v2900_v15 = vpop.f32.mrf.mxu2  ;;  %v876_v56 = vld [vmem:[%s7879_s5 + $0x1430] sm:$0xff] }
 0x265   : > { %v2901_v19 = vadd.f32 %v2900_v15, %v2836_v12  ;;  %3270 = vmatpush.msrb.mxu0 %v876_v56  ;;  %v908_v15 = vld [vmem:[%s7879_s5 + $0x1530] sm:$0xff] }
 0x266   : > { %v2773_v3 = vpop.f32.mrf.mxu0  ;;  %3335 = vmatpush.msrb.mxu1 %v908_v15 }
 0x267   : > { %v2774_v24 = vadd.f32 %v2773_v3, %v8947_v35  ;;  %v2965_v7 = vpop.f32.mrf.mxu3 }
 0x268   : > { %v9232_v63 = vadd.f32 %v2965_v7, %v2901_v19  ;;  %v2838_v27 = vpop.f32.mrf.mxu1  ;;  %v1724_v19 = vld [vmem:[%s13554_s0 + $0xab0] sm:$0xff]  ;;  %v1725_v7 = vld [vmem:[%s13554_s0 + $0xab8] sm:$0xff] }
 0x269   : > { %3032 = vmatmul.f32.gmra.mxu0 %v1614_v45  ;;  %3162 = vmatmul.f32.gmra.mxu2 %v1616_v23  ;;  %v2839_v34 = vadd.f32 %v2838_v27, %v2774_v24  ;;  %v1723_v24 = vld [vmem:[%s13554_s0 + $0xaa8] sm:$0xff]  ;;  %v938_v27 = vld [vmem:[%s7879_s5 + $0x1620] sm:$0xff] }
 0x26a   : > { %3401 = vmatpush.msrb.mxu2 %v938_v27  ;;  %v1124_v27 = vld [vmem:[%s7879_s5 + $0x1bf0] sm:$0xff] }
 0x26b   : > { %3097 = vmatmul.f32.gmra.mxu1 %v1615_v28  ;;  %3713 = vmatpush.msra.mxu3 %v1124_v27  ;;  %v1402_v27 = vld [vmem:[%s13554_s0 + $0xa0] sm:$0xff] }
 0x26c   : > { %3227 = vmatmul.f32.gmra.mxu3 %v1617_v11  ;;  %v2903_v35 = vpop.f32.mrf.mxu2  ;;  %v874_v11 = vld [vmem:[%s7879_s5 + $0x1420] sm:$0xff] }
 0x26d   : > { %v2904_v38 = vadd.f32 %v2903_v35, %v2839_v34  ;;  %3271 = vmatpush.msrb.mxu0 %v874_v11  ;;  %v906_v35 = vld [vmem:[%s7879_s5 + $0x1520] sm:$0xff] }
 0x26e   : > { %v2776_v22 = vpop.f32.mrf.mxu0  ;;  %3336 = vmatpush.msrb.mxu1 %v906_v35 }
 0x26f   : > { %v2777_v43 = vadd.f32 %v2776_v22, %v8966_v55  ;;  %v2968_v26 = vpop.f32.mrf.mxu3 }
 0x270   : > { %v9251_v14 = vadd.f32 %v2968_v26, %v2904_v38  ;;  %v2841_v49 = vpop.f32.mrf.mxu1  ;;  %v1760_v38 = vld [vmem:[%s13554_s0 + $0xbd0] sm:$0xff]  ;;  %v1761_v26 = vld [vmem:[%s13554_s0 + $0xbd8] sm:$0xff] }
 0x271   : > { %3035 = vmatmul.f32.gmra.mxu0 %v1650_v61  ;;  %3165 = vmatmul.f32.gmra.mxu2 %v1652_v42  ;;  %v2842_v53 = vadd.f32 %v2841_v49, %v2777_v43  ;;  %v1759_v43 = vld [vmem:[%s13554_s0 + $0xbc8] sm:$0xff]  ;;  %v936_v49 = vld [vmem:[%s7879_s5 + $0x1610] sm:$0xff] }
 0x272   : > { %3402 = vmatpush.msrb.mxu2 %v936_v49  ;;  %v1122_v49 = vld [vmem:[%s7879_s5 + $0x1be0] sm:$0xff] }
 0x273   : > { %3100 = vmatmul.f32.gmra.mxu1 %v1651_v50  ;;  %3714 = vmatpush.msra.mxu3 %v1122_v49  ;;  %v1438_v49 = vld [vmem:[%s13554_s0 + $0x1c0] sm:$0xff] }
 0x274   : > { %3230 = vmatmul.f32.gmra.mxu3 %v1653_v32  ;;  %v2906_v55 = vpop.f32.mrf.mxu2  ;;  %v872_v32 = vld [vmem:[%s7879_s5 + $0x1410] sm:$0xff] }
 0x275   : > { %v2907_v57 = vadd.f32 %v2906_v55, %v2842_v53  ;;  %3272 = vmatpush.msrb.mxu0 %v872_v32  ;;  %v904_v55 = vld [vmem:[%s7879_s5 + $0x1510] sm:$0xff] }
 0x276   : > { %v2779_v41 = vpop.f32.mrf.mxu0  ;;  %3337 = vmatpush.msrb.mxu1 %v904_v55 }
 0x277   : > { %v2780_v0 = vadd.f32 %v2779_v41, %v8985_v10  ;;  %v2971_v46 = vpop.f32.mrf.mxu3 }
 0x278   : > { %v9270_v29 = vadd.f32 %v2971_v46, %v2907_v57  ;;  %v2844_v4 = vpop.f32.mrf.mxu1  ;;  %v1796_v57 = vld [vmem:[%s13554_s0 + $0xcf0] sm:$0xff]  ;;  %v1797_v46 = vld [vmem:[%s13554_s0 + $0xcf8] sm:$0xff] }
 0x279   : > { %3038 = vmatmul.f32.gmra.mxu0 %v1686_v13  ;;  %3168 = vmatmul.f32.gmra.mxu2 %v1688_v62  ;;  %v2845_v9 = vadd.f32 %v2844_v4, %v2780_v0  ;;  %v1795_v0 = vld [vmem:[%s13554_s0 + $0xce8] sm:$0xff]  ;;  %v934_v4 = vld [vmem:[%s7879_s5 + $0x1600] sm:$0xff] }
 0x27a   : > { %3403 = vmatpush.msrb.mxu2 %v934_v4  ;;  %v1120_v4 = vld [vmem:[%s7879_s5 + $0x1bd0] sm:$0xff] }
 0x27b   : > { %3103 = vmatmul.f32.gmra.mxu1 %v1687_v5  ;;  %3715 = vmatpush.msra.mxu3 %v1120_v4  ;;  %v1474_v4 = vld [vmem:[%s13554_s0 + $0x2e0] sm:$0xff] }
 0x27c   : > { %3233 = vmatmul.f32.gmra.mxu3 %v1689_v52  ;;  %v2909_v10 = vpop.f32.mrf.mxu2  ;;  %v870_v52 = vld [vmem:[%s7879_s5 + $0x1400] sm:$0xff] }
 0x27d   : > { %v2910_v12 = vadd.f32 %v2909_v10, %v2845_v9  ;;  %3273 = vmatpush.msrb.mxu0 %v870_v52  ;;  %v902_v10 = vld [vmem:[%s7879_s5 + $0x1500] sm:$0xff] }
 0x27e   : > { %v2782_v60 = vpop.f32.mrf.mxu0  ;;  %3338 = vmatpush.msrb.mxu1 %v902_v10 }
 0x27f   : > { %v2783_v20 = vadd.f32 %v2782_v60, %v9004_v31  ;;  %v2974_v3 = vpop.f32.mrf.mxu3 }
 0x280   : > { %v9289_v45 = vadd.f32 %v2974_v3, %v2910_v12  ;;  %v2847_v23 = vpop.f32.mrf.mxu1  ;;  %v1832_v12 = vld [vmem:[%s13554_s0 + $0xe10] sm:$0xff]  ;;  %v1833_v3 = vld [vmem:[%s13554_s0 + $0xe18] sm:$0xff] }
 0x281   : > { %3041 = vmatmul.f32.gmra.mxu0 %v1722_v30  ;;  %3171 = vmatmul.f32.gmra.mxu2 %v1724_v19  ;;  %v2848_v28 = vadd.f32 %v2847_v23, %v2783_v20  ;;  %v1831_v20 = vld [vmem:[%s13554_s0 + $0xe08] sm:$0xff]  ;;  %v1092_v23 = vld [vmem:[%s7879_s5 + $0x1af0] sm:$0xff] }
 0x282   : > { %3648 = vmatpush.msra.mxu2 %v1092_v23  ;;  %v1118_v23 = vld [vmem:[%s7879_s5 + $0x1bc0] sm:$0xff] }
 0x283   : > { %3106 = vmatmul.f32.gmra.mxu1 %v1723_v24  ;;  %3716 = vmatpush.msra.mxu3 %v1118_v23  ;;  %v1510_v23 = vld [vmem:[%s13554_s0 + $0x400] sm:$0xff] }
 0x284   : > { %3236 = vmatmul.f32.gmra.mxu3 %v1725_v7  ;;  %v2912_v31 = vpop.f32.mrf.mxu2  ;;  %v1028_v7 = vld [vmem:[%s7879_s5 + $0x18f0] sm:$0xff] }
 0x285   : > { %v2913_v34 = vadd.f32 %v2912_v31, %v2848_v28  ;;  %3518 = vmatpush.msra.mxu0 %v1028_v7  ;;  %v1060_v31 = vld [vmem:[%s7879_s5 + $0x19f0] sm:$0xff] }
 0x286   : > { %v2785_v17 = vpop.f32.mrf.mxu0  ;;  %3583 = vmatpush.msra.mxu1 %v1060_v31 }
 0x287   : > { %v2786_v39 = vadd.f32 %v2785_v17, %v9023_v51  ;;  %v2977_v22 = vpop.f32.mrf.mxu3 }
 0x288   : > { %v9308_v61 = vadd.f32 %v2977_v22, %v2913_v34  ;;  %v2850_v42 = vpop.f32.mrf.mxu1  ;;  %v1868_v34 = vld [vmem:[%s13554_s0 + $0xf30] sm:$0xff]  ;;  %v1869_v22 = vld [vmem:[%s13554_s0 + $0xf38] sm:$0xff] }
 0x289   : > { %3044 = vmatmul.f32.gmra.mxu0 %v1758_v47  ;;  %3174 = vmatmul.f32.gmra.mxu2 %v1760_v38  ;;  %v2851_v50 = vadd.f32 %v2850_v42, %v2786_v39  ;;  %v1867_v39 = vld [vmem:[%s13554_s0 + $0xf28] sm:$0xff]  ;;  %v1090_v42 = vld [vmem:[%s7879_s5 + $0x1ae0] sm:$0xff] }
 0x28a   : > { %3649 = vmatpush.msra.mxu2 %v1090_v42  ;;  %v1116_v42 = vld [vmem:[%s7879_s5 + $0x1bb0] sm:$0xff] }
 0x28b   : > { %3109 = vmatmul.f32.gmra.mxu1 %v1759_v43  ;;  %3717 = vmatpush.msra.mxu3 %v1116_v42  ;;  %v1546_v42 = vld [vmem:[%s13554_s0 + $0x520] sm:$0xff] }
 0x28c   : > { %3239 = vmatmul.f32.gmra.mxu3 %v1761_v26  ;;  %v2915_v51 = vpop.f32.mrf.mxu2  ;;  %v1026_v26 = vld [vmem:[%s7879_s5 + $0x18e0] sm:$0xff] }
 0x28d   : > { %v2916_v53 = vadd.f32 %v2915_v51, %v2851_v50  ;;  %3519 = vmatpush.msra.mxu0 %v1026_v26  ;;  %v1058_v51 = vld [vmem:[%s7879_s5 + $0x19e0] sm:$0xff] }
 0x28e   : > { %v2788_v37 = vpop.f32.mrf.mxu0  ;;  %3584 = vmatpush.msra.mxu1 %v1058_v51 }
 0x28f   : > { %v2789_v58 = vadd.f32 %v2788_v37, %v9042_v6  ;;  %v2980_v41 = vpop.f32.mrf.mxu3 }
 0x290   : > { %v9327_v13 = vadd.f32 %v2980_v41, %v2916_v53  ;;  %v2853_v62 = vpop.f32.mrf.mxu1  ;;  %v1904_v53 = vld [vmem:[%s13554_s0 + $0x1050] sm:$0xff]  ;;  %v1905_v41 = vld [vmem:[%s13554_s0 + $0x1058] sm:$0xff] }
 0x291   : > { %3047 = vmatmul.f32.gmra.mxu0 %v1794_v1  ;;  %3177 = vmatmul.f32.gmra.mxu2 %v1796_v57  ;;  %v2854_v5 = vadd.f32 %v2853_v62, %v2789_v58  ;;  %v1903_v58 = vld [vmem:[%s13554_s0 + $0x1048] sm:$0xff]  ;;  %v1088_v62 = vld [vmem:[%s7879_s5 + $0x1ad0] sm:$0xff] }
 0x292   : > { %3650 = vmatpush.msra.mxu2 %v1088_v62  ;;  %v1114_v62 = vld [vmem:[%s7879_s5 + $0x1ba0] sm:$0xff] }
 0x293   : > { %3112 = vmatmul.f32.gmra.mxu1 %v1795_v0  ;;  %3718 = vmatpush.msra.mxu3 %v1114_v62  ;;  %v1582_v62 = vld [vmem:[%s13554_s0 + $0x640] sm:$0xff] }
 0x294   : > { %3242 = vmatmul.f32.gmra.mxu3 %v1797_v46  ;;  %v2918_v6 = vpop.f32.mrf.mxu2  ;;  %v1024_v46 = vld [vmem:[%s7879_s5 + $0x18d0] sm:$0xff] }
 0x295   : > { %v2919_v9 = vadd.f32 %v2918_v6, %v2854_v5  ;;  %3520 = vmatpush.msra.mxu0 %v1024_v46  ;;  %v1056_v6 = vld [vmem:[%s7879_s5 + $0x19d0] sm:$0xff] }
 0x296   : > { %v2791_v56 = vpop.f32.mrf.mxu0  ;;  %3585 = vmatpush.msra.mxu1 %v1056_v6 }
 0x297   : > { %v2792_v15 = vadd.f32 %v2791_v56, %v9061_v25  ;;  %v2983_v60 = vpop.f32.mrf.mxu3 }
 0x298   : > { %v9346_v30 = vadd.f32 %v2983_v60, %v2919_v9  ;;  %v2856_v19 = vpop.f32.mrf.mxu1  ;;  %v1940_v9 = vld [vmem:[%s13554_s0 + $0x1170] sm:$0xff]  ;;  %v1941_v60 = vld [vmem:[%s13554_s0 + $0x1178] sm:$0xff] }
 0x299   : > { %3050 = vmatmul.f32.gmra.mxu0 %v1830_v18  ;;  %3180 = vmatmul.f32.gmra.mxu2 %v1832_v12  ;;  %v2857_v24 = vadd.f32 %v2856_v19, %v2792_v15  ;;  %v1939_v15 = vld [vmem:[%s13554_s0 + $0x1168] sm:$0xff]  ;;  %v1086_v19 = vld [vmem:[%s7879_s5 + $0x1ac0] sm:$0xff] }
 0x29a   : > { %3651 = vmatpush.msra.mxu2 %v1086_v19  ;;  %v1112_v19 = vld [vmem:[%s7879_s5 + $0x1b90] sm:$0xff] }
 0x29b   : > { %3115 = vmatmul.f32.gmra.mxu1 %v1831_v20  ;;  %3719 = vmatpush.msra.mxu3 %v1112_v19  ;;  %v1618_v19 = vld [vmem:[%s13554_s0 + $0x760] sm:$0xff] }
 0x29c   : > { %3245 = vmatmul.f32.gmra.mxu3 %v1833_v3  ;;  %v2921_v25 = vpop.f32.mrf.mxu2  ;;  %v1022_v3 = vld [vmem:[%s7879_s5 + $0x18c0] sm:$0xff] }
 0x29d   : > { %v2922_v28 = vadd.f32 %v2921_v25, %v2857_v24  ;;  %3521 = vmatpush.msra.mxu0 %v1022_v3  ;;  %v1054_v25 = vld [vmem:[%s7879_s5 + $0x19c0] sm:$0xff] }
 0x29e   : > { %v2794_v11 = vpop.f32.mrf.mxu0  ;;  %3586 = vmatpush.msra.mxu1 %v1054_v25 }
 0x29f   : > { %v2795_v35 = vadd.f32 %v2794_v11, %v9080_v44  ;;  %v2986_v17 = vpop.f32.mrf.mxu3 }
 0x2a0   : > { %v9365_v47 = vadd.f32 %v2986_v17, %v2922_v28  ;;  %v2859_v38 = vpop.f32.mrf.mxu1  ;;  %v1404_v28 = vld [vmem:[%s13554_s0 + $0xb0] sm:$0xff]  ;;  %v1405_v17 = vld [vmem:[%s13554_s0 + $0xb8] sm:$0xff] }
 0x2a1   : > { %3053 = vmatmul.f32.gmra.mxu0 %v1866_v36  ;;  %3183 = vmatmul.f32.gmra.mxu2 %v1868_v34  ;;  %v2860_v43 = vadd.f32 %v2859_v38, %v2795_v35  ;;  %v1403_v35 = vld [vmem:[%s13554_s0 + $0xa8] sm:$0xff]  ;;  %v1084_v38 = vld [vmem:[%s7879_s5 + $0x1ab0] sm:$0xff] }
 0x2a2   : > { %3652 = vmatpush.msra.mxu2 %v1084_v38  ;;  %v1110_v38 = vld [vmem:[%s7879_s5 + $0x1b80] sm:$0xff] }
 0x2a3   : > { %3118 = vmatmul.f32.gmra.mxu1 %v1867_v39  ;;  %3720 = vmatpush.msra.mxu3 %v1110_v38  ;;  %v1654_v38 = vld [vmem:[%s13554_s0 + $0x880] sm:$0xff] }
 0x2a4   : > { %3248 = vmatmul.f32.gmra.mxu3 %v1869_v22  ;;  %v2924_v44 = vpop.f32.mrf.mxu2  ;;  %v1020_v22 = vld [vmem:[%s7879_s5 + $0x18b0] sm:$0xff] }
 0x2a5   : > { %v2925_v50 = vadd.f32 %v2924_v44, %v2860_v43  ;;  %3522 = vmatpush.msra.mxu0 %v1020_v22  ;;  %v1052_v44 = vld [vmem:[%s7879_s5 + $0x19b0] sm:$0xff] }
 0x2a6   : > { %v2797_v32 = vpop.f32.mrf.mxu0  ;;  %3587 = vmatpush.msra.mxu1 %v1052_v44 }
 0x2a7   : > { %v2798_v55 = vadd.f32 %v2797_v32, %v9099_v2  ;;  %v2989_v37 = vpop.f32.mrf.mxu3 }
 0x2a8   : > { %v9384_v1 = vadd.f32 %v2989_v37, %v2925_v50  ;;  %v2862_v57 = vpop.f32.mrf.mxu1  ;;  %v1440_v50 = vld [vmem:[%s13554_s0 + $0x1d0] sm:$0xff]  ;;  %v1441_v37 = vld [vmem:[%s13554_s0 + $0x1d8] sm:$0xff] }
 0x2a9   : > { %3056 = vmatmul.f32.gmra.mxu0 %v1902_v54  ;;  %3186 = vmatmul.f32.gmra.mxu2 %v1904_v53  ;;  %v2863_v0 = vadd.f32 %v2862_v57, %v2798_v55  ;;  %v1439_v55 = vld [vmem:[%s13554_s0 + $0x1c8] sm:$0xff]  ;;  %v1082_v57 = vld [vmem:[%s7879_s5 + $0x1aa0] sm:$0xff] }
 0x2aa   : > { %3653 = vmatpush.msra.mxu2 %v1082_v57  ;;  %v1108_v57 = vld [vmem:[%s7879_s5 + $0x1b70] sm:$0xff] }
 0x2ab   : > { %3121 = vmatmul.f32.gmra.mxu1 %v1903_v58  ;;  %3721 = vmatpush.msra.mxu3 %v1108_v57  ;;  %v1690_v57 = vld [vmem:[%s13554_s0 + $0x9a0] sm:$0xff] }
 0x2ac   : > { %3251 = vmatmul.f32.gmra.mxu3 %v1905_v41  ;;  %v2927_v2 = vpop.f32.mrf.mxu2  ;;  %v1018_v41 = vld [vmem:[%s7879_s5 + $0x18a0] sm:$0xff] }
 0x2ad   : > { %v2928_v5 = vadd.f32 %v2927_v2, %v2863_v0  ;;  %3523 = vmatpush.msra.mxu0 %v1018_v41  ;;  %v1050_v2 = vld [vmem:[%s7879_s5 + $0x19a0] sm:$0xff] }
 0x2ae   : > { %v2800_v52 = vpop.f32.mrf.mxu0  ;;  %3588 = vmatpush.msra.mxu1 %v1050_v2 }
 0x2af   : > { %v2801_v10 = vadd.f32 %v2800_v52, %v9118_v21  ;;  %v2992_v56 = vpop.f32.mrf.mxu3 }
 0x2b0   : > { %v9403_v18 = vadd.f32 %v2992_v56, %v2928_v5  ;;  %v2865_v12 = vpop.f32.mrf.mxu1  ;;  %v1476_v5 = vld [vmem:[%s13554_s0 + $0x2f0] sm:$0xff]  ;;  %v1477_v56 = vld [vmem:[%s13554_s0 + $0x2f8] sm:$0xff] }
 0x2b1   : > { %3059 = vmatmul.f32.gmra.mxu0 %v1938_v8  ;;  %3189 = vmatmul.f32.gmra.mxu2 %v1940_v9  ;;  %v2866_v20 = vadd.f32 %v2865_v12, %v2801_v10  ;;  %v1475_v10 = vld [vmem:[%s13554_s0 + $0x2e8] sm:$0xff]  ;;  %v1080_v12 = vld [vmem:[%s7879_s5 + $0x1a90] sm:$0xff] }
 0x2b2   : > { %3654 = vmatpush.msra.mxu2 %v1080_v12  ;;  %v1106_v12 = vld [vmem:[%s7879_s5 + $0x1b60] sm:$0xff] }
 0x2b3   : > { %3124 = vmatmul.f32.gmra.mxu1 %v1939_v15  ;;  %3722 = vmatpush.msra.mxu3 %v1106_v12  ;;  %v1726_v12 = vld [vmem:[%s13554_s0 + $0xac0] sm:$0xff] }
 0x2b4   : > { %3254 = vmatmul.f32.gmra.mxu3 %v1941_v60  ;;  %v2930_v21 = vpop.f32.mrf.mxu2  ;;  %v1016_v60 = vld [vmem:[%s7879_s5 + $0x1890] sm:$0xff] }
 0x2b5   : > { %v2931_v24 = vadd.f32 %v2930_v21, %v2866_v20  ;;  %3524 = vmatpush.msra.mxu0 %v1016_v60  ;;  %v1048_v21 = vld [vmem:[%s7879_s5 + $0x1990] sm:$0xff] }
 0x2b6   : > { %v3015_v7 = vpop.f32.mrf.mxu0  ;;  %3589 = vmatpush.msra.mxu1 %v1048_v21 }
 0x2b7   : > { %v2995_v31 = vpop.f32.mrf.mxu3  ;;  %v3016_v11 = vadd.f32 %v3015_v7, %v9137_v40 }
 0x2b8   : > { %v9422_v36 = vadd.f32 %v2995_v31, %v2931_v24  ;;  %v3080_v34 = vpop.f32.mrf.mxu1  ;;  %v1512_v24 = vld [vmem:[%s13554_s0 + $0x410] sm:$0xff]  ;;  %v1511_v31 = vld [vmem:[%s13554_s0 + $0x408] sm:$0xff] }
 0x2b9   : > { %3274 = vmatmul.f32.vlgmr.msrb.gmra.mxu0 %v1402_v27  ;;  %3404 = vmatmul.f32.vlgmr.msrb.gmra.mxu2 %v1404_v28  ;;  %v3081_v39 = vadd.f32 %v3080_v34, %v3016_v11  ;;  %v1513_v11 = vld [vmem:[%s13554_s0 + $0x418] sm:$0xff]  ;;  %v1078_v34 = vld [vmem:[%s7879_s5 + $0x1a80] sm:$0xff] }
 0x2ba   : > { %3655 = vmatpush.msra.mxu2 %v1078_v34  ;;  %v1104_v34 = vld [vmem:[%s7879_s5 + $0x1b50] sm:$0xff] }
 0x2bb   : > { %3339 = vmatmul.f32.vlgmr.msrb.gmra.mxu1 %v1403_v35  ;;  %3723 = vmatpush.msra.mxu3 %v1104_v34  ;;  %v1762_v34 = vld [vmem:[%s13554_s0 + $0xbe0] sm:$0xff] }
 0x2bc   : > { %3469 = vmatmul.f32.vlgmr.msrb.gmra.mxu3 %v1405_v17  ;;  %v3145_v40 = vpop.f32.mrf.mxu2  ;;  %v1014_v17 = vld [vmem:[%s7879_s5 + $0x1880] sm:$0xff] }
 0x2bd   : > { %v3146_v43 = vadd.f32 %v3145_v40, %v3081_v39  ;;  %3525 = vmatpush.msra.mxu0 %v1014_v17  ;;  %v1046_v40 = vld [vmem:[%s7879_s5 + $0x1980] sm:$0xff] }
 0x2be   : > { %v3018_v26 = vpop.f32.mrf.mxu0  ;;  %3590 = vmatpush.msra.mxu1 %v1046_v40 }
 0x2bf   : > { %v3019_v51 = vadd.f32 %v3018_v26, %v9156_v59  ;;  %v3210_v32 = vpop.f32.mrf.mxu3 }
 0x2c0   : > { %v9441_v54 = vadd.f32 %v3210_v32, %v3146_v43  ;;  %v3083_v53 = vpop.f32.mrf.mxu1  ;;  %v1548_v43 = vld [vmem:[%s13554_s0 + $0x530] sm:$0xff]  ;;  %v1549_v32 = vld [vmem:[%s13554_s0 + $0x538] sm:$0xff] }
 0x2c1   : > { %3277 = vmatmul.f32.gmra.mxu0 %v1438_v49  ;;  %3407 = vmatmul.f32.gmra.mxu2 %v1440_v50  ;;  %v3084_v58 = vadd.f32 %v3083_v53, %v3019_v51  ;;  %v1547_v51 = vld [vmem:[%s13554_s0 + $0x528] sm:$0xff]  ;;  %v1076_v53 = vld [vmem:[%s7879_s5 + $0x1a70] sm:$0xff] }
 0x2c2   : > { %3656 = vmatpush.msra.mxu2 %v1076_v53  ;;  %v1102_v53 = vld [vmem:[%s7879_s5 + $0x1b40] sm:$0xff] }
 0x2c3   : > { %3342 = vmatmul.f32.gmra.mxu1 %v1439_v55  ;;  %3724 = vmatpush.msra.mxu3 %v1102_v53  ;;  %v1798_v53 = vld [vmem:[%s13554_s0 + $0xd00] sm:$0xff] }
 0x2c4   : > { %3472 = vmatmul.f32.gmra.mxu3 %v1441_v37  ;;  %v3148_v59 = vpop.f32.mrf.mxu2  ;;  %v1012_v37 = vld [vmem:[%s7879_s5 + $0x1870] sm:$0xff] }
 0x2c5   : > { %v3149_v0 = vadd.f32 %v3148_v59, %v3084_v58  ;;  %3526 = vmatpush.msra.mxu0 %v1012_v37  ;;  %v1044_v59 = vld [vmem:[%s7879_s5 + $0x1970] sm:$0xff] }
 0x2c6   : > { %v3021_v46 = vpop.f32.mrf.mxu0  ;;  %3591 = vmatpush.msra.mxu1 %v1044_v59 }
 0x2c7   : > { %v3022_v6 = vadd.f32 %v3021_v46, %v9175_v16  ;;  %v3213_v52 = vpop.f32.mrf.mxu3 }
 0x2c8   : > { %v9460_v8 = vadd.f32 %v3213_v52, %v3149_v0  ;;  %v3086_v9 = vpop.f32.mrf.mxu1  ;;  %v1584_v0 = vld [vmem:[%s13554_s0 + $0x650] sm:$0xff]  ;;  %v1585_v52 = vld [vmem:[%s13554_s0 + $0x658] sm:$0xff] }
 0x2c9   : > { %3280 = vmatmul.f32.gmra.mxu0 %v1474_v4  ;;  %3410 = vmatmul.f32.gmra.mxu2 %v1476_v5  ;;  %v3087_v15 = vadd.f32 %v3086_v9, %v3022_v6  ;;  %v1583_v6 = vld [vmem:[%s13554_s0 + $0x648] sm:$0xff]  ;;  %v1074_v9 = vld [vmem:[%s7879_s5 + $0x1a60] sm:$0xff] }
 0x2ca   : > { %3657 = vmatpush.msra.mxu2 %v1074_v9  ;;  %v1100_v9 = vld [vmem:[%s7879_s5 + $0x1b30] sm:$0xff] }
 0x2cb   : > { %3345 = vmatmul.f32.gmra.mxu1 %v1475_v10  ;;  %3725 = vmatpush.msra.mxu3 %v1100_v9  ;;  %v1834_v9 = vld [vmem:[%s13554_s0 + $0xe20] sm:$0xff] }
 0x2cc   : > { %3475 = vmatmul.f32.gmra.mxu3 %v1477_v56  ;;  %v3151_v16 = vpop.f32.mrf.mxu2  ;;  %v1010_v56 = vld [vmem:[%s7879_s5 + $0x1860] sm:$0xff] }
 0x2cd   : > { %v3152_v20 = vadd.f32 %v3151_v16, %v3087_v15  ;;  %3527 = vmatpush.msra.mxu0 %v1010_v56  ;;  %v1042_v16 = vld [vmem:[%s7879_s5 + $0x1960] sm:$0xff] }
 0x2ce   : > { %v3024_v3 = vpop.f32.mrf.mxu0  ;;  %3592 = vmatpush.msra.mxu1 %v1042_v16 }
 0x2cf   : > { %v3025_v25 = vadd.f32 %v3024_v3, %v9194_v33  ;;  %v3216_v7 = vpop.f32.mrf.mxu3 }
 0x2d0   : > { %v9479_v27 = vadd.f32 %v3216_v7, %v3152_v20  ;;  %v3089_v28 = vpop.f32.mrf.mxu1  ;;  %v1620_v20 = vld [vmem:[%s13554_s0 + $0x770] sm:$0xff]  ;;  %v1621_v7 = vld [vmem:[%s13554_s0 + $0x778] sm:$0xff] }
 0x2d1   : > { %3283 = vmatmul.f32.gmra.mxu0 %v1510_v23  ;;  %3413 = vmatmul.f32.gmra.mxu2 %v1512_v24  ;;  %v3090_v35 = vadd.f32 %v3089_v28, %v3025_v25  ;;  %v1619_v25 = vld [vmem:[%s13554_s0 + $0x768] sm:$0xff]  ;;  %v1072_v28 = vld [vmem:[%s7879_s5 + $0x1a50] sm:$0xff] }
 0x2d2   : > { %3658 = vmatpush.msra.mxu2 %v1072_v28  ;;  %v1098_v28 = vld [vmem:[%s7879_s5 + $0x1b20] sm:$0xff] }
 0x2d3   : > { %3348 = vmatmul.f32.gmra.mxu1 %v1511_v31  ;;  %3726 = vmatpush.msra.mxu3 %v1098_v28  ;;  %v1870_v28 = vld [vmem:[%s13554_s0 + $0xf40] sm:$0xff] }
 0x2d4   : > { %3478 = vmatmul.f32.gmra.mxu3 %v1513_v11  ;;  %v3154_v33 = vpop.f32.mrf.mxu2  ;;  %v1008_v11 = vld [vmem:[%s7879_s5 + $0x1850] sm:$0xff] }
 0x2d5   : > { %v3155_v39 = vadd.f32 %v3154_v33, %v3090_v35  ;;  %3528 = vmatpush.msra.mxu0 %v1008_v11  ;;  %v1040_v33 = vld [vmem:[%s7879_s5 + $0x1950] sm:$0xff] }
 0x2d6   : > { %v3027_v22 = vpop.f32.mrf.mxu0  ;;  %3593 = vmatpush.msra.mxu1 %v1040_v33 }
 0x2d7   : > { %v3028_v44 = vadd.f32 %v3027_v22, %v9213_v48  ;;  %v3219_v26 = vpop.f32.mrf.mxu3 }
 0x2d8   : > { %v9498_v49 = vadd.f32 %v3219_v26, %v3155_v39  ;;  %v3092_v50 = vpop.f32.mrf.mxu1  ;;  %v1656_v39 = vld [vmem:[%s13554_s0 + $0x890] sm:$0xff]  ;;  %v1657_v26 = vld [vmem:[%s13554_s0 + $0x898] sm:$0xff] }
 0x2d9   : > { %3286 = vmatmul.f32.gmra.mxu0 %v1546_v42  ;;  %3416 = vmatmul.f32.gmra.mxu2 %v1548_v43  ;;  %v3093_v55 = vadd.f32 %v3092_v50, %v3028_v44  ;;  %v1655_v44 = vld [vmem:[%s13554_s0 + $0x888] sm:$0xff]  ;;  %v1070_v50 = vld [vmem:[%s7879_s5 + $0x1a40] sm:$0xff] }
 0x2da   : > { %3659 = vmatpush.msra.mxu2 %v1070_v50  ;;  %v1096_v50 = vld [vmem:[%s7879_s5 + $0x1b10] sm:$0xff] }
 0x2db   : > { %3351 = vmatmul.f32.gmra.mxu1 %v1547_v51  ;;  %3727 = vmatpush.msra.mxu3 %v1096_v50  ;;  %v1906_v50 = vld [vmem:[%s13554_s0 + $0x1060] sm:$0xff] }
 0x2dc   : > { %3481 = vmatmul.f32.gmra.mxu3 %v1549_v32  ;;  %v3157_v48 = vpop.f32.mrf.mxu2  ;;  %v1006_v32 = vld [vmem:[%s7879_s5 + $0x1840] sm:$0xff] }
 0x2dd   : > { %v3158_v58 = vadd.f32 %v3157_v48, %v3093_v55  ;;  %3529 = vmatpush.msra.mxu0 %v1006_v32  ;;  %v1038_v48 = vld [vmem:[%s7879_s5 + $0x1940] sm:$0xff] }
 0x2de   : > { %v3030_v41 = vpop.f32.mrf.mxu0  ;;  %3594 = vmatpush.msra.mxu1 %v1038_v48 }
 0x2df   : > { %v3031_v2 = vadd.f32 %v3030_v41, %v9232_v63  ;;  %v3222_v46 = vpop.f32.mrf.mxu3 }
 0x2e0   : > { %v9517_v4 = vadd.f32 %v3222_v46, %v3158_v58  ;;  %v3095_v5 = vpop.f32.mrf.mxu1  ;;  %v1692_v58 = vld [vmem:[%s13554_s0 + $0x9b0] sm:$0xff]  ;;  %v1693_v46 = vld [vmem:[%s13554_s0 + $0x9b8] sm:$0xff] }
 0x2e1   : > { %3289 = vmatmul.f32.gmra.mxu0 %v1582_v62  ;;  %3419 = vmatmul.f32.gmra.mxu2 %v1584_v0  ;;  %v3096_v10 = vadd.f32 %v3095_v5, %v3031_v2  ;;  %v1691_v2 = vld [vmem:[%s13554_s0 + $0x9a8] sm:$0xff]  ;;  %v1068_v5 = vld [vmem:[%s7879_s5 + $0x1a30] sm:$0xff] }
 0x2e2   : > { %3660 = vmatpush.msra.mxu2 %v1068_v5  ;;  %v1094_v5 = vld [vmem:[%s7879_s5 + $0x1b00] sm:$0xff] }
 0x2e3   : > { %3354 = vmatmul.f32.gmra.mxu1 %v1583_v6  ;;  %3728 = vmatpush.msra.mxu3 %v1094_v5  ;;  %v1942_v5 = vld [vmem:[%s13554_s0 + $0x1180] sm:$0xff] }
 0x2e4   : > { %3484 = vmatmul.f32.gmra.mxu3 %v1585_v52  ;;  %v3160_v63 = vpop.f32.mrf.mxu2  ;;  %v1004_v52 = vld [vmem:[%s7879_s5 + $0x1830] sm:$0xff] }
 0x2e5   : > { %v3161_v15 = vadd.f32 %v3160_v63, %v3096_v10  ;;  %3530 = vmatpush.msra.mxu0 %v1004_v52  ;;  %v1036_v63 = vld [vmem:[%s7879_s5 + $0x1930] sm:$0xff] }
 0x2e6   : > { %v3033_v60 = vpop.f32.mrf.mxu0  ;;  %3595 = vmatpush.msra.mxu1 %v1036_v63 }
 0x2e7   : > { %v3034_v21 = vadd.f32 %v3033_v60, %v9251_v14  ;;  %v3225_v3 = vpop.f32.mrf.mxu3 }
 0x2e8   : > { %v9536_v23 = vadd.f32 %v3225_v3, %v3161_v15  ;;  %v3098_v24 = vpop.f32.mrf.mxu1  ;;  %v1728_v15 = vld [vmem:[%s13554_s0 + $0xad0] sm:$0xff]  ;;  %v1729_v3 = vld [vmem:[%s13554_s0 + $0xad8] sm:$0xff] }
 0x2e9   : > { %3292 = vmatmul.f32.gmra.mxu0 %v1618_v19  ;;  %3422 = vmatmul.f32.gmra.mxu2 %v1620_v20  ;;  %v3099_v31 = vadd.f32 %v3098_v24, %v3034_v21  ;;  %v1727_v21 = vld [vmem:[%s13554_s0 + $0xac8] sm:$0xff]  ;;  %v1066_v24 = vld [vmem:[%s7879_s5 + $0x1a20] sm:$0xff] }
 0x2ea   : > { %3661 = vmatpush.msra.mxu2 %v1066_v24  ;;  %v1252_v24 = vld [vmem:[%s7879_s5 + $0x1ff0] sm:$0xff] }
 0x2eb   : > { %3357 = vmatmul.f32.gmra.mxu1 %v1619_v25  ;;  %3973 = vmatpush.msrb.mxu3 %v1252_v24  ;;  %v1406_v24 = vld [vmem:[%s13554_s0 + $0xc0] sm:$0xff] }
 0x2ec   : > { %3487 = vmatmul.f32.gmra.mxu3 %v1621_v7  ;;  %v3163_v14 = vpop.f32.mrf.mxu2  ;;  %v1002_v7 = vld [vmem:[%s7879_s5 + $0x1820] sm:$0xff] }
 0x2ed   : > { %v3164_v35 = vadd.f32 %v3163_v14, %v3099_v31  ;;  %3531 = vmatpush.msra.mxu0 %v1002_v7  ;;  %v1034_v14 = vld [vmem:[%s7879_s5 + $0x1920] sm:$0xff] }
 0x2ee   : > { %v3036_v17 = vpop.f32.mrf.mxu0  ;;  %3596 = vmatpush.msra.mxu1 %v1034_v14 }
 0x2ef   : > { %v3037_v40 = vadd.f32 %v3036_v17, %v9270_v29  ;;  %v3228_v22 = vpop.f32.mrf.mxu3 }
 0x2f0   : > { %v9555_v42 = vadd.f32 %v3228_v22, %v3164_v35  ;;  %v3101_v43 = vpop.f32.mrf.mxu1  ;;  %v1764_v35 = vld [vmem:[%s13554_s0 + $0xbf0] sm:$0xff]  ;;  %v1765_v22 = vld [vmem:[%s13554_s0 + $0xbf8] sm:$0xff] }
 0x2f1   : > { %3295 = vmatmul.f32.gmra.mxu0 %v1654_v38  ;;  %3425 = vmatmul.f32.gmra.mxu2 %v1656_v39  ;;  %v3102_v51 = vadd.f32 %v3101_v43, %v3037_v40  ;;  %v1763_v40 = vld [vmem:[%s13554_s0 + $0xbe8] sm:$0xff]  ;;  %v1064_v43 = vld [vmem:[%s7879_s5 + $0x1a10] sm:$0xff] }
 0x2f2   : > { %3662 = vmatpush.msra.mxu2 %v1064_v43  ;;  %v1250_v43 = vld [vmem:[%s7879_s5 + $0x1fe0] sm:$0xff] }
 0x2f3   : > { %3360 = vmatmul.f32.gmra.mxu1 %v1655_v44  ;;  %3974 = vmatpush.msrb.mxu3 %v1250_v43  ;;  %v1442_v43 = vld [vmem:[%s13554_s0 + $0x1e0] sm:$0xff] }
 0x2f4   : > { %3490 = vmatmul.f32.gmra.mxu3 %v1657_v26  ;;  %v3166_v29 = vpop.f32.mrf.mxu2  ;;  %v1000_v26 = vld [vmem:[%s7879_s5 + $0x1810] sm:$0xff] }
 0x2f5   : > { %v3167_v55 = vadd.f32 %v3166_v29, %v3102_v51  ;;  %3532 = vmatpush.msra.mxu0 %v1000_v26  ;;  %v1032_v29 = vld [vmem:[%s7879_s5 + $0x1910] sm:$0xff] }
 0x2f6   : > { %v3039_v37 = vpop.f32.mrf.mxu0  ;;  %3597 = vmatpush.msra.mxu1 %v1032_v29 }
 0x2f7   : > { %v3040_v59 = vadd.f32 %v3039_v37, %v9289_v45  ;;  %v3231_v41 = vpop.f32.mrf.mxu3 }
 0x2f8   : > { %v9574_v62 = vadd.f32 %v3231_v41, %v3167_v55  ;;  %v3104_v0 = vpop.f32.mrf.mxu1  ;;  %v1800_v55 = vld [vmem:[%s13554_s0 + $0xd10] sm:$0xff]  ;;  %v1801_v41 = vld [vmem:[%s13554_s0 + $0xd18] sm:$0xff] }
 0x2f9   : > { %3298 = vmatmul.f32.gmra.mxu0 %v1690_v57  ;;  %3428 = vmatmul.f32.gmra.mxu2 %v1692_v58  ;;  %v3105_v6 = vadd.f32 %v3104_v0, %v3040_v59  ;;  %v1799_v59 = vld [vmem:[%s13554_s0 + $0xd08] sm:$0xff]  ;;  %v1062_v0 = vld [vmem:[%s7879_s5 + $0x1a00] sm:$0xff] }
 0x2fa   : > { %3663 = vmatpush.msra.mxu2 %v1062_v0  ;;  %v1248_v0 = vld [vmem:[%s7879_s5 + $0x1fd0] sm:$0xff] }
 0x2fb   : > { %3363 = vmatmul.f32.gmra.mxu1 %v1691_v2  ;;  %3975 = vmatpush.msrb.mxu3 %v1248_v0  ;;  %v1478_v0 = vld [vmem:[%s13554_s0 + $0x300] sm:$0xff] }
 0x2fc   : > { %3493 = vmatmul.f32.gmra.mxu3 %v1693_v46  ;;  %v3169_v45 = vpop.f32.mrf.mxu2  ;;  %v998_v46 = vld [vmem:[%s7879_s5 + $0x1800] sm:$0xff] }
 0x2fd   : > { %v3170_v10 = vadd.f32 %v3169_v45, %v3105_v6  ;;  %3533 = vmatpush.msra.mxu0 %v998_v46  ;;  %v1030_v45 = vld [vmem:[%s7879_s5 + $0x1900] sm:$0xff] }
 0x2fe   : > { %v3042_v56 = vpop.f32.mrf.mxu0  ;;  %3598 = vmatpush.msra.mxu1 %v1030_v45 }
 0x2ff   : > { %v3043_v16 = vadd.f32 %v3042_v56, %v9308_v61  ;;  %v3234_v60 = vpop.f32.mrf.mxu3 }
 0x300   : > { %v9593_v19 = vadd.f32 %v3234_v60, %v3170_v10  ;;  %v3107_v20 = vpop.f32.mrf.mxu1  ;;  %v1836_v10 = vld [vmem:[%s13554_s0 + $0xe30] sm:$0xff]  ;;  %v1837_v60 = vld [vmem:[%s13554_s0 + $0xe38] sm:$0xff] }
 0x301   : > { %3301 = vmatmul.f32.gmra.mxu0 %v1726_v12  ;;  %3431 = vmatmul.f32.gmra.mxu2 %v1728_v15  ;;  %v3108_v25 = vadd.f32 %v3107_v20, %v3043_v16  ;;  %v1835_v16 = vld [vmem:[%s13554_s0 + $0xe28] sm:$0xff]  ;;  %v1220_v20 = vld [vmem:[%s7879_s5 + $0x1ef0] sm:$0xff] }
 0x302   : > { %3908 = vmatpush.msrb.mxu2 %v1220_v20  ;;  %v1246_v20 = vld [vmem:[%s7879_s5 + $0x1fc0] sm:$0xff] }
 0x303   : > { %3366 = vmatmul.f32.gmra.mxu1 %v1727_v21  ;;  %3976 = vmatpush.msrb.mxu3 %v1246_v20  ;;  %v1514_v20 = vld [vmem:[%s13554_s0 + $0x420] sm:$0xff] }
 0x304   : > { %3496 = vmatmul.f32.gmra.mxu3 %v1729_v3  ;;  %v3172_v61 = vpop.f32.mrf.mxu2  ;;  %v1156_v3 = vld [vmem:[%s7879_s5 + $0x1cf0] sm:$0xff] }
 0x305   : > { %v3173_v31 = vadd.f32 %v3172_v61, %v3108_v25  ;;  %3778 = vmatpush.msrb.mxu0 %v1156_v3  ;;  %v1188_v61 = vld [vmem:[%s7879_s5 + $0x1df0] sm:$0xff] }
 0x306   : > { %v3045_v11 = vpop.f32.mrf.mxu0  ;;  %3843 = vmatpush.msrb.mxu1 %v1188_v61 }
 0x307   : > { %v3046_v33 = vadd.f32 %v3045_v11, %v9327_v13  ;;  %v3237_v17 = vpop.f32.mrf.mxu3 }
 0x308   : > { %v9612_v38 = vadd.f32 %v3237_v17, %v3173_v31  ;;  %v3110_v39 = vpop.f32.mrf.mxu1  ;;  %v1872_v31 = vld [vmem:[%s13554_s0 + $0xf50] sm:$0xff]  ;;  %v1873_v17 = vld [vmem:[%s13554_s0 + $0xf58] sm:$0xff] }
 0x309   : > { %3304 = vmatmul.f32.gmra.mxu0 %v1762_v34  ;;  %3434 = vmatmul.f32.gmra.mxu2 %v1764_v35  ;;  %v3111_v44 = vadd.f32 %v3110_v39, %v3046_v33  ;;  %v1871_v33 = vld [vmem:[%s13554_s0 + $0xf48] sm:$0xff]  ;;  %v1218_v39 = vld [vmem:[%s7879_s5 + $0x1ee0] sm:$0xff] }
 0x30a   : > { %3909 = vmatpush.msrb.mxu2 %v1218_v39  ;;  %v1244_v39 = vld [vmem:[%s7879_s5 + $0x1fb0] sm:$0xff] }
 0x30b   : > { %3369 = vmatmul.f32.gmra.mxu1 %v1763_v40  ;;  %3977 = vmatpush.msrb.mxu3 %v1244_v39  ;;  %v1550_v39 = vld [vmem:[%s13554_s0 + $0x540] sm:$0xff] }
 0x30c   : > { %3499 = vmatmul.f32.gmra.mxu3 %v1765_v22  ;;  %v3175_v13 = vpop.f32.mrf.mxu2  ;;  %v1154_v22 = vld [vmem:[%s7879_s5 + $0x1ce0] sm:$0xff] }
 0x30d   : > { %v3176_v51 = vadd.f32 %v3175_v13, %v3111_v44  ;;  %3779 = vmatpush.msrb.mxu0 %v1154_v22  ;;  %v1186_v13 = vld [vmem:[%s7879_s5 + $0x1de0] sm:$0xff] }
 0x30e   : > { %v3048_v32 = vpop.f32.mrf.mxu0  ;;  %3844 = vmatpush.msrb.mxu1 %v1186_v13 }
 0x30f   : > { %v3049_v48 = vadd.f32 %v3048_v32, %v9346_v30  ;;  %v3240_v37 = vpop.f32.mrf.mxu3 }
 0x310   : > { %v9631_v57 = vadd.f32 %v3240_v37, %v3176_v51  ;;  %v3113_v58 = vpop.f32.mrf.mxu1  ;;  %v1908_v51 = vld [vmem:[%s13554_s0 + $0x1070] sm:$0xff]  ;;  %v1909_v37 = vld [vmem:[%s13554_s0 + $0x1078] sm:$0xff] }
 0x311   : > { %3307 = vmatmul.f32.gmra.mxu0 %v1798_v53  ;;  %3437 = vmatmul.f32.gmra.mxu2 %v1800_v55  ;;  %v3114_v2 = vadd.f32 %v3113_v58, %v3049_v48  ;;  %v1907_v48 = vld [vmem:[%s13554_s0 + $0x1068] sm:$0xff]  ;;  %v1216_v58 = vld [vmem:[%s7879_s5 + $0x1ed0] sm:$0xff] }
 0x312   : > { %3910 = vmatpush.msrb.mxu2 %v1216_v58  ;;  %v1242_v58 = vld [vmem:[%s7879_s5 + $0x1fa0] sm:$0xff] }
 0x313   : > { %3372 = vmatmul.f32.gmra.mxu1 %v1799_v59  ;;  %3978 = vmatpush.msrb.mxu3 %v1242_v58  ;;  %v1586_v58 = vld [vmem:[%s13554_s0 + $0x660] sm:$0xff] }
 0x314   : > { %3502 = vmatmul.f32.gmra.mxu3 %v1801_v41  ;;  %v3178_v30 = vpop.f32.mrf.mxu2  ;;  %v1152_v41 = vld [vmem:[%s7879_s5 + $0x1cd0] sm:$0xff] }
 0x315   : > { %v3179_v6 = vadd.f32 %v3178_v30, %v3114_v2  ;;  %3780 = vmatpush.msrb.mxu0 %v1152_v41  ;;  %v1184_v30 = vld [vmem:[%s7879_s5 + $0x1dd0] sm:$0xff] }
 0x316   : > { %v3051_v52 = vpop.f32.mrf.mxu0  ;;  %3845 = vmatpush.msrb.mxu1 %v1184_v30 }
 0x317   : > { %v3052_v63 = vadd.f32 %v3051_v52, %v9365_v47  ;;  %v3243_v56 = vpop.f32.mrf.mxu3 }
 0x318   : > { %v9650_v12 = vadd.f32 %v3243_v56, %v3179_v6  ;;  %v3116_v15 = vpop.f32.mrf.mxu1  ;;  %v1944_v6 = vld [vmem:[%s13554_s0 + $0x1190] sm:$0xff]  ;;  %v1945_v56 = vld [vmem:[%s13554_s0 + $0x1198] sm:$0xff] }
 0x319   : > { %3310 = vmatmul.f32.gmra.mxu0 %v1834_v9  ;;  %3440 = vmatmul.f32.gmra.mxu2 %v1836_v10  ;;  %v3117_v21 = vadd.f32 %v3116_v15, %v3052_v63  ;;  %v1943_v63 = vld [vmem:[%s13554_s0 + $0x1188] sm:$0xff]  ;;  %v1214_v15 = vld [vmem:[%s7879_s5 + $0x1ec0] sm:$0xff] }
 0x31a   : > { %3911 = vmatpush.msrb.mxu2 %v1214_v15  ;;  %v1240_v15 = vld [vmem:[%s7879_s5 + $0x1f90] sm:$0xff] }
 0x31b   : > { %3375 = vmatmul.f32.gmra.mxu1 %v1835_v16  ;;  %3979 = vmatpush.msrb.mxu3 %v1240_v15  ;;  %v1622_v15 = vld [vmem:[%s13554_s0 + $0x780] sm:$0xff] }
 0x31c   : > { %3505 = vmatmul.f32.gmra.mxu3 %v1837_v60  ;;  %v3181_v47 = vpop.f32.mrf.mxu2  ;;  %v1150_v60 = vld [vmem:[%s7879_s5 + $0x1cc0] sm:$0xff] }
 0x31d   : > { %v3182_v25 = vadd.f32 %v3181_v47, %v3117_v21  ;;  %3781 = vmatpush.msrb.mxu0 %v1150_v60  ;;  %v1182_v47 = vld [vmem:[%s7879_s5 + $0x1dc0] sm:$0xff] }
 0x31e   : > { %v3054_v7 = vpop.f32.mrf.mxu0  ;;  %3846 = vmatpush.msrb.mxu1 %v1182_v47 }
 0x31f   : > { %v3055_v14 = vadd.f32 %v3054_v7, %v9384_v1  ;;  %v3246_v11 = vpop.f32.mrf.mxu3 }
 0x320   : > { %v9669_v34 = vadd.f32 %v3246_v11, %v3182_v25  ;;  %v3119_v35 = vpop.f32.mrf.mxu1  ;;  %v1408_v25 = vld [vmem:[%s13554_s0 + $0xd0] sm:$0xff]  ;;  %v1409_v11 = vld [vmem:[%s13554_s0 + $0xd8] sm:$0xff] }
 0x321   : > { %3313 = vmatmul.f32.gmra.mxu0 %v1870_v28  ;;  %3443 = vmatmul.f32.gmra.mxu2 %v1872_v31  ;;  %v3120_v40 = vadd.f32 %v3119_v35, %v3055_v14  ;;  %v1407_v14 = vld [vmem:[%s13554_s0 + $0xc8] sm:$0xff]  ;;  %v1212_v35 = vld [vmem:[%s7879_s5 + $0x1eb0] sm:$0xff] }
 0x322   : > { %3912 = vmatpush.msrb.mxu2 %v1212_v35  ;;  %v1238_v35 = vld [vmem:[%s7879_s5 + $0x1f80] sm:$0xff] }
 0x323   : > { %3378 = vmatmul.f32.gmra.mxu1 %v1871_v33  ;;  %3980 = vmatpush.msrb.mxu3 %v1238_v35  ;;  %v1658_v35 = vld [vmem:[%s13554_s0 + $0x8a0] sm:$0xff] }
 0x324   : > { %3508 = vmatmul.f32.gmra.mxu3 %v1873_v17  ;;  %v3184_v1 = vpop.f32.mrf.mxu2  ;;  %v1148_v17 = vld [vmem:[%s7879_s5 + $0x1cb0] sm:$0xff] }
 0x325   : > { %v3185_v44 = vadd.f32 %v3184_v1, %v3120_v40  ;;  %3782 = vmatpush.msrb.mxu0 %v1148_v17  ;;  %v1180_v1 = vld [vmem:[%s7879_s5 + $0x1db0] sm:$0xff] }
 0x326   : > { %v3057_v26 = vpop.f32.mrf.mxu0  ;;  %3847 = vmatpush.msrb.mxu1 %v1180_v1 }
 0x327   : > { %v3058_v29 = vadd.f32 %v3057_v26, %v9403_v18  ;;  %v3249_v32 = vpop.f32.mrf.mxu3 }
 0x328   : > { %v9688_v53 = vadd.f32 %v3249_v32, %v3185_v44  ;;  %v3122_v55 = vpop.f32.mrf.mxu1  ;;  %v1444_v44 = vld [vmem:[%s13554_s0 + $0x1f0] sm:$0xff]  ;;  %v1445_v32 = vld [vmem:[%s13554_s0 + $0x1f8] sm:$0xff] }
 0x329   : > { %3316 = vmatmul.f32.gmra.mxu0 %v1906_v50  ;;  %3446 = vmatmul.f32.gmra.mxu2 %v1908_v51  ;;  %v3123_v59 = vadd.f32 %v3122_v55, %v3058_v29  ;;  %v1443_v29 = vld [vmem:[%s13554_s0 + $0x1e8] sm:$0xff]  ;;  %v1210_v55 = vld [vmem:[%s7879_s5 + $0x1ea0] sm:$0xff] }
 0x32a   : > { %3913 = vmatpush.msrb.mxu2 %v1210_v55  ;;  %v1236_v55 = vld [vmem:[%s7879_s5 + $0x1f70] sm:$0xff] }
 0x32b   : > { %3381 = vmatmul.f32.gmra.mxu1 %v1907_v48  ;;  %3981 = vmatpush.msrb.mxu3 %v1236_v55  ;;  %v1694_v55 = vld [vmem:[%s13554_s0 + $0x9c0] sm:$0xff] }
 0x32c   : > { %3511 = vmatmul.f32.gmra.mxu3 %v1909_v37  ;;  %v3187_v18 = vpop.f32.mrf.mxu2  ;;  %v1146_v37 = vld [vmem:[%s7879_s5 + $0x1ca0] sm:$0xff] }
 0x32d   : > { %v3188_v2 = vadd.f32 %v3187_v18, %v3123_v59  ;;  %3783 = vmatpush.msrb.mxu0 %v1146_v37  ;;  %v1178_v18 = vld [vmem:[%s7879_s5 + $0x1da0] sm:$0xff] }
 0x32e   : > { %v3060_v46 = vpop.f32.mrf.mxu0  ;;  %3848 = vmatpush.msrb.mxu1 %v1178_v18 }
 0x32f   : > { %v3061_v45 = vadd.f32 %v3060_v46, %v9422_v36  ;;  %v3252_v52 = vpop.f32.mrf.mxu3 }
 0x330   : > { %v9707_v9 = vadd.f32 %v3252_v52, %v3188_v2  ;;  %v3125_v10 = vpop.f32.mrf.mxu1  ;;  %v1480_v2 = vld [vmem:[%s13554_s0 + $0x310] sm:$0xff]  ;;  %v1481_v52 = vld [vmem:[%s13554_s0 + $0x318] sm:$0xff] }
 0x331   : > { %3319 = vmatmul.f32.gmra.mxu0 %v1942_v5  ;;  %3449 = vmatmul.f32.gmra.mxu2 %v1944_v6  ;;  %v3126_v16 = vadd.f32 %v3125_v10, %v3061_v45  ;;  %v1479_v45 = vld [vmem:[%s13554_s0 + $0x308] sm:$0xff]  ;;  %v1208_v10 = vld [vmem:[%s7879_s5 + $0x1e90] sm:$0xff] }
 0x332   : > { %3914 = vmatpush.msrb.mxu2 %v1208_v10  ;;  %v1234_v10 = vld [vmem:[%s7879_s5 + $0x1f60] sm:$0xff] }
 0x333   : > { %3384 = vmatmul.f32.gmra.mxu1 %v1943_v63  ;;  %3982 = vmatpush.msrb.mxu3 %v1234_v10  ;;  %v1730_v10 = vld [vmem:[%s13554_s0 + $0xae0] sm:$0xff] }
 0x334   : > { %3514 = vmatmul.f32.gmra.mxu3 %v1945_v56  ;;  %v3190_v36 = vpop.f32.mrf.mxu2  ;;  %v1144_v56 = vld [vmem:[%s7879_s5 + $0x1c90] sm:$0xff] }
 0x335   : > { %v3191_v21 = vadd.f32 %v3190_v36, %v3126_v16  ;;  %3784 = vmatpush.msrb.mxu0 %v1144_v56  ;;  %v1176_v36 = vld [vmem:[%s7879_s5 + $0x1d90] sm:$0xff] }
 0x336   : > { %v3275_v3 = vpop.f32.mrf.mxu0  ;;  %3849 = vmatpush.msrb.mxu1 %v1176_v36 }
 0x337   : > { %v3255_v61 = vpop.f32.mrf.mxu3  ;;  %v3276_v7 = vadd.f32 %v3275_v3, %v9441_v54 }
 0x338   : > { %v9726_v28 = vadd.f32 %v3255_v61, %v3191_v21  ;;  %v3340_v31 = vpop.f32.mrf.mxu1  ;;  %v1516_v21 = vld [vmem:[%s13554_s0 + $0x430] sm:$0xff]  ;;  %v1515_v61 = vld [vmem:[%s13554_s0 + $0x428] sm:$0xff] }
 0x339   : > { %3534 = vmatmul.f32.vlgmr.msra.gmra.mxu0 %v1406_v24  ;;  %3664 = vmatmul.f32.vlgmr.msra.gmra.mxu2 %v1408_v25  ;;  %v3341_v33 = vadd.f32 %v3340_v31, %v3276_v7  ;;  %v1517_v7 = vld [vmem:[%s13554_s0 + $0x438] sm:$0xff]  ;;  %v1206_v31 = vld [vmem:[%s7879_s5 + $0x1e80] sm:$0xff] }
 0x33a   : > { %3915 = vmatpush.msrb.mxu2 %v1206_v31  ;;  %v1232_v31 = vld [vmem:[%s7879_s5 + $0x1f50] sm:$0xff] }
 0x33b   : > { %3599 = vmatmul.f32.vlgmr.msra.gmra.mxu1 %v1407_v14  ;;  %3983 = vmatpush.msrb.mxu3 %v1232_v31  ;;  %v1766_v31 = vld [vmem:[%s13554_s0 + $0xc00] sm:$0xff] }
 0x33c   : > { %3729 = vmatmul.f32.vlgmr.msra.gmra.mxu3 %v1409_v11  ;;  %v3405_v54 = vpop.f32.mrf.mxu2  ;;  %v1142_v11 = vld [vmem:[%s7879_s5 + $0x1c80] sm:$0xff] }
 0x33d   : > { %v3406_v40 = vadd.f32 %v3405_v54, %v3341_v33  ;;  %3785 = vmatpush.msrb.mxu0 %v1142_v11  ;;  %v1174_v54 = vld [vmem:[%s7879_s5 + $0x1d80] sm:$0xff] }
 0x33e   : > { %v3278_v22 = vpop.f32.mrf.mxu0  ;;  %3850 = vmatpush.msrb.mxu1 %v1174_v54 }
 0x33f   : > { %v3279_v13 = vadd.f32 %v3278_v22, %v9460_v8  ;;  %v3470_v26 = vpop.f32.mrf.mxu3 }
 0x340   : > { %v9745_v50 = vadd.f32 %v3470_v26, %v3406_v40  ;;  %v3343_v51 = vpop.f32.mrf.mxu1  ;;  %v1552_v40 = vld [vmem:[%s13554_s0 + $0x550] sm:$0xff]  ;;  %v1553_v26 = vld [vmem:[%s13554_s0 + $0x558] sm:$0xff] }
 0x341   : > { %3537 = vmatmul.f32.gmra.mxu0 %v1442_v43  ;;  %3667 = vmatmul.f32.gmra.mxu2 %v1444_v44  ;;  %v3344_v48 = vadd.f32 %v3343_v51, %v3279_v13  ;;  %v1551_v13 = vld [vmem:[%s13554_s0 + $0x548] sm:$0xff]  ;;  %v1204_v51 = vld [vmem:[%s7879_s5 + $0x1e70] sm:$0xff] }
 0x342   : > { %3916 = vmatpush.msrb.mxu2 %v1204_v51  ;;  %v1230_v51 = vld [vmem:[%s7879_s5 + $0x1f40] sm:$0xff] }
 0x343   : > { %3602 = vmatmul.f32.gmra.mxu1 %v1443_v29  ;;  %3984 = vmatpush.msrb.mxu3 %v1230_v51  ;;  %v1802_v51 = vld [vmem:[%s13554_s0 + $0xd20] sm:$0xff] }
 0x344   : > { %3732 = vmatmul.f32.gmra.mxu3 %v1445_v32  ;;  %v3408_v8 = vpop.f32.mrf.mxu2  ;;  %v1140_v32 = vld [vmem:[%s7879_s5 + $0x1c70] sm:$0xff] }
 0x345   : > { %v3409_v59 = vadd.f32 %v3408_v8, %v3344_v48  ;;  %3786 = vmatpush.msrb.mxu0 %v1140_v32  ;;  %v1172_v8 = vld [vmem:[%s7879_s5 + $0x1d70] sm:$0xff] }
 0x346   : > { %v3281_v41 = vpop.f32.mrf.mxu0  ;;  %3851 = vmatpush.msrb.mxu1 %v1172_v8 }
 0x347   : > { %v3282_v30 = vadd.f32 %v3281_v41, %v9479_v27  ;;  %v3473_v46 = vpop.f32.mrf.mxu3 }
 0x348   : > { %v9764_v5 = vadd.f32 %v3473_v46, %v3409_v59  ;;  %v3346_v6 = vpop.f32.mrf.mxu1  ;;  %v1588_v59 = vld [vmem:[%s13554_s0 + $0x670] sm:$0xff]  ;;  %v1589_v46 = vld [vmem:[%s13554_s0 + $0x678] sm:$0xff] }
 0x349   : > { %3540 = vmatmul.f32.gmra.mxu0 %v1478_v0  ;;  %3670 = vmatmul.f32.gmra.mxu2 %v1480_v2  ;;  %v3347_v63 = vadd.f32 %v3346_v6, %v3282_v30  ;;  %v1587_v30 = vld [vmem:[%s13554_s0 + $0x668] sm:$0xff]  ;;  %v1202_v6 = vld [vmem:[%s7879_s5 + $0x1e60] sm:$0xff] }
 0x34a   : > { %3917 = vmatpush.msrb.mxu2 %v1202_v6  ;;  %v1228_v6 = vld [vmem:[%s7879_s5 + $0x1f30] sm:$0xff] }
 0x34b   : > { %3605 = vmatmul.f32.gmra.mxu1 %v1479_v45  ;;  %3985 = vmatpush.msrb.mxu3 %v1228_v6  ;;  %v1838_v6 = vld [vmem:[%s13554_s0 + $0xe40] sm:$0xff] }
 0x34c   : > { %3735 = vmatmul.f32.gmra.mxu3 %v1481_v52  ;;  %v3411_v27 = vpop.f32.mrf.mxu2  ;;  %v1138_v52 = vld [vmem:[%s7879_s5 + $0x1c60] sm:$0xff] }
 0x34d   : > { %v3412_v16 = vadd.f32 %v3411_v27, %v3347_v63  ;;  %3787 = vmatpush.msrb.mxu0 %v1138_v52  ;;  %v1170_v27 = vld [vmem:[%s7879_s5 + $0x1d60] sm:$0xff] }
 0x34e   : > { %v3284_v60 = vpop.f32.mrf.mxu0  ;;  %3852 = vmatpush.msrb.mxu1 %v1170_v27 }
 0x34f   : > { %v3285_v47 = vadd.f32 %v3284_v60, %v9498_v49  ;;  %v3476_v3 = vpop.f32.mrf.mxu3 }
 0x350   : > { %v9783_v24 = vadd.f32 %v3476_v3, %v3412_v16  ;;  %v3349_v25 = vpop.f32.mrf.mxu1  ;;  %v1624_v16 = vld [vmem:[%s13554_s0 + $0x790] sm:$0xff]  ;;  %v1625_v3 = vld [vmem:[%s13554_s0 + $0x798] sm:$0xff] }
 0x351   : > { %3543 = vmatmul.f32.gmra.mxu0 %v1514_v20  ;;  %3673 = vmatmul.f32.gmra.mxu2 %v1516_v21  ;;  %v3350_v14 = vadd.f32 %v3349_v25, %v3285_v47  ;;  %v1623_v47 = vld [vmem:[%s13554_s0 + $0x788] sm:$0xff]  ;;  %v1200_v25 = vld [vmem:[%s7879_s5 + $0x1e50] sm:$0xff] }
 0x352   : > { %3918 = vmatpush.msrb.mxu2 %v1200_v25  ;;  %v1226_v25 = vld [vmem:[%s7879_s5 + $0x1f20] sm:$0xff] }
 0x353   : > { %3608 = vmatmul.f32.gmra.mxu1 %v1515_v61  ;;  %3986 = vmatpush.msrb.mxu3 %v1226_v25  ;;  %v1874_v25 = vld [vmem:[%s13554_s0 + $0xf60] sm:$0xff] }
 0x354   : > { %3738 = vmatmul.f32.gmra.mxu3 %v1517_v7  ;;  %v3414_v49 = vpop.f32.mrf.mxu2  ;;  %v1136_v7 = vld [vmem:[%s7879_s5 + $0x1c50] sm:$0xff] }
 0x355   : > { %v3415_v33 = vadd.f32 %v3414_v49, %v3350_v14  ;;  %3788 = vmatpush.msrb.mxu0 %v1136_v7  ;;  %v1168_v49 = vld [vmem:[%s7879_s5 + $0x1d50] sm:$0xff] }
 0x356   : > { %v3287_v17 = vpop.f32.mrf.mxu0  ;;  %3853 = vmatpush.msrb.mxu1 %v1168_v49 }
 0x357   : > { %v3288_v1 = vadd.f32 %v3287_v17, %v9517_v4  ;;  %v3479_v22 = vpop.f32.mrf.mxu3 }
 0x358   : > { %v9802_v43 = vadd.f32 %v3479_v22, %v3415_v33  ;;  %v3352_v44 = vpop.f32.mrf.mxu1  ;;  %v1660_v33 = vld [vmem:[%s13554_s0 + $0x8b0] sm:$0xff]  ;;  %v1661_v22 = vld [vmem:[%s13554_s0 + $0x8b8] sm:$0xff] }
 0x359   : > { %3546 = vmatmul.f32.gmra.mxu0 %v1550_v39  ;;  %3676 = vmatmul.f32.gmra.mxu2 %v1552_v40  ;;  %v3353_v29 = vadd.f32 %v3352_v44, %v3288_v1  ;;  %v1659_v1 = vld [vmem:[%s13554_s0 + $0x8a8] sm:$0xff]  ;;  %v1198_v44 = vld [vmem:[%s7879_s5 + $0x1e40] sm:$0xff] }
 0x35a   : > { %3919 = vmatpush.msrb.mxu2 %v1198_v44  ;;  %v1224_v44 = vld [vmem:[%s7879_s5 + $0x1f10] sm:$0xff] }
 0x35b   : > { %3611 = vmatmul.f32.gmra.mxu1 %v1551_v13  ;;  %3987 = vmatpush.msrb.mxu3 %v1224_v44  ;;  %v1910_v44 = vld [vmem:[%s13554_s0 + $0x1080] sm:$0xff] }
 0x35c   : > { %3741 = vmatmul.f32.gmra.mxu3 %v1553_v26  ;;  %v3417_v4 = vpop.f32.mrf.mxu2  ;;  %v1134_v26 = vld [vmem:[%s7879_s5 + $0x1c40] sm:$0xff] }
 0x35d   : > { %v3418_v48 = vadd.f32 %v3417_v4, %v3353_v29  ;;  %3789 = vmatpush.msrb.mxu0 %v1134_v26  ;;  %v1166_v4 = vld [vmem:[%s7879_s5 + $0x1d40] sm:$0xff] }
 0x35e   : > { %v3290_v37 = vpop.f32.mrf.mxu0  ;;  %3854 = vmatpush.msrb.mxu1 %v1166_v4 }
 0x35f   : > { %v3291_v18 = vadd.f32 %v3290_v37, %v9536_v23  ;;  %v3482_v41 = vpop.f32.mrf.mxu3 }
 0x360   : > { %v9821_v0 = vadd.f32 %v3482_v41, %v3418_v48  ;;  %v3355_v2 = vpop.f32.mrf.mxu1  ;;  %v1696_v48 = vld [vmem:[%s13554_s0 + $0x9d0] sm:$0xff]  ;;  %v1697_v41 = vld [vmem:[%s13554_s0 + $0x9d8] sm:$0xff] }
 0x361   : > { %3549 = vmatmul.f32.gmra.mxu0 %v1586_v58  ;;  %3679 = vmatmul.f32.gmra.mxu2 %v1588_v59  ;;  %v3356_v45 = vadd.f32 %v3355_v2, %v3291_v18  ;;  %v1695_v18 = vld [vmem:[%s13554_s0 + $0x9c8] sm:$0xff]  ;;  %v1196_v2 = vld [vmem:[%s7879_s5 + $0x1e30] sm:$0xff] }
 0x362   : > { %3920 = vmatpush.msrb.mxu2 %v1196_v2  ;;  %v1222_v2 = vld [vmem:[%s7879_s5 + $0x1f00] sm:$0xff] }
 0x363   : > { %3614 = vmatmul.f32.gmra.mxu1 %v1587_v30  ;;  %3988 = vmatpush.msrb.mxu3 %v1222_v2  ;;  %v1946_v2 = vld [vmem:[%s13554_s0 + $0x11a0] sm:$0xff] }
 0x364   : > { %3744 = vmatmul.f32.gmra.mxu3 %v1589_v46  ;;  %v3420_v23 = vpop.f32.mrf.mxu2  ;;  %v1132_v46 = vld [vmem:[%s7879_s5 + $0x1c30] sm:$0xff] }
 0x365   : > { %v3421_v63 = vadd.f32 %v3420_v23, %v3356_v45  ;;  %3790 = vmatpush.msrb.mxu0 %v1132_v46  ;;  %v1164_v23 = vld [vmem:[%s7879_s5 + $0x1d30] sm:$0xff] }
 0x366   : > { %v3293_v56 = vpop.f32.mrf.mxu0  ;;  %3855 = vmatpush.msrb.mxu1 %v1164_v23 }
 0x367   : > { %v3294_v36 = vadd.f32 %v3293_v56, %v9555_v42  ;;  %v3485_v60 = vpop.f32.mrf.mxu3 }
 0x368   : > { %v9840_v20 = vadd.f32 %v3485_v60, %v3421_v63  ;;  %v3358_v21 = vpop.f32.mrf.mxu1  ;;  %v1732_v63 = vld [vmem:[%s13554_s0 + $0xaf0] sm:$0xff]  ;;  %v1733_v60 = vld [vmem:[%s13554_s0 + $0xaf8] sm:$0xff] }
 0x369   : > { %3552 = vmatmul.f32.gmra.mxu0 %v1622_v15  ;;  %3682 = vmatmul.f32.gmra.mxu2 %v1624_v16  ;;  %v3359_v61 = vadd.f32 %v3358_v21, %v3294_v36  ;;  %v1731_v36 = vld [vmem:[%s13554_s0 + $0xae8] sm:$0xff]  ;;  %v1194_v21 = vld [vmem:[%s7879_s5 + $0x1e20] sm:$0xff] }
 0x36a   : > { %3921 = vmatpush.msrb.mxu2 %v1194_v21  ;;  %v1380_v21 = vld [vmem:[%s7879_s5 + $0x23f0] sm:$0xff] }
 0x36b   : > { %3617 = vmatmul.f32.gmra.mxu1 %v1623_v47  ;;  %4233 = vmatpush.msra.mxu3 %v1380_v21  ;;  %v1410_v21 = vld [vmem:[%s13554_s0 + $0xe0] sm:$0xff] }
 0x36c   : > { %3747 = vmatmul.f32.gmra.mxu3 %v1625_v3  ;;  %v3423_v42 = vpop.f32.mrf.mxu2  ;;  %v1130_v3 = vld [vmem:[%s7879_s5 + $0x1c20] sm:$0xff] }
 0x36d   : > { %v3424_v14 = vadd.f32 %v3423_v42, %v3359_v61  ;;  %3791 = vmatpush.msrb.mxu0 %v1130_v3  ;;  %v1162_v42 = vld [vmem:[%s7879_s5 + $0x1d20] sm:$0xff] }
 0x36e   : > { %v3296_v11 = vpop.f32.mrf.mxu0  ;;  %3856 = vmatpush.msrb.mxu1 %v1162_v42 }
 0x36f   : > { %v3297_v54 = vadd.f32 %v3296_v11, %v9574_v62  ;;  %v3488_v17 = vpop.f32.mrf.mxu3 }
 0x370   : > { %v9859_v39 = vadd.f32 %v3488_v17, %v3424_v14  ;;  %v3361_v40 = vpop.f32.mrf.mxu1  ;;  %v1768_v14 = vld [vmem:[%s13554_s0 + $0xc10] sm:$0xff]  ;;  %v1769_v17 = vld [vmem:[%s13554_s0 + $0xc18] sm:$0xff] }
 0x371   : > { %3555 = vmatmul.f32.gmra.mxu0 %v1658_v35  ;;  %3685 = vmatmul.f32.gmra.mxu2 %v1660_v33  ;;  %v3362_v13 = vadd.f32 %v3361_v40, %v3297_v54  ;;  %v1767_v54 = vld [vmem:[%s13554_s0 + $0xc08] sm:$0xff]  ;;  %v1192_v40 = vld [vmem:[%s7879_s5 + $0x1e10] sm:$0xff] }
 0x372   : > { %3922 = vmatpush.msrb.mxu2 %v1192_v40  ;;  %v1378_v40 = vld [vmem:[%s7879_s5 + $0x23e0] sm:$0xff] }
 0x373   : > { %3620 = vmatmul.f32.gmra.mxu1 %v1659_v1  ;;  %4234 = vmatpush.msra.mxu3 %v1378_v40  ;;  %v1446_v40 = vld [vmem:[%s13554_s0 + $0x200] sm:$0xff] }
 0x374   : > { %3750 = vmatmul.f32.gmra.mxu3 %v1661_v22  ;;  %v3426_v62 = vpop.f32.mrf.mxu2  ;;  %v1128_v22 = vld [vmem:[%s7879_s5 + $0x1c10] sm:$0xff] }
 0x375   : > { %v3427_v29 = vadd.f32 %v3426_v62, %v3362_v13  ;;  %3792 = vmatpush.msrb.mxu0 %v1128_v22  ;;  %v1160_v62 = vld [vmem:[%s7879_s5 + $0x1d10] sm:$0xff] }
 0x376   : > { %v3299_v32 = vpop.f32.mrf.mxu0  ;;  %3857 = vmatpush.msrb.mxu1 %v1160_v62 }
 0x377   : > { %v3300_v8 = vadd.f32 %v3299_v32, %v9593_v19  ;;  %v3491_v37 = vpop.f32.mrf.mxu3 }
 0x378   : > { %v9878_v58 = vadd.f32 %v3491_v37, %v3427_v29  ;;  %v3364_v59 = vpop.f32.mrf.mxu1  ;;  %v1804_v29 = vld [vmem:[%s13554_s0 + $0xd30] sm:$0xff]  ;;  %v1805_v37 = vld [vmem:[%s13554_s0 + $0xd38] sm:$0xff] }
 0x379   : > { %3558 = vmatmul.f32.gmra.mxu0 %v1694_v55  ;;  %3688 = vmatmul.f32.gmra.mxu2 %v1696_v48  ;;  %v3365_v30 = vadd.f32 %v3364_v59, %v3300_v8  ;;  %v1803_v8 = vld [vmem:[%s13554_s0 + $0xd28] sm:$0xff]  ;;  %v1190_v59 = vld [vmem:[%s7879_s5 + $0x1e00] sm:$0xff] }
 0x37a   : > { %3923 = vmatpush.msrb.mxu2 %v1190_v59  ;;  %v1376_v59 = vld [vmem:[%s7879_s5 + $0x23d0] sm:$0xff] }
 0x37b   : > { %3623 = vmatmul.f32.gmra.mxu1 %v1695_v18  ;;  %4235 = vmatpush.msra.mxu3 %v1376_v59  ;;  %v1482_v59 = vld [vmem:[%s13554_s0 + $0x320] sm:$0xff] }
 0x37c   : > { %3753 = vmatmul.f32.gmra.mxu3 %v1697_v41  ;;  %v3429_v19 = vpop.f32.mrf.mxu2  ;;  %v1126_v41 = vld [vmem:[%s7879_s5 + $0x1c00] sm:$0xff] }
 0x37d   : > { %v3430_v45 = vadd.f32 %v3429_v19, %v3365_v30  ;;  %3793 = vmatpush.msrb.mxu0 %v1126_v41  ;;  %v1158_v19 = vld [vmem:[%s7879_s5 + $0x1d00] sm:$0xff] }
 0x37e   : > { %v3302_v52 = vpop.f32.mrf.mxu0  ;;  %3858 = vmatpush.msrb.mxu1 %v1158_v19 }
 0x37f   : > { %v3303_v27 = vadd.f32 %v3302_v52, %v9612_v38  ;;  %v3494_v56 = vpop.f32.mrf.mxu3 }
 0x380   : > { %v9897_v15 = vadd.f32 %v3494_v56, %v3430_v45  ;;  %v3367_v16 = vpop.f32.mrf.mxu1  ;;  %v1840_v45 = vld [vmem:[%s13554_s0 + $0xe50] sm:$0xff]  ;;  %v1841_v56 = vld [vmem:[%s13554_s0 + $0xe58] sm:$0xff] }
 0x381   : > { %3561 = vmatmul.f32.gmra.mxu0 %v1730_v10  ;;  %3691 = vmatmul.f32.gmra.mxu2 %v1732_v63  ;;  %v3368_v47 = vadd.f32 %v3367_v16, %v3303_v27  ;;  %v1839_v27 = vld [vmem:[%s13554_s0 + $0xe48] sm:$0xff]  ;;  %v1348_v16 = vld [vmem:[%s7879_s5 + $0x22f0] sm:$0xff] }
 0x382   : > { %4168 = vmatpush.msra.mxu2 %v1348_v16  ;;  %v1374_v16 = vld [vmem:[%s7879_s5 + $0x23c0] sm:$0xff] }
 0x383   : > { %3626 = vmatmul.f32.gmra.mxu1 %v1731_v36  ;;  %4236 = vmatpush.msra.mxu3 %v1374_v16  ;;  %v1518_v16 = vld [vmem:[%s13554_s0 + $0x440] sm:$0xff] }
 0x384   : > { %3756 = vmatmul.f32.gmra.mxu3 %v1733_v60  ;;  %v3432_v38 = vpop.f32.mrf.mxu2  ;;  %v1284_v60 = vld [vmem:[%s7879_s5 + $0x20f0] sm:$0xff] }
 0x385   : > { %v3433_v61 = vadd.f32 %v3432_v38, %v3368_v47  ;;  %4038 = vmatpush.msra.mxu0 %v1284_v60  ;;  %v1316_v38 = vld [vmem:[%s7879_s5 + $0x21f0] sm:$0xff] }
 0x386   : > { %v3305_v7 = vpop.f32.mrf.mxu0  ;;  %4103 = vmatpush.msra.mxu1 %v1316_v38 }
 0x387   : > { %v3306_v49 = vadd.f32 %v3305_v7, %v9631_v57  ;;  %v3497_v11 = vpop.f32.mrf.mxu3 }
 0x388   : > { %v9916_v35 = vadd.f32 %v3497_v11, %v3433_v61  ;;  %v3370_v33 = vpop.f32.mrf.mxu1  ;;  %v1876_v61 = vld [vmem:[%s13554_s0 + $0xf70] sm:$0xff]  ;;  %v1877_v11 = vld [vmem:[%s13554_s0 + $0xf78] sm:$0xff] }
 0x389   : > { %3564 = vmatmul.f32.gmra.mxu0 %v1766_v31  ;;  %3694 = vmatmul.f32.gmra.mxu2 %v1768_v14  ;;  %v3371_v1 = vadd.f32 %v3370_v33, %v3306_v49  ;;  %v1875_v49 = vld [vmem:[%s13554_s0 + $0xf68] sm:$0xff]  ;;  %v1346_v33 = vld [vmem:[%s7879_s5 + $0x22e0] sm:$0xff] }
 0x38a   : > { %4169 = vmatpush.msra.mxu2 %v1346_v33  ;;  %v1372_v33 = vld [vmem:[%s7879_s5 + $0x23b0] sm:$0xff] }
 0x38b   : > { %3629 = vmatmul.f32.gmra.mxu1 %v1767_v54  ;;  %4237 = vmatpush.msra.mxu3 %v1372_v33  ;;  %v1554_v33 = vld [vmem:[%s13554_s0 + $0x560] sm:$0xff] }
 0x38c   : > { %3759 = vmatmul.f32.gmra.mxu3 %v1769_v17  ;;  %v3435_v57 = vpop.f32.mrf.mxu2  ;;  %v1282_v17 = vld [vmem:[%s7879_s5 + $0x20e0] sm:$0xff] }
 0x38d   : > { %v3436_v13 = vadd.f32 %v3435_v57, %v3371_v1  ;;  %4039 = vmatpush.msra.mxu0 %v1282_v17  ;;  %v1314_v57 = vld [vmem:[%s7879_s5 + $0x21e0] sm:$0xff] }
 0x38e   : > { %v3308_v26 = vpop.f32.mrf.mxu0  ;;  %4104 = vmatpush.msra.mxu1 %v1314_v57 }
 0x38f   : > { %v3309_v4 = vadd.f32 %v3308_v26, %v9650_v12  ;;  %v3500_v32 = vpop.f32.mrf.mxu3 }
 0x390   : > { %v9935_v55 = vadd.f32 %v3500_v32, %v3436_v13  ;;  %v3373_v48 = vpop.f32.mrf.mxu1  ;;  %v1912_v13 = vld [vmem:[%s13554_s0 + $0x1090] sm:$0xff]  ;;  %v1913_v32 = vld [vmem:[%s13554_s0 + $0x1098] sm:$0xff] }
 0x391   : > { %3567 = vmatmul.f32.gmra.mxu0 %v1802_v51  ;;  %3697 = vmatmul.f32.gmra.mxu2 %v1804_v29  ;;  %v3374_v18 = vadd.f32 %v3373_v48, %v3309_v4  ;;  %v1911_v4 = vld [vmem:[%s13554_s0 + $0x1088] sm:$0xff]  ;;  %v1344_v48 = vld [vmem:[%s7879_s5 + $0x22d0] sm:$0xff] }
 0x392   : > { %4170 = vmatpush.msra.mxu2 %v1344_v48  ;;  %v1370_v48 = vld [vmem:[%s7879_s5 + $0x23a0] sm:$0xff] }
 0x393   : > { %3632 = vmatmul.f32.gmra.mxu1 %v1803_v8  ;;  %4238 = vmatpush.msra.mxu3 %v1370_v48  ;;  %v1590_v48 = vld [vmem:[%s13554_s0 + $0x680] sm:$0xff] }
 0x394   : > { %3762 = vmatmul.f32.gmra.mxu3 %v1805_v37  ;;  %v3438_v12 = vpop.f32.mrf.mxu2  ;;  %v1280_v37 = vld [vmem:[%s7879_s5 + $0x20d0] sm:$0xff] }
 0x395   : > { %v3439_v30 = vadd.f32 %v3438_v12, %v3374_v18  ;;  %4040 = vmatpush.msra.mxu0 %v1280_v37  ;;  %v1312_v12 = vld [vmem:[%s7879_s5 + $0x21d0] sm:$0xff] }
 0x396   : > { %v3311_v46 = vpop.f32.mrf.mxu0  ;;  %4105 = vmatpush.msra.mxu1 %v1312_v12 }
 0x397   : > { %v3312_v23 = vadd.f32 %v3311_v46, %v9669_v34  ;;  %v3503_v52 = vpop.f32.mrf.mxu3 }
 0x398   : > { %v9954_v10 = vadd.f32 %v3503_v52, %v3439_v30  ;;  %v3376_v63 = vpop.f32.mrf.mxu1  ;;  %v1948_v30 = vld [vmem:[%s13554_s0 + $0x11b0] sm:$0xff]  ;;  %v1949_v52 = vld [vmem:[%s13554_s0 + $0x11b8] sm:$0xff] }
 0x399   : > { %3570 = vmatmul.f32.gmra.mxu0 %v1838_v6  ;;  %3700 = vmatmul.f32.gmra.mxu2 %v1840_v45  ;;  %v3377_v36 = vadd.f32 %v3376_v63, %v3312_v23  ;;  %v1947_v23 = vld [vmem:[%s13554_s0 + $0x11a8] sm:$0xff]  ;;  %v1342_v63 = vld [vmem:[%s7879_s5 + $0x22c0] sm:$0xff] }
 0x39a   : > { %4171 = vmatpush.msra.mxu2 %v1342_v63  ;;  %v1368_v63 = vld [vmem:[%s7879_s5 + $0x2390] sm:$0xff] }
 0x39b   : > { %3635 = vmatmul.f32.gmra.mxu1 %v1839_v27  ;;  %4239 = vmatpush.msra.mxu3 %v1368_v63  ;;  %v1626_v63 = vld [vmem:[%s13554_s0 + $0x7a0] sm:$0xff] }
 0x39c   : > { %3765 = vmatmul.f32.gmra.mxu3 %v1841_v56  ;;  %v3441_v34 = vpop.f32.mrf.mxu2  ;;  %v1278_v56 = vld [vmem:[%s7879_s5 + $0x20c0] sm:$0xff] }
 0x39d   : > { %v3442_v47 = vadd.f32 %v3441_v34, %v3377_v36  ;;  %4041 = vmatpush.msra.mxu0 %v1278_v56  ;;  %v1310_v34 = vld [vmem:[%s7879_s5 + $0x21c0] sm:$0xff] }
 0x39e   : > { %v3314_v3 = vpop.f32.mrf.mxu0  ;;  %4106 = vmatpush.msra.mxu1 %v1310_v34 }
 0x39f   : > { %v3315_v42 = vadd.f32 %v3314_v3, %v9688_v53  ;;  %v3506_v7 = vpop.f32.mrf.mxu3 }
 0x3a0   : > { %v9973_v31 = vadd.f32 %v3506_v7, %v3442_v47  ;;  %v3379_v14 = vpop.f32.mrf.mxu1  ;;  %v1412_v47 = vld [vmem:[%s13554_s0 + $0xf0] sm:$0xff]  ;;  %v1413_v7 = vld [vmem:[%s13554_s0 + $0xf8] sm:$0xff] }
 0x3a1   : > { %3573 = vmatmul.f32.gmra.mxu0 %v1874_v25  ;;  %3703 = vmatmul.f32.gmra.mxu2 %v1876_v61  ;;  %v3380_v54 = vadd.f32 %v3379_v14, %v3315_v42  ;;  %v1411_v42 = vld [vmem:[%s13554_s0 + $0xe8] sm:$0xff]  ;;  %v1340_v14 = vld [vmem:[%s7879_s5 + $0x22b0] sm:$0xff] }
 0x3a2   : > { %4172 = vmatpush.msra.mxu2 %v1340_v14  ;;  %v1366_v14 = vld [vmem:[%s7879_s5 + $0x2380] sm:$0xff] }
 0x3a3   : > { %3638 = vmatmul.f32.gmra.mxu1 %v1875_v49  ;;  %4240 = vmatpush.msra.mxu3 %v1366_v14  ;;  %v1662_v14 = vld [vmem:[%s13554_s0 + $0x8c0] sm:$0xff] }
 0x3a4   : > { %3768 = vmatmul.f32.gmra.mxu3 %v1877_v11  ;;  %v3444_v53 = vpop.f32.mrf.mxu2  ;;  %v1276_v11 = vld [vmem:[%s7879_s5 + $0x20b0] sm:$0xff] }
 0x3a5   : > { %v3445_v1 = vadd.f32 %v3444_v53, %v3380_v54  ;;  %4042 = vmatpush.msra.mxu0 %v1276_v11  ;;  %v1308_v53 = vld [vmem:[%s7879_s5 + $0x21b0] sm:$0xff] }
 0x3a6   : > { %v3317_v22 = vpop.f32.mrf.mxu0  ;;  %4107 = vmatpush.msra.mxu1 %v1308_v53 }
 0x3a7   : > { %v3318_v62 = vadd.f32 %v3317_v22, %v9707_v9  ;;  %v3509_v26 = vpop.f32.mrf.mxu3 }
 0x3a8   : > { %v9992_v51 = vadd.f32 %v3509_v26, %v3445_v1  ;;  %v3382_v29 = vpop.f32.mrf.mxu1  ;;  %v1448_v1 = vld [vmem:[%s13554_s0 + $0x210] sm:$0xff]  ;;  %v1449_v26 = vld [vmem:[%s13554_s0 + $0x218] sm:$0xff] }
 0x3a9   : > { %3576 = vmatmul.f32.gmra.mxu0 %v1910_v44  ;;  %3706 = vmatmul.f32.gmra.mxu2 %v1912_v13  ;;  %v3383_v8 = vadd.f32 %v3382_v29, %v3318_v62  ;;  %v1447_v62 = vld [vmem:[%s13554_s0 + $0x208] sm:$0xff]  ;;  %v1338_v29 = vld [vmem:[%s7879_s5 + $0x22a0] sm:$0xff] }
 0x3aa   : > { %4173 = vmatpush.msra.mxu2 %v1338_v29  ;;  %v1364_v29 = vld [vmem:[%s7879_s5 + $0x2370] sm:$0xff] }
 0x3ab   : > { %3641 = vmatmul.f32.gmra.mxu1 %v1911_v4  ;;  %4241 = vmatpush.msra.mxu3 %v1364_v29  ;;  %v1698_v29 = vld [vmem:[%s13554_s0 + $0x9e0] sm:$0xff] }
 0x3ac   : > { %3771 = vmatmul.f32.gmra.mxu3 %v1913_v32  ;;  %v3447_v9 = vpop.f32.mrf.mxu2  ;;  %v1274_v32 = vld [vmem:[%s7879_s5 + $0x20a0] sm:$0xff] }
 0x3ad   : > { %v3448_v18 = vadd.f32 %v3447_v9, %v3383_v8  ;;  %4043 = vmatpush.msra.mxu0 %v1274_v32  ;;  %v1306_v9 = vld [vmem:[%s7879_s5 + $0x21a0] sm:$0xff] }
 0x3ae   : > { %v3320_v41 = vpop.f32.mrf.mxu0  ;;  %4108 = vmatpush.msra.mxu1 %v1306_v9 }
 0x3af   : > { %v3321_v19 = vadd.f32 %v3320_v41, %v9726_v28  ;;  %v3512_v46 = vpop.f32.mrf.mxu3 }
 0x3b0   : > { %v10011_v6 = vadd.f32 %v3512_v46, %v3448_v18  ;;  %v3385_v45 = vpop.f32.mrf.mxu1  ;;  %v1484_v18 = vld [vmem:[%s13554_s0 + $0x330] sm:$0xff]  ;;  %v1485_v46 = vld [vmem:[%s13554_s0 + $0x338] sm:$0xff] }
 0x3b1   : > { %3579 = vmatmul.f32.gmra.mxu0 %v1946_v2  ;;  %3709 = vmatmul.f32.gmra.mxu2 %v1948_v30  ;;  %v3386_v27 = vadd.f32 %v3385_v45, %v3321_v19  ;;  %v1483_v19 = vld [vmem:[%s13554_s0 + $0x328] sm:$0xff]  ;;  %v1336_v45 = vld [vmem:[%s7879_s5 + $0x2290] sm:$0xff] }
 0x3b2   : > { %4174 = vmatpush.msra.mxu2 %v1336_v45  ;;  %v1362_v45 = vld [vmem:[%s7879_s5 + $0x2360] sm:$0xff] }
 0x3b3   : > { %3644 = vmatmul.f32.gmra.mxu1 %v1947_v23  ;;  %4242 = vmatpush.msra.mxu3 %v1362_v45  ;;  %v1734_v45 = vld [vmem:[%s13554_s0 + $0xb00] sm:$0xff] }
 0x3b4   : > { %3774 = vmatmul.f32.gmra.mxu3 %v1949_v52  ;;  %v3450_v28 = vpop.f32.mrf.mxu2  ;;  %v1272_v52 = vld [vmem:[%s7879_s5 + $0x2090] sm:$0xff] }
 0x3b5   : > { %v3451_v36 = vadd.f32 %v3450_v28, %v3386_v27  ;;  %4044 = vmatpush.msra.mxu0 %v1272_v52  ;;  %v1304_v28 = vld [vmem:[%s7879_s5 + $0x2190] sm:$0xff] }
 0x3b6   : > { %v3535_v60 = vpop.f32.mrf.mxu0  ;;  %4109 = vmatpush.msra.mxu1 %v1304_v28 }
 0x3b7   : > { %v3515_v38 = vpop.f32.mrf.mxu3  ;;  %v3536_v3 = vadd.f32 %v3535_v60, %v9745_v50 }
 0x3b8   : > { %v10030_v25 = vadd.f32 %v3515_v38, %v3451_v36  ;;  %v3600_v61 = vpop.f32.mrf.mxu1  ;;  %v1520_v36 = vld [vmem:[%s13554_s0 + $0x450] sm:$0xff]  ;;  %v1519_v38 = vld [vmem:[%s13554_s0 + $0x448] sm:$0xff] }
 0x3b9   : > { %3794 = vmatmul.f32.vlgmr.msrb.gmra.mxu0 %v1410_v21  ;;  %3924 = vmatmul.f32.vlgmr.msrb.gmra.mxu2 %v1412_v47  ;;  %v3601_v49 = vadd.f32 %v3600_v61, %v3536_v3  ;;  %v1521_v3 = vld [vmem:[%s13554_s0 + $0x458] sm:$0xff]  ;;  %v1334_v61 = vld [vmem:[%s7879_s5 + $0x2280] sm:$0xff] }
 0x3ba   : > { %4175 = vmatpush.msra.mxu2 %v1334_v61  ;;  %v1360_v61 = vld [vmem:[%s7879_s5 + $0x2350] sm:$0xff] }
 0x3bb   : > { %3859 = vmatmul.f32.vlgmr.msrb.gmra.mxu1 %v1411_v42  ;;  %4243 = vmatpush.msra.mxu3 %v1360_v61  ;;  %v1770_v61 = vld [vmem:[%s13554_s0 + $0xc20] sm:$0xff] }
 0x3bc   : > { %3989 = vmatmul.f32.vlgmr.msrb.gmra.mxu3 %v1413_v7  ;;  %v3665_v50 = vpop.f32.mrf.mxu2  ;;  %v1270_v7 = vld [vmem:[%s7879_s5 + $0x2080] sm:$0xff] }
 0x3bd   : > { %v3666_v54 = vadd.f32 %v3665_v50, %v3601_v49  ;;  %4045 = vmatpush.msra.mxu0 %v1270_v7  ;;  %v1302_v50 = vld [vmem:[%s7879_s5 + $0x2180] sm:$0xff] }
 0x3be   : > { %v3538_v17 = vpop.f32.mrf.mxu0  ;;  %4110 = vmatpush.msra.mxu1 %v1302_v50 }
 0x3bf   : > { %v3539_v57 = vadd.f32 %v3538_v17, %v9764_v5  ;;  %v3730_v22 = vpop.f32.mrf.mxu3 }
 0x3c0   : > { %v10049_v44 = vadd.f32 %v3730_v22, %v3666_v54  ;;  %v3603_v13 = vpop.f32.mrf.mxu1  ;;  %v1556_v54 = vld [vmem:[%s13554_s0 + $0x570] sm:$0xff]  ;;  %v1557_v22 = vld [vmem:[%s13554_s0 + $0x578] sm:$0xff] }
 0x3c1   : > { %3797 = vmatmul.f32.gmra.mxu0 %v1446_v40  ;;  %3927 = vmatmul.f32.gmra.mxu2 %v1448_v1  ;;  %v3604_v4 = vadd.f32 %v3603_v13, %v3539_v57  ;;  %v1555_v57 = vld [vmem:[%s13554_s0 + $0x568] sm:$0xff]  ;;  %v1332_v13 = vld [vmem:[%s7879_s5 + $0x2270] sm:$0xff] }
 0x3c2   : > { %4176 = vmatpush.msra.mxu2 %v1332_v13  ;;  %v1358_v13 = vld [vmem:[%s7879_s5 + $0x2340] sm:$0xff] }
 0x3c3   : > { %3862 = vmatmul.f32.gmra.mxu1 %v1447_v62  ;;  %4244 = vmatpush.msra.mxu3 %v1358_v13  ;;  %v1806_v13 = vld [vmem:[%s13554_s0 + $0xd40] sm:$0xff] }
 0x3c4   : > { %3992 = vmatmul.f32.gmra.mxu3 %v1449_v26  ;;  %v3668_v5 = vpop.f32.mrf.mxu2  ;;  %v1268_v26 = vld [vmem:[%s7879_s5 + $0x2070] sm:$0xff] }
 0x3c5   : > { %v3669_v8 = vadd.f32 %v3668_v5, %v3604_v4  ;;  %4046 = vmatpush.msra.mxu0 %v1268_v26  ;;  %v1300_v5 = vld [vmem:[%s7879_s5 + $0x2170] sm:$0xff] }
 0x3c6   : > { %v3541_v37 = vpop.f32.mrf.mxu0  ;;  %4111 = vmatpush.msra.mxu1 %v1300_v5 }
 0x3c7   : > { %v3542_v12 = vadd.f32 %v3541_v37, %v9783_v24  ;;  %v3733_v41 = vpop.f32.mrf.mxu3 }
 0x3c8   : > { %v10068_v2 = vadd.f32 %v3733_v41, %v3669_v8  ;;  %v3606_v30 = vpop.f32.mrf.mxu1  ;;  %v1592_v8 = vld [vmem:[%s13554_s0 + $0x690] sm:$0xff]  ;;  %v1593_v41 = vld [vmem:[%s13554_s0 + $0x698] sm:$0xff] }
 0x3c9   : > { %3800 = vmatmul.f32.gmra.mxu0 %v1482_v59  ;;  %3930 = vmatmul.f32.gmra.mxu2 %v1484_v18  ;;  %v3607_v23 = vadd.f32 %v3606_v30, %v3542_v12  ;;  %v1591_v12 = vld [vmem:[%s13554_s0 + $0x688] sm:$0xff]  ;;  %v1330_v30 = vld [vmem:[%s7879_s5 + $0x2260] sm:$0xff] }
 0x3ca   : > { %4177 = vmatpush.msra.mxu2 %v1330_v30  ;;  %v1356_v30 = vld [vmem:[%s7879_s5 + $0x2330] sm:$0xff] }
 0x3cb   : > { %3865 = vmatmul.f32.gmra.mxu1 %v1483_v19  ;;  %4245 = vmatpush.msra.mxu3 %v1356_v30  ;;  %v1842_v30 = vld [vmem:[%s13554_s0 + $0xe60] sm:$0xff] }
 0x3cc   : > { %3995 = vmatmul.f32.gmra.mxu3 %v1485_v46  ;;  %v3671_v24 = vpop.f32.mrf.mxu2  ;;  %v1266_v46 = vld [vmem:[%s7879_s5 + $0x2060] sm:$0xff] }
 0x3cd   : > { %v3672_v27 = vadd.f32 %v3671_v24, %v3607_v23  ;;  %4047 = vmatpush.msra.mxu0 %v1266_v46  ;;  %v1298_v24 = vld [vmem:[%s7879_s5 + $0x2160] sm:$0xff] }
 0x3ce   : > { %v3544_v56 = vpop.f32.mrf.mxu0  ;;  %4112 = vmatpush.msra.mxu1 %v1298_v24 }
 0x3cf   : > { %v3545_v34 = vadd.f32 %v3544_v56, %v9802_v43  ;;  %v3736_v60 = vpop.f32.mrf.mxu3 }
 0x3d0   : > { %v10087_v21 = vadd.f32 %v3736_v60, %v3672_v27  ;;  %v3609_v47 = vpop.f32.mrf.mxu1  ;;  %v1628_v27 = vld [vmem:[%s13554_s0 + $0x7b0] sm:$0xff]  ;;  %v1629_v60 = vld [vmem:[%s13554_s0 + $0x7b8] sm:$0xff] }
 0x3d1   : > { %3803 = vmatmul.f32.gmra.mxu0 %v1518_v16  ;;  %3933 = vmatmul.f32.gmra.mxu2 %v1520_v36  ;;  %v3610_v42 = vadd.f32 %v3609_v47, %v3545_v34  ;;  %v1627_v34 = vld [vmem:[%s13554_s0 + $0x7a8] sm:$0xff]  ;;  %v1328_v47 = vld [vmem:[%s7879_s5 + $0x2250] sm:$0xff] }
 0x3d2   : > { %4178 = vmatpush.msra.mxu2 %v1328_v47  ;;  %v1354_v47 = vld [vmem:[%s7879_s5 + $0x2320] sm:$0xff] }
 0x3d3   : > { %3868 = vmatmul.f32.gmra.mxu1 %v1519_v38  ;;  %4246 = vmatpush.msra.mxu3 %v1354_v47  ;;  %v1878_v47 = vld [vmem:[%s13554_s0 + $0xf80] sm:$0xff] }
 0x3d4   : > { %3998 = vmatmul.f32.gmra.mxu3 %v1521_v3  ;;  %v3674_v43 = vpop.f32.mrf.mxu2  ;;  %v1264_v3 = vld [vmem:[%s7879_s5 + $0x2050] sm:$0xff] }
 0x3d5   : > { %v3675_v49 = vadd.f32 %v3674_v43, %v3610_v42  ;;  %4048 = vmatpush.msra.mxu0 %v1264_v3  ;;  %v1296_v43 = vld [vmem:[%s7879_s5 + $0x2150] sm:$0xff] }
 0x3d6   : > { %v3547_v11 = vpop.f32.mrf.mxu0  ;;  %4113 = vmatpush.msra.mxu1 %v1296_v43 }
 0x3d7   : > { %v3548_v53 = vadd.f32 %v3547_v11, %v9821_v0  ;;  %v3739_v17 = vpop.f32.mrf.mxu3 }
 0x3d8   : > { %v10106_v40 = vadd.f32 %v3739_v17, %v3675_v49  ;;  %v3612_v1 = vpop.f32.mrf.mxu1  ;;  %v1664_v49 = vld [vmem:[%s13554_s0 + $0x8d0] sm:$0xff]  ;;  %v1665_v17 = vld [vmem:[%s13554_s0 + $0x8d8] sm:$0xff] }
 0x3d9   : > { %3806 = vmatmul.f32.gmra.mxu0 %v1554_v33  ;;  %3936 = vmatmul.f32.gmra.mxu2 %v1556_v54  ;;  %v3613_v62 = vadd.f32 %v3612_v1, %v3548_v53  ;;  %v1663_v53 = vld [vmem:[%s13554_s0 + $0x8c8] sm:$0xff]  ;;  %v1326_v1 = vld [vmem:[%s7879_s5 + $0x2240] sm:$0xff] }
 0x3da   : > { %4179 = vmatpush.msra.mxu2 %v1326_v1  ;;  %v1352_v1 = vld [vmem:[%s7879_s5 + $0x2310] sm:$0xff] }
 0x3db   : > { %3871 = vmatmul.f32.gmra.mxu1 %v1555_v57  ;;  %4247 = vmatpush.msra.mxu3 %v1352_v1  ;;  %v1914_v1 = vld [vmem:[%s13554_s0 + $0x10a0] sm:$0xff] }
 0x3dc   : > { %4001 = vmatmul.f32.gmra.mxu3 %v1557_v22  ;;  %v3677_v0 = vpop.f32.mrf.mxu2  ;;  %v1262_v22 = vld [vmem:[%s7879_s5 + $0x2040] sm:$0xff] }
 0x3dd   : > { %v3678_v4 = vadd.f32 %v3677_v0, %v3613_v62  ;;  %4049 = vmatpush.msra.mxu0 %v1262_v22  ;;  %v1294_v0 = vld [vmem:[%s7879_s5 + $0x2140] sm:$0xff] }
 0x3de   : > { %v3550_v32 = vpop.f32.mrf.mxu0  ;;  %4114 = vmatpush.msra.mxu1 %v1294_v0 }
 0x3df   : > { %v3551_v9 = vadd.f32 %v3550_v32, %v9840_v20  ;;  %v3742_v37 = vpop.f32.mrf.mxu3 }
 0x3e0   : > { %v10125_v59 = vadd.f32 %v3742_v37, %v3678_v4  ;;  %v3615_v18 = vpop.f32.mrf.mxu1  ;;  %v1700_v4 = vld [vmem:[%s13554_s0 + $0x9f0] sm:$0xff]  ;;  %v1701_v37 = vld [vmem:[%s13554_s0 + $0x9f8] sm:$0xff] }
 0x3e1   : > { %3809 = vmatmul.f32.gmra.mxu0 %v1590_v48  ;;  %3939 = vmatmul.f32.gmra.mxu2 %v1592_v8  ;;  %v3616_v19 = vadd.f32 %v3615_v18, %v3551_v9  ;;  %v1699_v9 = vld [vmem:[%s13554_s0 + $0x9e8] sm:$0xff]  ;;  %v1324_v18 = vld [vmem:[%s7879_s5 + $0x2230] sm:$0xff] }
 0x3e2   : > { %4180 = vmatpush.msra.mxu2 %v1324_v18  ;;  %v1350_v18 = vld [vmem:[%s7879_s5 + $0x2300] sm:$0xff] }
 0x3e3   : > { %3874 = vmatmul.f32.gmra.mxu1 %v1591_v12  ;;  %4248 = vmatpush.msra.mxu3 %v1350_v18  ;;  %v1950_v18 = vld [vmem:[%s13554_s0 + $0x11c0] sm:$0xff] }
 0x3e4   : > { %4004 = vmatmul.f32.gmra.mxu3 %v1593_v41  ;;  %v3680_v20 = vpop.f32.mrf.mxu2  ;;  %v1260_v41 = vld [vmem:[%s7879_s5 + $0x2030] sm:$0xff] }
 0x3e5   : > { %v3681_v23 = vadd.f32 %v3680_v20, %v3616_v19  ;;  %4050 = vmatpush.msra.mxu0 %v1260_v41  ;;  %v1292_v20 = vld [vmem:[%s7879_s5 + $0x2130] sm:$0xff] }
 0x3e6   : > { %v3553_v52 = vpop.f32.mrf.mxu0  ;;  %4115 = vmatpush.msra.mxu1 %v1292_v20 }
 0x3e7   : > { %v3554_v28 = vadd.f32 %v3553_v52, %v9859_v39  ;;  %v3745_v56 = vpop.f32.mrf.mxu3 }
 0x3e8   : > { %v10144_v16 = vadd.f32 %v3745_v56, %v3681_v23  ;;  %v3618_v36 = vpop.f32.mrf.mxu1  ;;  %v1736_v23 = vld [vmem:[%s13554_s0 + $0xb10] sm:$0xff]  ;;  %v1737_v56 = vld [vmem:[%s13554_s0 + $0xb18] sm:$0xff] }
 0x3e9   : > { %3812 = vmatmul.f32.gmra.mxu0 %v1626_v63  ;;  %3942 = vmatmul.f32.gmra.mxu2 %v1628_v27  ;;  %v3619_v38 = vadd.f32 %v3618_v36, %v3554_v28  ;;  %v1735_v28 = vld [vmem:[%s13554_s0 + $0xb08] sm:$0xff]  ;;  %v1322_v36 = vld [vmem:[%s7879_s5 + $0x2220] sm:$0xff] }
 0x3ea   : > { %4181 = vmatpush.msra.mxu2 %v1322_v36  ;;  %v357_v36 = vld [vmem:[%s7879_s5 + $0x3f8] sm:$0xff] }
 0x3eb   : > { %3877 = vmatmul.f32.gmra.mxu1 %v1627_v34  ;;  %4493 = vmatpush.msrb.mxu3 %v357_v36  ;;  %v1414_v36 = vld [vmem:[%s13554_s0 + $0x100] sm:$0xff] }
 0x3ec   : > { %4007 = vmatmul.f32.gmra.mxu3 %v1629_v60  ;;  %v3683_v39 = vpop.f32.mrf.mxu2  ;;  %v1258_v60 = vld [vmem:[%s7879_s5 + $0x2020] sm:$0xff] }
 0x3ed   : > { %v3684_v42 = vadd.f32 %v3683_v39, %v3619_v38  ;;  %4051 = vmatpush.msra.mxu0 %v1258_v60  ;;  %v1290_v39 = vld [vmem:[%s7879_s5 + $0x2120] sm:$0xff] }
 0x3ee   : > { %v3556_v7 = vpop.f32.mrf.mxu0  ;;  %4116 = vmatpush.msra.mxu1 %v1290_v39 }
 0x3ef   : > { %v3557_v50 = vadd.f32 %v3556_v7, %v9878_v58  ;;  %v3748_v11 = vpop.f32.mrf.mxu3 }
 0x3f0   : > { %v10163_v33 = vadd.f32 %v3748_v11, %v3684_v42  ;;  %v3621_v54 = vpop.f32.mrf.mxu1  ;;  %v1772_v42 = vld [vmem:[%s13554_s0 + $0xc30] sm:$0xff]  ;;  %v1773_v11 = vld [vmem:[%s13554_s0 + $0xc38] sm:$0xff] }
 0x3f1   : > { %3815 = vmatmul.f32.gmra.mxu0 %v1662_v14  ;;  %3945 = vmatmul.f32.gmra.mxu2 %v1664_v49  ;;  %v3622_v57 = vadd.f32 %v3621_v54, %v3557_v50  ;;  %v1771_v50 = vld [vmem:[%s13554_s0 + $0xc28] sm:$0xff]  ;;  %v1320_v54 = vld [vmem:[%s7879_s5 + $0x2210] sm:$0xff] }
 0x3f2   : > { %4182 = vmatpush.msra.mxu2 %v1320_v54  ;;  %v355_v54 = vld [vmem:[%s7879_s5 + $0x3e8] sm:$0xff] }
 0x3f3   : > { %3880 = vmatmul.f32.gmra.mxu1 %v1663_v53  ;;  %4494 = vmatpush.msrb.mxu3 %v355_v54  ;;  %v1450_v54 = vld [vmem:[%s13554_s0 + $0x220] sm:$0xff] }
 0x3f4   : > { %4010 = vmatmul.f32.gmra.mxu3 %v1665_v17  ;;  %v3686_v58 = vpop.f32.mrf.mxu2  ;;  %v1256_v17 = vld [vmem:[%s7879_s5 + $0x2010] sm:$0xff] }
 0x3f5   : > { %v3687_v62 = vadd.f32 %v3686_v58, %v3622_v57  ;;  %4052 = vmatpush.msra.mxu0 %v1256_v17  ;;  %v1288_v58 = vld [vmem:[%s7879_s5 + $0x2110] sm:$0xff] }
 0x3f6   : > { %v3559_v26 = vpop.f32.mrf.mxu0  ;;  %4117 = vmatpush.msra.mxu1 %v1288_v58 }
 0x3f7   : > { %v3560_v5 = vadd.f32 %v3559_v26, %v9897_v15  ;;  %v3751_v32 = vpop.f32.mrf.mxu3 }
 0x3f8   : > { %v10182_v48 = vadd.f32 %v3751_v32, %v3687_v62  ;;  %v3624_v8 = vpop.f32.mrf.mxu1  ;;  %v1808_v62 = vld [vmem:[%s13554_s0 + $0xd50] sm:$0xff]  ;;  %v1809_v32 = vld [vmem:[%s13554_s0 + $0xd58] sm:$0xff] }
 0x3f9   : > { %3818 = vmatmul.f32.gmra.mxu0 %v1698_v29  ;;  %3948 = vmatmul.f32.gmra.mxu2 %v1700_v4  ;;  %v3625_v12 = vadd.f32 %v3624_v8, %v3560_v5  ;;  %v1807_v5 = vld [vmem:[%s13554_s0 + $0xd48] sm:$0xff]  ;;  %v1318_v8 = vld [vmem:[%s7879_s5 + $0x2200] sm:$0xff] }
 0x3fa   : > { %4183 = vmatpush.msra.mxu2 %v1318_v8  ;;  %v353_v8 = vld [vmem:[%s7879_s5 + $0x3d8] sm:$0xff] }
 0x3fb   : > { %3883 = vmatmul.f32.gmra.mxu1 %v1699_v9  ;;  %4495 = vmatpush.msrb.mxu3 %v353_v8  ;;  %v1486_v8 = vld [vmem:[%s13554_s0 + $0x340] sm:$0xff] }
 0x3fc   : > { %4013 = vmatmul.f32.gmra.mxu3 %v1701_v37  ;;  %v3689_v15 = vpop.f32.mrf.mxu2  ;;  %v1254_v37 = vld [vmem:[%s7879_s5 + $0x2000] sm:$0xff] }
 0x3fd   : > { %v3690_v19 = vadd.f32 %v3689_v15, %v3625_v12  ;;  %4053 = vmatpush.msra.mxu0 %v1254_v37  ;;  %v1286_v15 = vld [vmem:[%s7879_s5 + $0x2100] sm:$0xff] }
 0x3fe   : > { %v3562_v46 = vpop.f32.mrf.mxu0  ;;  %4118 = vmatpush.msra.mxu1 %v1286_v15 }
 0x3ff   : > { %v3563_v24 = vadd.f32 %v3562_v46, %v9916_v35  ;;  %v3754_v52 = vpop.f32.mrf.mxu3 }
 0x400   : > { %v10201_v63 = vadd.f32 %v3754_v52, %v3690_v19  ;;  %v3627_v27 = vpop.f32.mrf.mxu1  ;;  %v1844_v19 = vld [vmem:[%s13554_s0 + $0xe70] sm:$0xff]  ;;  %v1845_v52 = vld [vmem:[%s13554_s0 + $0xe78] sm:$0xff] }
 0x401   : > { %3821 = vmatmul.f32.gmra.mxu0 %v1734_v45  ;;  %3951 = vmatmul.f32.gmra.mxu2 %v1736_v23  ;;  %v3628_v34 = vadd.f32 %v3627_v27, %v3563_v24  ;;  %v1843_v24 = vld [vmem:[%s13554_s0 + $0xe68] sm:$0xff]  ;;  %v325_v27 = vld [vmem:[%s7879_s5 + $0x2f8] sm:$0xff] }
 0x402   : > { %4428 = vmatpush.msrb.mxu2 %v325_v27  ;;  %v351_v27 = vld [vmem:[%s7879_s5 + $0x3c8] sm:$0xff] }
 0x403   : > { %3886 = vmatmul.f32.gmra.mxu1 %v1735_v28  ;;  %4496 = vmatpush.msrb.mxu3 %v351_v27  ;;  %v1522_v27 = vld [vmem:[%s13554_s0 + $0x460] sm:$0xff] }
 0x404   : > { %4016 = vmatmul.f32.gmra.mxu3 %v1737_v56  ;;  %v3692_v35 = vpop.f32.mrf.mxu2  ;;  %v261_v56 = vld [vmem:[%s7879_s5 + $0xf8] sm:$0xff] }
 0x405   : > { %v3693_v38 = vadd.f32 %v3692_v35, %v3628_v34  ;;  %4298 = vmatpush.msrb.mxu0 %v261_v56  ;;  %v293_v35 = vld [vmem:[%s7879_s5 + $0x1f8] sm:$0xff] }
 0x406   : > { %v3565_v3 = vpop.f32.mrf.mxu0  ;;  %4363 = vmatpush.msrb.mxu1 %v293_v35 }
 0x407   : > { %v3566_v43 = vadd.f32 %v3565_v3, %v9935_v55  ;;  %v3757_v7 = vpop.f32.mrf.mxu3 }
 0x408   : > { %v10220_v14 = vadd.f32 %v3757_v7, %v3693_v38  ;;  %v3630_v49 = vpop.f32.mrf.mxu1  ;;  %v1880_v38 = vld [vmem:[%s13554_s0 + $0xf90] sm:$0xff]  ;;  %v1881_v7 = vld [vmem:[%s13554_s0 + $0xf98] sm:$0xff] }
 0x409   : > { %3824 = vmatmul.f32.gmra.mxu0 %v1770_v61  ;;  %3954 = vmatmul.f32.gmra.mxu2 %v1772_v42  ;;  %v3631_v53 = vadd.f32 %v3630_v49, %v3566_v43  ;;  %v1879_v43 = vld [vmem:[%s13554_s0 + $0xf88] sm:$0xff] }
 0x40a   : > { %v323_v49 = vld [vmem:[%s7879_s5 + $0x2e8] sm:$0xff] }
 0x40b   : > { %3889 = vmatmul.f32.gmra.mxu1 %v1771_v50  ;;  %4429 = vmatpush.msrb.mxu2 %v323_v49  ;;  %v349_v49 = vld [vmem:[%s7879_s5 + $0x3b8] sm:$0xff] }
 0x40c   : > { %4019 = vmatmul.f32.gmra.mxu3 %v1773_v11  ;;  %v3695_v55 = vpop.f32.mrf.mxu2  ;;  %v259_v11 = vld [vmem:[%s7879_s5 + $0xe8] sm:$0xff] }
 0x40d   : > { %v3696_v57 = vadd.f32 %v3695_v55, %v3631_v53  ;;  %4299 = vmatpush.msrb.mxu0 %v259_v11  ;;  %v291_v55 = vld [vmem:[%s7879_s5 + $0x1e8] sm:$0xff]  ;;  %4497 = vmatpush.msrb.mxu3 %v349_v49  ;;  %v1558_v49 = vld [vmem:[%s13554_s0 + $0x580] sm:$0xff] }
 0x40e   : > { %v3568_v22 = vpop.f32.mrf.mxu0  ;;  %4364 = vmatpush.msrb.mxu1 %v291_v55 }
 0x40f   : > { %v3569_v0 = vadd.f32 %v3568_v22, %v9954_v10  ;;  %v3760_v26 = vpop.f32.mrf.mxu3 }
 0x410   : > { %v10239_v29 = vadd.f32 %v3760_v26, %v3696_v57  ;;  %v3633_v4 = vpop.f32.mrf.mxu1  ;;  %v1916_v57 = vld [vmem:[%s13554_s0 + $0x10b0] sm:$0xff]  ;;  %v1917_v26 = vld [vmem:[%s13554_s0 + $0x10b8] sm:$0xff] }
 0x411   : > { %3827 = vmatmul.f32.gmra.mxu0 %v1806_v13  ;;  %3957 = vmatmul.f32.gmra.mxu2 %v1808_v62  ;;  %v3634_v9 = vadd.f32 %v3633_v4, %v3569_v0  ;;  %v1915_v0 = vld [vmem:[%s13554_s0 + $0x10a8] sm:$0xff]  ;;  %v321_v4 = vld [vmem:[%s7879_s5 + $0x2d8] sm:$0xff] }
 0x412   : > { %4430 = vmatpush.msrb.mxu2 %v321_v4  ;;  %v347_v4 = vld [vmem:[%s7879_s5 + $0x3a8] sm:$0xff] }
 0x413   : > { %3892 = vmatmul.f32.gmra.mxu1 %v1807_v5  ;;  %4498 = vmatpush.msrb.mxu3 %v347_v4  ;;  %v1594_v4 = vld [vmem:[%s13554_s0 + $0x6a0] sm:$0xff] }
 0x414   : > { %4022 = vmatmul.f32.gmra.mxu3 %v1809_v32  ;;  %v3698_v10 = vpop.f32.mrf.mxu2  ;;  %v257_v32 = vld [vmem:[%s7879_s5 + $0xd8] sm:$0xff] }
 0x415   : > { %v3699_v12 = vadd.f32 %v3698_v10, %v3634_v9  ;;  %4300 = vmatpush.msrb.mxu0 %v257_v32  ;;  %v289_v10 = vld [vmem:[%s7879_s5 + $0x1d8] sm:$0xff] }
 0x416   : > { %v3571_v41 = vpop.f32.mrf.mxu0  ;;  %4365 = vmatpush.msrb.mxu1 %v289_v10 }
 0x417   : > { %v3572_v20 = vadd.f32 %v3571_v41, %v9973_v31  ;;  %v3763_v46 = vpop.f32.mrf.mxu3 }
 0x418   : > { %v10258_v45 = vadd.f32 %v3763_v46, %v3699_v12  ;;  %v3636_v23 = vpop.f32.mrf.mxu1  ;;  %v1952_v12 = vld [vmem:[%s13554_s0 + $0x11d0] sm:$0xff]  ;;  %v1953_v46 = vld [vmem:[%s13554_s0 + $0x11d8] sm:$0xff] }
 0x419   : > { %3830 = vmatmul.f32.gmra.mxu0 %v1842_v30  ;;  %3960 = vmatmul.f32.gmra.mxu2 %v1844_v19  ;;  %v3637_v28 = vadd.f32 %v3636_v23, %v3572_v20  ;;  %v1951_v20 = vld [vmem:[%s13554_s0 + $0x11c8] sm:$0xff] }
 0x41a   : > { %v319_v23 = vld [vmem:[%s7879_s5 + $0x2c8] sm:$0xff] }
 0x41b   : > { %3895 = vmatmul.f32.gmra.mxu1 %v1843_v24  ;;  %4431 = vmatpush.msrb.mxu2 %v319_v23  ;;  %v345_v23 = vld [vmem:[%s7879_s5 + $0x398] sm:$0xff] }
 0x41c   : > { %4025 = vmatmul.f32.gmra.mxu3 %v1845_v52  ;;  %v3701_v31 = vpop.f32.mrf.mxu2  ;;  %v255_v52 = vld [vmem:[%s7879_s5 + $0xc8] sm:$0xff] }
 0x41d   : > { %v3702_v34 = vadd.f32 %v3701_v31, %v3637_v28  ;;  %4301 = vmatpush.msrb.mxu0 %v255_v52  ;;  %v287_v31 = vld [vmem:[%s7879_s5 + $0x1c8] sm:$0xff]  ;;  %4499 = vmatpush.msrb.mxu3 %v345_v23  ;;  %v1630_v23 = vld [vmem:[%s13554_s0 + $0x7c0] sm:$0xff] }
 0x41e   : > { %v3574_v60 = vpop.f32.mrf.mxu0  ;;  %4366 = vmatpush.msrb.mxu1 %v287_v31 }
 0x41f   : > { %v3575_v39 = vadd.f32 %v3574_v60, %v9992_v51  ;;  %v3766_v3 = vpop.f32.mrf.mxu3 }
 0x420   : > { %v10277_v61 = vadd.f32 %v3766_v3, %v3702_v34  ;;  %v3639_v42 = vpop.f32.mrf.mxu1  ;;  %v1416_v34 = vld [vmem:[%s13554_s0 + $0x110] sm:$0xff]  ;;  %v1417_v3 = vld [vmem:[%s13554_s0 + $0x118] sm:$0xff] }
 0x421   : > { %3833 = vmatmul.f32.gmra.mxu0 %v1878_v47  ;;  %3963 = vmatmul.f32.gmra.mxu2 %v1880_v38  ;;  %v3640_v50 = vadd.f32 %v3639_v42, %v3575_v39  ;;  %v1415_v39 = vld [vmem:[%s13554_s0 + $0x108] sm:$0xff]  ;;  %v317_v42 = vld [vmem:[%s7879_s5 + $0x2b8] sm:$0xff] }
 0x422   : > { %4432 = vmatpush.msrb.mxu2 %v317_v42  ;;  %v343_v42 = vld [vmem:[%s7879_s5 + $0x388] sm:$0xff] }
 0x423   : > { %3898 = vmatmul.f32.gmra.mxu1 %v1879_v43  ;;  %4500 = vmatpush.msrb.mxu3 %v343_v42  ;;  %v1666_v42 = vld [vmem:[%s13554_s0 + $0x8e0] sm:$0xff] }
 0x424   : > { %4028 = vmatmul.f32.gmra.mxu3 %v1881_v7  ;;  %v3704_v51 = vpop.f32.mrf.mxu2  ;;  %v253_v7 = vld [vmem:[%s7879_s5 + $0xb8] sm:$0xff] }
 0x425   : > { %v3705_v53 = vadd.f32 %v3704_v51, %v3640_v50  ;;  %4302 = vmatpush.msrb.mxu0 %v253_v7  ;;  %v285_v51 = vld [vmem:[%s7879_s5 + $0x1b8] sm:$0xff] }
 0x426   : > { %v3577_v17 = vpop.f32.mrf.mxu0  ;;  %4367 = vmatpush.msrb.mxu1 %v285_v51 }
 0x427   : > { %v3578_v58 = vadd.f32 %v3577_v17, %v10011_v6  ;;  %v3769_v22 = vpop.f32.mrf.mxu3 }
 0x428   : > { %v10296_v13 = vadd.f32 %v3769_v22, %v3705_v53  ;;  %v3642_v62 = vpop.f32.mrf.mxu1  ;;  %v1452_v53 = vld [vmem:[%s13554_s0 + $0x230] sm:$0xff]  ;;  %v1453_v22 = vld [vmem:[%s13554_s0 + $0x238] sm:$0xff] }
 0x429   : > { %3836 = vmatmul.f32.gmra.mxu0 %v1914_v1  ;;  %3966 = vmatmul.f32.gmra.mxu2 %v1916_v57  ;;  %v3643_v5 = vadd.f32 %v3642_v62, %v3578_v58  ;;  %v1451_v58 = vld [vmem:[%s13554_s0 + $0x228] sm:$0xff] }
 0x42a   : > { %v315_v62 = vld [vmem:[%s7879_s5 + $0x2a8] sm:$0xff] }
 0x42b   : > { %3901 = vmatmul.f32.gmra.mxu1 %v1915_v0  ;;  %4433 = vmatpush.msrb.mxu2 %v315_v62  ;;  %v341_v62 = vld [vmem:[%s7879_s5 + $0x378] sm:$0xff] }
 0x42c   : > { %4031 = vmatmul.f32.gmra.mxu3 %v1917_v26  ;;  %v3707_v6 = vpop.f32.mrf.mxu2  ;;  %v251_v26 = vld [vmem:[%s7879_s5 + $0xa8] sm:$0xff] }
 0x42d   : > { %v3708_v9 = vadd.f32 %v3707_v6, %v3643_v5  ;;  %4303 = vmatpush.msrb.mxu0 %v251_v26  ;;  %v283_v6 = vld [vmem:[%s7879_s5 + $0x1a8] sm:$0xff]  ;;  %4501 = vmatpush.msrb.mxu3 %v341_v62  ;;  %v1702_v62 = vld [vmem:[%s13554_s0 + $0xa00] sm:$0xff] }
 0x42e   : > { %v3580_v37 = vpop.f32.mrf.mxu0  ;;  %4368 = vmatpush.msrb.mxu1 %v283_v6 }
 0x42f   : > { %v3581_v15 = vadd.f32 %v3580_v37, %v10030_v25  ;;  %v3772_v41 = vpop.f32.mrf.mxu3 }
 0x430   : > { %v10315_v30 = vadd.f32 %v3772_v41, %v3708_v9  ;;  %v3645_v19 = vpop.f32.mrf.mxu1  ;;  %v1488_v9 = vld [vmem:[%s13554_s0 + $0x350] sm:$0xff]  ;;  %v1489_v41 = vld [vmem:[%s13554_s0 + $0x358] sm:$0xff] }
 0x431   : > { %3839 = vmatmul.f32.gmra.mxu0 %v1950_v18  ;;  %3969 = vmatmul.f32.gmra.mxu2 %v1952_v12  ;;  %v3646_v24 = vadd.f32 %v3645_v19, %v3581_v15  ;;  %v1487_v15 = vld [vmem:[%s13554_s0 + $0x348] sm:$0xff]  ;;  %v313_v19 = vld [vmem:[%s7879_s5 + $0x298] sm:$0xff] }
 0x432   : > { %4434 = vmatpush.msrb.mxu2 %v313_v19  ;;  %v339_v19 = vld [vmem:[%s7879_s5 + $0x368] sm:$0xff] }
 0x433   : > { %3904 = vmatmul.f32.gmra.mxu1 %v1951_v20  ;;  %4502 = vmatpush.msrb.mxu3 %v339_v19  ;;  %v1738_v19 = vld [vmem:[%s13554_s0 + $0xb20] sm:$0xff] }
 0x434   : > { %4034 = vmatmul.f32.gmra.mxu3 %v1953_v46  ;;  %v3710_v25 = vpop.f32.mrf.mxu2  ;;  %v249_v46 = vld [vmem:[%s7879_s5 + $0x98] sm:$0xff] }
 0x435   : > { %v3711_v28 = vadd.f32 %v3710_v25, %v3646_v24  ;;  %4304 = vmatpush.msrb.mxu0 %v249_v46  ;;  %v281_v25 = vld [vmem:[%s7879_s5 + $0x198] sm:$0xff] }
 0x436   : > { %v3795_v56 = vpop.f32.mrf.mxu0  ;;  %4369 = vmatpush.msrb.mxu1 %v281_v25 }
 0x437   : > { %v3775_v35 = vpop.f32.mrf.mxu3  ;;  %v3796_v60 = vadd.f32 %v3795_v56, %v10049_v44 }
 0x438   : > { %v10334_v47 = vadd.f32 %v3775_v35, %v3711_v28  ;;  %v3860_v38 = vpop.f32.mrf.mxu1  ;;  %v1524_v28 = vld [vmem:[%s13554_s0 + $0x470] sm:$0xff]  ;;  %v1523_v35 = vld [vmem:[%s13554_s0 + $0x468] sm:$0xff] }
 0x439   : > { %4054 = vmatmul.f32.vlgmr.msra.gmra.mxu0 %v1414_v36  ;;  %4184 = vmatmul.f32.vlgmr.msra.gmra.mxu2 %v1416_v34  ;;  %v3861_v43 = vadd.f32 %v3860_v38, %v3796_v60  ;;  %v1525_v60 = vld [vmem:[%s13554_s0 + $0x478] sm:$0xff]  ;;  %v311_v38 = vld [vmem:[%s7879_s5 + $0x288] sm:$0xff] }
 0x43a   : > { %4435 = vmatpush.msrb.mxu2 %v311_v38  ;;  %v337_v38 = vld [vmem:[%s7879_s5 + $0x358] sm:$0xff] }
 0x43b   : > { %4119 = vmatmul.f32.vlgmr.msra.gmra.mxu1 %v1415_v39  ;;  %4503 = vmatpush.msrb.mxu3 %v337_v38  ;;  %v1774_v38 = vld [vmem:[%s13554_s0 + $0xc40] sm:$0xff] }
 0x43c   : > { %4249 = vmatmul.f32.vlgmr.msra.gmra.mxu3 %v1417_v3  ;;  %v3925_v44 = vpop.f32.mrf.mxu2  ;;  %v247_v3 = vld [vmem:[%s7879_s5 + $0x88] sm:$0xff] }
 0x43d   : > { %v3926_v50 = vadd.f32 %v3925_v44, %v3861_v43  ;;  %4305 = vmatpush.msrb.mxu0 %v247_v3  ;;  %v279_v44 = vld [vmem:[%s7879_s5 + $0x188] sm:$0xff] }
 0x43e   : > { %v3798_v11 = vpop.f32.mrf.mxu0  ;;  %4370 = vmatpush.msrb.mxu1 %v279_v44 }
 0x43f   : > { %v3799_v55 = vadd.f32 %v3798_v11, %v10068_v2  ;;  %v3990_v17 = vpop.f32.mrf.mxu3 }
 0x440   : > { %v10353_v1 = vadd.f32 %v3990_v17, %v3926_v50  ;;  %v3863_v57 = vpop.f32.mrf.mxu1  ;;  %v1560_v50 = vld [vmem:[%s13554_s0 + $0x590] sm:$0xff]  ;;  %v1561_v17 = vld [vmem:[%s13554_s0 + $0x598] sm:$0xff] }
 0x441   : > { %4057 = vmatmul.f32.gmra.mxu0 %v1450_v54  ;;  %4187 = vmatmul.f32.gmra.mxu2 %v1452_v53  ;;  %v3864_v0 = vadd.f32 %v3863_v57, %v3799_v55  ;;  %v1559_v55 = vld [vmem:[%s13554_s0 + $0x588] sm:$0xff]  ;;  %v309_v57 = vld [vmem:[%s7879_s5 + $0x278] sm:$0xff] }
 0x442   : > { %4436 = vmatpush.msrb.mxu2 %v309_v57  ;;  %v335_v57 = vld [vmem:[%s7879_s5 + $0x348] sm:$0xff] }
 0x443   : > { %4122 = vmatmul.f32.gmra.mxu1 %v1451_v58  ;;  %4504 = vmatpush.msrb.mxu3 %v335_v57  ;;  %v1810_v57 = vld [vmem:[%s13554_s0 + $0xd60] sm:$0xff] }
 0x444   : > { %4252 = vmatmul.f32.gmra.mxu3 %v1453_v22  ;;  %v3928_v2 = vpop.f32.mrf.mxu2  ;;  %v245_v22 = vld [vmem:[%s7879_s5 + $0x78] sm:$0xff] }
 0x445   : > { %v3929_v5 = vadd.f32 %v3928_v2, %v3864_v0  ;;  %4306 = vmatpush.msrb.mxu0 %v245_v22  ;;  %v277_v2 = vld [vmem:[%s7879_s5 + $0x178] sm:$0xff] }
 0x446   : > { %v3801_v32 = vpop.f32.mrf.mxu0  ;;  %4371 = vmatpush.msrb.mxu1 %v277_v2 }
 0x447   : > { %v3802_v10 = vadd.f32 %v3801_v32, %v10087_v21  ;;  %v3993_v37 = vpop.f32.mrf.mxu3 }
 0x448   : > { %v10372_v18 = vadd.f32 %v3993_v37, %v3929_v5  ;;  %v3866_v12 = vpop.f32.mrf.mxu1  ;;  %v1596_v5 = vld [vmem:[%s13554_s0 + $0x6b0] sm:$0xff]  ;;  %v1597_v37 = vld [vmem:[%s13554_s0 + $0x6b8] sm:$0xff] }
 0x449   : > { %4060 = vmatmul.f32.gmra.mxu0 %v1486_v8  ;;  %4190 = vmatmul.f32.gmra.mxu2 %v1488_v9  ;;  %v3867_v20 = vadd.f32 %v3866_v12, %v3802_v10  ;;  %v1595_v10 = vld [vmem:[%s13554_s0 + $0x6a8] sm:$0xff] }
 0x44a   : > { %v307_v12 = vld [vmem:[%s7879_s5 + $0x268] sm:$0xff] }
 0x44b   : > { %4125 = vmatmul.f32.gmra.mxu1 %v1487_v15  ;;  %4437 = vmatpush.msrb.mxu2 %v307_v12  ;;  %v333_v12 = vld [vmem:[%s7879_s5 + $0x338] sm:$0xff] }
 0x44c   : > { %4255 = vmatmul.f32.gmra.mxu3 %v1489_v41  ;;  %v3931_v21 = vpop.f32.mrf.mxu2  ;;  %v243_v41 = vld [vmem:[%s7879_s5 + $0x68] sm:$0xff] }
 0x44d   : > { %v3932_v24 = vadd.f32 %v3931_v21, %v3867_v20  ;;  %4307 = vmatpush.msrb.mxu0 %v243_v41  ;;  %v275_v21 = vld [vmem:[%s7879_s5 + $0x168] sm:$0xff]  ;;  %4505 = vmatpush.msrb.mxu3 %v333_v12  ;;  %v1846_v12 = vld [vmem:[%s13554_s0 + $0xe80] sm:$0xff] }
 0x44e   : > { %v3804_v52 = vpop.f32.mrf.mxu0  ;;  %4372 = vmatpush.msrb.mxu1 %v275_v21 }
 0x44f   : > { %v3805_v31 = vadd.f32 %v3804_v52, %v10106_v40  ;;  %v3996_v56 = vpop.f32.mrf.mxu3 }
 0x450   : > { %v10391_v36 = vadd.f32 %v3996_v56, %v3932_v24  ;;  %v3869_v34 = vpop.f32.mrf.mxu1  ;;  %v1632_v24 = vld [vmem:[%s13554_s0 + $0x7d0] sm:$0xff]  ;;  %v1633_v56 = vld [vmem:[%s13554_s0 + $0x7d8] sm:$0xff] }
 0x451   : > { %4063 = vmatmul.f32.gmra.mxu0 %v1522_v27  ;;  %4193 = vmatmul.f32.gmra.mxu2 %v1524_v28  ;;  %v3870_v39 = vadd.f32 %v3869_v34, %v3805_v31  ;;  %v1631_v31 = vld [vmem:[%s13554_s0 + $0x7c8] sm:$0xff]  ;;  %v305_v34 = vld [vmem:[%s7879_s5 + $0x258] sm:$0xff] }
 0x452   : > { %4438 = vmatpush.msrb.mxu2 %v305_v34  ;;  %v331_v34 = vld [vmem:[%s7879_s5 + $0x328] sm:$0xff] }
 0x453   : > { %4128 = vmatmul.f32.gmra.mxu1 %v1523_v35  ;;  %4506 = vmatpush.msrb.mxu3 %v331_v34  ;;  %v1882_v34 = vld [vmem:[%s13554_s0 + $0xfa0] sm:$0xff] }
 0x454   : > { %4258 = vmatmul.f32.gmra.mxu3 %v1525_v60  ;;  %v3934_v40 = vpop.f32.mrf.mxu2  ;;  %v241_v60 = vld [vmem:[%s7879_s5 + $0x58] sm:$0xff] }
 0x455   : > { %v3935_v43 = vadd.f32 %v3934_v40, %v3870_v39  ;;  %4308 = vmatpush.msrb.mxu0 %v241_v60  ;;  %v273_v40 = vld [vmem:[%s7879_s5 + $0x158] sm:$0xff] }
 0x456   : > { %v3807_v7 = vpop.f32.mrf.mxu0  ;;  %4373 = vmatpush.msrb.mxu1 %v273_v40 }
 0x457   : > { %v3808_v51 = vadd.f32 %v3807_v7, %v10125_v59  ;;  %v3999_v11 = vpop.f32.mrf.mxu3 }
 0x458   : > { %v10410_v54 = vadd.f32 %v3999_v11, %v3935_v43  ;;  %v3872_v53 = vpop.f32.mrf.mxu1  ;;  %v1668_v43 = vld [vmem:[%s13554_s0 + $0x8f0] sm:$0xff]  ;;  %v1669_v11 = vld [vmem:[%s13554_s0 + $0x8f8] sm:$0xff] }
 0x459   : > { %4066 = vmatmul.f32.gmra.mxu0 %v1558_v49  ;;  %4196 = vmatmul.f32.gmra.mxu2 %v1560_v50  ;;  %v3873_v58 = vadd.f32 %v3872_v53, %v3808_v51  ;;  %v1667_v51 = vld [vmem:[%s13554_s0 + $0x8e8] sm:$0xff] }
 0x45a   : > { %v303_v53 = vld [vmem:[%s7879_s5 + $0x248] sm:$0xff] }
 0x45b   : > { %4131 = vmatmul.f32.gmra.mxu1 %v1559_v55  ;;  %4439 = vmatpush.msrb.mxu2 %v303_v53  ;;  %v329_v53 = vld [vmem:[%s7879_s5 + $0x318] sm:$0xff] }
 0x45c   : > { %4261 = vmatmul.f32.gmra.mxu3 %v1561_v17  ;;  %v3937_v59 = vpop.f32.mrf.mxu2  ;;  %v239_v17 = vld [vmem:[%s7879_s5 + $0x48] sm:$0xff] }
 0x45d   : > { %v3938_v0 = vadd.f32 %v3937_v59, %v3873_v58  ;;  %4309 = vmatpush.msrb.mxu0 %v239_v17  ;;  %v271_v59 = vld [vmem:[%s7879_s5 + $0x148] sm:$0xff]  ;;  %4507 = vmatpush.msrb.mxu3 %v329_v53  ;;  %v1918_v53 = vld [vmem:[%s13554_s0 + $0x10c0] sm:$0xff] }
 0x45e   : > { %v3810_v26 = vpop.f32.mrf.mxu0  ;;  %4374 = vmatpush.msrb.mxu1 %v271_v59 }
 0x45f   : > { %v3811_v6 = vadd.f32 %v3810_v26, %v10144_v16  ;;  %v4002_v32 = vpop.f32.mrf.mxu3 }
 0x460   : > { %v10429_v8 = vadd.f32 %v4002_v32, %v3938_v0  ;;  %v3875_v9 = vpop.f32.mrf.mxu1  ;;  %v1704_v0 = vld [vmem:[%s13554_s0 + $0xa10] sm:$0xff]  ;;  %v1705_v32 = vld [vmem:[%s13554_s0 + $0xa18] sm:$0xff] }
 0x461   : > { %4069 = vmatmul.f32.gmra.mxu0 %v1594_v4  ;;  %4199 = vmatmul.f32.gmra.mxu2 %v1596_v5  ;;  %v3876_v15 = vadd.f32 %v3875_v9, %v3811_v6  ;;  %v1703_v6 = vld [vmem:[%s13554_s0 + $0xa08] sm:$0xff]  ;;  %v301_v9 = vld [vmem:[%s7879_s5 + $0x238] sm:$0xff] }
 0x462   : > { %4440 = vmatpush.msrb.mxu2 %v301_v9  ;;  %v327_v9 = vld [vmem:[%s7879_s5 + $0x308] sm:$0xff] }
 0x463   : > { %4134 = vmatmul.f32.gmra.mxu1 %v1595_v10  ;;  %4508 = vmatpush.msrb.mxu3 %v327_v9  ;;  %v1954_v9 = vld [vmem:[%s13554_s0 + $0x11e0] sm:$0xff] }
 0x464   : > { %4264 = vmatmul.f32.gmra.mxu3 %v1597_v37  ;;  %v3940_v16 = vpop.f32.mrf.mxu2  ;;  %v237_v37 = vld [vmem:[%s7879_s5 + $0x38] sm:$0xff] }
 0x465   : > { %v3941_v20 = vadd.f32 %v3940_v16, %v3876_v15  ;;  %4310 = vmatpush.msrb.mxu0 %v237_v37  ;;  %v269_v16 = vld [vmem:[%s7879_s5 + $0x138] sm:$0xff] }
 0x466   : > { %v3813_v46 = vpop.f32.mrf.mxu0  ;;  %4375 = vmatpush.msrb.mxu1 %v269_v16 }
 0x467   : > { %v3814_v25 = vadd.f32 %v3813_v46, %v10163_v33  ;;  %v4005_v52 = vpop.f32.mrf.mxu3 }
 0x468   : > { %v10448_v27 = vadd.f32 %v4005_v52, %v3941_v20  ;;  %v3878_v28 = vpop.f32.mrf.mxu1  ;;  %v1740_v20 = vld [vmem:[%s13554_s0 + $0xb30] sm:$0xff]  ;;  %v1741_v52 = vld [vmem:[%s13554_s0 + $0xb38] sm:$0xff] }
 0x469   : > { %4072 = vmatmul.f32.gmra.mxu0 %v1630_v23  ;;  %4202 = vmatmul.f32.gmra.mxu2 %v1632_v24  ;;  %v3879_v35 = vadd.f32 %v3878_v28, %v3814_v25  ;;  %v1739_v25 = vld [vmem:[%s13554_s0 + $0xb28] sm:$0xff] }
 0x46a   : > { %v299_v28 = vld [vmem:[%s7879_s5 + $0x228] sm:$0xff] }
 0x46b   : > { %4137 = vmatmul.f32.gmra.mxu1 %v1631_v31  ;;  %4441 = vmatpush.msrb.mxu2 %v299_v28  ;;  %v485_v28 = vld [vmem:[%s7879_s5 + $0x7f8] sm:$0xff] }
 0x46c   : > { %4267 = vmatmul.f32.gmra.mxu3 %v1633_v56  ;;  %v3943_v33 = vpop.f32.mrf.mxu2  ;;  %v235_v56 = vld [vmem:[%s7879_s5 + $0x28] sm:$0xff] }
 0x46d   : > { %v3944_v39 = vadd.f32 %v3943_v33, %v3879_v35  ;;  %4311 = vmatpush.msrb.mxu0 %v235_v56  ;;  %v267_v33 = vld [vmem:[%s7879_s5 + $0x128] sm:$0xff]  ;;  %4753 = vmatpush.msra.mxu3 %v485_v28 }
 0x46e   : > { %v3816_v3 = vpop.f32.mrf.mxu0  ;;  %4376 = vmatpush.msrb.mxu1 %v267_v33 }
 0x46f   : > { %v3817_v44 = vadd.f32 %v3816_v3, %v10182_v48  ;;  %v4008_v7 = vpop.f32.mrf.mxu3 }
 0x470   : > { %v10467_v49 = vadd.f32 %v4008_v7, %v3944_v39  ;;  %v3881_v50 = vpop.f32.mrf.mxu1  ;;  %v1776_v39 = vld [vmem:[%s13554_s0 + $0xc50] sm:$0xff]  ;;  %v1777_v7 = vld [vmem:[%s13554_s0 + $0xc58] sm:$0xff] }
 0x471   : > { %4075 = vmatmul.f32.gmra.mxu0 %v1666_v42  ;;  %4205 = vmatmul.f32.gmra.mxu2 %v1668_v43  ;;  %v3882_v55 = vadd.f32 %v3881_v50, %v3817_v44  ;;  %v1775_v44 = vld [vmem:[%s13554_s0 + $0xc48] sm:$0xff]  ;;  %v297_v50 = vld [vmem:[%s7879_s5 + $0x218] sm:$0xff] }
 0x472   : > { %4442 = vmatpush.msrb.mxu2 %v297_v50  ;;  %v483_v50 = vld [vmem:[%s7879_s5 + $0x7e8] sm:$0xff] }
 0x473   : > { %4140 = vmatmul.f32.gmra.mxu1 %v1667_v51  ;;  %4754 = vmatpush.msra.mxu3 %v483_v50 }
 0x474   : > { %4270 = vmatmul.f32.gmra.mxu3 %v1669_v11  ;;  %v3946_v48 = vpop.f32.mrf.mxu2  ;;  %v233_v11 = vld [vmem:[%s7879_s5 + $0x18] sm:$0xff] }
 0x475   : > { %v3947_v58 = vadd.f32 %v3946_v48, %v3882_v55  ;;  %4312 = vmatpush.msrb.mxu0 %v233_v11  ;;  %v265_v48 = vld [vmem:[%s7879_s5 + $0x118] sm:$0xff] }
 0x476   : > { %v3819_v22 = vpop.f32.mrf.mxu0  ;;  %4377 = vmatpush.msrb.mxu1 %v265_v48 }
 0x477   : > { %v3820_v2 = vadd.f32 %v3819_v22, %v10201_v63  ;;  %v4011_v26 = vpop.f32.mrf.mxu3 }
 0x478   : > { %v10486_v4 = vadd.f32 %v4011_v26, %v3947_v58  ;;  %v3884_v5 = vpop.f32.mrf.mxu1  ;;  %v1812_v58 = vld [vmem:[%s13554_s0 + $0xd70] sm:$0xff]  ;;  %v1813_v26 = vld [vmem:[%s13554_s0 + $0xd78] sm:$0xff] }
 0x479   : > { %4078 = vmatmul.f32.gmra.mxu0 %v1702_v62  ;;  %4208 = vmatmul.f32.gmra.mxu2 %v1704_v0  ;;  %v3885_v10 = vadd.f32 %v3884_v5, %v3820_v2  ;;  %v1811_v2 = vld [vmem:[%s13554_s0 + $0xd68] sm:$0xff] }
 0x47a   : > { %v295_v5 = vld [vmem:[%s7879_s5 + $0x208] sm:$0xff] }
 0x47b   : > { %4143 = vmatmul.f32.gmra.mxu1 %v1703_v6  ;;  %4443 = vmatpush.msrb.mxu2 %v295_v5  ;;  %v481_v5 = vld [vmem:[%s7879_s5 + $0x7d8] sm:$0xff] }
 0x47c   : > { %4273 = vmatmul.f32.gmra.mxu3 %v1705_v32  ;;  %v3949_v63 = vpop.f32.mrf.mxu2  ;;  %v231_v32 = vld [vmem:[%s7879_s5 + $0x8] sm:$0xff] }
 0x47d   : > { %v3950_v15 = vadd.f32 %v3949_v63, %v3885_v10  ;;  %4313 = vmatpush.msrb.mxu0 %v231_v32  ;;  %v263_v63 = vld [vmem:[%s7879_s5 + $0x108] sm:$0xff]  ;;  %4755 = vmatpush.msra.mxu3 %v481_v5 }
 0x47e   : > { %v3822_v41 = vpop.f32.mrf.mxu0  ;;  %4378 = vmatpush.msrb.mxu1 %v263_v63 }
 0x47f   : > { %v3823_v21 = vadd.f32 %v3822_v41, %v10220_v14  ;;  %v4014_v46 = vpop.f32.mrf.mxu3 }
 0x480   : > { %v10505_v23 = vadd.f32 %v4014_v46, %v3950_v15  ;;  %v3887_v24 = vpop.f32.mrf.mxu1  ;;  %v1848_v15 = vld [vmem:[%s13554_s0 + $0xe90] sm:$0xff]  ;;  %v1849_v46 = vld [vmem:[%s13554_s0 + $0xe98] sm:$0xff] }
 0x481   : > { %4081 = vmatmul.f32.gmra.mxu0 %v1738_v19  ;;  %4211 = vmatmul.f32.gmra.mxu2 %v1740_v20  ;;  %v3888_v31 = vadd.f32 %v3887_v24, %v3823_v21  ;;  %v1847_v21 = vld [vmem:[%s13554_s0 + $0xe88] sm:$0xff]  ;;  %v453_v24 = vld [vmem:[%s7879_s5 + $0x6f8] sm:$0xff] }
 0x482   : > { %4688 = vmatpush.msra.mxu2 %v453_v24  ;;  %v479_v24 = vld [vmem:[%s7879_s5 + $0x7c8] sm:$0xff] }
 0x483   : > { %4146 = vmatmul.f32.gmra.mxu1 %v1739_v25  ;;  %4756 = vmatpush.msra.mxu3 %v479_v24 }
 0x484   : > { %4276 = vmatmul.f32.gmra.mxu3 %v1741_v52  ;;  %v3952_v14 = vpop.f32.mrf.mxu2  ;;  %v389_v52 = vld [vmem:[%s7879_s5 + $0x4f8] sm:$0xff] }
 0x485   : > { %v3953_v35 = vadd.f32 %v3952_v14, %v3888_v31  ;;  %4558 = vmatpush.msra.mxu0 %v389_v52  ;;  %v421_v14 = vld [vmem:[%s7879_s5 + $0x5f8] sm:$0xff] }
 0x486   : > { %v3825_v60 = vpop.f32.mrf.mxu0  ;;  %4623 = vmatpush.msra.mxu1 %v421_v14 }
 0x487   : > { %v3826_v40 = vadd.f32 %v3825_v60, %v10239_v29  ;;  %v4017_v3 = vpop.f32.mrf.mxu3 }
 0x488   : > { %v10524_v42 = vadd.f32 %v4017_v3, %v3953_v35  ;;  %v3890_v43 = vpop.f32.mrf.mxu1  ;;  %v1884_v35 = vld [vmem:[%s13554_s0 + $0xfb0] sm:$0xff]  ;;  %v1885_v3 = vld [vmem:[%s13554_s0 + $0xfb8] sm:$0xff] }
 0x489   : > { %4084 = vmatmul.f32.gmra.mxu0 %v1774_v38  ;;  %4214 = vmatmul.f32.gmra.mxu2 %v1776_v39  ;;  %v3891_v51 = vadd.f32 %v3890_v43, %v3826_v40  ;;  %v1883_v40 = vld [vmem:[%s13554_s0 + $0xfa8] sm:$0xff] }
 0x48b   : > { %4149 = vmatmul.f32.gmra.mxu1 %v1775_v44 }
 0x48c   : > { %4279 = vmatmul.f32.gmra.mxu3 %v1777_v7  ;;  %v3955_v29 = vpop.f32.mrf.mxu2  ;;  %v387_v7 = vld [vmem:[%s7879_s5 + $0x4e8] sm:$0xff] }
 0x48d   : > { %v3956_v55 = vadd.f32 %v3955_v29, %v3891_v51  ;;  %4559 = vmatpush.msra.mxu0 %v387_v7  ;;  %v419_v29 = vld [vmem:[%s7879_s5 + $0x5e8] sm:$0xff] }
 0x48e   : > { %v3828_v17 = vpop.f32.mrf.mxu0  ;;  %4624 = vmatpush.msra.mxu1 %v419_v29 }
 0x48f   : > { %v3829_v59 = vadd.f32 %v3828_v17, %v10258_v45  ;;  %v4020_v22 = vpop.f32.mrf.mxu3 }
 0x490   : > { %v10543_v62 = vadd.f32 %v4020_v22, %v3956_v55  ;;  %v3893_v0 = vpop.f32.mrf.mxu1  ;;  %v1920_v55 = vld [vmem:[%s13554_s0 + $0x10d0] sm:$0xff]  ;;  %v1921_v22 = vld [vmem:[%s13554_s0 + $0x10d8] sm:$0xff] }
 0x491   : > { %4087 = vmatmul.f32.gmra.mxu0 %v1810_v57  ;;  %4217 = vmatmul.f32.gmra.mxu2 %v1812_v58  ;;  %v3894_v6 = vadd.f32 %v3893_v0, %v3829_v59  ;;  %v1919_v59 = vld [vmem:[%s13554_s0 + $0x10c8] sm:$0xff] }
 0x493   : > { %4152 = vmatmul.f32.gmra.mxu1 %v1811_v2 }
 0x494   : > { %4282 = vmatmul.f32.gmra.mxu3 %v1813_v26  ;;  %v3958_v45 = vpop.f32.mrf.mxu2  ;;  %v385_v26 = vld [vmem:[%s7879_s5 + $0x4d8] sm:$0xff] }
 0x495   : > { %v3959_v10 = vadd.f32 %v3958_v45, %v3894_v6  ;;  %4560 = vmatpush.msra.mxu0 %v385_v26  ;;  %v417_v45 = vld [vmem:[%s7879_s5 + $0x5d8] sm:$0xff] }
 0x496   : > { %v3831_v37 = vpop.f32.mrf.mxu0  ;;  %4625 = vmatpush.msra.mxu1 %v417_v45 }
 0x497   : > { %v3832_v16 = vadd.f32 %v3831_v37, %v10277_v61  ;;  %v4023_v41 = vpop.f32.mrf.mxu3 }
 0x498   : > { %v10562_v19 = vadd.f32 %v4023_v41, %v3959_v10  ;;  %v3896_v20 = vpop.f32.mrf.mxu1  ;;  %v1956_v10 = vld [vmem:[%s13554_s0 + $0x11f0] sm:$0xff]  ;;  %v1957_v41 = vld [vmem:[%s13554_s0 + $0x11f8] sm:$0xff] }
 0x499   : > { %4090 = vmatmul.f32.gmra.mxu0 %v1846_v12  ;;  %4220 = vmatmul.f32.gmra.mxu2 %v1848_v15  ;;  %v3897_v25 = vadd.f32 %v3896_v20, %v3832_v16  ;;  %v1955_v16 = vld [vmem:[%s13554_s0 + $0x11e8] sm:$0xff] }
 0x49b   : > { %4155 = vmatmul.f32.gmra.mxu1 %v1847_v21 }
 0x49c   : > { %4285 = vmatmul.f32.gmra.mxu3 %v1849_v46  ;;  %v3961_v61 = vpop.f32.mrf.mxu2  ;;  %v383_v46 = vld [vmem:[%s7879_s5 + $0x4c8] sm:$0xff] }
 0x49d   : > { %v3962_v31 = vadd.f32 %v3961_v61, %v3897_v25  ;;  %4561 = vmatpush.msra.mxu0 %v383_v46  ;;  %v415_v61 = vld [vmem:[%s7879_s5 + $0x5c8] sm:$0xff] }
 0x49e   : > { %v3834_v56 = vpop.f32.mrf.mxu0  ;;  %4626 = vmatpush.msra.mxu1 %v415_v61 }
 0x49f   : > { %v3835_v33 = vadd.f32 %v3834_v56, %v10296_v13  ;;  %v4026_v60 = vpop.f32.mrf.mxu3  ;;  %v451_v13 = vld [vmem:[%s7879_s5 + $0x6e8] sm:$0xff] }
 0x4a0   : > { %v10581_v38 = vadd.f32 %v4026_v60, %v3962_v31  ;;  %v3899_v39 = vpop.f32.mrf.mxu1  ;;  %4689 = vmatpush.msra.mxu2 %v451_v13  ;;  %v7156_v60 = vld [vmem:[%s13554_s0 + $0x8] sm:$0xff]  ;;  %v413_v13 = vld [vmem:[%s7879_s5 + $0x5b8] sm:$0xff] }
 0x4a1   : > { %4093 = vmatmul.f32.gmra.mxu0 %v1882_v34  ;;  %4223 = vmatmul.f32.gmra.mxu2 %v1884_v35  ;;  %v3900_v43 = vadd.f32 %v3899_v39, %v3835_v33  ;;  %v7154_v34 = vld [vmem:[%s13554_s0] sm:$0xff]  ;;  %v7155_v35 = vld [vmem:[%s13554_s0 + $0x10] sm:$0xff] }
 0x4a2   : > { %4627 = vmatpush.msra.mxu1 %v413_v13 }
 0x4a3   : > { %4158 = vmatmul.f32.gmra.mxu1 %v1883_v40  ;;  %v445_v40 = vld [vmem:[%s7879_s5 + $0x6b8] sm:$0xff] }
 0x4a4   : > { %4288 = vmatmul.f32.gmra.mxu3 %v1885_v3  ;;  %v3964_v44 = vpop.f32.mrf.mxu2  ;;  %v381_v3 = vld [vmem:[%s7879_s5 + $0x4b8] sm:$0xff] }
 0x4a5   : > { %v3965_v51 = vadd.f32 %v3964_v44, %v3900_v43  ;;  %v477_v43 = vld [vmem:[%s7879_s5 + $0x7b8] sm:$0xff]  ;;  %4562 = vmatpush.msra.mxu0 %v381_v3 }
 0x4a6   : > { %v3837_v11 = vpop.f32.mrf.mxu0  ;;  %4757 = vmatpush.msra.mxu3 %v477_v43 }
 0x4a7   : > { %v3838_v48 = vadd.f32 %v3837_v11, %v10315_v30  ;;  %v4029_v17 = vpop.f32.mrf.mxu3  ;;  %v449_v30 = vld [vmem:[%s7879_s5 + $0x6d8] sm:$0xff] }
 0x4a8   : > { %v10600_v57 = vadd.f32 %v4029_v17, %v3965_v51  ;;  %v3902_v58 = vpop.f32.mrf.mxu1  ;;  %4690 = vmatpush.msra.mxu2 %v449_v30  ;;  %v7161_v17 = vld [vmem:[%s13554_s0 + $0x138] sm:$0xff]  ;;  %v411_v30 = vld [vmem:[%s7879_s5 + $0x5a8] sm:$0xff] }
 0x4a9   : > { %4096 = vmatmul.f32.gmra.mxu0 %v1918_v53  ;;  %4226 = vmatmul.f32.gmra.mxu2 %v1920_v55  ;;  %v3903_v0 = vadd.f32 %v3902_v58, %v3838_v48  ;;  %v7158_v53 = vld [vmem:[%s13554_s0 + $0x120] sm:$0xff]  ;;  %v7159_v55 = vld [vmem:[%s13554_s0 + $0x130] sm:$0xff] }
 0x4aa   : > { %4628 = vmatpush.msra.mxu1 %v411_v30 }
 0x4ab   : > { %4161 = vmatmul.f32.gmra.mxu1 %v1919_v59  ;;  %v443_v59 = vld [vmem:[%s7879_s5 + $0x6a8] sm:$0xff] }
 0x4ac   : > { %4291 = vmatmul.f32.gmra.mxu3 %v1921_v22  ;;  %v3967_v2 = vpop.f32.mrf.mxu2  ;;  %v379_v22 = vld [vmem:[%s7879_s5 + $0x4a8] sm:$0xff] }
 0x4ad   : > { %v3968_v6 = vadd.f32 %v3967_v2, %v3903_v0  ;;  %v475_v0 = vld [vmem:[%s7879_s5 + $0x7a8] sm:$0xff]  ;;  %4563 = vmatpush.msra.mxu0 %v379_v22 }
 0x4ae   : > { %v3840_v32 = vpop.f32.mrf.mxu0  ;;  %4758 = vmatpush.msra.mxu3 %v475_v0 }
 0x4af   : > { %v3841_v63 = vadd.f32 %v3840_v32, %v10334_v47  ;;  %v4032_v37 = vpop.f32.mrf.mxu3  ;;  %v447_v47 = vld [vmem:[%s7879_s5 + $0x6c8] sm:$0xff] }
 0x4b0   : > { %v10619_v12 = vadd.f32 %v4032_v37, %v3968_v6  ;;  %v3905_v15 = vpop.f32.mrf.mxu1  ;;  %4691 = vmatpush.msra.mxu2 %v447_v47  ;;  %v7165_v37 = vld [vmem:[%s13554_s0 + $0x258] sm:$0xff] }
 0x4b1   : > { %4099 = vmatmul.f32.gmra.mxu0 %v1954_v9  ;;  %4229 = vmatmul.f32.gmra.mxu2 %v1956_v10  ;;  %v3906_v20 = vadd.f32 %v3905_v15, %v3841_v63  ;;  %v7162_v9 = vld [vmem:[%s13554_s0 + $0x240] sm:$0xff]  ;;  %v7163_v10 = vld [vmem:[%s13554_s0 + $0x250] sm:$0xff]  ;;  %v409_v47 = vld [vmem:[%s7879_s5 + $0x598] sm:$0xff] }
 0x4b2   : > { %4692 = vmatpush.msra.mxu2 %v445_v40  ;;  %4629 = vmatpush.msra.mxu1 %v409_v47  ;;  %v407_v40 = vld [vmem:[%s7879_s5 + $0x588] sm:$0xff] }
 0x4b3   : > { %4164 = vmatmul.f32.gmra.mxu1 %v1955_v16  ;;  %v441_v16 = vld [vmem:[%s7879_s5 + $0x698] sm:$0xff] }
 0x4b4   : > { %4294 = vmatmul.f32.gmra.mxu3 %v1957_v41  ;;  %v3970_v21 = vpop.f32.mrf.mxu2  ;;  %4693 = vmatpush.msra.mxu2 %v443_v59  ;;  %v377_v41 = vld [vmem:[%s7879_s5 + $0x498] sm:$0xff] }
 0x4b5   : > { %v3971_v25 = vadd.f32 %v3970_v21, %v3906_v20  ;;  %v473_v20 = vld [vmem:[%s7879_s5 + $0x798] sm:$0xff]  ;;  %4564 = vmatpush.msra.mxu0 %v377_v41  ;;  %4630 = vmatpush.msra.mxu1 %v407_v40 }
 0x4b6   : > { %v4055_v52 = vpop.f32.mrf.mxu0  ;;  %4694 = vmatpush.msra.mxu2 %v441_v16  ;;  %4759 = vmatpush.msra.mxu3 %v473_v20  ;;  %v405_v59 = vld [vmem:[%s7879_s5 + $0x578] sm:$0xff]  ;;  %v403_v16 = vld [vmem:[%s7879_s5 + $0x568] sm:$0xff] }
 0x4b7   : > { %v4035_v28 = vpop.f32.mrf.mxu3  ;;  %v4056_v31 = vadd.f32 %v4055_v52, %v10353_v1  ;;  %v7157_v1 = vld [vmem:[%s13554_s0 + $0x18] sm:$0xff]  ;;  %4631 = vmatpush.msra.mxu1 %v405_v59 }
 0x4b8   : > { %v10632_v14 = vadd.f32 %v4035_v28, %v3971_v25  ;;  %v4120_v56 = vpop.f32.mrf.mxu1  ;;  %v7166_v28 = vld [vmem:[%s13554_s0 + $0x360] sm:$0xff] }
 0x4b9   : > { %4314 = vmatmul.f32.vlgmr.msrb.gmra.mxu0 %v7154_v34  ;;  %4444 = vmatmul.f32.vlgmr.msrb.gmra.mxu2 %v7155_v35  ;;  %v4121_v33 = vadd.f32 %v4120_v56, %v4056_v31  ;;  %v7167_v31 = vld [vmem:[%s13554_s0 + $0x370] sm:$0xff]  ;;  %v7169_v34 = vld [vmem:[%s13554_s0 + $0x378] sm:$0xff] }
 0x4ba   : > { %4632 = vmatpush.msra.mxu1 %v403_v16 }
 0x4bb   : > { %4379 = vmatmul.f32.vlgmr.msrb.gmra.mxu1 %v7156_v60  ;;  %v375_v60 = vld [vmem:[%s7879_s5 + $0x488] sm:$0xff] }
 0x4bc   : > { %4509 = vmatmul.f32.vlgmr.msrb.gmra.mxu3 %v7157_v1  ;;  %v4185_v39 = vpop.f32.mrf.mxu2  ;;  %v471_v1 = vld [vmem:[%s7879_s5 + $0x788] sm:$0xff]  ;;  %4565 = vmatpush.msra.mxu0 %v375_v60 }
 0x4bd   : > { %v4186_v44 = vadd.f32 %v4185_v39, %v4121_v33  ;;  %v439_v33 = vld [vmem:[%s7879_s5 + $0x688] sm:$0xff]  ;;  %4760 = vmatpush.msra.mxu3 %v471_v1 }
 0x4be   : > { %v4058_v7 = vpop.f32.mrf.mxu0  ;;  %4695 = vmatpush.msra.mxu2 %v439_v33  ;;  %v401_v33 = vld [vmem:[%s7879_s5 + $0x558] sm:$0xff] }
 0x4bf   : > { %v4059_v50 = vadd.f32 %v4058_v7, %v10372_v18  ;;  %v4250_v51 = vpop.f32.mrf.mxu3  ;;  %v7160_v18 = vld [vmem:[%s13554_s0 + $0x128] sm:$0xff]  ;;  %4633 = vmatpush.msra.mxu1 %v401_v33 }
 0x4c0   : > { %v10651_v29 = vadd.f32 %v4250_v51, %v4186_v44  ;;  %v4123_v11 = vpop.f32.mrf.mxu1  ;;  %v7171_v51 = vld [vmem:[%s13554_s0 + $0x490] sm:$0xff] }
 0x4c1   : > { %4317 = vmatmul.f32.gmra.mxu0 %v7158_v53  ;;  %4447 = vmatmul.f32.gmra.mxu2 %v7159_v55  ;;  %v4124_v48 = vadd.f32 %v4123_v11, %v4059_v50  ;;  %v7170_v50 = vld [vmem:[%s13554_s0 + $0x480] sm:$0xff]  ;;  %v7173_v53 = vld [vmem:[%s13554_s0 + $0x498] sm:$0xff] }
 0x4c3   : > { %4382 = vmatmul.f32.gmra.mxu1 %v7160_v18  ;;  %v373_v18 = vld [vmem:[%s7879_s5 + $0x478] sm:$0xff] }
 0x4c4   : > { %4512 = vmatmul.f32.gmra.mxu3 %v7161_v17  ;;  %v4188_v58 = vpop.f32.mrf.mxu2  ;;  %v469_v17 = vld [vmem:[%s7879_s5 + $0x778] sm:$0xff]  ;;  %4566 = vmatpush.msra.mxu0 %v373_v18 }
 0x4c5   : > { %v4189_v2 = vadd.f32 %v4188_v58, %v4124_v48  ;;  %v437_v48 = vld [vmem:[%s7879_s5 + $0x678] sm:$0xff]  ;;  %4761 = vmatpush.msra.mxu3 %v469_v17 }
 0x4c6   : > { %v4061_v26 = vpop.f32.mrf.mxu0  ;;  %4696 = vmatpush.msra.mxu2 %v437_v48  ;;  %v399_v48 = vld [vmem:[%s7879_s5 + $0x548] sm:$0xff] }
 0x4c7   : > { %v4062_v5 = vadd.f32 %v4061_v26, %v10391_v36  ;;  %v4253_v6 = vpop.f32.mrf.mxu3  ;;  %v7164_v36 = vld [vmem:[%s13554_s0 + $0x248] sm:$0xff]  ;;  %4634 = vmatpush.msra.mxu1 %v399_v48 }
 0x4c8   : > { %v10670_v45 = vadd.f32 %v4253_v6, %v4189_v2  ;;  %v4126_v32 = vpop.f32.mrf.mxu1  ;;  %v7175_v6 = vld [vmem:[%s13554_s0 + $0x5b0] sm:$0xff] }
 0x4c9   : > { %4320 = vmatmul.f32.gmra.mxu0 %v7162_v9  ;;  %4450 = vmatmul.f32.gmra.mxu2 %v7163_v10  ;;  %v4127_v63 = vadd.f32 %v4126_v32, %v4062_v5  ;;  %v7174_v5 = vld [vmem:[%s13554_s0 + $0x5a0] sm:$0xff]  ;;  %v7177_v9 = vld [vmem:[%s13554_s0 + $0x5b8] sm:$0xff] }
 0x4cb   : > { %4385 = vmatmul.f32.gmra.mxu1 %v7164_v36  ;;  %v371_v36 = vld [vmem:[%s7879_s5 + $0x468] sm:$0xff] }
 0x4cc   : > { %4515 = vmatmul.f32.gmra.mxu3 %v7165_v37  ;;  %v4191_v15 = vpop.f32.mrf.mxu2  ;;  %v467_v37 = vld [vmem:[%s7879_s5 + $0x768] sm:$0xff]  ;;  %4567 = vmatpush.msra.mxu0 %v371_v36 }
 0x4cd   : > { %v4192_v21 = vadd.f32 %v4191_v15, %v4127_v63  ;;  %v435_v63 = vld [vmem:[%s7879_s5 + $0x668] sm:$0xff]  ;;  %4762 = vmatpush.msra.mxu3 %v467_v37 }
 0x4ce   : > { %v4064_v46 = vpop.f32.mrf.mxu0  ;;  %4697 = vmatpush.msra.mxu2 %v435_v63  ;;  %v397_v63 = vld [vmem:[%s7879_s5 + $0x538] sm:$0xff] }
 0x4cf   : > { %v4065_v24 = vadd.f32 %v4064_v46, %v10410_v54  ;;  %v4256_v25 = vpop.f32.mrf.mxu3  ;;  %v7168_v54 = vld [vmem:[%s13554_s0 + $0x368] sm:$0xff]  ;;  %4635 = vmatpush.msra.mxu1 %v397_v63 }
 0x4d0   : > { %v10689_v61 = vadd.f32 %v4256_v25, %v4192_v21  ;;  %v4129_v52 = vpop.f32.mrf.mxu1  ;;  %v7179_v25 = vld [vmem:[%s13554_s0 + $0x6d0] sm:$0xff] }
 0x4d1   : > { %4323 = vmatmul.f32.gmra.mxu0 %v7166_v28  ;;  %4453 = vmatmul.f32.gmra.mxu2 %v7167_v31  ;;  %v4130_v56 = vadd.f32 %v4129_v52, %v4065_v24  ;;  %v7178_v24 = vld [vmem:[%s13554_s0 + $0x6c0] sm:$0xff]  ;;  %v7181_v28 = vld [vmem:[%s13554_s0 + $0x6d8] sm:$0xff] }
 0x4d3   : > { %4388 = vmatmul.f32.gmra.mxu1 %v7168_v54  ;;  %v369_v54 = vld [vmem:[%s7879_s5 + $0x458] sm:$0xff] }
 0x4d4   : > { %4518 = vmatmul.f32.gmra.mxu3 %v7169_v34  ;;  %v4194_v35 = vpop.f32.mrf.mxu2  ;;  %v465_v34 = vld [vmem:[%s7879_s5 + $0x758] sm:$0xff]  ;;  %4568 = vmatpush.msra.mxu0 %v369_v54 }
 0x4d5   : > { %v4195_v39 = vadd.f32 %v4194_v35, %v4130_v56  ;;  %v433_v56 = vld [vmem:[%s7879_s5 + $0x658] sm:$0xff]  ;;  %4763 = vmatpush.msra.mxu3 %v465_v34 }
 0x4d6   : > { %v4067_v3 = vpop.f32.mrf.mxu0  ;;  %4698 = vmatpush.msra.mxu2 %v433_v56  ;;  %v395_v56 = vld [vmem:[%s7879_s5 + $0x528] sm:$0xff] }
 0x4d7   : > { %v4068_v43 = vadd.f32 %v4067_v3, %v10429_v8  ;;  %v4259_v44 = vpop.f32.mrf.mxu3  ;;  %v7172_v8 = vld [vmem:[%s13554_s0 + $0x488] sm:$0xff]  ;;  %4636 = vmatpush.msra.mxu1 %v395_v56 }
 0x4d8   : > { %v10708_v13 = vadd.f32 %v4259_v44, %v4195_v39  ;;  %v4132_v7 = vpop.f32.mrf.mxu1  ;;  %v7183_v44 = vld [vmem:[%s13554_s0 + $0x7f0] sm:$0xff] }
 0x4d9   : > { %4326 = vmatmul.f32.gmra.mxu0 %v7170_v50  ;;  %4456 = vmatmul.f32.gmra.mxu2 %v7171_v51  ;;  %v4133_v11 = vadd.f32 %v4132_v7, %v4068_v43  ;;  %v7182_v43 = vld [vmem:[%s13554_s0 + $0x7e0] sm:$0xff]  ;;  %v7185_v50 = vld [vmem:[%s13554_s0 + $0x7f8] sm:$0xff] }
 0x4db   : > { %4391 = vmatmul.f32.gmra.mxu1 %v7172_v8  ;;  %v367_v8 = vld [vmem:[%s7879_s5 + $0x448] sm:$0xff] }
 0x4dc   : > { %4521 = vmatmul.f32.gmra.mxu3 %v7173_v53  ;;  %v4197_v55 = vpop.f32.mrf.mxu2  ;;  %v463_v53 = vld [vmem:[%s7879_s5 + $0x748] sm:$0xff]  ;;  %4569 = vmatpush.msra.mxu0 %v367_v8 }
 0x4dd   : > { %v4198_v58 = vadd.f32 %v4197_v55, %v4133_v11  ;;  %v431_v11 = vld [vmem:[%s7879_s5 + $0x648] sm:$0xff]  ;;  %4764 = vmatpush.msra.mxu3 %v463_v53 }
 0x4de   : > { %v4070_v22 = vpop.f32.mrf.mxu0  ;;  %4699 = vmatpush.msra.mxu2 %v431_v11  ;;  %v393_v11 = vld [vmem:[%s7879_s5 + $0x518] sm:$0xff] }
 0x4df   : > { %v4071_v0 = vadd.f32 %v4070_v22, %v10448_v27  ;;  %v4262_v2 = vpop.f32.mrf.mxu3  ;;  %v7176_v27 = vld [vmem:[%s13554_s0 + $0x5a8] sm:$0xff]  ;;  %4637 = vmatpush.msra.mxu1 %v393_v11 }
 0x4e0   : > { %v10727_v30 = vadd.f32 %v4262_v2, %v4198_v58  ;;  %v4135_v26 = vpop.f32.mrf.mxu1  ;;  %v7187_v2 = vld [vmem:[%s13554_s0 + $0x910] sm:$0xff] }
 0x4e1   : > { %4329 = vmatmul.f32.gmra.mxu0 %v7174_v5  ;;  %4459 = vmatmul.f32.gmra.mxu2 %v7175_v6  ;;  %v4136_v32 = vadd.f32 %v4135_v26, %v4071_v0  ;;  %v7186_v0 = vld [vmem:[%s13554_s0 + $0x900] sm:$0xff]  ;;  %v7189_v5 = vld [vmem:[%s13554_s0 + $0x918] sm:$0xff] }
 0x4e3   : > { %4394 = vmatmul.f32.gmra.mxu1 %v7176_v27  ;;  %v365_v27 = vld [vmem:[%s7879_s5 + $0x438] sm:$0xff] }
 0x4e4   : > { %4524 = vmatmul.f32.gmra.mxu3 %v7177_v9  ;;  %v4200_v10 = vpop.f32.mrf.mxu2  ;;  %v461_v9 = vld [vmem:[%s7879_s5 + $0x738] sm:$0xff]  ;;  %4570 = vmatpush.msra.mxu0 %v365_v27 }
 0x4e5   : > { %v4201_v15 = vadd.f32 %v4200_v10, %v4136_v32  ;;  %v429_v32 = vld [vmem:[%s7879_s5 + $0x638] sm:$0xff]  ;;  %4765 = vmatpush.msra.mxu3 %v461_v9 }
 0x4e6   : > { %v4073_v41 = vpop.f32.mrf.mxu0  ;;  %4700 = vmatpush.msra.mxu2 %v429_v32  ;;  %v391_v32 = vld [vmem:[%s7879_s5 + $0x508] sm:$0xff] }
 0x4e7   : > { %v4074_v20 = vadd.f32 %v4073_v41, %v10467_v49  ;;  %v4265_v21 = vpop.f32.mrf.mxu3  ;;  %v7180_v49 = vld [vmem:[%s13554_s0 + $0x6c8] sm:$0xff]  ;;  %4638 = vmatpush.msra.mxu1 %v391_v32 }
 0x4e8   : > { %v10746_v47 = vadd.f32 %v4265_v21, %v4201_v15  ;;  %v4138_v46 = vpop.f32.mrf.mxu1  ;;  %v7191_v21 = vld [vmem:[%s13554_s0 + $0xa30] sm:$0xff] }
 0x4e9   : > { %4332 = vmatmul.f32.gmra.mxu0 %v7178_v24  ;;  %4462 = vmatmul.f32.gmra.mxu2 %v7179_v25  ;;  %v4139_v52 = vadd.f32 %v4138_v46, %v4074_v20  ;;  %v7190_v20 = vld [vmem:[%s13554_s0 + $0xa20] sm:$0xff]  ;;  %v7193_v24 = vld [vmem:[%s13554_s0 + $0xa38] sm:$0xff] }
 0x4eb   : > { %4397 = vmatmul.f32.gmra.mxu1 %v7180_v49  ;;  %v363_v49 = vld [vmem:[%s7879_s5 + $0x428] sm:$0xff] }
 0x4ec   : > { %4527 = vmatmul.f32.gmra.mxu3 %v7181_v28  ;;  %v4203_v31 = vpop.f32.mrf.mxu2  ;;  %v459_v28 = vld [vmem:[%s7879_s5 + $0x728] sm:$0xff]  ;;  %4571 = vmatpush.msra.mxu0 %v363_v49 }
 0x4ed   : > { %v4204_v35 = vadd.f32 %v4203_v31, %v4139_v52  ;;  %v427_v52 = vld [vmem:[%s7879_s5 + $0x628] sm:$0xff]  ;;  %4766 = vmatpush.msra.mxu3 %v459_v28 }
 0x4ee   : > { %v4076_v60 = vpop.f32.mrf.mxu0  ;;  %4701 = vmatpush.msra.mxu2 %v427_v52  ;;  %v549_v52 = vld [vmem:[%s7879_s5 + $0x9f8] sm:$0xff] }
 0x4ef   : > { %v4077_v1 = vadd.f32 %v4076_v60, %v10486_v4  ;;  %v4268_v39 = vpop.f32.mrf.mxu3  ;;  %v7184_v4 = vld [vmem:[%s13554_s0 + $0x7e8] sm:$0xff]  ;;  %4883 = vmatpush.msrb.mxu1 %v549_v52 }
 0x4f0   : > { %v10765_v40 = vadd.f32 %v4268_v39, %v4204_v35  ;;  %v4141_v3 = vpop.f32.mrf.mxu1  ;;  %v7195_v39 = vld [vmem:[%s13554_s0 + $0xb50] sm:$0xff] }
 0x4f1   : > { %4335 = vmatmul.f32.gmra.mxu0 %v7182_v43  ;;  %4465 = vmatmul.f32.gmra.mxu2 %v7183_v44  ;;  %v4142_v7 = vadd.f32 %v4141_v3, %v4077_v1  ;;  %v7194_v1 = vld [vmem:[%s13554_s0 + $0xb40] sm:$0xff]  ;;  %v7197_v43 = vld [vmem:[%s13554_s0 + $0xb58] sm:$0xff] }
 0x4f3   : > { %4400 = vmatmul.f32.gmra.mxu1 %v7184_v4  ;;  %v361_v4 = vld [vmem:[%s7879_s5 + $0x418] sm:$0xff] }
 0x4f4   : > { %4530 = vmatmul.f32.gmra.mxu3 %v7185_v50  ;;  %v4206_v51 = vpop.f32.mrf.mxu2  ;;  %v457_v50 = vld [vmem:[%s7879_s5 + $0x718] sm:$0xff]  ;;  %4572 = vmatpush.msra.mxu0 %v361_v4 }
 0x4f5   : > { %v4207_v55 = vadd.f32 %v4206_v51, %v4142_v7  ;;  %v425_v7 = vld [vmem:[%s7879_s5 + $0x618] sm:$0xff]  ;;  %4767 = vmatpush.msra.mxu3 %v457_v50 }
 0x4f6   : > { %v4079_v18 = vpop.f32.mrf.mxu0  ;;  %4702 = vmatpush.msra.mxu2 %v425_v7  ;;  %v547_v7 = vld [vmem:[%s7879_s5 + $0x9e8] sm:$0xff] }
 0x4f7   : > { %v4080_v17 = vadd.f32 %v4079_v18, %v10505_v23  ;;  %v4271_v58 = vpop.f32.mrf.mxu3  ;;  %v7188_v23 = vld [vmem:[%s13554_s0 + $0x908] sm:$0xff]  ;;  %4884 = vmatpush.msrb.mxu1 %v547_v7 }
 0x4f8   : > { %v10784_v59 = vadd.f32 %v4271_v58, %v4207_v55  ;;  %v4144_v22 = vpop.f32.mrf.mxu1  ;;  %v7199_v58 = vld [vmem:[%s13554_s0 + $0xc70] sm:$0xff] }
 0x4f9   : > { %4338 = vmatmul.f32.gmra.mxu0 %v7186_v0  ;;  %4468 = vmatmul.f32.gmra.mxu2 %v7187_v2  ;;  %v4145_v26 = vadd.f32 %v4144_v22, %v4080_v17  ;;  %v7198_v17 = vld [vmem:[%s13554_s0 + $0xc60] sm:$0xff]  ;;  %v7201_v0 = vld [vmem:[%s13554_s0 + $0xc78] sm:$0xff] }
 0x4fb   : > { %4403 = vmatmul.f32.gmra.mxu1 %v7188_v23  ;;  %v359_v23 = vld [vmem:[%s7879_s5 + $0x408] sm:$0xff] }
 0x4fc   : > { %4533 = vmatmul.f32.gmra.mxu3 %v7189_v5  ;;  %v4209_v6 = vpop.f32.mrf.mxu2  ;;  %v455_v5 = vld [vmem:[%s7879_s5 + $0x708] sm:$0xff]  ;;  %4573 = vmatpush.msra.mxu0 %v359_v23 }
 0x4fd   : > { %v4210_v10 = vadd.f32 %v4209_v6, %v4145_v26  ;;  %v423_v26 = vld [vmem:[%s7879_s5 + $0x608] sm:$0xff]  ;;  %4768 = vmatpush.msra.mxu3 %v455_v5 }
 0x4fe   : > { %v4082_v36 = vpop.f32.mrf.mxu0  ;;  %4703 = vmatpush.msra.mxu2 %v423_v26  ;;  %v545_v26 = vld [vmem:[%s7879_s5 + $0x9d8] sm:$0xff] }
 0x4ff   : > { %v4083_v37 = vadd.f32 %v4082_v36, %v10524_v42  ;;  %v4274_v15 = vpop.f32.mrf.mxu3  ;;  %v7192_v42 = vld [vmem:[%s13554_s0 + $0xa28] sm:$0xff]  ;;  %4885 = vmatpush.msrb.mxu1 %v545_v26 }
 0x500   : > { %v10803_v16 = vadd.f32 %v4274_v15, %v4210_v10  ;;  %v4147_v41 = vpop.f32.mrf.mxu1  ;;  %v7203_v15 = vld [vmem:[%s13554_s0 + $0xd90] sm:$0xff] }
 0x501   : > { %4341 = vmatmul.f32.gmra.mxu0 %v7190_v20  ;;  %4471 = vmatmul.f32.gmra.mxu2 %v7191_v21  ;;  %v4148_v46 = vadd.f32 %v4147_v41, %v4083_v37  ;;  %v7202_v37 = vld [vmem:[%s13554_s0 + $0xd80] sm:$0xff]  ;;  %v7205_v20 = vld [vmem:[%s13554_s0 + $0xd98] sm:$0xff] }
 0x503   : > { %4406 = vmatmul.f32.gmra.mxu1 %v7192_v42  ;;  %v517_v42 = vld [vmem:[%s7879_s5 + $0x8f8] sm:$0xff] }
 0x504   : > { %4536 = vmatmul.f32.gmra.mxu3 %v7193_v24  ;;  %v4212_v25 = vpop.f32.mrf.mxu2  ;;  %v613_v24 = vld [vmem:[%s7879_s5 + $0xbf8] sm:$0xff]  ;;  %4818 = vmatpush.msrb.mxu0 %v517_v42 }
 0x505   : > { %v4213_v31 = vadd.f32 %v4212_v25, %v4148_v46  ;;  %v581_v46 = vld [vmem:[%s7879_s5 + $0xaf8] sm:$0xff]  ;;  %5013 = vmatpush.msrb.mxu3 %v613_v24 }
 0x506   : > { %v4085_v54 = vpop.f32.mrf.mxu0  ;;  %4948 = vmatpush.msrb.mxu2 %v581_v46  ;;  %v543_v46 = vld [vmem:[%s7879_s5 + $0x9c8] sm:$0xff] }
 0x507   : > { %v4086_v34 = vadd.f32 %v4085_v54, %v10543_v62  ;;  %v4277_v35 = vpop.f32.mrf.mxu3  ;;  %v7196_v62 = vld [vmem:[%s13554_s0 + $0xb48] sm:$0xff]  ;;  %4886 = vmatpush.msrb.mxu1 %v543_v46 }
 0x508   : > { %v10822_v33 = vadd.f32 %v4277_v35, %v4213_v31  ;;  %v4150_v60 = vpop.f32.mrf.mxu1  ;;  %v7207_v35 = vld [vmem:[%s13554_s0 + $0xeb0] sm:$0xff] }
 0x509   : > { %4344 = vmatmul.f32.gmra.mxu0 %v7194_v1  ;;  %4474 = vmatmul.f32.gmra.mxu2 %v7195_v39  ;;  %v4151_v3 = vadd.f32 %v4150_v60, %v4086_v34  ;;  %v7206_v34 = vld [vmem:[%s13554_s0 + $0xea0] sm:$0xff]  ;;  %v579_v60 = vld [vmem:[%s7879_s5 + $0xae8] sm:$0xff]  ;;  %v7209_v39 = vld [vmem:[%s13554_s0 + $0xeb8] sm:$0xff] }
 0x50a   : > { %4949 = vmatpush.msrb.mxu2 %v579_v60  ;;  %v7208_v1 = vld [vmem:[%s13554_s0 + $0xea8] sm:$0xff] }
 0x50b   : > { %4409 = vmatmul.f32.gmra.mxu1 %v7196_v62  ;;  %v515_v62 = vld [vmem:[%s7879_s5 + $0x8e8] sm:$0xff] }
 0x50c   : > { %4539 = vmatmul.f32.gmra.mxu3 %v7197_v43  ;;  %v4215_v44 = vpop.f32.mrf.mxu2  ;;  %v611_v43 = vld [vmem:[%s7879_s5 + $0xbe8] sm:$0xff]  ;;  %4819 = vmatpush.msrb.mxu0 %v515_v62 }
 0x50d   : > { %v4216_v51 = vadd.f32 %v4215_v44, %v4151_v3  ;;  %5014 = vmatpush.msrb.mxu3 %v611_v43 }
 0x50e   : > { %v4088_v8 = vpop.f32.mrf.mxu0 }
 0x50f   : > { %v4089_v53 = vadd.f32 %v4088_v8, %v10562_v19  ;;  %v4280_v55 = vpop.f32.mrf.mxu3  ;;  %v7200_v19 = vld [vmem:[%s13554_s0 + $0xc68] sm:$0xff] }
 0x510   : > { %v10841_v48 = vadd.f32 %v4280_v55, %v4216_v51  ;;  %v4153_v18 = vpop.f32.mrf.mxu1  ;;  %v7211_v55 = vld [vmem:[%s13554_s0 + $0xfd0] sm:$0xff] }
 0x511   : > { %4347 = vmatmul.f32.gmra.mxu0 %v7198_v17  ;;  %4477 = vmatmul.f32.gmra.mxu2 %v7199_v58  ;;  %v4154_v22 = vadd.f32 %v4153_v18, %v4089_v53  ;;  %v7210_v53 = vld [vmem:[%s13554_s0 + $0xfc0] sm:$0xff]  ;;  %v577_v18 = vld [vmem:[%s7879_s5 + $0xad8] sm:$0xff]  ;;  %v7212_v17 = vld [vmem:[%s13554_s0 + $0xfc8] sm:$0xff] }
 0x512   : > { %4950 = vmatpush.msrb.mxu2 %v577_v18  ;;  %v7213_v58 = vld [vmem:[%s13554_s0 + $0xfd8] sm:$0xff] }
 0x513   : > { %4412 = vmatmul.f32.gmra.mxu1 %v7200_v19  ;;  %v513_v19 = vld [vmem:[%s7879_s5 + $0x8d8] sm:$0xff] }
 0x514   : > { %4542 = vmatmul.f32.gmra.mxu3 %v7201_v0  ;;  %v4218_v2 = vpop.f32.mrf.mxu2  ;;  %v609_v0 = vld [vmem:[%s7879_s5 + $0xbd8] sm:$0xff]  ;;  %4820 = vmatpush.msrb.mxu0 %v513_v19 }
 0x515   : > { %v4219_v6 = vadd.f32 %v4218_v2, %v4154_v22  ;;  %5015 = vmatpush.msrb.mxu3 %v609_v0 }
 0x516   : > { %v4091_v27 = vpop.f32.mrf.mxu0 }
 0x517   : > { %v4092_v9 = vadd.f32 %v4091_v27, %v10581_v38  ;;  %v4283_v10 = vpop.f32.mrf.mxu3  ;;  %v7204_v38 = vld [vmem:[%s13554_s0 + $0xd88] sm:$0xff] }
 0x518   : > { %v10860_v63 = vadd.f32 %v4283_v10, %v4219_v6  ;;  %v4156_v36 = vpop.f32.mrf.mxu1  ;;  %v7215_v10 = vld [vmem:[%s13554_s0 + $0x10f0] sm:$0xff] }
 0x519   : > { %4350 = vmatmul.f32.gmra.mxu0 %v7202_v37  ;;  %4480 = vmatmul.f32.gmra.mxu2 %v7203_v15  ;;  %v4157_v41 = vadd.f32 %v4156_v36, %v4092_v9  ;;  %v7214_v9 = vld [vmem:[%s13554_s0 + $0x10e0] sm:$0xff]  ;;  %v575_v36 = vld [vmem:[%s7879_s5 + $0xac8] sm:$0xff]  ;;  %v7217_v15 = vld [vmem:[%s13554_s0 + $0x10f8] sm:$0xff] }
 0x51a   : > { %4951 = vmatpush.msrb.mxu2 %v575_v36  ;;  %v7216_v37 = vld [vmem:[%s13554_s0 + $0x10e8] sm:$0xff] }
 0x51b   : > { %4415 = vmatmul.f32.gmra.mxu1 %v7204_v38  ;;  %v511_v38 = vld [vmem:[%s7879_s5 + $0x8c8] sm:$0xff] }
 0x51c   : > { %4545 = vmatmul.f32.gmra.mxu3 %v7205_v20  ;;  %v4221_v21 = vpop.f32.mrf.mxu2  ;;  %v607_v20 = vld [vmem:[%s7879_s5 + $0xbc8] sm:$0xff]  ;;  %4821 = vmatpush.msrb.mxu0 %v511_v38 }
 0x51d   : > { %v4222_v25 = vadd.f32 %v4221_v21, %v4157_v41  ;;  %5016 = vmatpush.msrb.mxu3 %v607_v20 }
 0x51e   : > { %v4094_v49 = vpop.f32.mrf.mxu0 }
 0x51f   : > { %v4095_v28 = vadd.f32 %v4094_v49, %v10600_v57  ;;  %v4286_v31 = vpop.f32.mrf.mxu3  ;;  %v7218_v49 = vld [vmem:[%s13554_s0 + $0x20] sm:$0xff] }
 0x520   : > { %v10879_v56 = vadd.f32 %v4286_v31, %v4222_v25  ;;  %v4159_v54 = vpop.f32.mrf.mxu1  ;;  %v573_v31 = vld [vmem:[%s7879_s5 + $0xab8] sm:$0xff] }
 0x521   : > { %4353 = vmatmul.f32.gmra.mxu0 %v7206_v34  ;;  %4483 = vmatmul.f32.gmra.mxu2 %v7207_v35  ;;  %v4160_v57 = vadd.f32 %v4159_v54, %v4095_v28  ;;  %v7219_v28 = vld [vmem:[%s13554_s0 + $0x30] sm:$0xff]  ;;  %v7220_v34 = vld [vmem:[%s13554_s0 + $0x28] sm:$0xff]  ;;  %v7221_v35 = vld [vmem:[%s13554_s0 + $0x38] sm:$0xff] }
 0x522   : > { %4952 = vmatpush.msrb.mxu2 %v573_v31  ;;  %v7233_v31 = vld [vmem:[%s13554_s0 + $0x398] sm:$0xff] }
 0x523   : > { %4418 = vmatmul.f32.gmra.mxu1 %v7208_v1  ;;  %v605_v1 = vld [vmem:[%s7879_s5 + $0xbb8] sm:$0xff] }
 0x524   : > { %4548 = vmatmul.f32.gmra.mxu3 %v7209_v39  ;;  %v4224_v3 = vpop.f32.mrf.mxu2 }
 0x525   : > { %v4225_v44 = vadd.f32 %v4224_v3, %v4160_v57  ;;  %v509_v57 = vld [vmem:[%s7879_s5 + $0x8b8] sm:$0xff]  ;;  %5017 = vmatpush.msrb.mxu3 %v605_v1 }
 0x526   : > { %v4097_v4 = vpop.f32.mrf.mxu0  ;;  %4822 = vmatpush.msrb.mxu0 %v509_v57  ;;  %v541_v3 = vld [vmem:[%s7879_s5 + $0x9b8] sm:$0xff]  ;;  %v535_v57 = vld [vmem:[%s7879_s5 + $0x988] sm:$0xff] }
 0x527   : > { %v4098_v50 = vadd.f32 %v4097_v4, %v10619_v12  ;;  %v4289_v51 = vpop.f32.mrf.mxu3  ;;  %4887 = vmatpush.msrb.mxu1 %v541_v3  ;;  %v7222_v4 = vld [vmem:[%s13554_s0 + $0x140] sm:$0xff] }
 0x528   : > { %v10898_v11 = vadd.f32 %v4289_v51, %v4225_v44  ;;  %v4162_v8 = vpop.f32.mrf.mxu1  ;;  %v571_v51 = vld [vmem:[%s7879_s5 + $0xaa8] sm:$0xff] }
 0x529   : > { %4356 = vmatmul.f32.gmra.mxu0 %v7210_v53  ;;  %4486 = vmatmul.f32.gmra.mxu2 %v7211_v55  ;;  %v4163_v12 = vadd.f32 %v4162_v8, %v4098_v50  ;;  %v7223_v50 = vld [vmem:[%s13554_s0 + $0x150] sm:$0xff]  ;;  %v7224_v53 = vld [vmem:[%s13554_s0 + $0x148] sm:$0xff]  ;;  %v7225_v55 = vld [vmem:[%s13554_s0 + $0x158] sm:$0xff] }
 0x52a   : > { %4953 = vmatpush.msrb.mxu2 %v571_v51  ;;  %v7236_v51 = vld [vmem:[%s13554_s0 + $0x4a8] sm:$0xff] }
 0x52b   : > { %4421 = vmatmul.f32.gmra.mxu1 %v7212_v17  ;;  %v603_v17 = vld [vmem:[%s7879_s5 + $0xba8] sm:$0xff] }
 0x52c   : > { %4551 = vmatmul.f32.gmra.mxu3 %v7213_v58  ;;  %v4227_v22 = vpop.f32.mrf.mxu2 }
 0x52d   : > { %v4228_v2 = vadd.f32 %v4227_v22, %v4163_v12  ;;  %v507_v12 = vld [vmem:[%s7879_s5 + $0x8a8] sm:$0xff]  ;;  %5018 = vmatpush.msrb.mxu3 %v603_v17  ;;  %v533_v17 = vld [vmem:[%s7879_s5 + $0x978] sm:$0xff] }
 0x52e   : > { %v4100_v23 = vpop.f32.mrf.mxu0  ;;  %4823 = vmatpush.msrb.mxu0 %v507_v12  ;;  %v539_v22 = vld [vmem:[%s7879_s5 + $0x9a8] sm:$0xff] }
 0x52f   : > { %v4101_v5 = vadd.f32 %v4100_v23, %v10632_v14  ;;  %v4292_v6 = vpop.f32.mrf.mxu3  ;;  %4888 = vmatpush.msrb.mxu1 %v539_v22  ;;  %v7226_v23 = vld [vmem:[%s13554_s0 + $0x260] sm:$0xff] }
 0x530   : > { %v10917_v32 = vadd.f32 %v4292_v6, %v4228_v2  ;;  %v4165_v27 = vpop.f32.mrf.mxu1  ;;  %v569_v6 = vld [vmem:[%s7879_s5 + $0xa98] sm:$0xff] }
 0x531   : > { %4359 = vmatmul.f32.gmra.mxu0 %v7214_v9  ;;  %4489 = vmatmul.f32.gmra.mxu2 %v7215_v10  ;;  %v4166_v14 = vadd.f32 %v4165_v27, %v4101_v5  ;;  %v7227_v5 = vld [vmem:[%s13554_s0 + $0x270] sm:$0xff]  ;;  %v7228_v9 = vld [vmem:[%s13554_s0 + $0x268] sm:$0xff]  ;;  %v7229_v10 = vld [vmem:[%s13554_s0 + $0x278] sm:$0xff] }
 0x532   : > { %4954 = vmatpush.msrb.mxu2 %v569_v6 }
 0x533   : > { %4424 = vmatmul.f32.gmra.mxu1 %v7216_v37  ;;  %v601_v37 = vld [vmem:[%s7879_s5 + $0xb98] sm:$0xff] }
 0x534   : > { %4554 = vmatmul.f32.gmra.mxu3 %v7217_v15  ;;  %v4230_v41 = vpop.f32.mrf.mxu2 }
 0x535   : > { %v4231_v21 = vadd.f32 %v4230_v41, %v4166_v14  ;;  %v505_v14 = vld [vmem:[%s7879_s5 + $0x898] sm:$0xff]  ;;  %5019 = vmatpush.msrb.mxu3 %v601_v37 }
 0x536   : > { %v4315_v42 = vpop.f32.mrf.mxu0  ;;  %4824 = vmatpush.msrb.mxu0 %v505_v14  ;;  %v537_v41 = vld [vmem:[%s7879_s5 + $0x998] sm:$0xff]  ;;  %v595_v14 = vld [vmem:[%s7879_s5 + $0xb68] sm:$0xff] }
 0x537   : > { %v4295_v24 = vpop.f32.mrf.mxu3  ;;  %4889 = vmatpush.msrb.mxu1 %v537_v41 }
 0x538   : > { %v10935_v25 = vadd.f32 %v4295_v24, %v4231_v21  ;;  %v4380_v52 = vpop.f32.mrf.mxu1  ;;  %v7231_v24 = vld [vmem:[%s13554_s0 + $0x390] sm:$0xff] }
 0x539   : > { %4574 = vmatmul.f32.vlgmr.msra.gmra.mxu0 %v7218_v49  ;;  %4704 = vmatmul.f32.vlgmr.msra.gmra.mxu2 %v7219_v28  ;;  %v4381_v54 = vadd.f32 %v4380_v52, %v4315_v42  ;;  %v7230_v42 = vld [vmem:[%s13554_s0 + $0x380] sm:$0xff]  ;;  %v567_v52 = vld [vmem:[%s7879_s5 + $0xa88] sm:$0xff] }
 0x53a   : > { %4955 = vmatpush.msrb.mxu2 %v567_v52  ;;  %v7232_v28 = vld [vmem:[%s13554_s0 + $0x388] sm:$0xff]  ;;  %4890 = vmatpush.msrb.mxu1 %v535_v57  ;;  %v561_v52 = vld [vmem:[%s7879_s5 + $0xa58] sm:$0xff] }
 0x53b   : > { %4639 = vmatmul.f32.vlgmr.msra.gmra.mxu1 %v7220_v34  ;;  %v503_v34 = vld [vmem:[%s7879_s5 + $0x888] sm:$0xff]  ;;  %v529_v57 = vld [vmem:[%s7879_s5 + $0x958] sm:$0xff] }
 0x53c   : > { %4769 = vmatmul.f32.vlgmr.msra.gmra.mxu3 %v7221_v35  ;;  %v4445_v60 = vpop.f32.mrf.mxu2  ;;  %v599_v35 = vld [vmem:[%s7879_s5 + $0xb88] sm:$0xff]  ;;  %4825 = vmatpush.msrb.mxu0 %v503_v34  ;;  %v497_v34 = vld [vmem:[%s7879_s5 + $0x858] sm:$0xff] }
 0x53d   : > { %v4446_v39 = vadd.f32 %v4445_v60, %v4381_v54  ;;  %5020 = vmatpush.msrb.mxu3 %v599_v35  ;;  %4891 = vmatpush.msrb.mxu1 %v533_v17  ;;  %v593_v35 = vld [vmem:[%s7879_s5 + $0xb58] sm:$0xff] }
 0x53e   : > { %v4318_v62 = vpop.f32.mrf.mxu0 }
 0x53f   : > { %v4510_v43 = vpop.f32.mrf.mxu3 }
 0x540   : > { %v10953_v44 = vadd.f32 %v4510_v43, %v4446_v39  ;;  %v4383_v7 = vpop.f32.mrf.mxu1  ;;  %v7234_v43 = vld [vmem:[%s13554_s0 + $0x4a0] sm:$0xff] }
 0x541   : > { %4577 = vmatmul.f32.gmra.mxu0 %v7222_v4  ;;  %4707 = vmatmul.f32.gmra.mxu2 %v7223_v50  ;;  %v4384_v8 = vadd.f32 %v4383_v7, %v4318_v62  ;;  %v7235_v7 = vld [vmem:[%s13554_s0 + $0x4b0] sm:$0xff]  ;;  %v565_v4 = vld [vmem:[%s7879_s5 + $0xa78] sm:$0xff] }
 0x542   : > { %4956 = vmatpush.msrb.mxu2 %v565_v4  ;;  %v7247_v4 = vld [vmem:[%s13554_s0 + $0x810] sm:$0xff] }
 0x543   : > { %4642 = vmatmul.f32.gmra.mxu1 %v7224_v53 }
 0x544   : > { %4772 = vmatmul.f32.gmra.mxu3 %v7225_v55  ;;  %v4448_v18 = vpop.f32.mrf.mxu2  ;;  %v501_v55 = vld [vmem:[%s7879_s5 + $0x878] sm:$0xff] }
 0x545   : > { %v4449_v58 = vadd.f32 %v4448_v18, %v4384_v8  ;;  %v7237_v8 = vld [vmem:[%s13554_s0 + $0x4b8] sm:$0xff]  ;;  %4826 = vmatpush.msrb.mxu0 %v501_v55 }
 0x546   : > { %v4321_v19 = vpop.f32.mrf.mxu0  ;;  %v597_v18 = vld [vmem:[%s7879_s5 + $0xb78] sm:$0xff] }
 0x547   : > { %v4513_v0 = vpop.f32.mrf.mxu3  ;;  %5021 = vmatpush.msrb.mxu3 %v597_v18  ;;  %v495_v18 = vld [vmem:[%s7879_s5 + $0x848] sm:$0xff] }
 0x548   : > { %v10971_v2 = vadd.f32 %v4513_v0, %v4449_v58  ;;  %v4386_v26 = vpop.f32.mrf.mxu1 }
 0x549   : > { %4580 = vmatmul.f32.gmra.mxu0 %v7226_v23  ;;  %4710 = vmatmul.f32.gmra.mxu2 %v7227_v5  ;;  %v4387_v27 = vadd.f32 %v4386_v26, %v4321_v19  ;;  %v7238_v26 = vld [vmem:[%s13554_s0 + $0x5c0] sm:$0xff]  ;;  %v7239_v23 = vld [vmem:[%s13554_s0 + $0x5d0] sm:$0xff]  ;;  %v563_v5 = vld [vmem:[%s7879_s5 + $0xa68] sm:$0xff] }
 0x54a   : > { %4957 = vmatpush.msrb.mxu2 %v563_v5  ;;  %5022 = vmatpush.msrb.mxu3 %v595_v14  ;;  %v7250_v5 = vld [vmem:[%s13554_s0 + $0x920] sm:$0xff] }
 0x54b   : > { %4645 = vmatmul.f32.gmra.mxu1 %v7228_v9  ;;  %v7241_v9 = vld [vmem:[%s13554_s0 + $0x5d8] sm:$0xff] }
 0x54c   : > { %4775 = vmatmul.f32.gmra.mxu3 %v7229_v10  ;;  %v4451_v36 = vpop.f32.mrf.mxu2  ;;  %4958 = vmatpush.msrb.mxu2 %v561_v52 }
 0x54d   : > { %v4452_v15 = vadd.f32 %v4451_v36, %v4387_v27  ;;  %v7240_v27 = vld [vmem:[%s13554_s0 + $0x5c8] sm:$0xff]  ;;  %5023 = vmatpush.msrb.mxu3 %v593_v35  ;;  %v7257_v35 = vld [vmem:[%s13554_s0 + $0xa58] sm:$0xff] }
 0x54e   : > { %v4324_v38 = vpop.f32.mrf.mxu0  ;;  %v499_v36 = vld [vmem:[%s7879_s5 + $0x868] sm:$0xff] }
 0x54f   : > { %v4516_v20 = vpop.f32.mrf.mxu3  ;;  %4827 = vmatpush.msrb.mxu0 %v499_v36  ;;  %v7253_v36 = vld [vmem:[%s13554_s0 + $0x938] sm:$0xff] }
 0x550   : > { %v10989_v21 = vadd.f32 %v4516_v20, %v4452_v15  ;;  %v4389_v46 = vpop.f32.mrf.mxu1  ;;  %v531_v15 = vld [vmem:[%s7879_s5 + $0x968] sm:$0xff] }
 0x551   : > { %4583 = vmatmul.f32.gmra.mxu0 %v7230_v42  ;;  %4713 = vmatmul.f32.gmra.mxu2 %v7231_v24  ;;  %v4390_v49 = vadd.f32 %v4389_v46, %v4324_v38  ;;  %v7242_v42 = vld [vmem:[%s13554_s0 + $0x6e0] sm:$0xff]  ;;  %v7243_v24 = vld [vmem:[%s13554_s0 + $0x6f0] sm:$0xff] }
 0x552   : > { %4892 = vmatpush.msrb.mxu1 %v531_v15  ;;  %4828 = vmatpush.msrb.mxu0 %v497_v34  ;;  %v589_v15 = vld [vmem:[%s7879_s5 + $0xb38] sm:$0xff]  ;;  %v7256_v34 = vld [vmem:[%s13554_s0 + $0xa48] sm:$0xff] }
 0x553   : > { %4648 = vmatmul.f32.gmra.mxu1 %v7232_v28  ;;  %v7244_v28 = vld [vmem:[%s13554_s0 + $0x6e8] sm:$0xff] }
 0x554   : > { %4778 = vmatmul.f32.gmra.mxu3 %v7233_v31  ;;  %v4454_v54 = vpop.f32.mrf.mxu2  ;;  %v7245_v31 = vld [vmem:[%s13554_s0 + $0x6f8] sm:$0xff]  ;;  %4893 = vmatpush.msrb.mxu1 %v529_v57  ;;  %v491_v57 = vld [vmem:[%s7879_s5 + $0x828] sm:$0xff] }
 0x555   : > { %v4455_v60 = vadd.f32 %v4454_v54, %v4390_v49  ;;  %4829 = vmatpush.msrb.mxu0 %v495_v18 }
 0x556   : > { %v4327_v1 = vpop.f32.mrf.mxu0 }
 0x557   : > { %v4519_v39 = vpop.f32.mrf.mxu3 }
 0x558   : > { %v11007_v3 = vadd.f32 %v4519_v39, %v4455_v60  ;;  %v4392_v62 = vpop.f32.mrf.mxu1 }
 0x559   : > { %4586 = vmatmul.f32.gmra.mxu0 %v7234_v43  ;;  %4716 = vmatmul.f32.gmra.mxu2 %v7235_v7  ;;  %v4393_v50 = vadd.f32 %v4392_v62, %v4327_v1  ;;  %v7246_v7 = vld [vmem:[%s13554_s0 + $0x800] sm:$0xff] }
 0x55b   : > { %4651 = vmatmul.f32.gmra.mxu1 %v7236_v51 }
 0x55c   : > { %4781 = vmatmul.f32.gmra.mxu3 %v7237_v8  ;;  %v4457_v53 = vpop.f32.mrf.mxu2  ;;  %v7248_v8 = vld [vmem:[%s13554_s0 + $0x808] sm:$0xff] }
 0x55d   : > { %v4458_v12 = vadd.f32 %v4457_v53, %v4393_v50  ;;  %v559_v50 = vld [vmem:[%s7879_s5 + $0xa48] sm:$0xff]  ;;  %v7249_v53 = vld [vmem:[%s13554_s0 + $0x818] sm:$0xff] }
 0x55e   : > { %v4330_v58 = vpop.f32.mrf.mxu0  ;;  %4959 = vmatpush.msrb.mxu2 %v559_v50 }
 0x55f   : > { %v4522_v22 = vpop.f32.mrf.mxu3 }
 0x560   : > { %v11025_v19 = vadd.f32 %v4522_v22, %v4458_v12  ;;  %v4395_v0 = vpop.f32.mrf.mxu1  ;;  %v591_v12 = vld [vmem:[%s7879_s5 + $0xb48] sm:$0xff] }
 0x561   : > { %4589 = vmatmul.f32.gmra.mxu0 %v7238_v26  ;;  %4719 = vmatmul.f32.gmra.mxu2 %v7239_v23  ;;  %v4396_v6 = vadd.f32 %v4395_v0, %v4330_v58  ;;  %v527_v58 = vld [vmem:[%s7879_s5 + $0x948] sm:$0xff] }
 0x562   : > { %5024 = vmatpush.msrb.mxu3 %v591_v12  ;;  %4894 = vmatpush.msrb.mxu1 %v527_v58  ;;  %v7260_v12 = vld [vmem:[%s13554_s0 + $0xb68] sm:$0xff] }
 0x563   : > { %4654 = vmatmul.f32.gmra.mxu1 %v7240_v27  ;;  %v557_v27 = vld [vmem:[%s7879_s5 + $0xa38] sm:$0xff] }
 0x564   : > { %4784 = vmatmul.f32.gmra.mxu3 %v7241_v9  ;;  %v4460_v10 = vpop.f32.mrf.mxu2  ;;  %4960 = vmatpush.msrb.mxu2 %v557_v27 }
 0x565   : > { %v4461_v37 = vadd.f32 %v4460_v10, %v4396_v6  ;;  %v7251_v6 = vld [vmem:[%s13554_s0 + $0x930] sm:$0xff]  ;;  %v7252_v10 = vld [vmem:[%s13554_s0 + $0x928] sm:$0xff]  ;;  %5025 = vmatpush.msrb.mxu3 %v589_v15 }
 0x566   : > { %v4333_v41 = vpop.f32.mrf.mxu0 }
 0x567   : > { %v4525_v38 = vpop.f32.mrf.mxu3 }
 0x568   : > { %v11043_v20 = vadd.f32 %v4525_v38, %v4461_v37  ;;  %v4398_v46 = vpop.f32.mrf.mxu1  ;;  %v493_v37 = vld [vmem:[%s7879_s5 + $0x838] sm:$0xff] }
 0x569   : > { %4592 = vmatmul.f32.gmra.mxu0 %v7242_v42  ;;  %4722 = vmatmul.f32.gmra.mxu2 %v7243_v24  ;;  %v4399_v49 = vadd.f32 %v4398_v46, %v4333_v41  ;;  %v525_v38 = vld [vmem:[%s7879_s5 + $0x938] sm:$0xff] }
 0x56a   : > { %4830 = vmatpush.msrb.mxu0 %v493_v37  ;;  %4895 = vmatpush.msrb.mxu1 %v525_v38  ;;  %v551_v37 = vld [vmem:[%s7879_s5 + $0xa08] sm:$0xff]  ;;  %v7265_v38 = vld [vmem:[%s13554_s0 + $0xc98] sm:$0xff] }
 0x56b   : > { %4657 = vmatmul.f32.gmra.mxu1 %v7244_v28  ;;  %v7255_v28 = vld [vmem:[%s13554_s0 + $0xa50] sm:$0xff] }
 0x56c   : > { %4787 = vmatmul.f32.gmra.mxu3 %v7245_v31  ;;  %v4463_v54 = vpop.f32.mrf.mxu2  ;;  %v555_v31 = vld [vmem:[%s7879_s5 + $0xa28] sm:$0xff]  ;;  %4831 = vmatpush.msrb.mxu0 %v491_v57  ;;  %v7267_v57 = vld [vmem:[%s13554_s0 + $0xdb0] sm:$0xff] }
 0x56d   : > { %v4464_v60 = vadd.f32 %v4463_v54, %v4399_v49  ;;  %v7254_v49 = vld [vmem:[%s13554_s0 + $0xa40] sm:$0xff]  ;;  %4961 = vmatpush.msrb.mxu2 %v555_v31 }
 0x56e   : > { %v4336_v1 = vpop.f32.mrf.mxu0 }
 0x56f   : > { %v4528_v39 = vpop.f32.mrf.mxu3 }
 0x570   : > { %v11061_v62 = vadd.f32 %v4528_v39, %v4464_v60  ;;  %v4401_v43 = vpop.f32.mrf.mxu1 }
 0x571   : > { %4595 = vmatmul.f32.gmra.mxu0 %v7246_v7  ;;  %4725 = vmatmul.f32.gmra.mxu2 %v7247_v4  ;;  %v4402_v51 = vadd.f32 %v4401_v43, %v4336_v1  ;;  %v587_v1 = vld [vmem:[%s7879_s5 + $0xb28] sm:$0xff] }
 0x572   : > { %5026 = vmatpush.msrb.mxu3 %v587_v1  ;;  %v523_v43 = vld [vmem:[%s7879_s5 + $0x928] sm:$0xff]  ;;  %v709_v1 = vld [vmem:[%s7879_s5 + $0xef8] sm:$0xff] }
 0x573   : > { %4660 = vmatmul.f32.gmra.mxu1 %v7248_v8  ;;  %v7258_v8 = vld [vmem:[%s13554_s0 + $0xb60] sm:$0xff] }
 0x574   : > { %4790 = vmatmul.f32.gmra.mxu3 %v7249_v53  ;;  %v4466_v55 = vpop.f32.mrf.mxu2  ;;  %4896 = vmatpush.msrb.mxu1 %v523_v43  ;;  %v7259_v53 = vld [vmem:[%s13554_s0 + $0xb70] sm:$0xff]  ;;  %v7268_v43 = vld [vmem:[%s13554_s0 + $0xda8] sm:$0xff] }
 0x575   : > { %v4467_v17 = vadd.f32 %v4466_v55, %v4402_v51  ;;  %v553_v55 = vld [vmem:[%s7879_s5 + $0xa18] sm:$0xff] }
 0x576   : > { %v4339_v22 = vpop.f32.mrf.mxu0  ;;  %4962 = vmatpush.msrb.mxu2 %v553_v55  ;;  %v677_v55 = vld [vmem:[%s7879_s5 + $0xdf8] sm:$0xff] }
 0x577   : > { %v4531_v0 = vpop.f32.mrf.mxu3 }
 0x578   : > { %v11079_v26 = vadd.f32 %v4531_v0, %v4467_v17  ;;  %v4404_v23 = vpop.f32.mrf.mxu1  ;;  %v7261_v17 = vld [vmem:[%s13554_s0 + $0xb78] sm:$0xff]  ;;  %4963 = vmatpush.msrb.mxu2 %v551_v37 }
 0x579   : > { %4598 = vmatmul.f32.gmra.mxu0 %v7250_v5  ;;  %4728 = vmatmul.f32.gmra.mxu2 %v7251_v6  ;;  %v4405_v9 = vadd.f32 %v4404_v23, %v4339_v22  ;;  %v489_v22 = vld [vmem:[%s7879_s5 + $0x818] sm:$0xff] }
 0x57a   : > { %v585_v0 = vld [vmem:[%s7879_s5 + $0xb18] sm:$0xff]  ;;  %4832 = vmatpush.msrb.mxu0 %v489_v22  ;;  %5208 = vmatpush.msra.mxu2 %v709_v1  ;;  %v7270_v22 = vld [vmem:[%s13554_s0 + $0xec0] sm:$0xff] }
 0x57b   : > { %4663 = vmatmul.f32.gmra.mxu1 %v7252_v10  ;;  %5027 = vmatpush.msrb.mxu3 %v585_v0  ;;  %v521_v5 = vld [vmem:[%s7879_s5 + $0x918] sm:$0xff]  ;;  %v7271_v0 = vld [vmem:[%s13554_s0 + $0xed0] sm:$0xff] }
 0x57c   : > { %4793 = vmatmul.f32.gmra.mxu3 %v7253_v36  ;;  %v4469_v14 = vpop.f32.mrf.mxu2  ;;  %4897 = vmatpush.msrb.mxu1 %v521_v5  ;;  %v7262_v36 = vld [vmem:[%s13554_s0 + $0xc80] sm:$0xff]  ;;  %v737_v1 = vld [vmem:[%s7879_s5 + $0xfd8] sm:$0xff] }
 0x57d   : > { %v4470_v41 = vadd.f32 %v4469_v14, %v4405_v9  ;;  %v7263_v14 = vld [vmem:[%s13554_s0 + $0xc90] sm:$0xff] }
 0x57e   : > { %v4342_v46 = vpop.f32.mrf.mxu0 }
 0x57f   : > { %v4534_v42 = vpop.f32.mrf.mxu3 }
 0x580   : > { %v11097_v24 = vadd.f32 %v4534_v42, %v4470_v41  ;;  %v4407_v52 = vpop.f32.mrf.mxu1  ;;  %v7264_v41 = vld [vmem:[%s13554_s0 + $0xc88] sm:$0xff] }
 0x581   : > { %4601 = vmatmul.f32.gmra.mxu0 %v7254_v49  ;;  %4731 = vmatmul.f32.gmra.mxu2 %v7255_v28  ;;  %v4408_v54 = vadd.f32 %v4407_v52, %v4342_v46  ;;  %v487_v42 = vld [vmem:[%s7879_s5 + $0x808] sm:$0xff] }
 0x582   : > { %v583_v52 = vld [vmem:[%s7879_s5 + $0xb08] sm:$0xff]  ;;  %4833 = vmatpush.msrb.mxu0 %v487_v42 }
 0x583   : > { %4666 = vmatmul.f32.gmra.mxu1 %v7256_v34  ;;  %5028 = vmatpush.msrb.mxu3 %v583_v52  ;;  %v519_v28 = vld [vmem:[%s7879_s5 + $0x908] sm:$0xff]  ;;  %v7274_v52 = vld [vmem:[%s13554_s0 + $0xfe0] sm:$0xff] }
 0x584   : > { %4796 = vmatmul.f32.gmra.mxu3 %v7257_v35  ;;  %v4472_v60 = vpop.f32.mrf.mxu2  ;;  %4898 = vmatpush.msrb.mxu1 %v519_v28  ;;  %v705_v28 = vld [vmem:[%s7879_s5 + $0xed8] sm:$0xff] }
 0x585   : > { %v4473_v39 = vadd.f32 %v4472_v60, %v4408_v54  ;;  %v7266_v60 = vld [vmem:[%s13554_s0 + $0xda0] sm:$0xff] }
 0x586   : > { %v4345_v7 = vpop.f32.mrf.mxu0  ;;  %5143 = vmatpush.msra.mxu1 %v677_v55  ;;  %v7279_v55 = vld [vmem:[%s13554_s0 + $0x1110] sm:$0xff] }
 0x587   : > { %v4537_v4 = vpop.f32.mrf.mxu3 }
 0x588   : > { %v11115_v50 = vadd.f32 %v4537_v4, %v4473_v39  ;;  %v4410_v51 = vpop.f32.mrf.mxu1 }
 0x589   : > { %4604 = vmatmul.f32.gmra.mxu0 %v7258_v8  ;;  %4734 = vmatmul.f32.gmra.mxu2 %v7259_v53  ;;  %v4411_v18 = vadd.f32 %v4410_v51, %v4345_v7  ;;  %v7269_v7 = vld [vmem:[%s13554_s0 + $0xdb8] sm:$0xff] }
 0x58a   : > { %v645_v51 = vld [vmem:[%s7879_s5 + $0xcf8] sm:$0xff] }
 0x58b   : > { %4669 = vmatmul.f32.gmra.mxu1 %v7260_v12  ;;  %v741_v8 = vld [vmem:[%s7879_s5 + $0xff8] sm:$0xff]  ;;  %5078 = vmatpush.msra.mxu0 %v645_v51 }
 0x58c   : > { %4799 = vmatmul.f32.gmra.mxu3 %v7261_v17  ;;  %v4475_v58 = vpop.f32.mrf.mxu2 }
 0x58d   : > { %v4476_v23 = vadd.f32 %v4475_v58, %v4411_v18  ;;  %5273 = vmatpush.msra.mxu3 %v741_v8 }
 0x58e   : > { %v4348_v6 = vpop.f32.mrf.mxu0 }
 0x58f   : > { %v4540_v27 = vpop.f32.mrf.mxu3 }
 0x590   : > { %v11133_v9 = vadd.f32 %v4540_v27, %v4476_v23  ;;  %v4413_v10 = vpop.f32.mrf.mxu1  ;;  %v707_v23 = vld [vmem:[%s7879_s5 + $0xee8] sm:$0xff]  ;;  %v7273_v27 = vld [vmem:[%s13554_s0 + $0xed8] sm:$0xff] }
 0x591   : > { %4607 = vmatmul.f32.gmra.mxu0 %v7262_v36  ;;  %4737 = vmatmul.f32.gmra.mxu2 %v7263_v14  ;;  %v4414_v15 = vadd.f32 %v4413_v10, %v4348_v6  ;;  %v7272_v6 = vld [vmem:[%s13554_s0 + $0xec8] sm:$0xff] }
 0x592   : > { %5209 = vmatpush.msra.mxu2 %v707_v23  ;;  %v643_v36 = vld [vmem:[%s7879_s5 + $0xce8] sm:$0xff] }
 0x593   : > { %4672 = vmatmul.f32.gmra.mxu1 %v7264_v41  ;;  %v739_v14 = vld [vmem:[%s7879_s5 + $0xfe8] sm:$0xff]  ;;  %5079 = vmatpush.msra.mxu0 %v643_v36 }
 0x594   : > { %4802 = vmatmul.f32.gmra.mxu3 %v7265_v38  ;;  %v4478_v46 = vpop.f32.mrf.mxu2  ;;  %5210 = vmatpush.msra.mxu2 %v705_v28  ;;  %v639_v23 = vld [vmem:[%s7879_s5 + $0xcc8] sm:$0xff] }
 0x595   : > { %v4479_v49 = vadd.f32 %v4478_v46, %v4414_v15  ;;  %5274 = vmatpush.msra.mxu3 %v739_v14  ;;  %v675_v15 = vld [vmem:[%s7879_s5 + $0xde8] sm:$0xff] }
 0x596   : > { %v4351_v31 = vpop.f32.mrf.mxu0  ;;  %5144 = vmatpush.msra.mxu1 %v675_v15 }
 0x597   : > { %v4543_v54 = vpop.f32.mrf.mxu3  ;;  %5275 = vmatpush.msra.mxu3 %v737_v1 }
 0x598   : > { %v11151_v34 = vadd.f32 %v4543_v54, %v4479_v49  ;;  %v4416_v35 = vpop.f32.mrf.mxu1  ;;  %v7275_v49 = vld [vmem:[%s13554_s0 + $0xff0] sm:$0xff]  ;;  %v7276_v54 = vld [vmem:[%s13554_s0 + $0xfe8] sm:$0xff] }
 0x599   : > { %4610 = vmatmul.f32.gmra.mxu0 %v7266_v60  ;;  %4740 = vmatmul.f32.gmra.mxu2 %v7267_v57  ;;  %v4417_v39 = vadd.f32 %v4416_v35, %v4351_v31  ;;  %v7277_v35 = vld [vmem:[%s13554_s0 + $0xff8] sm:$0xff] }
 0x59a   : > { %v641_v57 = vld [vmem:[%s7879_s5 + $0xcd8] sm:$0xff] }
 0x59b   : > { %4675 = vmatmul.f32.gmra.mxu1 %v7268_v43  ;;  %5080 = vmatpush.msra.mxu0 %v641_v57  ;;  %v673_v43 = vld [vmem:[%s7879_s5 + $0xdd8] sm:$0xff] }
 0x59c   : > { %4805 = vmatmul.f32.gmra.mxu3 %v7269_v7  ;;  %v4481_v4 = vpop.f32.mrf.mxu2  ;;  %5145 = vmatpush.msra.mxu1 %v673_v43 }
 0x59d   : > { %v4482_v53 = vadd.f32 %v4481_v4, %v4417_v39  ;;  %5081 = vmatpush.msra.mxu0 %v639_v23  ;;  %v667_v23 = vld [vmem:[%s7879_s5 + $0xda8] sm:$0xff] }
 0x59e   : > { %v4354_v18 = vpop.f32.mrf.mxu0 }
 0x59f   : > { %v4546_v12 = vpop.f32.mrf.mxu3 }
 0x5a0   : > { %v11169_v17 = vadd.f32 %v4546_v12, %v4482_v53  ;;  %v4419_v58 = vpop.f32.mrf.mxu1  ;;  %v7278_v53 = vld [vmem:[%s13554_s0 + $0x1100] sm:$0xff] }
 0x5a1   : > { %4613 = vmatmul.f32.gmra.mxu0 %v7270_v22  ;;  %4743 = vmatmul.f32.gmra.mxu2 %v7271_v0  ;;  %v4420_v5 = vadd.f32 %v4419_v58, %v4354_v18  ;;  %v703_v18 = vld [vmem:[%s7879_s5 + $0xec8] sm:$0xff]  ;;  %v7281_v22 = vld [vmem:[%s13554_s0 + $0x1118] sm:$0xff] }
 0x5a2   : > { %5211 = vmatpush.msra.mxu2 %v703_v18  ;;  %v7280_v58 = vld [vmem:[%s13554_s0 + $0x1108] sm:$0xff]  ;;  %v7289_v18 = vld [vmem:[%s13554_s0 + $0x178] sm:$0xff] }
 0x5a3   : > { %4678 = vmatmul.f32.gmra.mxu1 %v7272_v6 }
 0x5a4   : > { %4808 = vmatmul.f32.gmra.mxu3 %v7273_v27  ;;  %v4484_v10 = vpop.f32.mrf.mxu2  ;;  %v671_v27 = vld [vmem:[%s7879_s5 + $0xdc8] sm:$0xff] }
 0x5a5   : > { %v4485_v37 = vadd.f32 %v4484_v10, %v4420_v5  ;;  %v735_v5 = vld [vmem:[%s7879_s5 + $0xfc8] sm:$0xff]  ;;  %5146 = vmatpush.msra.mxu1 %v671_v27 }
 0x5a6   : > { %v4357_v41 = vpop.f32.mrf.mxu0  ;;  %5276 = vmatpush.msra.mxu3 %v735_v5 }
 0x5a7   : > { %v4549_v38 = vpop.f32.mrf.mxu3 }
 0x5a8   : > { %v11187_v46 = vadd.f32 %v4549_v38, %v4485_v37  ;;  %v4422_v42 = vpop.f32.mrf.mxu1  ;;  %v7283_v38 = vld [vmem:[%s13554_s0 + $0x50] sm:$0xff] }
 0x5a9   : > { %4616 = vmatmul.f32.gmra.mxu0 %v7274_v52  ;;  %4746 = vmatmul.f32.gmra.mxu2 %v7275_v49  ;;  %v4423_v31 = vadd.f32 %v4422_v42, %v4357_v41  ;;  %v7282_v41 = vld [vmem:[%s13554_s0 + $0x40] sm:$0xff]  ;;  %v701_v42 = vld [vmem:[%s7879_s5 + $0xeb8] sm:$0xff] }
 0x5aa   : > { %5212 = vmatpush.msra.mxu2 %v701_v42  ;;  %v7285_v49 = vld [vmem:[%s13554_s0 + $0x58] sm:$0xff] }
 0x5ab   : > { %4681 = vmatmul.f32.gmra.mxu1 %v7276_v54  ;;  %v733_v54 = vld [vmem:[%s7879_s5 + $0xfb8] sm:$0xff] }
 0x5ac   : > { %4811 = vmatmul.f32.gmra.mxu3 %v7277_v35  ;;  %v4487_v60 = vpop.f32.mrf.mxu2  ;;  %v7293_v42 = vld [vmem:[%s13554_s0 + $0x298] sm:$0xff] }
 0x5ad   : > { %v4488_v39 = vadd.f32 %v4487_v60, %v4423_v31  ;;  %v637_v31 = vld [vmem:[%s7879_s5 + $0xcb8] sm:$0xff]  ;;  %5277 = vmatpush.msra.mxu3 %v733_v54 }
 0x5ae   : > { %v4360_v7 = vpop.f32.mrf.mxu0  ;;  %5082 = vmatpush.msra.mxu0 %v637_v31  ;;  %v669_v60 = vld [vmem:[%s7879_s5 + $0xdb8] sm:$0xff] }
 0x5af   : > { %v4552_v4 = vpop.f32.mrf.mxu3  ;;  %5147 = vmatpush.msra.mxu1 %v669_v60  ;;  %v665_v31 = vld [vmem:[%s7879_s5 + $0xd98] sm:$0xff] }
 0x5b0   : > { %v11205_v51 = vadd.f32 %v4552_v4, %v4488_v39  ;;  %v4425_v8 = vpop.f32.mrf.mxu1  ;;  %v7286_v4 = vld [vmem:[%s13554_s0 + $0x160] sm:$0xff] }
 0x5b1   : > { %4619 = vmatmul.f32.gmra.mxu0 %v7278_v53  ;;  %4749 = vmatmul.f32.gmra.mxu2 %v7279_v55  ;;  %v4426_v12 = vadd.f32 %v4425_v8, %v4360_v7  ;;  %v7287_v8 = vld [vmem:[%s13554_s0 + $0x170] sm:$0xff]  ;;  %v699_v53 = vld [vmem:[%s7879_s5 + $0xea8] sm:$0xff] }
 0x5b2   : > { %5213 = vmatpush.msra.mxu2 %v699_v53  ;;  %v7288_v55 = vld [vmem:[%s13554_s0 + $0x168] sm:$0xff]  ;;  %5148 = vmatpush.msra.mxu1 %v667_v23  ;;  %v7297_v53 = vld [vmem:[%s13554_s0 + $0x3b8] sm:$0xff] }
 0x5b3   : > { %4684 = vmatmul.f32.gmra.mxu1 %v7280_v58  ;;  %v635_v58 = vld [vmem:[%s7879_s5 + $0xca8] sm:$0xff] }
 0x5b4   : > { %4814 = vmatmul.f32.gmra.mxu3 %v7281_v22  ;;  %v4490_v0 = vpop.f32.mrf.mxu2  ;;  %v731_v22 = vld [vmem:[%s7879_s5 + $0xfa8] sm:$0xff]  ;;  %5083 = vmatpush.msra.mxu0 %v635_v58 }
 0x5b5   : > { %v4491_v6 = vadd.f32 %v4490_v0, %v4426_v12  ;;  %5278 = vmatpush.msra.mxu3 %v731_v22  ;;  %5149 = vmatpush.msra.mxu1 %v665_v31  ;;  %v663_v58 = vld [vmem:[%s7879_s5 + $0xd88] sm:$0xff] }
 0x5b6   : > { %v4575_v10 = vpop.f32.mrf.mxu0 }
 0x5b7   : > { %v4555_v36 = vpop.f32.mrf.mxu3  ;;  %v4576_v14 = vadd.f32 %v4575_v10, %v10953_v44  ;;  %v7284_v44 = vld [vmem:[%s13554_s0 + $0x48] sm:$0xff]  ;;  %5150 = vmatpush.msra.mxu1 %v663_v58 }
 0x5b8   : > { %v11224_v37 = vadd.f32 %v4555_v36, %v4491_v6  ;;  %v4640_v15 = vpop.f32.mrf.mxu1 }
 0x5b9   : > { %4834 = vmatmul.f32.vlgmr.msrb.gmra.mxu0 %v7282_v41  ;;  %4964 = vmatmul.f32.vlgmr.msrb.gmra.mxu2 %v7283_v38  ;;  %v4641_v52 = vadd.f32 %v4640_v15, %v4576_v14  ;;  %v7290_v14 = vld [vmem:[%s13554_s0 + $0x280] sm:$0xff]  ;;  %v7291_v15 = vld [vmem:[%s13554_s0 + $0x290] sm:$0xff]  ;;  %v697_v41 = vld [vmem:[%s7879_s5 + $0xe98] sm:$0xff] }
 0x5ba   : > { %5214 = vmatpush.msra.mxu2 %v697_v41  ;;  %v7292_v38 = vld [vmem:[%s13554_s0 + $0x288] sm:$0xff]  ;;  %v7301_v41 = vld [vmem:[%s13554_s0 + $0x4d8] sm:$0xff] }
 0x5bb   : > { %4899 = vmatmul.f32.vlgmr.msrb.gmra.mxu1 %v7284_v44  ;;  %v633_v44 = vld [vmem:[%s7879_s5 + $0xc98] sm:$0xff] }
 0x5bc   : > { %5029 = vmatmul.f32.vlgmr.msrb.gmra.mxu3 %v7285_v49  ;;  %v4705_v28 = vpop.f32.mrf.mxu2  ;;  %v729_v49 = vld [vmem:[%s7879_s5 + $0xf98] sm:$0xff]  ;;  %5084 = vmatpush.msra.mxu0 %v633_v44 }
 0x5bd   : > { %v4706_v35 = vadd.f32 %v4705_v28, %v4641_v52  ;;  %5279 = vmatpush.msra.mxu3 %v729_v49  ;;  %v661_v44 = vld [vmem:[%s7879_s5 + $0xd78] sm:$0xff] }
 0x5be   : > { %v4578_v57 = vpop.f32.mrf.mxu0  ;;  %5151 = vmatpush.msra.mxu1 %v661_v44 }
 0x5bf   : > { %v4579_v1 = vadd.f32 %v4578_v57, %v10971_v2  ;;  %v4770_v39 = vpop.f32.mrf.mxu3 }
 0x5c0   : > { %v11243_v43 = vadd.f32 %v4770_v39, %v4706_v35  ;;  %v4643_v7 = vpop.f32.mrf.mxu1  ;;  %v7294_v39 = vld [vmem:[%s13554_s0 + $0x3a0] sm:$0xff] }
 0x5c1   : > { %4837 = vmatmul.f32.gmra.mxu0 %v7286_v4  ;;  %4967 = vmatmul.f32.gmra.mxu2 %v7287_v8  ;;  %v4644_v2 = vadd.f32 %v4643_v7, %v4579_v1  ;;  %v7295_v7 = vld [vmem:[%s13554_s0 + $0x3b0] sm:$0xff]  ;;  %v695_v4 = vld [vmem:[%s7879_s5 + $0xe88] sm:$0xff] }
 0x5c2   : > { %5215 = vmatpush.msra.mxu2 %v695_v4  ;;  %v7296_v8 = vld [vmem:[%s13554_s0 + $0x3a8] sm:$0xff]  ;;  %v7305_v4 = vld [vmem:[%s13554_s0 + $0x5f8] sm:$0xff] }
 0x5c3   : > { %4902 = vmatmul.f32.gmra.mxu1 %v7288_v55  ;;  %v631_v55 = vld [vmem:[%s7879_s5 + $0xc88] sm:$0xff] }
 0x5c4   : > { %5032 = vmatmul.f32.gmra.mxu3 %v7289_v18  ;;  %v4708_v12 = vpop.f32.mrf.mxu2  ;;  %v727_v18 = vld [vmem:[%s7879_s5 + $0xf88] sm:$0xff]  ;;  %5085 = vmatpush.msra.mxu0 %v631_v55 }
 0x5c5   : > { %v4709_v0 = vadd.f32 %v4708_v12, %v4644_v2  ;;  %5280 = vmatpush.msra.mxu3 %v727_v18  ;;  %v659_v55 = vld [vmem:[%s7879_s5 + $0xd68] sm:$0xff] }
 0x5c6   : > { %v4581_v5 = vpop.f32.mrf.mxu0  ;;  %5152 = vmatpush.msra.mxu1 %v659_v55 }
 0x5c7   : > { %v4582_v6 = vadd.f32 %v4581_v5, %v10989_v21  ;;  %v4773_v27 = vpop.f32.mrf.mxu3 }
 0x5c8   : > { %v11262_v10 = vadd.f32 %v4773_v27, %v4709_v0  ;;  %v4646_v36 = vpop.f32.mrf.mxu1  ;;  %v7298_v27 = vld [vmem:[%s13554_s0 + $0x4c0] sm:$0xff] }
 0x5c9   : > { %4840 = vmatmul.f32.gmra.mxu0 %v7290_v14  ;;  %4970 = vmatmul.f32.gmra.mxu2 %v7291_v15  ;;  %v4647_v21 = vadd.f32 %v4646_v36, %v4582_v6  ;;  %v7299_v36 = vld [vmem:[%s13554_s0 + $0x4d0] sm:$0xff]  ;;  %v693_v14 = vld [vmem:[%s7879_s5 + $0xe78] sm:$0xff]  ;;  %v7300_v15 = vld [vmem:[%s13554_s0 + $0x4c8] sm:$0xff] }
 0x5ca   : > { %5216 = vmatpush.msra.mxu2 %v693_v14  ;;  %v7309_v14 = vld [vmem:[%s13554_s0 + $0x718] sm:$0xff] }
 0x5cb   : > { %4905 = vmatmul.f32.gmra.mxu1 %v7292_v38  ;;  %v629_v38 = vld [vmem:[%s7879_s5 + $0xc78] sm:$0xff] }
 0x5cc   : > { %5035 = vmatmul.f32.gmra.mxu3 %v7293_v42  ;;  %v4711_v52 = vpop.f32.mrf.mxu2  ;;  %v725_v42 = vld [vmem:[%s7879_s5 + $0xf78] sm:$0xff]  ;;  %5086 = vmatpush.msra.mxu0 %v629_v38 }
 0x5cd   : > { %v4712_v28 = vadd.f32 %v4711_v52, %v4647_v21  ;;  %5281 = vmatpush.msra.mxu3 %v725_v42  ;;  %v657_v38 = vld [vmem:[%s7879_s5 + $0xd58] sm:$0xff] }
 0x5ce   : > { %v4584_v54 = vpop.f32.mrf.mxu0  ;;  %5153 = vmatpush.msra.mxu1 %v657_v38 }
 0x5cf   : > { %v4585_v35 = vadd.f32 %v4584_v54, %v11007_v3  ;;  %v4776_v60 = vpop.f32.mrf.mxu3 }
 0x5d0   : > { %v11281_v57 = vadd.f32 %v4776_v60, %v4712_v28  ;;  %v4649_v1 = vpop.f32.mrf.mxu1  ;;  %v7302_v60 = vld [vmem:[%s13554_s0 + $0x5e0] sm:$0xff] }
 0x5d1   : > { %4843 = vmatmul.f32.gmra.mxu0 %v7294_v39  ;;  %4973 = vmatmul.f32.gmra.mxu2 %v7295_v7  ;;  %v4650_v3 = vadd.f32 %v4649_v1, %v4585_v35  ;;  %v7303_v1 = vld [vmem:[%s13554_s0 + $0x5f0] sm:$0xff]  ;;  %v691_v39 = vld [vmem:[%s7879_s5 + $0xe68] sm:$0xff] }
 0x5d2   : > { %5217 = vmatpush.msra.mxu2 %v691_v39  ;;  %v7304_v7 = vld [vmem:[%s13554_s0 + $0x5e8] sm:$0xff]  ;;  %v7313_v39 = vld [vmem:[%s13554_s0 + $0x838] sm:$0xff] }
 0x5d3   : > { %4908 = vmatmul.f32.gmra.mxu1 %v7296_v8  ;;  %v627_v8 = vld [vmem:[%s7879_s5 + $0xc68] sm:$0xff] }
 0x5d4   : > { %5038 = vmatmul.f32.gmra.mxu3 %v7297_v53  ;;  %v4714_v2 = vpop.f32.mrf.mxu2  ;;  %v723_v53 = vld [vmem:[%s7879_s5 + $0xf68] sm:$0xff]  ;;  %5087 = vmatpush.msra.mxu0 %v627_v8 }
 0x5d5   : > { %v4715_v12 = vadd.f32 %v4714_v2, %v4650_v3  ;;  %5282 = vmatpush.msra.mxu3 %v723_v53  ;;  %v655_v8 = vld [vmem:[%s7879_s5 + $0xd48] sm:$0xff] }
 0x5d6   : > { %v4587_v22 = vpop.f32.mrf.mxu0  ;;  %5154 = vmatpush.msra.mxu1 %v655_v8 }
 0x5d7   : > { %v4588_v0 = vadd.f32 %v4587_v22, %v11025_v19  ;;  %v4779_v23 = vpop.f32.mrf.mxu3 }
 0x5d8   : > { %v11300_v5 = vadd.f32 %v4779_v23, %v4715_v12  ;;  %v4652_v6 = vpop.f32.mrf.mxu1  ;;  %v7306_v23 = vld [vmem:[%s13554_s0 + $0x700] sm:$0xff] }
 0x5d9   : > { %4846 = vmatmul.f32.gmra.mxu0 %v7298_v27  ;;  %4976 = vmatmul.f32.gmra.mxu2 %v7299_v36  ;;  %v4653_v19 = vadd.f32 %v4652_v6, %v4588_v0  ;;  %v7307_v6 = vld [vmem:[%s13554_s0 + $0x710] sm:$0xff]  ;;  %v689_v27 = vld [vmem:[%s7879_s5 + $0xe58] sm:$0xff]  ;;  %v7308_v36 = vld [vmem:[%s13554_s0 + $0x708] sm:$0xff] }
 0x5da   : > { %5218 = vmatpush.msra.mxu2 %v689_v27  ;;  %v7317_v27 = vld [vmem:[%s13554_s0 + $0x958] sm:$0xff] }
 0x5db   : > { %4911 = vmatmul.f32.gmra.mxu1 %v7300_v15  ;;  %v625_v15 = vld [vmem:[%s7879_s5 + $0xc58] sm:$0xff] }
 0x5dc   : > { %5041 = vmatmul.f32.gmra.mxu3 %v7301_v41  ;;  %v4717_v21 = vpop.f32.mrf.mxu2  ;;  %v721_v41 = vld [vmem:[%s7879_s5 + $0xf58] sm:$0xff]  ;;  %5088 = vmatpush.msra.mxu0 %v625_v15 }
 0x5dd   : > { %v4718_v52 = vadd.f32 %v4717_v21, %v4653_v19  ;;  %5283 = vmatpush.msra.mxu3 %v721_v41  ;;  %v653_v15 = vld [vmem:[%s7879_s5 + $0xd38] sm:$0xff] }
 0x5de   : > { %v4590_v49 = vpop.f32.mrf.mxu0  ;;  %5155 = vmatpush.msra.mxu1 %v653_v15 }
 0x5df   : > { %v4591_v28 = vadd.f32 %v4590_v49, %v11043_v20  ;;  %v4782_v31 = vpop.f32.mrf.mxu3 }
 0x5e0   : > { %v11319_v54 = vadd.f32 %v4782_v31, %v4718_v52  ;;  %v4655_v35 = vpop.f32.mrf.mxu1  ;;  %v7310_v31 = vld [vmem:[%s13554_s0 + $0x820] sm:$0xff] }
 0x5e1   : > { %4849 = vmatmul.f32.gmra.mxu0 %v7302_v60  ;;  %4979 = vmatmul.f32.gmra.mxu2 %v7303_v1  ;;  %v4656_v20 = vadd.f32 %v4655_v35, %v4591_v28  ;;  %v7311_v35 = vld [vmem:[%s13554_s0 + $0x830] sm:$0xff]  ;;  %v687_v60 = vld [vmem:[%s7879_s5 + $0xe48] sm:$0xff] }
 0x5e2   : > { %5219 = vmatpush.msra.mxu2 %v687_v60  ;;  %v7312_v1 = vld [vmem:[%s13554_s0 + $0x828] sm:$0xff]  ;;  %v7321_v60 = vld [vmem:[%s13554_s0 + $0xa78] sm:$0xff] }
 0x5e3   : > { %4914 = vmatmul.f32.gmra.mxu1 %v7304_v7  ;;  %v623_v7 = vld [vmem:[%s7879_s5 + $0xc48] sm:$0xff] }
 0x5e4   : > { %5044 = vmatmul.f32.gmra.mxu3 %v7305_v4  ;;  %v4720_v3 = vpop.f32.mrf.mxu2  ;;  %v719_v4 = vld [vmem:[%s7879_s5 + $0xf48] sm:$0xff]  ;;  %5089 = vmatpush.msra.mxu0 %v623_v7 }
 0x5e5   : > { %v4721_v2 = vadd.f32 %v4720_v3, %v4656_v20  ;;  %5284 = vmatpush.msra.mxu3 %v719_v4  ;;  %v651_v7 = vld [vmem:[%s7879_s5 + $0xd28] sm:$0xff] }
 0x5e6   : > { %v4593_v18 = vpop.f32.mrf.mxu0  ;;  %5156 = vmatpush.msra.mxu1 %v651_v7 }
 0x5e7   : > { %v4594_v12 = vadd.f32 %v4593_v18, %v11061_v62  ;;  %v4785_v58 = vpop.f32.mrf.mxu3 }
 0x5e8   : > { %v11338_v22 = vadd.f32 %v4785_v58, %v4721_v2  ;;  %v4658_v0 = vpop.f32.mrf.mxu1  ;;  %v7314_v58 = vld [vmem:[%s13554_s0 + $0x940] sm:$0xff] }
 0x5e9   : > { %4852 = vmatmul.f32.gmra.mxu0 %v7306_v23  ;;  %4982 = vmatmul.f32.gmra.mxu2 %v7307_v6  ;;  %v4659_v62 = vadd.f32 %v4658_v0, %v4594_v12  ;;  %v7315_v0 = vld [vmem:[%s13554_s0 + $0x950] sm:$0xff]  ;;  %v685_v23 = vld [vmem:[%s7879_s5 + $0xe38] sm:$0xff]  ;;  %v7316_v6 = vld [vmem:[%s13554_s0 + $0x948] sm:$0xff] }
 0x5ea   : > { %5220 = vmatpush.msra.mxu2 %v685_v23  ;;  %v7325_v23 = vld [vmem:[%s13554_s0 + $0xb98] sm:$0xff] }
 0x5eb   : > { %4917 = vmatmul.f32.gmra.mxu1 %v7308_v36  ;;  %v621_v36 = vld [vmem:[%s7879_s5 + $0xc38] sm:$0xff] }
 0x5ec   : > { %5047 = vmatmul.f32.gmra.mxu3 %v7309_v14  ;;  %v4723_v19 = vpop.f32.mrf.mxu2  ;;  %v717_v14 = vld [vmem:[%s7879_s5 + $0xf38] sm:$0xff]  ;;  %5090 = vmatpush.msra.mxu0 %v621_v36 }
 0x5ed   : > { %v4724_v21 = vadd.f32 %v4723_v19, %v4659_v62  ;;  %5285 = vmatpush.msra.mxu3 %v717_v14  ;;  %v649_v36 = vld [vmem:[%s7879_s5 + $0xd18] sm:$0xff] }
 0x5ee   : > { %v4596_v42 = vpop.f32.mrf.mxu0  ;;  %5157 = vmatpush.msra.mxu1 %v649_v36 }
 0x5ef   : > { %v4597_v52 = vadd.f32 %v4596_v42, %v11079_v26  ;;  %v4788_v44 = vpop.f32.mrf.mxu3 }
 0x5f0   : > { %v11357_v49 = vadd.f32 %v4788_v44, %v4724_v21  ;;  %v4661_v28 = vpop.f32.mrf.mxu1  ;;  %v7318_v44 = vld [vmem:[%s13554_s0 + $0xa60] sm:$0xff] }
 0x5f1   : > { %4855 = vmatmul.f32.gmra.mxu0 %v7310_v31  ;;  %4985 = vmatmul.f32.gmra.mxu2 %v7311_v35  ;;  %v4662_v26 = vadd.f32 %v4661_v28, %v4597_v52  ;;  %v7319_v28 = vld [vmem:[%s13554_s0 + $0xa70] sm:$0xff]  ;;  %v683_v31 = vld [vmem:[%s7879_s5 + $0xe28] sm:$0xff] }
 0x5f2   : > { %5221 = vmatpush.msra.mxu2 %v683_v31  ;;  %v7320_v35 = vld [vmem:[%s13554_s0 + $0xa68] sm:$0xff]  ;;  %v7329_v31 = vld [vmem:[%s13554_s0 + $0xcb8] sm:$0xff] }
 0x5f3   : > { %4920 = vmatmul.f32.gmra.mxu1 %v7312_v1  ;;  %v619_v1 = vld [vmem:[%s7879_s5 + $0xc28] sm:$0xff] }
 0x5f4   : > { %5050 = vmatmul.f32.gmra.mxu3 %v7313_v39  ;;  %v4726_v20 = vpop.f32.mrf.mxu2  ;;  %v715_v39 = vld [vmem:[%s7879_s5 + $0xf28] sm:$0xff]  ;;  %5091 = vmatpush.msra.mxu0 %v619_v1 }
 0x5f5   : > { %v4727_v3 = vadd.f32 %v4726_v20, %v4662_v26  ;;  %5286 = vmatpush.msra.mxu3 %v715_v39  ;;  %v647_v1 = vld [vmem:[%s7879_s5 + $0xd08] sm:$0xff] }
 0x5f6   : > { %v4599_v53 = vpop.f32.mrf.mxu0  ;;  %5158 = vmatpush.msra.mxu1 %v647_v1 }
 0x5f7   : > { %v4600_v2 = vadd.f32 %v4599_v53, %v11097_v24  ;;  %v4791_v55 = vpop.f32.mrf.mxu3 }
 0x5f8   : > { %v11376_v18 = vadd.f32 %v4791_v55, %v4727_v3  ;;  %v4664_v12 = vpop.f32.mrf.mxu1  ;;  %v7322_v55 = vld [vmem:[%s13554_s0 + $0xb80] sm:$0xff] }
 0x5f9   : > { %4858 = vmatmul.f32.gmra.mxu0 %v7314_v58  ;;  %4988 = vmatmul.f32.gmra.mxu2 %v7315_v0  ;;  %v4665_v24 = vadd.f32 %v4664_v12, %v4600_v2  ;;  %v7323_v12 = vld [vmem:[%s13554_s0 + $0xb90] sm:$0xff]  ;;  %v681_v58 = vld [vmem:[%s7879_s5 + $0xe18] sm:$0xff]  ;;  %v7324_v0 = vld [vmem:[%s13554_s0 + $0xb88] sm:$0xff] }
 0x5fa   : > { %5222 = vmatpush.msra.mxu2 %v681_v58  ;;  %v7333_v58 = vld [vmem:[%s13554_s0 + $0xdd8] sm:$0xff] }
 0x5fb   : > { %4923 = vmatmul.f32.gmra.mxu1 %v7316_v6  ;;  %v617_v6 = vld [vmem:[%s7879_s5 + $0xc18] sm:$0xff] }
 0x5fc   : > { %5053 = vmatmul.f32.gmra.mxu3 %v7317_v27  ;;  %v4729_v62 = vpop.f32.mrf.mxu2  ;;  %v713_v27 = vld [vmem:[%s7879_s5 + $0xf18] sm:$0xff]  ;;  %5092 = vmatpush.msra.mxu0 %v617_v6 }
 0x5fd   : > { %v4730_v19 = vadd.f32 %v4729_v62, %v4665_v24  ;;  %5287 = vmatpush.msra.mxu3 %v713_v27  ;;  %v805_v6 = vld [vmem:[%s7879_s5 + $0x11f8] sm:$0xff] }
 0x5fe   : > { %v4602_v41 = vpop.f32.mrf.mxu0  ;;  %5403 = vmatpush.msrb.mxu1 %v805_v6 }
 0x5ff   : > { %v4603_v21 = vadd.f32 %v4602_v41, %v11115_v50  ;;  %v4794_v38 = vpop.f32.mrf.mxu3 }
 0x600   : > { %v11395_v42 = vadd.f32 %v4794_v38, %v4730_v19  ;;  %v4667_v52 = vpop.f32.mrf.mxu1  ;;  %v7326_v38 = vld [vmem:[%s13554_s0 + $0xca0] sm:$0xff] }
 0x601   : > { %4861 = vmatmul.f32.gmra.mxu0 %v7318_v44  ;;  %4991 = vmatmul.f32.gmra.mxu2 %v7319_v28  ;;  %v4668_v50 = vadd.f32 %v4667_v52, %v4603_v21  ;;  %v7327_v52 = vld [vmem:[%s13554_s0 + $0xcb0] sm:$0xff]  ;;  %v679_v44 = vld [vmem:[%s7879_s5 + $0xe08] sm:$0xff] }
 0x602   : > { %5223 = vmatpush.msra.mxu2 %v679_v44  ;;  %v7328_v28 = vld [vmem:[%s13554_s0 + $0xca8] sm:$0xff]  ;;  %v7337_v44 = vld [vmem:[%s13554_s0 + $0xef8] sm:$0xff] }
 0x603   : > { %4926 = vmatmul.f32.gmra.mxu1 %v7320_v35  ;;  %v615_v35 = vld [vmem:[%s7879_s5 + $0xc08] sm:$0xff] }
 0x604   : > { %5056 = vmatmul.f32.gmra.mxu3 %v7321_v60  ;;  %v4732_v26 = vpop.f32.mrf.mxu2  ;;  %v711_v60 = vld [vmem:[%s7879_s5 + $0xf08] sm:$0xff]  ;;  %5093 = vmatpush.msra.mxu0 %v615_v35 }
 0x605   : > { %v4733_v20 = vadd.f32 %v4732_v26, %v4668_v50  ;;  %5288 = vmatpush.msra.mxu3 %v711_v60  ;;  %v803_v35 = vld [vmem:[%s7879_s5 + $0x11e8] sm:$0xff] }
 0x606   : > { %v4605_v4 = vpop.f32.mrf.mxu0  ;;  %5404 = vmatpush.msrb.mxu1 %v803_v35 }
 0x607   : > { %v4606_v3 = vadd.f32 %v4605_v4, %v11133_v9  ;;  %v4797_v8 = vpop.f32.mrf.mxu3 }
 0x608   : > { %v11414_v53 = vadd.f32 %v4797_v8, %v4733_v20  ;;  %v4670_v2 = vpop.f32.mrf.mxu1  ;;  %v7330_v8 = vld [vmem:[%s13554_s0 + $0xdc0] sm:$0xff] }
 0x609   : > { %4864 = vmatmul.f32.gmra.mxu0 %v7322_v55  ;;  %4994 = vmatmul.f32.gmra.mxu2 %v7323_v12  ;;  %v4671_v9 = vadd.f32 %v4670_v2, %v4606_v3  ;;  %v7331_v2 = vld [vmem:[%s13554_s0 + $0xdd0] sm:$0xff]  ;;  %v837_v55 = vld [vmem:[%s7879_s5 + $0x12f8] sm:$0xff]  ;;  %v7332_v12 = vld [vmem:[%s13554_s0 + $0xdc8] sm:$0xff] }
 0x60a   : > { %5468 = vmatpush.msrb.mxu2 %v837_v55  ;;  %v7341_v55 = vld [vmem:[%s13554_s0 + $0x1018] sm:$0xff] }
 0x60b   : > { %4929 = vmatmul.f32.gmra.mxu1 %v7324_v0  ;;  %v773_v0 = vld [vmem:[%s7879_s5 + $0x10f8] sm:$0xff] }
 0x60c   : > { %5059 = vmatmul.f32.gmra.mxu3 %v7325_v23  ;;  %v4735_v24 = vpop.f32.mrf.mxu2  ;;  %v869_v23 = vld [vmem:[%s7879_s5 + $0x13f8] sm:$0xff]  ;;  %5338 = vmatpush.msrb.mxu0 %v773_v0 }
 0x60d   : > { %v4736_v62 = vadd.f32 %v4735_v24, %v4671_v9  ;;  %5533 = vmatpush.msrb.mxu3 %v869_v23  ;;  %v801_v0 = vld [vmem:[%s7879_s5 + $0x11d8] sm:$0xff] }
 0x60e   : > { %v4608_v14 = vpop.f32.mrf.mxu0  ;;  %5405 = vmatpush.msrb.mxu1 %v801_v0 }
 0x60f   : > { %v4609_v19 = vadd.f32 %v4608_v14, %v11151_v34  ;;  %v4800_v15 = vpop.f32.mrf.mxu3 }
 0x610   : > { %v11433_v41 = vadd.f32 %v4800_v15, %v4736_v62  ;;  %v4673_v21 = vpop.f32.mrf.mxu1  ;;  %v7334_v15 = vld [vmem:[%s13554_s0 + $0xee0] sm:$0xff] }
 0x611   : > { %4867 = vmatmul.f32.gmra.mxu0 %v7326_v38  ;;  %4997 = vmatmul.f32.gmra.mxu2 %v7327_v52  ;;  %v4674_v34 = vadd.f32 %v4673_v21, %v4609_v19  ;;  %v7335_v21 = vld [vmem:[%s13554_s0 + $0xef0] sm:$0xff]  ;;  %v835_v38 = vld [vmem:[%s7879_s5 + $0x12e8] sm:$0xff] }
 0x612   : > { %5469 = vmatpush.msrb.mxu2 %v835_v38  ;;  %v7336_v52 = vld [vmem:[%s13554_s0 + $0xee8] sm:$0xff]  ;;  %v7345_v38 = vld [vmem:[%s13554_s0 + $0x1138] sm:$0xff] }
 0x613   : > { %4932 = vmatmul.f32.gmra.mxu1 %v7328_v28  ;;  %v771_v28 = vld [vmem:[%s7879_s5 + $0x10e8] sm:$0xff] }
 0x614   : > { %5062 = vmatmul.f32.gmra.mxu3 %v7329_v31  ;;  %v4738_v50 = vpop.f32.mrf.mxu2  ;;  %v867_v31 = vld [vmem:[%s7879_s5 + $0x13e8] sm:$0xff]  ;;  %5339 = vmatpush.msrb.mxu0 %v771_v28 }
 0x615   : > { %v4739_v26 = vadd.f32 %v4738_v50, %v4674_v34  ;;  %5534 = vmatpush.msrb.mxu3 %v867_v31  ;;  %v799_v28 = vld [vmem:[%s7879_s5 + $0x11c8] sm:$0xff] }
 0x616   : > { %v4611_v39 = vpop.f32.mrf.mxu0  ;;  %5406 = vmatpush.msrb.mxu1 %v799_v28 }
 0x617   : > { %v4612_v20 = vadd.f32 %v4611_v39, %v11169_v17  ;;  %v4803_v7 = vpop.f32.mrf.mxu3 }
 0x618   : > { %v11452_v4 = vadd.f32 %v4803_v7, %v4739_v26  ;;  %v4676_v3 = vpop.f32.mrf.mxu1  ;;  %v7338_v7 = vld [vmem:[%s13554_s0 + $0x1000] sm:$0xff] }
 0x619   : > { %4870 = vmatmul.f32.gmra.mxu0 %v7330_v8  ;;  %5000 = vmatmul.f32.gmra.mxu2 %v7331_v2  ;;  %v4677_v17 = vadd.f32 %v4676_v3, %v4612_v20  ;;  %v7339_v3 = vld [vmem:[%s13554_s0 + $0x1010] sm:$0xff]  ;;  %v833_v8 = vld [vmem:[%s7879_s5 + $0x12d8] sm:$0xff]  ;;  %v7340_v2 = vld [vmem:[%s13554_s0 + $0x1008] sm:$0xff] }
 0x61a   : > { %5470 = vmatpush.msrb.mxu2 %v833_v8  ;;  %v7349_v8 = vld [vmem:[%s13554_s0 + $0x78] sm:$0xff] }
 0x61b   : > { %4935 = vmatmul.f32.gmra.mxu1 %v7332_v12  ;;  %v769_v12 = vld [vmem:[%s7879_s5 + $0x10d8] sm:$0xff] }
 0x61c   : > { %5065 = vmatmul.f32.gmra.mxu3 %v7333_v58  ;;  %v4741_v9 = vpop.f32.mrf.mxu2  ;;  %v865_v58 = vld [vmem:[%s7879_s5 + $0x13d8] sm:$0xff]  ;;  %5340 = vmatpush.msrb.mxu0 %v769_v12 }
 0x61d   : > { %v4742_v24 = vadd.f32 %v4741_v9, %v4677_v17  ;;  %5535 = vmatpush.msrb.mxu3 %v865_v58  ;;  %v797_v12 = vld [vmem:[%s7879_s5 + $0x11b8] sm:$0xff] }
 0x61e   : > { %v4614_v27 = vpop.f32.mrf.mxu0  ;;  %5407 = vmatpush.msrb.mxu1 %v797_v12 }
 0x61f   : > { %v4615_v62 = vadd.f32 %v4614_v27, %v11187_v46  ;;  %v4806_v36 = vpop.f32.mrf.mxu3 }
 0x620   : > { %v11471_v14 = vadd.f32 %v4806_v36, %v4742_v24  ;;  %v4679_v19 = vpop.f32.mrf.mxu1  ;;  %v7342_v36 = vld [vmem:[%s13554_s0 + $0x1120] sm:$0xff] }
 0x621   : > { %4873 = vmatmul.f32.gmra.mxu0 %v7334_v15  ;;  %5003 = vmatmul.f32.gmra.mxu2 %v7335_v21  ;;  %v4680_v46 = vadd.f32 %v4679_v19, %v4615_v62  ;;  %v7343_v19 = vld [vmem:[%s13554_s0 + $0x1130] sm:$0xff]  ;;  %v831_v15 = vld [vmem:[%s7879_s5 + $0x12c8] sm:$0xff] }
 0x622   : > { %5471 = vmatpush.msrb.mxu2 %v831_v15  ;;  %v7344_v21 = vld [vmem:[%s13554_s0 + $0x1128] sm:$0xff]  ;;  %v7353_v15 = vld [vmem:[%s13554_s0 + $0x198] sm:$0xff] }
 0x623   : > { %4938 = vmatmul.f32.gmra.mxu1 %v7336_v52  ;;  %v767_v52 = vld [vmem:[%s7879_s5 + $0x10c8] sm:$0xff] }
 0x624   : > { %5068 = vmatmul.f32.gmra.mxu3 %v7337_v44  ;;  %v4744_v34 = vpop.f32.mrf.mxu2  ;;  %v863_v44 = vld [vmem:[%s7879_s5 + $0x13c8] sm:$0xff]  ;;  %5341 = vmatpush.msrb.mxu0 %v767_v52 }
 0x625   : > { %v4745_v50 = vadd.f32 %v4744_v34, %v4680_v46  ;;  %5536 = vmatpush.msrb.mxu3 %v863_v44  ;;  %v795_v52 = vld [vmem:[%s7879_s5 + $0x11a8] sm:$0xff] }
 0x626   : > { %v4617_v60 = vpop.f32.mrf.mxu0  ;;  %5408 = vmatpush.msrb.mxu1 %v795_v52 }
 0x627   : > { %v4618_v26 = vadd.f32 %v4617_v60, %v11205_v51  ;;  %v4809_v1 = vpop.f32.mrf.mxu3 }
 0x628   : > { %v11490_v39 = vadd.f32 %v4809_v1, %v4745_v50  ;;  %v4682_v20 = vpop.f32.mrf.mxu1  ;;  %v7346_v1 = vld [vmem:[%s13554_s0 + $0x60] sm:$0xff] }
 0x629   : > { %4876 = vmatmul.f32.gmra.mxu0 %v7338_v7  ;;  %5006 = vmatmul.f32.gmra.mxu2 %v7339_v3  ;;  %v4683_v51 = vadd.f32 %v4682_v20, %v4618_v26  ;;  %v7347_v20 = vld [vmem:[%s13554_s0 + $0x70] sm:$0xff]  ;;  %v829_v7 = vld [vmem:[%s7879_s5 + $0x12b8] sm:$0xff] }
 0x62a   : > { %5472 = vmatpush.msrb.mxu2 %v829_v7  ;;  %v7357_v7 = vld [vmem:[%s13554_s0 + $0x2b8] sm:$0xff] }
 0x62b   : > { %4941 = vmatmul.f32.gmra.mxu1 %v7340_v2  ;;  %v765_v2 = vld [vmem:[%s7879_s5 + $0x10b8] sm:$0xff] }
 0x62c   : > { %5071 = vmatmul.f32.gmra.mxu3 %v7341_v55  ;;  %v4747_v17 = vpop.f32.mrf.mxu2  ;;  %v861_v55 = vld [vmem:[%s7879_s5 + $0x13b8] sm:$0xff]  ;;  %5342 = vmatpush.msrb.mxu0 %v765_v2 }
 0x62d   : > { %v4748_v9 = vadd.f32 %v4747_v17, %v4683_v51  ;;  %5537 = vmatpush.msrb.mxu3 %v861_v55  ;;  %v793_v2 = vld [vmem:[%s7879_s5 + $0x1198] sm:$0xff] }
 0x62e   : > { %v4620_v23 = vpop.f32.mrf.mxu0  ;;  %5409 = vmatpush.msrb.mxu1 %v793_v2 }
 0x62f   : > { %v4621_v24 = vadd.f32 %v4620_v23, %v11224_v37  ;;  %v4812_v6 = vpop.f32.mrf.mxu3 }
 0x630   : > { %v11509_v27 = vadd.f32 %v4812_v6, %v4748_v9  ;;  %v4685_v62 = vpop.f32.mrf.mxu1  ;;  %v7350_v6 = vld [vmem:[%s13554_s0 + $0x180] sm:$0xff] }
 0x631   : > { %4879 = vmatmul.f32.gmra.mxu0 %v7342_v36  ;;  %5009 = vmatmul.f32.gmra.mxu2 %v7343_v19  ;;  %v4686_v37 = vadd.f32 %v4685_v62, %v4621_v24  ;;  %v7351_v62 = vld [vmem:[%s13554_s0 + $0x190] sm:$0xff]  ;;  %v827_v36 = vld [vmem:[%s7879_s5 + $0x12a8] sm:$0xff] }
 0x632   : > { %5473 = vmatpush.msrb.mxu2 %v827_v36  ;;  %v7352_v19 = vld [vmem:[%s13554_s0 + $0x188] sm:$0xff]  ;;  %v7361_v36 = vld [vmem:[%s13554_s0 + $0x3d8] sm:$0xff] }
 0x633   : > { %4944 = vmatmul.f32.gmra.mxu1 %v7344_v21  ;;  %v763_v21 = vld [vmem:[%s7879_s5 + $0x10a8] sm:$0xff] }
 0x634   : > { %5074 = vmatmul.f32.gmra.mxu3 %v7345_v38  ;;  %v4750_v46 = vpop.f32.mrf.mxu2  ;;  %v859_v38 = vld [vmem:[%s7879_s5 + $0x13a8] sm:$0xff]  ;;  %5343 = vmatpush.msrb.mxu0 %v763_v21 }
 0x635   : > { %v4751_v34 = vadd.f32 %v4750_v46, %v4686_v37  ;;  %5538 = vmatpush.msrb.mxu3 %v859_v38  ;;  %v791_v21 = vld [vmem:[%s7879_s5 + $0x1188] sm:$0xff] }
 0x636   : > { %v4835_v31 = vpop.f32.mrf.mxu0  ;;  %5410 = vmatpush.msrb.mxu1 %v791_v21 }
 0x637   : > { %v4815_v50 = vpop.f32.mrf.mxu3  ;;  %v4836_v35 = vadd.f32 %v4835_v31, %v11243_v43  ;;  %v7348_v43 = vld [vmem:[%s13554_s0 + $0x68] sm:$0xff] }
 0x638   : > { %v11528_v60 = vadd.f32 %v4815_v50, %v4751_v34  ;;  %v4900_v26 = vpop.f32.mrf.mxu1 }
 0x639   : > { %5094 = vmatmul.f32.vlgmr.msra.gmra.mxu0 %v7346_v1  ;;  %5224 = vmatmul.f32.vlgmr.msra.gmra.mxu2 %v7347_v20  ;;  %v4901_v3 = vadd.f32 %v4900_v26, %v4836_v35  ;;  %v7354_v35 = vld [vmem:[%s13554_s0 + $0x2a0] sm:$0xff]  ;;  %v7355_v26 = vld [vmem:[%s13554_s0 + $0x2b0] sm:$0xff]  ;;  %v825_v1 = vld [vmem:[%s7879_s5 + $0x1298] sm:$0xff] }
 0x63a   : > { %5474 = vmatpush.msrb.mxu2 %v825_v1  ;;  %v7356_v20 = vld [vmem:[%s13554_s0 + $0x2a8] sm:$0xff]  ;;  %v7365_v1 = vld [vmem:[%s13554_s0 + $0x4f8] sm:$0xff] }
 0x63b   : > { %5159 = vmatmul.f32.vlgmr.msra.gmra.mxu1 %v7348_v43  ;;  %v761_v43 = vld [vmem:[%s7879_s5 + $0x1098] sm:$0xff] }
 0x63c   : > { %5289 = vmatmul.f32.vlgmr.msra.gmra.mxu3 %v7349_v8  ;;  %v4965_v51 = vpop.f32.mrf.mxu2  ;;  %v857_v8 = vld [vmem:[%s7879_s5 + $0x1398] sm:$0xff]  ;;  %5344 = vmatpush.msrb.mxu0 %v761_v43 }
 0x63d   : > { %v4966_v17 = vadd.f32 %v4965_v51, %v4901_v3  ;;  %5539 = vmatpush.msrb.mxu3 %v857_v8  ;;  %v789_v43 = vld [vmem:[%s7879_s5 + $0x1178] sm:$0xff] }
 0x63e   : > { %v4838_v58 = vpop.f32.mrf.mxu0  ;;  %5411 = vmatpush.msrb.mxu1 %v789_v43 }
 0x63f   : > { %v4839_v9 = vadd.f32 %v4838_v58, %v11262_v10  ;;  %v5030_v0 = vpop.f32.mrf.mxu3 }
 0x640   : > { %v11547_v23 = vadd.f32 %v5030_v0, %v4966_v17  ;;  %v4903_v24 = vpop.f32.mrf.mxu1  ;;  %v7358_v0 = vld [vmem:[%s13554_s0 + $0x3c0] sm:$0xff] }
 0x641   : > { %5097 = vmatmul.f32.gmra.mxu0 %v7350_v6  ;;  %5227 = vmatmul.f32.gmra.mxu2 %v7351_v62  ;;  %v4904_v10 = vadd.f32 %v4903_v24, %v4839_v9  ;;  %v7359_v24 = vld [vmem:[%s13554_s0 + $0x3d0] sm:$0xff]  ;;  %v823_v6 = vld [vmem:[%s7879_s5 + $0x1288] sm:$0xff] }
 0x642   : > { %5475 = vmatpush.msrb.mxu2 %v823_v6  ;;  %v7360_v62 = vld [vmem:[%s13554_s0 + $0x3c8] sm:$0xff]  ;;  %v7369_v6 = vld [vmem:[%s13554_s0 + $0x618] sm:$0xff] }
 0x643   : > { %5162 = vmatmul.f32.gmra.mxu1 %v7352_v19  ;;  %v759_v19 = vld [vmem:[%s7879_s5 + $0x1088] sm:$0xff] }
 0x644   : > { %5292 = vmatmul.f32.gmra.mxu3 %v7353_v15  ;;  %v4968_v37 = vpop.f32.mrf.mxu2  ;;  %v855_v15 = vld [vmem:[%s7879_s5 + $0x1388] sm:$0xff]  ;;  %5345 = vmatpush.msrb.mxu0 %v759_v19 }
 0x645   : > { %v4969_v46 = vadd.f32 %v4968_v37, %v4904_v10  ;;  %5540 = vmatpush.msrb.mxu3 %v855_v15  ;;  %v787_v19 = vld [vmem:[%s7879_s5 + $0x1168] sm:$0xff] }
 0x646   : > { %v4841_v44 = vpop.f32.mrf.mxu0  ;;  %5412 = vmatpush.msrb.mxu1 %v787_v19 }
 0x647   : > { %v4842_v34 = vadd.f32 %v4841_v44, %v11281_v57  ;;  %v5033_v28 = vpop.f32.mrf.mxu3 }
 0x648   : > { %v11566_v31 = vadd.f32 %v5033_v28, %v4969_v46  ;;  %v4906_v50 = vpop.f32.mrf.mxu1  ;;  %v7362_v28 = vld [vmem:[%s13554_s0 + $0x4e0] sm:$0xff] }
 0x649   : > { %5100 = vmatmul.f32.gmra.mxu0 %v7354_v35  ;;  %5230 = vmatmul.f32.gmra.mxu2 %v7355_v26  ;;  %v4907_v57 = vadd.f32 %v4906_v50, %v4842_v34  ;;  %v7363_v50 = vld [vmem:[%s13554_s0 + $0x4f0] sm:$0xff]  ;;  %v821_v35 = vld [vmem:[%s7879_s5 + $0x1278] sm:$0xff]  ;;  %v7364_v26 = vld [vmem:[%s13554_s0 + $0x4e8] sm:$0xff] }
 0x64a   : > { %5476 = vmatpush.msrb.mxu2 %v821_v35  ;;  %v7373_v35 = vld [vmem:[%s13554_s0 + $0x738] sm:$0xff] }
 0x64b   : > { %5165 = vmatmul.f32.gmra.mxu1 %v7356_v20  ;;  %v757_v20 = vld [vmem:[%s7879_s5 + $0x1078] sm:$0xff] }
 0x64c   : > { %5295 = vmatmul.f32.gmra.mxu3 %v7357_v7  ;;  %v4971_v3 = vpop.f32.mrf.mxu2  ;;  %v853_v7 = vld [vmem:[%s7879_s5 + $0x1378] sm:$0xff]  ;;  %5346 = vmatpush.msrb.mxu0 %v757_v20 }
 0x64d   : > { %v4972_v51 = vadd.f32 %v4971_v3, %v4907_v57  ;;  %5541 = vmatpush.msrb.mxu3 %v853_v7  ;;  %v785_v20 = vld [vmem:[%s7879_s5 + $0x1158] sm:$0xff] }
 0x64e   : > { %v4844_v55 = vpop.f32.mrf.mxu0  ;;  %5413 = vmatpush.msrb.mxu1 %v785_v20 }
 0x64f   : > { %v4845_v17 = vadd.f32 %v4844_v55, %v11300_v5  ;;  %v5036_v12 = vpop.f32.mrf.mxu3 }
 0x650   : > { %v11585_v58 = vadd.f32 %v5036_v12, %v4972_v51  ;;  %v4909_v9 = vpop.f32.mrf.mxu1  ;;  %v7366_v12 = vld [vmem:[%s13554_s0 + $0x600] sm:$0xff] }
 0x651   : > { %5103 = vmatmul.f32.gmra.mxu0 %v7358_v0  ;;  %5233 = vmatmul.f32.gmra.mxu2 %v7359_v24  ;;  %v4910_v5 = vadd.f32 %v4909_v9, %v4845_v17  ;;  %v7367_v9 = vld [vmem:[%s13554_s0 + $0x610] sm:$0xff]  ;;  %v819_v0 = vld [vmem:[%s7879_s5 + $0x1268] sm:$0xff] }
 0x652   : > { %5477 = vmatpush.msrb.mxu2 %v819_v0  ;;  %v7368_v24 = vld [vmem:[%s13554_s0 + $0x608] sm:$0xff]  ;;  %v7377_v0 = vld [vmem:[%s13554_s0 + $0x858] sm:$0xff] }
 0x653   : > { %5168 = vmatmul.f32.gmra.mxu1 %v7360_v62  ;;  %v755_v62 = vld [vmem:[%s7879_s5 + $0x1068] sm:$0xff] }
 0x654   : > { %5298 = vmatmul.f32.gmra.mxu3 %v7361_v36  ;;  %v4974_v10 = vpop.f32.mrf.mxu2  ;;  %v851_v36 = vld [vmem:[%s7879_s5 + $0x1368] sm:$0xff]  ;;  %5347 = vmatpush.msrb.mxu0 %v755_v62 }
 0x655   : > { %v4975_v37 = vadd.f32 %v4974_v10, %v4910_v5  ;;  %5542 = vmatpush.msrb.mxu3 %v851_v36  ;;  %v783_v62 = vld [vmem:[%s7879_s5 + $0x1148] sm:$0xff] }
 0x656   : > { %v4847_v38 = vpop.f32.mrf.mxu0  ;;  %5414 = vmatpush.msrb.mxu1 %v783_v62 }
 0x657   : > { %v4848_v46 = vadd.f32 %v4847_v38, %v11319_v54  ;;  %v5039_v52 = vpop.f32.mrf.mxu3 }
 0x658   : > { %v11604_v44 = vadd.f32 %v5039_v52, %v4975_v37  ;;  %v4912_v34 = vpop.f32.mrf.mxu1  ;;  %v7370_v52 = vld [vmem:[%s13554_s0 + $0x720] sm:$0xff] }
 0x659   : > { %5106 = vmatmul.f32.gmra.mxu0 %v7362_v28  ;;  %5236 = vmatmul.f32.gmra.mxu2 %v7363_v50  ;;  %v4913_v54 = vadd.f32 %v4912_v34, %v4848_v46  ;;  %v7371_v34 = vld [vmem:[%s13554_s0 + $0x730] sm:$0xff]  ;;  %v817_v28 = vld [vmem:[%s7879_s5 + $0x1258] sm:$0xff]  ;;  %v7372_v50 = vld [vmem:[%s13554_s0 + $0x728] sm:$0xff] }
 0x65a   : > { %5478 = vmatpush.msrb.mxu2 %v817_v28  ;;  %v7381_v28 = vld [vmem:[%s13554_s0 + $0x978] sm:$0xff] }
 0x65b   : > { %5171 = vmatmul.f32.gmra.mxu1 %v7364_v26  ;;  %v753_v26 = vld [vmem:[%s7879_s5 + $0x1058] sm:$0xff] }
 0x65c   : > { %5301 = vmatmul.f32.gmra.mxu3 %v7365_v1  ;;  %v4977_v57 = vpop.f32.mrf.mxu2  ;;  %v849_v1 = vld [vmem:[%s7879_s5 + $0x1358] sm:$0xff]  ;;  %5348 = vmatpush.msrb.mxu0 %v753_v26 }
 0x65d   : > { %v4978_v3 = vadd.f32 %v4977_v57, %v4913_v54  ;;  %5543 = vmatpush.msrb.mxu3 %v849_v1  ;;  %v781_v26 = vld [vmem:[%s7879_s5 + $0x1138] sm:$0xff] }
 0x65e   : > { %v4850_v8 = vpop.f32.mrf.mxu0  ;;  %5415 = vmatpush.msrb.mxu1 %v781_v26 }
 0x65f   : > { %v4851_v51 = vadd.f32 %v4850_v8, %v11338_v22  ;;  %v5042_v2 = vpop.f32.mrf.mxu3 }
 0x660   : > { %v11623_v55 = vadd.f32 %v5042_v2, %v4978_v3  ;;  %v4915_v17 = vpop.f32.mrf.mxu1  ;;  %v7374_v2 = vld [vmem:[%s13554_s0 + $0x840] sm:$0xff] }
 0x661   : > { %5109 = vmatmul.f32.gmra.mxu0 %v7366_v12  ;;  %5239 = vmatmul.f32.gmra.mxu2 %v7367_v9  ;;  %v4916_v22 = vadd.f32 %v4915_v17, %v4851_v51  ;;  %v7375_v17 = vld [vmem:[%s13554_s0 + $0x850] sm:$0xff]  ;;  %v815_v12 = vld [vmem:[%s7879_s5 + $0x1248] sm:$0xff] }
 0x662   : > { %5479 = vmatpush.msrb.mxu2 %v815_v12  ;;  %v7376_v9 = vld [vmem:[%s13554_s0 + $0x848] sm:$0xff]  ;;  %v7385_v12 = vld [vmem:[%s13554_s0 + $0xa98] sm:$0xff] }
 0x663   : > { %5174 = vmatmul.f32.gmra.mxu1 %v7368_v24  ;;  %v751_v24 = vld [vmem:[%s7879_s5 + $0x1048] sm:$0xff] }
 0x664   : > { %5304 = vmatmul.f32.gmra.mxu3 %v7369_v6  ;;  %v4980_v5 = vpop.f32.mrf.mxu2  ;;  %v847_v6 = vld [vmem:[%s7879_s5 + $0x1348] sm:$0xff]  ;;  %5349 = vmatpush.msrb.mxu0 %v751_v24 }
 0x665   : > { %v4981_v10 = vadd.f32 %v4980_v5, %v4916_v22  ;;  %5544 = vmatpush.msrb.mxu3 %v847_v6  ;;  %v779_v24 = vld [vmem:[%s7879_s5 + $0x1128] sm:$0xff] }
 0x666   : > { %v4853_v15 = vpop.f32.mrf.mxu0  ;;  %5416 = vmatpush.msrb.mxu1 %v779_v24 }
 0x667   : > { %v4854_v37 = vadd.f32 %v4853_v15, %v11357_v49  ;;  %v5045_v21 = vpop.f32.mrf.mxu3 }
 0x668   : > { %v11642_v38 = vadd.f32 %v5045_v21, %v4981_v10  ;;  %v4918_v46 = vpop.f32.mrf.mxu1  ;;  %v7378_v21 = vld [vmem:[%s13554_s0 + $0x960] sm:$0xff] }
 0x669   : > { %5112 = vmatmul.f32.gmra.mxu0 %v7370_v52  ;;  %5242 = vmatmul.f32.gmra.mxu2 %v7371_v34  ;;  %v4919_v49 = vadd.f32 %v4918_v46, %v4854_v37  ;;  %v7379_v46 = vld [vmem:[%s13554_s0 + $0x970] sm:$0xff]  ;;  %v813_v52 = vld [vmem:[%s7879_s5 + $0x1238] sm:$0xff]  ;;  %v7380_v34 = vld [vmem:[%s13554_s0 + $0x968] sm:$0xff] }
 0x66a   : > { %5480 = vmatpush.msrb.mxu2 %v813_v52  ;;  %v7389_v52 = vld [vmem:[%s13554_s0 + $0xbb8] sm:$0xff] }
 0x66b   : > { %5177 = vmatmul.f32.gmra.mxu1 %v7372_v50  ;;  %v749_v50 = vld [vmem:[%s7879_s5 + $0x1038] sm:$0xff] }
 0x66c   : > { %5307 = vmatmul.f32.gmra.mxu3 %v7373_v35  ;;  %v4983_v54 = vpop.f32.mrf.mxu2  ;;  %v845_v35 = vld [vmem:[%s7879_s5 + $0x1338] sm:$0xff]  ;;  %5350 = vmatpush.msrb.mxu0 %v749_v50 }
 0x66d   : > { %v4984_v57 = vadd.f32 %v4983_v54, %v4919_v49  ;;  %5545 = vmatpush.msrb.mxu3 %v845_v35  ;;  %v777_v50 = vld [vmem:[%s7879_s5 + $0x1118] sm:$0xff] }
 0x66e   : > { %v4856_v7 = vpop.f32.mrf.mxu0  ;;  %5417 = vmatpush.msrb.mxu1 %v777_v50 }
 0x66f   : > { %v4857_v3 = vadd.f32 %v4856_v7, %v11376_v18  ;;  %v5048_v43 = vpop.f32.mrf.mxu3 }
 0x670   : > { %v11661_v8 = vadd.f32 %v5048_v43, %v4984_v57  ;;  %v4921_v51 = vpop.f32.mrf.mxu1  ;;  %v7382_v43 = vld [vmem:[%s13554_s0 + $0xa80] sm:$0xff] }
 0x671   : > { %5115 = vmatmul.f32.gmra.mxu0 %v7374_v2  ;;  %5245 = vmatmul.f32.gmra.mxu2 %v7375_v17  ;;  %v4922_v18 = vadd.f32 %v4921_v51, %v4857_v3  ;;  %v7383_v51 = vld [vmem:[%s13554_s0 + $0xa90] sm:$0xff]  ;;  %v811_v2 = vld [vmem:[%s7879_s5 + $0x1228] sm:$0xff] }
 0x672   : > { %5481 = vmatpush.msrb.mxu2 %v811_v2  ;;  %v7384_v17 = vld [vmem:[%s13554_s0 + $0xa88] sm:$0xff]  ;;  %v7393_v2 = vld [vmem:[%s13554_s0 + $0xcd8] sm:$0xff] }
 0x673   : > { %5180 = vmatmul.f32.gmra.mxu1 %v7376_v9  ;;  %v747_v9 = vld [vmem:[%s7879_s5 + $0x1028] sm:$0xff] }
 0x674   : > { %5310 = vmatmul.f32.gmra.mxu3 %v7377_v0  ;;  %v4986_v22 = vpop.f32.mrf.mxu2  ;;  %v843_v0 = vld [vmem:[%s7879_s5 + $0x1328] sm:$0xff]  ;;  %5351 = vmatpush.msrb.mxu0 %v747_v9 }
 0x675   : > { %v4987_v5 = vadd.f32 %v4986_v22, %v4922_v18  ;;  %5546 = vmatpush.msrb.mxu3 %v843_v0  ;;  %v775_v9 = vld [vmem:[%s7879_s5 + $0x1108] sm:$0xff] }
 0x676   : > { %v4859_v36 = vpop.f32.mrf.mxu0  ;;  %5418 = vmatpush.msrb.mxu1 %v775_v9 }
 0x677   : > { %v4860_v10 = vadd.f32 %v4859_v36, %v11395_v42  ;;  %v5051_v19 = vpop.f32.mrf.mxu3 }
 0x678   : > { %v11680_v15 = vadd.f32 %v5051_v19, %v4987_v5  ;;  %v4924_v37 = vpop.f32.mrf.mxu1  ;;  %v7386_v19 = vld [vmem:[%s13554_s0 + $0xba0] sm:$0xff] }
 0x679   : > { %5118 = vmatmul.f32.gmra.mxu0 %v7378_v21  ;;  %5248 = vmatmul.f32.gmra.mxu2 %v7379_v46  ;;  %v4925_v42 = vadd.f32 %v4924_v37, %v4860_v10  ;;  %v7387_v37 = vld [vmem:[%s13554_s0 + $0xbb0] sm:$0xff]  ;;  %v809_v21 = vld [vmem:[%s7879_s5 + $0x1218] sm:$0xff]  ;;  %v7388_v46 = vld [vmem:[%s13554_s0 + $0xba8] sm:$0xff] }
 0x67a   : > { %5482 = vmatpush.msrb.mxu2 %v809_v21  ;;  %v7397_v21 = vld [vmem:[%s13554_s0 + $0xdf8] sm:$0xff] }
 0x67b   : > { %5183 = vmatmul.f32.gmra.mxu1 %v7380_v34  ;;  %v745_v34 = vld [vmem:[%s7879_s5 + $0x1018] sm:$0xff] }
 0x67c   : > { %5313 = vmatmul.f32.gmra.mxu3 %v7381_v28  ;;  %v4989_v49 = vpop.f32.mrf.mxu2  ;;  %v841_v28 = vld [vmem:[%s7879_s5 + $0x1318] sm:$0xff]  ;;  %5352 = vmatpush.msrb.mxu0 %v745_v34 }
 0x67d   : > { %v4990_v54 = vadd.f32 %v4989_v49, %v4925_v42  ;;  %5547 = vmatpush.msrb.mxu3 %v841_v28  ;;  %v933_v34 = vld [vmem:[%s7879_s5 + $0x15f8] sm:$0xff] }
 0x67e   : > { %v4862_v1 = vpop.f32.mrf.mxu0  ;;  %5663 = vmatpush.msra.mxu1 %v933_v34 }
 0x67f   : > { %v4863_v57 = vadd.f32 %v4862_v1, %v11414_v53  ;;  %v5054_v20 = vpop.f32.mrf.mxu3 }
 0x680   : > { %v11699_v7 = vadd.f32 %v5054_v20, %v4990_v54  ;;  %v4927_v3 = vpop.f32.mrf.mxu1  ;;  %v7390_v20 = vld [vmem:[%s13554_s0 + $0xcc0] sm:$0xff] }
 0x681   : > { %5121 = vmatmul.f32.gmra.mxu0 %v7382_v43  ;;  %5251 = vmatmul.f32.gmra.mxu2 %v7383_v51  ;;  %v4928_v53 = vadd.f32 %v4927_v3, %v4863_v57  ;;  %v7391_v3 = vld [vmem:[%s13554_s0 + $0xcd0] sm:$0xff]  ;;  %v807_v43 = vld [vmem:[%s7879_s5 + $0x1208] sm:$0xff] }
 0x682   : > { %5483 = vmatpush.msrb.mxu2 %v807_v43  ;;  %v7392_v51 = vld [vmem:[%s13554_s0 + $0xcc8] sm:$0xff]  ;;  %v7401_v43 = vld [vmem:[%s13554_s0 + $0xf18] sm:$0xff] }
 0x683   : > { %5186 = vmatmul.f32.gmra.mxu1 %v7384_v17  ;;  %v743_v17 = vld [vmem:[%s7879_s5 + $0x1008] sm:$0xff] }
 0x684   : > { %5316 = vmatmul.f32.gmra.mxu3 %v7385_v12  ;;  %v4992_v18 = vpop.f32.mrf.mxu2  ;;  %v839_v12 = vld [vmem:[%s7879_s5 + $0x1308] sm:$0xff]  ;;  %5353 = vmatpush.msrb.mxu0 %v743_v17 }
 0x685   : > { %v4993_v22 = vadd.f32 %v4992_v18, %v4928_v53  ;;  %5548 = vmatpush.msrb.mxu3 %v839_v12  ;;  %v931_v17 = vld [vmem:[%s7879_s5 + $0x15e8] sm:$0xff] }
 0x686   : > { %v4865_v6 = vpop.f32.mrf.mxu0  ;;  %5664 = vmatpush.msra.mxu1 %v931_v17 }
 0x687   : > { %v4866_v5 = vadd.f32 %v4865_v6, %v11433_v41  ;;  %v5057_v62 = vpop.f32.mrf.mxu3 }
 0x688   : > { %v11718_v36 = vadd.f32 %v5057_v62, %v4993_v22  ;;  %v4930_v10 = vpop.f32.mrf.mxu1  ;;  %v7394_v62 = vld [vmem:[%s13554_s0 + $0xde0] sm:$0xff] }
 0x689   : > { %5124 = vmatmul.f32.gmra.mxu0 %v7386_v19  ;;  %5254 = vmatmul.f32.gmra.mxu2 %v7387_v37  ;;  %v4931_v41 = vadd.f32 %v4930_v10, %v4866_v5  ;;  %v7395_v10 = vld [vmem:[%s13554_s0 + $0xdf0] sm:$0xff]  ;;  %v965_v19 = vld [vmem:[%s7879_s5 + $0x16f8] sm:$0xff]  ;;  %v7396_v37 = vld [vmem:[%s13554_s0 + $0xde8] sm:$0xff] }
 0x68a   : > { %5728 = vmatpush.msra.mxu2 %v965_v19  ;;  %v7405_v19 = vld [vmem:[%s13554_s0 + $0x1038] sm:$0xff] }
 0x68b   : > { %5189 = vmatmul.f32.gmra.mxu1 %v7388_v46  ;;  %v901_v46 = vld [vmem:[%s7879_s5 + $0x14f8] sm:$0xff] }
 0x68c   : > { %5319 = vmatmul.f32.gmra.mxu3 %v7389_v52  ;;  %v4995_v42 = vpop.f32.mrf.mxu2  ;;  %v997_v52 = vld [vmem:[%s7879_s5 + $0x17f8] sm:$0xff]  ;;  %5598 = vmatpush.msra.mxu0 %v901_v46 }
 0x68d   : > { %v4996_v49 = vadd.f32 %v4995_v42, %v4931_v41  ;;  %5793 = vmatpush.msra.mxu3 %v997_v52  ;;  %v929_v46 = vld [vmem:[%s7879_s5 + $0x15d8] sm:$0xff] }
 0x68e   : > { %v4868_v35 = vpop.f32.mrf.mxu0  ;;  %5665 = vmatpush.msra.mxu1 %v929_v46 }
 0x68f   : > { %v4869_v54 = vadd.f32 %v4868_v35, %v11452_v4  ;;  %v5060_v26 = vpop.f32.mrf.mxu3 }
 0x690   : > { %v11737_v1 = vadd.f32 %v5060_v26, %v4996_v49  ;;  %v4933_v57 = vpop.f32.mrf.mxu1  ;;  %v7398_v26 = vld [vmem:[%s13554_s0 + $0xf00] sm:$0xff] }
 0x691   : > { %5127 = vmatmul.f32.gmra.mxu0 %v7390_v20  ;;  %5257 = vmatmul.f32.gmra.mxu2 %v7391_v3  ;;  %v4934_v4 = vadd.f32 %v4933_v57, %v4869_v54  ;;  %v7399_v57 = vld [vmem:[%s13554_s0 + $0xf10] sm:$0xff]  ;;  %v963_v20 = vld [vmem:[%s7879_s5 + $0x16e8] sm:$0xff] }
 0x692   : > { %5729 = vmatpush.msra.mxu2 %v963_v20  ;;  %v7400_v3 = vld [vmem:[%s13554_s0 + $0xf08] sm:$0xff]  ;;  %v7409_v20 = vld [vmem:[%s13554_s0 + $0x1158] sm:$0xff] }
 0x693   : > { %5192 = vmatmul.f32.gmra.mxu1 %v7392_v51  ;;  %v899_v51 = vld [vmem:[%s7879_s5 + $0x14e8] sm:$0xff] }
 0x694   : > { %5322 = vmatmul.f32.gmra.mxu3 %v7393_v2  ;;  %v4998_v53 = vpop.f32.mrf.mxu2  ;;  %v995_v2 = vld [vmem:[%s7879_s5 + $0x17e8] sm:$0xff]  ;;  %5599 = vmatpush.msra.mxu0 %v899_v51 }
 0x695   : > { %v4999_v18 = vadd.f32 %v4998_v53, %v4934_v4  ;;  %5794 = vmatpush.msra.mxu3 %v995_v2  ;;  %v927_v51 = vld [vmem:[%s7879_s5 + $0x15c8] sm:$0xff] }
 0x696   : > { %v4871_v0 = vpop.f32.mrf.mxu0  ;;  %5666 = vmatpush.msra.mxu1 %v927_v51 }
 0x697   : > { %v4872_v22 = vadd.f32 %v4871_v0, %v11471_v14  ;;  %v5063_v24 = vpop.f32.mrf.mxu3 }
 0x698   : > { %v11756_v6 = vadd.f32 %v5063_v24, %v4999_v18  ;;  %v4936_v5 = vpop.f32.mrf.mxu1  ;;  %v7402_v24 = vld [vmem:[%s13554_s0 + $0x1020] sm:$0xff] }
 0x699   : > { %5130 = vmatmul.f32.gmra.mxu0 %v7394_v62  ;;  %5260 = vmatmul.f32.gmra.mxu2 %v7395_v10  ;;  %v4937_v14 = vadd.f32 %v4936_v5, %v4872_v22  ;;  %v7403_v5 = vld [vmem:[%s13554_s0 + $0x1030] sm:$0xff]  ;;  %v961_v62 = vld [vmem:[%s7879_s5 + $0x16d8] sm:$0xff]  ;;  %v7404_v10 = vld [vmem:[%s13554_s0 + $0x1028] sm:$0xff] }
 0x69a   : > { %5730 = vmatpush.msra.mxu2 %v961_v62  ;;  %v7413_v62 = vld [vmem:[%s13554_s0 + $0x98] sm:$0xff] }
 0x69b   : > { %5195 = vmatmul.f32.gmra.mxu1 %v7396_v37  ;;  %v897_v37 = vld [vmem:[%s7879_s5 + $0x14d8] sm:$0xff] }
 0x69c   : > { %5325 = vmatmul.f32.gmra.mxu3 %v7397_v21  ;;  %v5001_v41 = vpop.f32.mrf.mxu2  ;;  %v993_v21 = vld [vmem:[%s7879_s5 + $0x17d8] sm:$0xff]  ;;  %5600 = vmatpush.msra.mxu0 %v897_v37 }
 0x69d   : > { %v5002_v42 = vadd.f32 %v5001_v41, %v4937_v14  ;;  %5795 = vmatpush.msra.mxu3 %v993_v21  ;;  %v925_v37 = vld [vmem:[%s7879_s5 + $0x15b8] sm:$0xff] }
 0x69e   : > { %v4874_v28 = vpop.f32.mrf.mxu0  ;;  %5667 = vmatpush.msra.mxu1 %v925_v37 }
 0x69f   : > { %v4875_v49 = vadd.f32 %v4874_v28, %v11490_v39  ;;  %v5066_v50 = vpop.f32.mrf.mxu3 }
 0x6a0   : > { %v11775_v35 = vadd.f32 %v5066_v50, %v5002_v42  ;;  %v4939_v54 = vpop.f32.mrf.mxu1  ;;  %v7406_v50 = vld [vmem:[%s13554_s0 + $0x1140] sm:$0xff] }
 0x6a1   : > { %5133 = vmatmul.f32.gmra.mxu0 %v7398_v26  ;;  %5263 = vmatmul.f32.gmra.mxu2 %v7399_v57  ;;  %v4940_v39 = vadd.f32 %v4939_v54, %v4875_v49  ;;  %v7407_v54 = vld [vmem:[%s13554_s0 + $0x1150] sm:$0xff]  ;;  %v959_v26 = vld [vmem:[%s7879_s5 + $0x16c8] sm:$0xff] }
 0x6a2   : > { %5731 = vmatpush.msra.mxu2 %v959_v26  ;;  %v7408_v57 = vld [vmem:[%s13554_s0 + $0x1148] sm:$0xff]  ;;  %v7417_v26 = vld [vmem:[%s13554_s0 + $0x1b8] sm:$0xff] }
 0x6a3   : > { %5198 = vmatmul.f32.gmra.mxu1 %v7400_v3  ;;  %v895_v3 = vld [vmem:[%s7879_s5 + $0x14c8] sm:$0xff] }
 0x6a4   : > { %5328 = vmatmul.f32.gmra.mxu3 %v7401_v43  ;;  %v5004_v4 = vpop.f32.mrf.mxu2  ;;  %v991_v43 = vld [vmem:[%s7879_s5 + $0x17c8] sm:$0xff]  ;;  %5601 = vmatpush.msra.mxu0 %v895_v3 }
 0x6a5   : > { %v5005_v53 = vadd.f32 %v5004_v4, %v4940_v39  ;;  %5796 = vmatpush.msra.mxu3 %v991_v43  ;;  %v923_v3 = vld [vmem:[%s7879_s5 + $0x15a8] sm:$0xff] }
 0x6a6   : > { %v4877_v12 = vpop.f32.mrf.mxu0  ;;  %5668 = vmatpush.msra.mxu1 %v923_v3 }
 0x6a7   : > { %v4878_v18 = vadd.f32 %v4877_v12, %v11509_v27  ;;  %v5069_v9 = vpop.f32.mrf.mxu3 }
 0x6a8   : > { %v11794_v0 = vadd.f32 %v5069_v9, %v5005_v53  ;;  %v4942_v22 = vpop.f32.mrf.mxu1  ;;  %v7410_v9 = vld [vmem:[%s13554_s0 + $0x80] sm:$0xff] }
 0x6a9   : > { %5136 = vmatmul.f32.gmra.mxu0 %v7402_v24  ;;  %5266 = vmatmul.f32.gmra.mxu2 %v7403_v5  ;;  %v4943_v27 = vadd.f32 %v4942_v22, %v4878_v18  ;;  %v7411_v22 = vld [vmem:[%s13554_s0 + $0x90] sm:$0xff]  ;;  %v957_v24 = vld [vmem:[%s7879_s5 + $0x16b8] sm:$0xff] }
 0x6aa   : > { %5732 = vmatpush.msra.mxu2 %v957_v24  ;;  %v7421_v24 = vld [vmem:[%s13554_s0 + $0x2d8] sm:$0xff] }
 0x6ab   : > { %5201 = vmatmul.f32.gmra.mxu1 %v7404_v10  ;;  %v893_v10 = vld [vmem:[%s7879_s5 + $0x14b8] sm:$0xff] }
 0x6ac   : > { %5331 = vmatmul.f32.gmra.mxu3 %v7405_v19  ;;  %v5007_v14 = vpop.f32.mrf.mxu2  ;;  %v989_v19 = vld [vmem:[%s7879_s5 + $0x17b8] sm:$0xff]  ;;  %5602 = vmatpush.msra.mxu0 %v893_v10 }
 0x6ad   : > { %v5008_v41 = vadd.f32 %v5007_v14, %v4943_v27  ;;  %5797 = vmatpush.msra.mxu3 %v989_v19  ;;  %v921_v10 = vld [vmem:[%s7879_s5 + $0x1598] sm:$0xff] }
 0x6ae   : > { %v4880_v52 = vpop.f32.mrf.mxu0  ;;  %5669 = vmatpush.msra.mxu1 %v921_v10 }
 0x6af   : > { %v4881_v42 = vadd.f32 %v4880_v52, %v11528_v60  ;;  %v5072_v34 = vpop.f32.mrf.mxu3 }
 0x6b0   : > { %v11813_v28 = vadd.f32 %v5072_v34, %v5008_v41  ;;  %v4945_v49 = vpop.f32.mrf.mxu1  ;;  %v7414_v34 = vld [vmem:[%s13554_s0 + $0x1a0] sm:$0xff] }
 0x6b1   : > { %5139 = vmatmul.f32.gmra.mxu0 %v7406_v50  ;;  %5269 = vmatmul.f32.gmra.mxu2 %v7407_v54  ;;  %v4946_v60 = vadd.f32 %v4945_v49, %v4881_v42  ;;  %v7415_v49 = vld [vmem:[%s13554_s0 + $0x1b0] sm:$0xff]  ;;  %v955_v50 = vld [vmem:[%s7879_s5 + $0x16a8] sm:$0xff] }
 0x6b2   : > { %5733 = vmatpush.msra.mxu2 %v955_v50  ;;  %v7416_v54 = vld [vmem:[%s13554_s0 + $0x1a8] sm:$0xff]  ;;  %v7425_v50 = vld [vmem:[%s13554_s0 + $0x3f8] sm:$0xff] }
 0x6b3   : > { %5204 = vmatmul.f32.gmra.mxu1 %v7408_v57  ;;  %v891_v57 = vld [vmem:[%s7879_s5 + $0x14a8] sm:$0xff] }
 0x6b4   : > { %5334 = vmatmul.f32.gmra.mxu3 %v7409_v20  ;;  %v5010_v39 = vpop.f32.mrf.mxu2  ;;  %v987_v20 = vld [vmem:[%s7879_s5 + $0x17a8] sm:$0xff]  ;;  %5603 = vmatpush.msra.mxu0 %v891_v57 }
 0x6b5   : > { %v5011_v4 = vadd.f32 %v5010_v39, %v4946_v60  ;;  %5798 = vmatpush.msra.mxu3 %v987_v20  ;;  %v919_v57 = vld [vmem:[%s7879_s5 + $0x1588] sm:$0xff] }
 0x6b6   : > { %v5095_v2 = vpop.f32.mrf.mxu0  ;;  %5670 = vmatpush.msra.mxu1 %v919_v57 }
 0x6b7   : > { %v5075_v53 = vpop.f32.mrf.mxu3  ;;  %v5096_v17 = vadd.f32 %v5095_v2, %v11547_v23  ;;  %v7412_v23 = vld [vmem:[%s13554_s0 + $0x88] sm:$0xff] }
 0x6b8   : > { %v11832_v12 = vadd.f32 %v5075_v53, %v5011_v4  ;;  %v5160_v18 = vpop.f32.mrf.mxu1 }
 0x6b9   : > { %5354 = vmatmul.f32.vlgmr.msrb.gmra.mxu0 %v7410_v9  ;;  %5484 = vmatmul.f32.vlgmr.msrb.gmra.mxu2 %v7411_v22  ;;  %v5161_v5 = vadd.f32 %v5160_v18, %v5096_v17  ;;  %v7418_v17 = vld [vmem:[%s13554_s0 + $0x2c0] sm:$0xff]  ;;  %v7419_v18 = vld [vmem:[%s13554_s0 + $0x2d0] sm:$0xff]  ;;  %v953_v9 = vld [vmem:[%s7879_s5 + $0x1698] sm:$0xff] }
 0x6ba   : > { %5734 = vmatpush.msra.mxu2 %v953_v9  ;;  %v7420_v22 = vld [vmem:[%s13554_s0 + $0x2c8] sm:$0xff]  ;;  %v7429_v9 = vld [vmem:[%s13554_s0 + $0x518] sm:$0xff] }
 0x6bb   : > { %5419 = vmatmul.f32.vlgmr.msrb.gmra.mxu1 %v7412_v23  ;;  %v889_v23 = vld [vmem:[%s7879_s5 + $0x1498] sm:$0xff] }
 0x6bc   : > { %5549 = vmatmul.f32.vlgmr.msrb.gmra.mxu3 %v7413_v62  ;;  %v5225_v27 = vpop.f32.mrf.mxu2  ;;  %v985_v62 = vld [vmem:[%s7879_s5 + $0x1798] sm:$0xff]  ;;  %5604 = vmatpush.msra.mxu0 %v889_v23 }
 0x6bd   : > { %v5226_v14 = vadd.f32 %v5225_v27, %v5161_v5  ;;  %5799 = vmatpush.msra.mxu3 %v985_v62  ;;  %v917_v23 = vld [vmem:[%s7879_s5 + $0x1578] sm:$0xff] }
 0x6be   : > { %v5098_v21 = vpop.f32.mrf.mxu0  ;;  %5671 = vmatpush.msra.mxu1 %v917_v23 }
 0x6bf   : > { %v5099_v41 = vadd.f32 %v5098_v21, %v11566_v31  ;;  %v5290_v46 = vpop.f32.mrf.mxu3 }
 0x6c0   : > { %v11851_v52 = vadd.f32 %v5290_v46, %v5226_v14  ;;  %v5163_v42 = vpop.f32.mrf.mxu1  ;;  %v7422_v46 = vld [vmem:[%s13554_s0 + $0x3e0] sm:$0xff] }
 0x6c1   : > { %5357 = vmatmul.f32.gmra.mxu0 %v7414_v34  ;;  %5487 = vmatmul.f32.gmra.mxu2 %v7415_v49  ;;  %v5164_v31 = vadd.f32 %v5163_v42, %v5099_v41  ;;  %v7423_v42 = vld [vmem:[%s13554_s0 + $0x3f0] sm:$0xff]  ;;  %v951_v34 = vld [vmem:[%s7879_s5 + $0x1688] sm:$0xff] }
 0x6c2   : > { %5735 = vmatpush.msra.mxu2 %v951_v34  ;;  %v7424_v49 = vld [vmem:[%s13554_s0 + $0x3e8] sm:$0xff]  ;;  %v7433_v34 = vld [vmem:[%s13554_s0 + $0x638] sm:$0xff] }
 0x6c3   : > { %5422 = vmatmul.f32.gmra.mxu1 %v7416_v54  ;;  %v887_v54 = vld [vmem:[%s7879_s5 + $0x1488] sm:$0xff] }
 0x6c4   : > { %5552 = vmatmul.f32.gmra.mxu3 %v7417_v26  ;;  %v5228_v60 = vpop.f32.mrf.mxu2  ;;  %v983_v26 = vld [vmem:[%s7879_s5 + $0x1788] sm:$0xff]  ;;  %5605 = vmatpush.msra.mxu0 %v887_v54 }
 0x6c5   : > { %v5229_v39 = vadd.f32 %v5228_v60, %v5164_v31  ;;  %5800 = vmatpush.msra.mxu3 %v983_v26  ;;  %v915_v54 = vld [vmem:[%s7879_s5 + $0x1568] sm:$0xff] }
 0x6c6   : > { %v5101_v43 = vpop.f32.mrf.mxu0  ;;  %5672 = vmatpush.msra.mxu1 %v915_v54 }
 0x6c7   : > { %v5102_v4 = vadd.f32 %v5101_v43, %v11585_v58  ;;  %v5293_v51 = vpop.f32.mrf.mxu3 }
 0x6c8   : > { %v11870_v2 = vadd.f32 %v5293_v51, %v5229_v39  ;;  %v5166_v53 = vpop.f32.mrf.mxu1  ;;  %v7426_v51 = vld [vmem:[%s13554_s0 + $0x500] sm:$0xff] }
 0x6c9   : > { %5360 = vmatmul.f32.gmra.mxu0 %v7418_v17  ;;  %5490 = vmatmul.f32.gmra.mxu2 %v7419_v18  ;;  %v5167_v58 = vadd.f32 %v5166_v53, %v5102_v4  ;;  %v7427_v53 = vld [vmem:[%s13554_s0 + $0x510] sm:$0xff]  ;;  %v949_v17 = vld [vmem:[%s7879_s5 + $0x1678] sm:$0xff]  ;;  %v7428_v18 = vld [vmem:[%s13554_s0 + $0x508] sm:$0xff] }
 0x6ca   : > { %5736 = vmatpush.msra.mxu2 %v949_v17  ;;  %v7437_v17 = vld [vmem:[%s13554_s0 + $0x758] sm:$0xff] }
 0x6cb   : > { %5425 = vmatmul.f32.gmra.mxu1 %v7420_v22  ;;  %v885_v22 = vld [vmem:[%s7879_s5 + $0x1478] sm:$0xff] }
 0x6cc   : > { %5555 = vmatmul.f32.gmra.mxu3 %v7421_v24  ;;  %v5231_v5 = vpop.f32.mrf.mxu2  ;;  %v981_v24 = vld [vmem:[%s7879_s5 + $0x1778] sm:$0xff]  ;;  %5606 = vmatpush.msra.mxu0 %v885_v22 }
 0x6cd   : > { %v5232_v27 = vadd.f32 %v5231_v5, %v5167_v58  ;;  %5801 = vmatpush.msra.mxu3 %v981_v24  ;;  %v913_v22 = vld [vmem:[%s7879_s5 + $0x1558] sm:$0xff] }
 0x6ce   : > { %v5104_v19 = vpop.f32.mrf.mxu0  ;;  %5673 = vmatpush.msra.mxu1 %v913_v22 }
 0x6cf   : > { %v5105_v14 = vadd.f32 %v5104_v19, %v11604_v44  ;;  %v5296_v37 = vpop.f32.mrf.mxu3 }
 0x6d0   : > { %v11889_v21 = vadd.f32 %v5296_v37, %v5232_v27  ;;  %v5169_v41 = vpop.f32.mrf.mxu1  ;;  %v7430_v37 = vld [vmem:[%s13554_s0 + $0x620] sm:$0xff] }
 0x6d1   : > { %5363 = vmatmul.f32.gmra.mxu0 %v7422_v46  ;;  %5493 = vmatmul.f32.gmra.mxu2 %v7423_v42  ;;  %v5170_v44 = vadd.f32 %v5169_v41, %v5105_v14  ;;  %v7431_v41 = vld [vmem:[%s13554_s0 + $0x630] sm:$0xff]  ;;  %v947_v46 = vld [vmem:[%s7879_s5 + $0x1668] sm:$0xff] }
 0x6d2   : > { %5737 = vmatpush.msra.mxu2 %v947_v46  ;;  %v7432_v42 = vld [vmem:[%s13554_s0 + $0x628] sm:$0xff]  ;;  %v7441_v46 = vld [vmem:[%s13554_s0 + $0x878] sm:$0xff] }
 0x6d3   : > { %5428 = vmatmul.f32.gmra.mxu1 %v7424_v49  ;;  %v883_v49 = vld [vmem:[%s7879_s5 + $0x1468] sm:$0xff] }
 0x6d4   : > { %5558 = vmatmul.f32.gmra.mxu3 %v7425_v50  ;;  %v5234_v31 = vpop.f32.mrf.mxu2  ;;  %v979_v50 = vld [vmem:[%s7879_s5 + $0x1768] sm:$0xff]  ;;  %5607 = vmatpush.msra.mxu0 %v883_v49 }
 0x6d5   : > { %v5235_v60 = vadd.f32 %v5234_v31, %v5170_v44  ;;  %5802 = vmatpush.msra.mxu3 %v979_v50  ;;  %v911_v49 = vld [vmem:[%s7879_s5 + $0x1548] sm:$0xff] }
 0x6d6   : > { %v5107_v20 = vpop.f32.mrf.mxu0  ;;  %5674 = vmatpush.msra.mxu1 %v911_v49 }
 0x6d7   : > { %v5108_v39 = vadd.f32 %v5107_v20, %v11623_v55  ;;  %v5299_v3 = vpop.f32.mrf.mxu3 }
 0x6d8   : > { %v11908_v43 = vadd.f32 %v5299_v3, %v5235_v60  ;;  %v5172_v4 = vpop.f32.mrf.mxu1  ;;  %v7434_v3 = vld [vmem:[%s13554_s0 + $0x740] sm:$0xff] }
 0x6d9   : > { %5366 = vmatmul.f32.gmra.mxu0 %v7426_v51  ;;  %5496 = vmatmul.f32.gmra.mxu2 %v7427_v53  ;;  %v5173_v55 = vadd.f32 %v5172_v4, %v5108_v39  ;;  %v7435_v4 = vld [vmem:[%s13554_s0 + $0x750] sm:$0xff]  ;;  %v945_v51 = vld [vmem:[%s7879_s5 + $0x1658] sm:$0xff]  ;;  %v7436_v53 = vld [vmem:[%s13554_s0 + $0x748] sm:$0xff] }
 0x6da   : > { %5738 = vmatpush.msra.mxu2 %v945_v51  ;;  %v7445_v51 = vld [vmem:[%s13554_s0 + $0x998] sm:$0xff] }
 0x6db   : > { %5431 = vmatmul.f32.gmra.mxu1 %v7428_v18  ;;  %v881_v18 = vld [vmem:[%s7879_s5 + $0x1458] sm:$0xff] }
 0x6dc   : > { %5561 = vmatmul.f32.gmra.mxu3 %v7429_v9  ;;  %v5237_v58 = vpop.f32.mrf.mxu2  ;;  %v977_v9 = vld [vmem:[%s7879_s5 + $0x1758] sm:$0xff]  ;;  %5608 = vmatpush.msra.mxu0 %v881_v18 }
 0x6dd   : > { %v5238_v5 = vadd.f32 %v5237_v58, %v5173_v55  ;;  %5803 = vmatpush.msra.mxu3 %v977_v9  ;;  %v909_v18 = vld [vmem:[%s7879_s5 + $0x1538] sm:$0xff] }
 0x6de   : > { %v5110_v62 = vpop.f32.mrf.mxu0  ;;  %5675 = vmatpush.msra.mxu1 %v909_v18 }
 0x6df   : > { %v5111_v27 = vadd.f32 %v5110_v62, %v11642_v38  ;;  %v5302_v10 = vpop.f32.mrf.mxu3 }
 0x6e0   : > { %v11927_v19 = vadd.f32 %v5302_v10, %v5238_v5  ;;  %v5175_v14 = vpop.f32.mrf.mxu1  ;;  %v7438_v10 = vld [vmem:[%s13554_s0 + $0x860] sm:$0xff] }
 0x6e1   : > { %5369 = vmatmul.f32.gmra.mxu0 %v7430_v37  ;;  %5499 = vmatmul.f32.gmra.mxu2 %v7431_v41  ;;  %v5176_v38 = vadd.f32 %v5175_v14, %v5111_v27  ;;  %v7439_v14 = vld [vmem:[%s13554_s0 + $0x870] sm:$0xff]  ;;  %v943_v37 = vld [vmem:[%s7879_s5 + $0x1648] sm:$0xff] }
 0x6e2   : > { %5739 = vmatpush.msra.mxu2 %v943_v37  ;;  %v7440_v41 = vld [vmem:[%s13554_s0 + $0x868] sm:$0xff]  ;;  %v7449_v37 = vld [vmem:[%s13554_s0 + $0xab8] sm:$0xff] }
 0x6e3   : > { %5434 = vmatmul.f32.gmra.mxu1 %v7432_v42  ;;  %v879_v42 = vld [vmem:[%s7879_s5 + $0x1448] sm:$0xff] }
 0x6e4   : > { %5564 = vmatmul.f32.gmra.mxu3 %v7433_v34  ;;  %v5240_v44 = vpop.f32.mrf.mxu2  ;;  %v975_v34 = vld [vmem:[%s7879_s5 + $0x1748] sm:$0xff]  ;;  %5609 = vmatpush.msra.mxu0 %v879_v42 }
 0x6e5   : > { %v5241_v31 = vadd.f32 %v5240_v44, %v5176_v38  ;;  %5804 = vmatpush.msra.mxu3 %v975_v34  ;;  %v907_v42 = vld [vmem:[%s7879_s5 + $0x1528] sm:$0xff] }
 0x6e6   : > { %v5113_v26 = vpop.f32.mrf.mxu0  ;;  %5676 = vmatpush.msra.mxu1 %v907_v42 }
 0x6e7   : > { %v5114_v60 = vadd.f32 %v5113_v26, %v11661_v8  ;;  %v5305_v57 = vpop.f32.mrf.mxu3 }
 0x6e8   : > { %v11946_v20 = vadd.f32 %v5305_v57, %v5241_v31  ;;  %v5178_v39 = vpop.f32.mrf.mxu1  ;;  %v7442_v57 = vld [vmem:[%s13554_s0 + $0x980] sm:$0xff] }
 0x6e9   : > { %5372 = vmatmul.f32.gmra.mxu0 %v7434_v3  ;;  %5502 = vmatmul.f32.gmra.mxu2 %v7435_v4  ;;  %v5179_v8 = vadd.f32 %v5178_v39, %v5114_v60  ;;  %v7443_v39 = vld [vmem:[%s13554_s0 + $0x990] sm:$0xff]  ;;  %v941_v3 = vld [vmem:[%s7879_s5 + $0x1638] sm:$0xff]  ;;  %v7444_v4 = vld [vmem:[%s13554_s0 + $0x988] sm:$0xff] }
 0x6ea   : > { %5740 = vmatpush.msra.mxu2 %v941_v3  ;;  %v7453_v3 = vld [vmem:[%s13554_s0 + $0xbd8] sm:$0xff] }
 0x6eb   : > { %5437 = vmatmul.f32.gmra.mxu1 %v7436_v53  ;;  %v877_v53 = vld [vmem:[%s7879_s5 + $0x1438] sm:$0xff] }
 0x6ec   : > { %5567 = vmatmul.f32.gmra.mxu3 %v7437_v17  ;;  %v5243_v55 = vpop.f32.mrf.mxu2  ;;  %v973_v17 = vld [vmem:[%s7879_s5 + $0x1738] sm:$0xff]  ;;  %5610 = vmatpush.msra.mxu0 %v877_v53 }
 0x6ed   : > { %v5244_v58 = vadd.f32 %v5243_v55, %v5179_v8  ;;  %5805 = vmatpush.msra.mxu3 %v973_v17  ;;  %v905_v53 = vld [vmem:[%s7879_s5 + $0x1518] sm:$0xff] }
 0x6ee   : > { %v5116_v24 = vpop.f32.mrf.mxu0  ;;  %5677 = vmatpush.msra.mxu1 %v905_v53 }
 0x6ef   : > { %v5117_v5 = vadd.f32 %v5116_v24, %v11680_v15  ;;  %v5308_v23 = vpop.f32.mrf.mxu3 }
 0x6f0   : > { %v11965_v62 = vadd.f32 %v5308_v23, %v5244_v58  ;;  %v5181_v27 = vpop.f32.mrf.mxu1  ;;  %v7446_v23 = vld [vmem:[%s13554_s0 + $0xaa0] sm:$0xff] }
 0x6f1   : > { %5375 = vmatmul.f32.gmra.mxu0 %v7438_v10  ;;  %5505 = vmatmul.f32.gmra.mxu2 %v7439_v14  ;;  %v5182_v15 = vadd.f32 %v5181_v27, %v5117_v5  ;;  %v7447_v27 = vld [vmem:[%s13554_s0 + $0xab0] sm:$0xff]  ;;  %v939_v10 = vld [vmem:[%s7879_s5 + $0x1628] sm:$0xff] }
 0x6f2   : > { %5741 = vmatpush.msra.mxu2 %v939_v10  ;;  %v7448_v14 = vld [vmem:[%s13554_s0 + $0xaa8] sm:$0xff]  ;;  %v7457_v10 = vld [vmem:[%s13554_s0 + $0xcf8] sm:$0xff] }
 0x6f3   : > { %5440 = vmatmul.f32.gmra.mxu1 %v7440_v41  ;;  %v875_v41 = vld [vmem:[%s7879_s5 + $0x1428] sm:$0xff] }
 0x6f4   : > { %5570 = vmatmul.f32.gmra.mxu3 %v7441_v46  ;;  %v5246_v38 = vpop.f32.mrf.mxu2  ;;  %v971_v46 = vld [vmem:[%s7879_s5 + $0x1728] sm:$0xff]  ;;  %5611 = vmatpush.msra.mxu0 %v875_v41 }
 0x6f5   : > { %v5247_v44 = vadd.f32 %v5246_v38, %v5182_v15  ;;  %5806 = vmatpush.msra.mxu3 %v971_v46  ;;  %v903_v41 = vld [vmem:[%s7879_s5 + $0x1508] sm:$0xff] }
 0x6f6   : > { %v5119_v50 = vpop.f32.mrf.mxu0  ;;  %5678 = vmatpush.msra.mxu1 %v903_v41 }
 0x6f7   : > { %v5120_v31 = vadd.f32 %v5119_v50, %v11699_v7  ;;  %v5311_v54 = vpop.f32.mrf.mxu3 }
 0x6f8   : > { %v11984_v26 = vadd.f32 %v5311_v54, %v5247_v44  ;;  %v5184_v60 = vpop.f32.mrf.mxu1  ;;  %v7450_v54 = vld [vmem:[%s13554_s0 + $0xbc0] sm:$0xff] }
 0x6f9   : > { %5378 = vmatmul.f32.gmra.mxu0 %v7442_v57  ;;  %5508 = vmatmul.f32.gmra.mxu2 %v7443_v39  ;;  %v5185_v7 = vadd.f32 %v5184_v60, %v5120_v31  ;;  %v7451_v60 = vld [vmem:[%s13554_s0 + $0xbd0] sm:$0xff]  ;;  %v937_v57 = vld [vmem:[%s7879_s5 + $0x1618] sm:$0xff]  ;;  %v7452_v39 = vld [vmem:[%s13554_s0 + $0xbc8] sm:$0xff] }
 0x6fa   : > { %5742 = vmatpush.msra.mxu2 %v937_v57  ;;  %v7461_v57 = vld [vmem:[%s13554_s0 + $0xe18] sm:$0xff] }
 0x6fb   : > { %5443 = vmatmul.f32.gmra.mxu1 %v7444_v4  ;;  %v873_v4 = vld [vmem:[%s7879_s5 + $0x1418] sm:$0xff] }
 0x6fc   : > { %5573 = vmatmul.f32.gmra.mxu3 %v7445_v51  ;;  %v5249_v8 = vpop.f32.mrf.mxu2  ;;  %v969_v51 = vld [vmem:[%s7879_s5 + $0x1718] sm:$0xff]  ;;  %5612 = vmatpush.msra.mxu0 %v873_v4 }
 0x6fd   : > { %v5250_v55 = vadd.f32 %v5249_v8, %v5185_v7  ;;  %5807 = vmatpush.msra.mxu3 %v969_v51  ;;  %v1061_v4 = vld [vmem:[%s7879_s5 + $0x19f8] sm:$0xff] }
 0x6fe   : > { %v5122_v9 = vpop.f32.mrf.mxu0  ;;  %5923 = vmatpush.msrb.mxu1 %v1061_v4 }
 0x6ff   : > { %v5123_v58 = vadd.f32 %v5122_v9, %v11718_v36  ;;  %v5314_v22 = vpop.f32.mrf.mxu3 }
 0x700   : > { %v12003_v24 = vadd.f32 %v5314_v22, %v5250_v55  ;;  %v5187_v5 = vpop.f32.mrf.mxu1  ;;  %v7454_v22 = vld [vmem:[%s13554_s0 + $0xce0] sm:$0xff] }
 0x701   : > { %5381 = vmatmul.f32.gmra.mxu0 %v7446_v23  ;;  %5511 = vmatmul.f32.gmra.mxu2 %v7447_v27  ;;  %v5188_v36 = vadd.f32 %v5187_v5, %v5123_v58  ;;  %v7455_v5 = vld [vmem:[%s13554_s0 + $0xcf0] sm:$0xff]  ;;  %v935_v23 = vld [vmem:[%s7879_s5 + $0x1608] sm:$0xff] }
 0x702   : > { %5743 = vmatpush.msra.mxu2 %v935_v23  ;;  %v7456_v27 = vld [vmem:[%s13554_s0 + $0xce8] sm:$0xff]  ;;  %v7465_v23 = vld [vmem:[%s13554_s0 + $0xf38] sm:$0xff] }
 0x703   : > { %5446 = vmatmul.f32.gmra.mxu1 %v7448_v14  ;;  %v871_v14 = vld [vmem:[%s7879_s5 + $0x1408] sm:$0xff] }
 0x704   : > { %5576 = vmatmul.f32.gmra.mxu3 %v7449_v37  ;;  %v5252_v15 = vpop.f32.mrf.mxu2  ;;  %v967_v37 = vld [vmem:[%s7879_s5 + $0x1708] sm:$0xff]  ;;  %5613 = vmatpush.msra.mxu0 %v871_v14 }
 0x705   : > { %v5253_v38 = vadd.f32 %v5252_v15, %v5188_v36  ;;  %5808 = vmatpush.msra.mxu3 %v967_v37  ;;  %v1059_v14 = vld [vmem:[%s7879_s5 + $0x19e8] sm:$0xff] }
 0x706   : > { %v5125_v34 = vpop.f32.mrf.mxu0  ;;  %5924 = vmatpush.msrb.mxu1 %v1059_v14 }
 0x707   : > { %v5126_v44 = vadd.f32 %v5125_v34, %v11737_v1  ;;  %v5317_v49 = vpop.f32.mrf.mxu3 }
 0x708   : > { %v12022_v50 = vadd.f32 %v5317_v49, %v5253_v38  ;;  %v5190_v31 = vpop.f32.mrf.mxu1  ;;  %v7458_v49 = vld [vmem:[%s13554_s0 + $0xe00] sm:$0xff] }
 0x709   : > { %5384 = vmatmul.f32.gmra.mxu0 %v7450_v54  ;;  %5514 = vmatmul.f32.gmra.mxu2 %v7451_v60  ;;  %v5191_v1 = vadd.f32 %v5190_v31, %v5126_v44  ;;  %v7459_v31 = vld [vmem:[%s13554_s0 + $0xe10] sm:$0xff]  ;;  %v1093_v54 = vld [vmem:[%s7879_s5 + $0x1af8] sm:$0xff]  ;;  %v7460_v60 = vld [vmem:[%s13554_s0 + $0xe08] sm:$0xff] }
 0x70a   : > { %5988 = vmatpush.msrb.mxu2 %v1093_v54  ;;  %v7469_v54 = vld [vmem:[%s13554_s0 + $0x1058] sm:$0xff] }
 0x70b   : > { %5449 = vmatmul.f32.gmra.mxu1 %v7452_v39  ;;  %v1029_v39 = vld [vmem:[%s7879_s5 + $0x18f8] sm:$0xff] }
 0x70c   : > { %5579 = vmatmul.f32.gmra.mxu3 %v7453_v3  ;;  %v5255_v7 = vpop.f32.mrf.mxu2  ;;  %v1125_v3 = vld [vmem:[%s7879_s5 + $0x1bf8] sm:$0xff]  ;;  %5858 = vmatpush.msrb.mxu0 %v1029_v39 }
 0x70d   : > { %v5256_v8 = vadd.f32 %v5255_v7, %v5191_v1  ;;  %6053 = vmatpush.msrb.mxu3 %v1125_v3  ;;  %v1057_v39 = vld [vmem:[%s7879_s5 + $0x19d8] sm:$0xff] }
 0x70e   : > { %v5128_v17 = vpop.f32.mrf.mxu0  ;;  %5925 = vmatpush.msrb.mxu1 %v1057_v39 }
 0x70f   : > { %v5129_v55 = vadd.f32 %v5128_v17, %v11756_v6  ;;  %v5320_v18 = vpop.f32.mrf.mxu3 }
 0x710   : > { %v12041_v9 = vadd.f32 %v5320_v18, %v5256_v8  ;;  %v5193_v58 = vpop.f32.mrf.mxu1  ;;  %v7462_v18 = vld [vmem:[%s13554_s0 + $0xf20] sm:$0xff] }
 0x711   : > { %5387 = vmatmul.f32.gmra.mxu0 %v7454_v22  ;;  %5517 = vmatmul.f32.gmra.mxu2 %v7455_v5  ;;  %v5194_v6 = vadd.f32 %v5193_v58, %v5129_v55  ;;  %v7463_v58 = vld [vmem:[%s13554_s0 + $0xf30] sm:$0xff]  ;;  %v1091_v22 = vld [vmem:[%s7879_s5 + $0x1ae8] sm:$0xff] }
 0x712   : > { %5989 = vmatpush.msrb.mxu2 %v1091_v22  ;;  %v7464_v5 = vld [vmem:[%s13554_s0 + $0xf28] sm:$0xff]  ;;  %v7473_v22 = vld [vmem:[%s13554_s0 + $0x1178] sm:$0xff] }
 0x713   : > { %5452 = vmatmul.f32.gmra.mxu1 %v7456_v27  ;;  %v1027_v27 = vld [vmem:[%s7879_s5 + $0x18e8] sm:$0xff] }
 0x714   : > { %5582 = vmatmul.f32.gmra.mxu3 %v7457_v10  ;;  %v5258_v36 = vpop.f32.mrf.mxu2  ;;  %v1123_v10 = vld [vmem:[%s7879_s5 + $0x1be8] sm:$0xff]  ;;  %5859 = vmatpush.msrb.mxu0 %v1027_v27 }
 0x715   : > { %v5259_v15 = vadd.f32 %v5258_v36, %v5194_v6  ;;  %6054 = vmatpush.msrb.mxu3 %v1123_v10  ;;  %v1055_v27 = vld [vmem:[%s7879_s5 + $0x19c8] sm:$0xff] }
 0x716   : > { %v5131_v46 = vpop.f32.mrf.mxu0  ;;  %5926 = vmatpush.msrb.mxu1 %v1055_v27 }
 0x717   : > { %v5132_v38 = vadd.f32 %v5131_v46, %v11775_v35  ;;  %v5323_v42 = vpop.f32.mrf.mxu3 }
 0x718   : > { %v12060_v34 = vadd.f32 %v5323_v42, %v5259_v15  ;;  %v5196_v44 = vpop.f32.mrf.mxu1  ;;  %v7466_v42 = vld [vmem:[%s13554_s0 + $0x1040] sm:$0xff] }
 0x719   : > { %5390 = vmatmul.f32.gmra.mxu0 %v7458_v49  ;;  %5520 = vmatmul.f32.gmra.mxu2 %v7459_v31  ;;  %v5197_v35 = vadd.f32 %v5196_v44, %v5132_v38  ;;  %v7467_v44 = vld [vmem:[%s13554_s0 + $0x1050] sm:$0xff]  ;;  %v1089_v49 = vld [vmem:[%s7879_s5 + $0x1ad8] sm:$0xff]  ;;  %v7468_v31 = vld [vmem:[%s13554_s0 + $0x1048] sm:$0xff] }
 0x71a   : > { %5990 = vmatpush.msrb.mxu2 %v1089_v49  ;;  %v7477_v49 = vld [vmem:[%s13554_s0 + $0xb8] sm:$0xff] }
 0x71b   : > { %5455 = vmatmul.f32.gmra.mxu1 %v7460_v60  ;;  %v1025_v60 = vld [vmem:[%s7879_s5 + $0x18d8] sm:$0xff] }
 0x71c   : > { %5585 = vmatmul.f32.gmra.mxu3 %v7461_v57  ;;  %v5261_v1 = vpop.f32.mrf.mxu2  ;;  %v1121_v57 = vld [vmem:[%s7879_s5 + $0x1bd8] sm:$0xff]  ;;  %5860 = vmatpush.msrb.mxu0 %v1025_v60 }
 0x71d   : > { %v5262_v7 = vadd.f32 %v5261_v1, %v5197_v35  ;;  %6055 = vmatpush.msrb.mxu3 %v1121_v57  ;;  %v1053_v60 = vld [vmem:[%s7879_s5 + $0x19b8] sm:$0xff] }
 0x71e   : > { %v5134_v51 = vpop.f32.mrf.mxu0  ;;  %5927 = vmatpush.msrb.mxu1 %v1053_v60 }
 0x71f   : > { %v5135_v8 = vadd.f32 %v5134_v51, %v11794_v0  ;;  %v5326_v53 = vpop.f32.mrf.mxu3 }
 0x720   : > { %v12079_v17 = vadd.f32 %v5326_v53, %v5262_v7  ;;  %v5199_v55 = vpop.f32.mrf.mxu1  ;;  %v7470_v53 = vld [vmem:[%s13554_s0 + $0x1160] sm:$0xff] }
 0x721   : > { %5393 = vmatmul.f32.gmra.mxu0 %v7462_v18  ;;  %5523 = vmatmul.f32.gmra.mxu2 %v7463_v58  ;;  %v5200_v0 = vadd.f32 %v5199_v55, %v5135_v8  ;;  %v7471_v55 = vld [vmem:[%s13554_s0 + $0x1170] sm:$0xff]  ;;  %v1087_v18 = vld [vmem:[%s7879_s5 + $0x1ac8] sm:$0xff] }
 0x722   : > { %5991 = vmatpush.msrb.mxu2 %v1087_v18  ;;  %v7472_v58 = vld [vmem:[%s13554_s0 + $0x1168] sm:$0xff]  ;;  %v7481_v18 = vld [vmem:[%s13554_s0 + $0x1d8] sm:$0xff] }
 0x723   : > { %5458 = vmatmul.f32.gmra.mxu1 %v7464_v5  ;;  %v1023_v5 = vld [vmem:[%s7879_s5 + $0x18c8] sm:$0xff] }
 0x724   : > { %5588 = vmatmul.f32.gmra.mxu3 %v7465_v23  ;;  %v5264_v6 = vpop.f32.mrf.mxu2  ;;  %v1119_v23 = vld [vmem:[%s7879_s5 + $0x1bc8] sm:$0xff]  ;;  %5861 = vmatpush.msrb.mxu0 %v1023_v5 }
 0x725   : > { %v5265_v36 = vadd.f32 %v5264_v6, %v5200_v0  ;;  %6056 = vmatpush.msrb.mxu3 %v1119_v23  ;;  %v1051_v5 = vld [vmem:[%s7879_s5 + $0x19a8] sm:$0xff] }
 0x726   : > { %v5137_v37 = vpop.f32.mrf.mxu0  ;;  %5928 = vmatpush.msrb.mxu1 %v1051_v5 }
 0x727   : > { %v5138_v15 = vadd.f32 %v5137_v37, %v11813_v28  ;;  %v5329_v41 = vpop.f32.mrf.mxu3 }
 0x728   : > { %v12098_v46 = vadd.f32 %v5329_v41, %v5265_v36  ;;  %v5202_v38 = vpop.f32.mrf.mxu1  ;;  %v7474_v41 = vld [vmem:[%s13554_s0 + $0xa0] sm:$0xff] }
 0x729   : > { %5396 = vmatmul.f32.gmra.mxu0 %v7466_v42  ;;  %5526 = vmatmul.f32.gmra.mxu2 %v7467_v44  ;;  %v5203_v28 = vadd.f32 %v5202_v38, %v5138_v15  ;;  %v7475_v38 = vld [vmem:[%s13554_s0 + $0xb0] sm:$0xff]  ;;  %v1085_v42 = vld [vmem:[%s7879_s5 + $0x1ab8] sm:$0xff] }
 0x72a   : > { %5992 = vmatpush.msrb.mxu2 %v1085_v42  ;;  %v7485_v42 = vld [vmem:[%s13554_s0 + $0x2f8] sm:$0xff] }
 0x72b   : > { %5461 = vmatmul.f32.gmra.mxu1 %v7468_v31  ;;  %v1021_v31 = vld [vmem:[%s7879_s5 + $0x18b8] sm:$0xff] }
 0x72c   : > { %5591 = vmatmul.f32.gmra.mxu3 %v7469_v54  ;;  %v5267_v35 = vpop.f32.mrf.mxu2  ;;  %v1117_v54 = vld [vmem:[%s7879_s5 + $0x1bb8] sm:$0xff]  ;;  %5862 = vmatpush.msrb.mxu0 %v1021_v31 }
 0x72d   : > { %v5268_v1 = vadd.f32 %v5267_v35, %v5203_v28  ;;  %6057 = vmatpush.msrb.mxu3 %v1117_v54  ;;  %v1049_v31 = vld [vmem:[%s7879_s5 + $0x1998] sm:$0xff] }
 0x72e   : > { %v5140_v3 = vpop.f32.mrf.mxu0  ;;  %5929 = vmatpush.msrb.mxu1 %v1049_v31 }
 0x72f   : > { %v5141_v7 = vadd.f32 %v5140_v3, %v11832_v12  ;;  %v5332_v4 = vpop.f32.mrf.mxu3 }
 0x730   : > { %v12117_v51 = vadd.f32 %v5332_v4, %v5268_v1  ;;  %v5205_v8 = vpop.f32.mrf.mxu1  ;;  %v7478_v4 = vld [vmem:[%s13554_s0 + $0x1c0] sm:$0xff] }
 0x731   : > { %5399 = vmatmul.f32.gmra.mxu0 %v7470_v53  ;;  %5529 = vmatmul.f32.gmra.mxu2 %v7471_v55  ;;  %v5206_v12 = vadd.f32 %v5205_v8, %v5141_v7  ;;  %v7479_v8 = vld [vmem:[%s13554_s0 + $0x1d0] sm:$0xff]  ;;  %v1083_v53 = vld [vmem:[%s7879_s5 + $0x1aa8] sm:$0xff] }
 0x732   : > { %5993 = vmatpush.msrb.mxu2 %v1083_v53  ;;  %v7480_v55 = vld [vmem:[%s13554_s0 + $0x1c8] sm:$0xff]  ;;  %v7489_v53 = vld [vmem:[%s13554_s0 + $0x418] sm:$0xff] }
 0x733   : > { %5464 = vmatmul.f32.gmra.mxu1 %v7472_v58  ;;  %v1019_v58 = vld [vmem:[%s7879_s5 + $0x18a8] sm:$0xff] }
 0x734   : > { %5594 = vmatmul.f32.gmra.mxu3 %v7473_v22  ;;  %v5270_v0 = vpop.f32.mrf.mxu2  ;;  %v1115_v22 = vld [vmem:[%s7879_s5 + $0x1ba8] sm:$0xff]  ;;  %5863 = vmatpush.msrb.mxu0 %v1019_v58 }
 0x735   : > { %v5271_v6 = vadd.f32 %v5270_v0, %v5206_v12  ;;  %6058 = vmatpush.msrb.mxu3 %v1115_v22  ;;  %v1047_v58 = vld [vmem:[%s7879_s5 + $0x1988] sm:$0xff] }
 0x736   : > { %v5355_v10 = vpop.f32.mrf.mxu0  ;;  %5930 = vmatpush.msrb.mxu1 %v1047_v58 }
 0x737   : > { %v5335_v36 = vpop.f32.mrf.mxu3  ;;  %v5356_v14 = vadd.f32 %v5355_v10, %v11851_v52  ;;  %v7476_v52 = vld [vmem:[%s13554_s0 + $0xa8] sm:$0xff] }
 0x738   : > { %v12136_v37 = vadd.f32 %v5335_v36, %v5271_v6  ;;  %v5420_v15 = vpop.f32.mrf.mxu1 }
 0x739   : > { %5614 = vmatmul.f32.vlgmr.msra.gmra.mxu0 %v7474_v41  ;;  %5744 = vmatmul.f32.vlgmr.msra.gmra.mxu2 %v7475_v38  ;;  %v5421_v44 = vadd.f32 %v5420_v15, %v5356_v14  ;;  %v7482_v14 = vld [vmem:[%s13554_s0 + $0x2e0] sm:$0xff]  ;;  %v7483_v15 = vld [vmem:[%s13554_s0 + $0x2f0] sm:$0xff]  ;;  %v1081_v41 = vld [vmem:[%s7879_s5 + $0x1a98] sm:$0xff] }
 0x73a   : > { %5994 = vmatpush.msrb.mxu2 %v1081_v41  ;;  %v7484_v38 = vld [vmem:[%s13554_s0 + $0x2e8] sm:$0xff]  ;;  %v7493_v41 = vld [vmem:[%s13554_s0 + $0x538] sm:$0xff] }
 0x73b   : > { %5679 = vmatmul.f32.vlgmr.msra.gmra.mxu1 %v7476_v52  ;;  %v1017_v52 = vld [vmem:[%s7879_s5 + $0x1898] sm:$0xff] }
 0x73c   : > { %5809 = vmatmul.f32.vlgmr.msra.gmra.mxu3 %v7477_v49  ;;  %v5485_v28 = vpop.f32.mrf.mxu2  ;;  %v1113_v49 = vld [vmem:[%s7879_s5 + $0x1b98] sm:$0xff]  ;;  %5864 = vmatpush.msrb.mxu0 %v1017_v52 }
 0x73d   : > { %v5486_v35 = vadd.f32 %v5485_v28, %v5421_v44  ;;  %6059 = vmatpush.msrb.mxu3 %v1113_v49  ;;  %v1045_v52 = vld [vmem:[%s7879_s5 + $0x1978] sm:$0xff] }
 0x73e   : > { %v5358_v57 = vpop.f32.mrf.mxu0  ;;  %5931 = vmatpush.msrb.mxu1 %v1045_v52 }
 0x73f   : > { %v5359_v1 = vadd.f32 %v5358_v57, %v11870_v2  ;;  %v5550_v39 = vpop.f32.mrf.mxu3 }
 0x740   : > { %v12155_v3 = vadd.f32 %v5550_v39, %v5486_v35  ;;  %v5423_v7 = vpop.f32.mrf.mxu1  ;;  %v7486_v39 = vld [vmem:[%s13554_s0 + $0x400] sm:$0xff] }
 0x741   : > { %5617 = vmatmul.f32.gmra.mxu0 %v7478_v4  ;;  %5747 = vmatmul.f32.gmra.mxu2 %v7479_v8  ;;  %v5424_v2 = vadd.f32 %v5423_v7, %v5359_v1  ;;  %v7487_v7 = vld [vmem:[%s13554_s0 + $0x410] sm:$0xff]  ;;  %v1079_v4 = vld [vmem:[%s7879_s5 + $0x1a88] sm:$0xff] }
 0x742   : > { %5995 = vmatpush.msrb.mxu2 %v1079_v4  ;;  %v7488_v8 = vld [vmem:[%s13554_s0 + $0x408] sm:$0xff]  ;;  %v7497_v4 = vld [vmem:[%s13554_s0 + $0x658] sm:$0xff] }
 0x743   : > { %5682 = vmatmul.f32.gmra.mxu1 %v7480_v55  ;;  %v1015_v55 = vld [vmem:[%s7879_s5 + $0x1888] sm:$0xff] }
 0x744   : > { %5812 = vmatmul.f32.gmra.mxu3 %v7481_v18  ;;  %v5488_v12 = vpop.f32.mrf.mxu2  ;;  %v1111_v18 = vld [vmem:[%s7879_s5 + $0x1b88] sm:$0xff]  ;;  %5865 = vmatpush.msrb.mxu0 %v1015_v55 }
 0x745   : > { %v5489_v0 = vadd.f32 %v5488_v12, %v5424_v2  ;;  %6060 = vmatpush.msrb.mxu3 %v1111_v18  ;;  %v1043_v55 = vld [vmem:[%s7879_s5 + $0x1968] sm:$0xff] }
 0x746   : > { %v5361_v23 = vpop.f32.mrf.mxu0  ;;  %5932 = vmatpush.msrb.mxu1 %v1043_v55 }
 0x747   : > { %v5362_v6 = vadd.f32 %v5361_v23, %v11889_v21  ;;  %v5553_v27 = vpop.f32.mrf.mxu3 }
 0x748   : > { %v12174_v10 = vadd.f32 %v5553_v27, %v5489_v0  ;;  %v5426_v36 = vpop.f32.mrf.mxu1  ;;  %v7490_v27 = vld [vmem:[%s13554_s0 + $0x520] sm:$0xff] }
 0x749   : > { %5620 = vmatmul.f32.gmra.mxu0 %v7482_v14  ;;  %5750 = vmatmul.f32.gmra.mxu2 %v7483_v15  ;;  %v5427_v21 = vadd.f32 %v5426_v36, %v5362_v6  ;;  %v7491_v36 = vld [vmem:[%s13554_s0 + $0x530] sm:$0xff]  ;;  %v1077_v14 = vld [vmem:[%s7879_s5 + $0x1a78] sm:$0xff]  ;;  %v7492_v15 = vld [vmem:[%s13554_s0 + $0x528] sm:$0xff] }
 0x74a   : > { %5996 = vmatpush.msrb.mxu2 %v1077_v14  ;;  %v7501_v14 = vld [vmem:[%s13554_s0 + $0x778] sm:$0xff] }
 0x74b   : > { %5685 = vmatmul.f32.gmra.mxu1 %v7484_v38  ;;  %v1013_v38 = vld [vmem:[%s7879_s5 + $0x1878] sm:$0xff] }
 0x74c   : > { %5815 = vmatmul.f32.gmra.mxu3 %v7485_v42  ;;  %v5491_v44 = vpop.f32.mrf.mxu2  ;;  %v1109_v42 = vld [vmem:[%s7879_s5 + $0x1b78] sm:$0xff]  ;;  %5866 = vmatpush.msrb.mxu0 %v1013_v38 }
 0x74d   : > { %v5492_v28 = vadd.f32 %v5491_v44, %v5427_v21  ;;  %6061 = vmatpush.msrb.mxu3 %v1109_v42  ;;  %v1041_v38 = vld [vmem:[%s7879_s5 + $0x1958] sm:$0xff] }
 0x74e   : > { %v5364_v54 = vpop.f32.mrf.mxu0  ;;  %5933 = vmatpush.msrb.mxu1 %v1041_v38 }
 0x74f   : > { %v5365_v35 = vadd.f32 %v5364_v54, %v11908_v43  ;;  %v5556_v60 = vpop.f32.mrf.mxu3 }
 0x750   : > { %v12193_v57 = vadd.f32 %v5556_v60, %v5492_v28  ;;  %v5429_v1 = vpop.f32.mrf.mxu1  ;;  %v7494_v60 = vld [vmem:[%s13554_s0 + $0x640] sm:$0xff] }
 0x751   : > { %5623 = vmatmul.f32.gmra.mxu0 %v7486_v39  ;;  %5753 = vmatmul.f32.gmra.mxu2 %v7487_v7  ;;  %v5430_v43 = vadd.f32 %v5429_v1, %v5365_v35  ;;  %v7495_v1 = vld [vmem:[%s13554_s0 + $0x650] sm:$0xff]  ;;  %v1075_v39 = vld [vmem:[%s7879_s5 + $0x1a68] sm:$0xff] }
 0x752   : > { %5997 = vmatpush.msrb.mxu2 %v1075_v39  ;;  %v7496_v7 = vld [vmem:[%s13554_s0 + $0x648] sm:$0xff]  ;;  %v7505_v39 = vld [vmem:[%s13554_s0 + $0x898] sm:$0xff] }
 0x753   : > { %5688 = vmatmul.f32.gmra.mxu1 %v7488_v8  ;;  %v1011_v8 = vld [vmem:[%s7879_s5 + $0x1868] sm:$0xff] }
 0x754   : > { %5818 = vmatmul.f32.gmra.mxu3 %v7489_v53  ;;  %v5494_v2 = vpop.f32.mrf.mxu2  ;;  %v1107_v53 = vld [vmem:[%s7879_s5 + $0x1b68] sm:$0xff]  ;;  %5867 = vmatpush.msrb.mxu0 %v1011_v8 }
 0x755   : > { %v5495_v12 = vadd.f32 %v5494_v2, %v5430_v43  ;;  %6062 = vmatpush.msrb.mxu3 %v1107_v53  ;;  %v1039_v8 = vld [vmem:[%s7879_s5 + $0x1948] sm:$0xff] }
 0x756   : > { %v5367_v22 = vpop.f32.mrf.mxu0  ;;  %5934 = vmatpush.msrb.mxu1 %v1039_v8 }
 0x757   : > { %v5368_v0 = vadd.f32 %v5367_v22, %v11927_v19  ;;  %v5559_v5 = vpop.f32.mrf.mxu3 }
 0x758   : > { %v12212_v23 = vadd.f32 %v5559_v5, %v5495_v12  ;;  %v5432_v6 = vpop.f32.mrf.mxu1  ;;  %v7498_v5 = vld [vmem:[%s13554_s0 + $0x760] sm:$0xff] }
 0x759   : > { %5626 = vmatmul.f32.gmra.mxu0 %v7490_v27  ;;  %5756 = vmatmul.f32.gmra.mxu2 %v7491_v36  ;;  %v5433_v19 = vadd.f32 %v5432_v6, %v5368_v0  ;;  %v7499_v6 = vld [vmem:[%s13554_s0 + $0x770] sm:$0xff]  ;;  %v1073_v27 = vld [vmem:[%s7879_s5 + $0x1a58] sm:$0xff]  ;;  %v7500_v36 = vld [vmem:[%s13554_s0 + $0x768] sm:$0xff] }
 0x75a   : > { %5998 = vmatpush.msrb.mxu2 %v1073_v27  ;;  %v7509_v27 = vld [vmem:[%s13554_s0 + $0x9b8] sm:$0xff] }
 0x75b   : > { %5691 = vmatmul.f32.gmra.mxu1 %v7492_v15  ;;  %v1009_v15 = vld [vmem:[%s7879_s5 + $0x1858] sm:$0xff] }
 0x75c   : > { %5821 = vmatmul.f32.gmra.mxu3 %v7493_v41  ;;  %v5497_v21 = vpop.f32.mrf.mxu2  ;;  %v1105_v41 = vld [vmem:[%s7879_s5 + $0x1b58] sm:$0xff]  ;;  %5868 = vmatpush.msrb.mxu0 %v1009_v15 }
 0x75d   : > { %v5498_v44 = vadd.f32 %v5497_v21, %v5433_v19  ;;  %6063 = vmatpush.msrb.mxu3 %v1105_v41  ;;  %v1037_v15 = vld [vmem:[%s7879_s5 + $0x1938] sm:$0xff] }
 0x75e   : > { %v5370_v49 = vpop.f32.mrf.mxu0  ;;  %5935 = vmatpush.msrb.mxu1 %v1037_v15 }
 0x75f   : > { %v5371_v28 = vadd.f32 %v5370_v49, %v11946_v20  ;;  %v5562_v31 = vpop.f32.mrf.mxu3 }
 0x760   : > { %v12231_v54 = vadd.f32 %v5562_v31, %v5498_v44  ;;  %v5435_v35 = vpop.f32.mrf.mxu1  ;;  %v7502_v31 = vld [vmem:[%s13554_s0 + $0x880] sm:$0xff] }
 0x761   : > { %5629 = vmatmul.f32.gmra.mxu0 %v7494_v60  ;;  %5759 = vmatmul.f32.gmra.mxu2 %v7495_v1  ;;  %v5436_v20 = vadd.f32 %v5435_v35, %v5371_v28  ;;  %v7503_v35 = vld [vmem:[%s13554_s0 + $0x890] sm:$0xff]  ;;  %v1071_v60 = vld [vmem:[%s7879_s5 + $0x1a48] sm:$0xff] }
 0x762   : > { %5999 = vmatpush.msrb.mxu2 %v1071_v60  ;;  %v7504_v1 = vld [vmem:[%s13554_s0 + $0x888] sm:$0xff]  ;;  %v7513_v60 = vld [vmem:[%s13554_s0 + $0xad8] sm:$0xff] }
 0x763   : > { %5694 = vmatmul.f32.gmra.mxu1 %v7496_v7  ;;  %v1007_v7 = vld [vmem:[%s7879_s5 + $0x1848] sm:$0xff] }
 0x764   : > { %5824 = vmatmul.f32.gmra.mxu3 %v7497_v4  ;;  %v5500_v43 = vpop.f32.mrf.mxu2  ;;  %v1103_v4 = vld [vmem:[%s7879_s5 + $0x1b48] sm:$0xff]  ;;  %5869 = vmatpush.msrb.mxu0 %v1007_v7 }
 0x765   : > { %v5501_v2 = vadd.f32 %v5500_v43, %v5436_v20  ;;  %6064 = vmatpush.msrb.mxu3 %v1103_v4  ;;  %v1035_v7 = vld [vmem:[%s7879_s5 + $0x1928] sm:$0xff] }
 0x766   : > { %v5373_v18 = vpop.f32.mrf.mxu0  ;;  %5936 = vmatpush.msrb.mxu1 %v1035_v7 }
 0x767   : > { %v5374_v12 = vadd.f32 %v5373_v18, %v11965_v62  ;;  %v5565_v58 = vpop.f32.mrf.mxu3 }
 0x768   : > { %v12250_v22 = vadd.f32 %v5565_v58, %v5501_v2  ;;  %v5438_v0 = vpop.f32.mrf.mxu1  ;;  %v7506_v58 = vld [vmem:[%s13554_s0 + $0x9a0] sm:$0xff] }
 0x769   : > { %5632 = vmatmul.f32.gmra.mxu0 %v7498_v5  ;;  %5762 = vmatmul.f32.gmra.mxu2 %v7499_v6  ;;  %v5439_v62 = vadd.f32 %v5438_v0, %v5374_v12  ;;  %v7507_v0 = vld [vmem:[%s13554_s0 + $0x9b0] sm:$0xff]  ;;  %v1069_v5 = vld [vmem:[%s7879_s5 + $0x1a38] sm:$0xff]  ;;  %v7508_v6 = vld [vmem:[%s13554_s0 + $0x9a8] sm:$0xff] }
 0x76a   : > { %6000 = vmatpush.msrb.mxu2 %v1069_v5  ;;  %v7517_v5 = vld [vmem:[%s13554_s0 + $0xbf8] sm:$0xff] }
 0x76b   : > { %5697 = vmatmul.f32.gmra.mxu1 %v7500_v36  ;;  %v1005_v36 = vld [vmem:[%s7879_s5 + $0x1838] sm:$0xff] }
 0x76c   : > { %5827 = vmatmul.f32.gmra.mxu3 %v7501_v14  ;;  %v5503_v19 = vpop.f32.mrf.mxu2  ;;  %v1101_v14 = vld [vmem:[%s7879_s5 + $0x1b38] sm:$0xff]  ;;  %5870 = vmatpush.msrb.mxu0 %v1005_v36 }
 0x76d   : > { %v5504_v21 = vadd.f32 %v5503_v19, %v5439_v62  ;;  %6065 = vmatpush.msrb.mxu3 %v1101_v14  ;;  %v1033_v36 = vld [vmem:[%s7879_s5 + $0x1918] sm:$0xff] }
 0x76e   : > { %v5376_v42 = vpop.f32.mrf.mxu0  ;;  %5937 = vmatpush.msrb.mxu1 %v1033_v36 }
 0x76f   : > { %v5377_v44 = vadd.f32 %v5376_v42, %v11984_v26  ;;  %v5568_v52 = vpop.f32.mrf.mxu3 }
 0x770   : > { %v12269_v49 = vadd.f32 %v5568_v52, %v5504_v21  ;;  %v5441_v28 = vpop.f32.mrf.mxu1  ;;  %v7510_v52 = vld [vmem:[%s13554_s0 + $0xac0] sm:$0xff] }
 0x771   : > { %5635 = vmatmul.f32.gmra.mxu0 %v7502_v31  ;;  %5765 = vmatmul.f32.gmra.mxu2 %v7503_v35  ;;  %v5442_v26 = vadd.f32 %v5441_v28, %v5377_v44  ;;  %v7511_v28 = vld [vmem:[%s13554_s0 + $0xad0] sm:$0xff]  ;;  %v1067_v31 = vld [vmem:[%s7879_s5 + $0x1a28] sm:$0xff] }
 0x772   : > { %6001 = vmatpush.msrb.mxu2 %v1067_v31  ;;  %v7512_v35 = vld [vmem:[%s13554_s0 + $0xac8] sm:$0xff]  ;;  %v7521_v31 = vld [vmem:[%s13554_s0 + $0xd18] sm:$0xff] }
 0x773   : > { %5700 = vmatmul.f32.gmra.mxu1 %v7504_v1  ;;  %v1003_v1 = vld [vmem:[%s7879_s5 + $0x1828] sm:$0xff] }
 0x774   : > { %5830 = vmatmul.f32.gmra.mxu3 %v7505_v39  ;;  %v5506_v20 = vpop.f32.mrf.mxu2  ;;  %v1099_v39 = vld [vmem:[%s7879_s5 + $0x1b28] sm:$0xff]  ;;  %5871 = vmatpush.msrb.mxu0 %v1003_v1 }
 0x775   : > { %v5507_v43 = vadd.f32 %v5506_v20, %v5442_v26  ;;  %6066 = vmatpush.msrb.mxu3 %v1099_v39  ;;  %v1031_v1 = vld [vmem:[%s7879_s5 + $0x1908] sm:$0xff] }
 0x776   : > { %v5379_v53 = vpop.f32.mrf.mxu0  ;;  %5938 = vmatpush.msrb.mxu1 %v1031_v1 }
 0x777   : > { %v5380_v2 = vadd.f32 %v5379_v53, %v12003_v24  ;;  %v5571_v55 = vpop.f32.mrf.mxu3 }
 0x778   : > { %v12288_v18 = vadd.f32 %v5571_v55, %v5507_v43  ;;  %v5444_v12 = vpop.f32.mrf.mxu1  ;;  %v7514_v55 = vld [vmem:[%s13554_s0 + $0xbe0] sm:$0xff] }
 0x779   : > { %5638 = vmatmul.f32.gmra.mxu0 %v7506_v58  ;;  %5768 = vmatmul.f32.gmra.mxu2 %v7507_v0  ;;  %v5445_v24 = vadd.f32 %v5444_v12, %v5380_v2  ;;  %v7515_v12 = vld [vmem:[%s13554_s0 + $0xbf0] sm:$0xff]  ;;  %v1065_v58 = vld [vmem:[%s7879_s5 + $0x1a18] sm:$0xff]  ;;  %v7516_v0 = vld [vmem:[%s13554_s0 + $0xbe8] sm:$0xff] }
 0x77a   : > { %6002 = vmatpush.msrb.mxu2 %v1065_v58  ;;  %v7525_v58 = vld [vmem:[%s13554_s0 + $0xe38] sm:$0xff] }
 0x77b   : > { %5703 = vmatmul.f32.gmra.mxu1 %v7508_v6  ;;  %v1001_v6 = vld [vmem:[%s7879_s5 + $0x1818] sm:$0xff] }
 0x77c   : > { %5833 = vmatmul.f32.gmra.mxu3 %v7509_v27  ;;  %v5509_v62 = vpop.f32.mrf.mxu2  ;;  %v1097_v27 = vld [vmem:[%s7879_s5 + $0x1b18] sm:$0xff]  ;;  %5872 = vmatpush.msrb.mxu0 %v1001_v6 }
 0x77d   : > { %v5510_v19 = vadd.f32 %v5509_v62, %v5445_v24  ;;  %6067 = vmatpush.msrb.mxu3 %v1097_v27  ;;  %v1189_v6 = vld [vmem:[%s7879_s5 + $0x1df8] sm:$0xff] }
 0x77e   : > { %v5382_v41 = vpop.f32.mrf.mxu0  ;;  %6183 = vmatpush.msra.mxu1 %v1189_v6 }
 0x77f   : > { %v5383_v21 = vadd.f32 %v5382_v41, %v12022_v50  ;;  %v5574_v38 = vpop.f32.mrf.mxu3 }
 0x780   : > { %v12307_v42 = vadd.f32 %v5574_v38, %v5510_v19  ;;  %v5447_v44 = vpop.f32.mrf.mxu1  ;;  %v7518_v38 = vld [vmem:[%s13554_s0 + $0xd00] sm:$0xff] }
 0x781   : > { %5641 = vmatmul.f32.gmra.mxu0 %v7510_v52  ;;  %5771 = vmatmul.f32.gmra.mxu2 %v7511_v28  ;;  %v5448_v50 = vadd.f32 %v5447_v44, %v5383_v21  ;;  %v7519_v44 = vld [vmem:[%s13554_s0 + $0xd10] sm:$0xff]  ;;  %v1063_v52 = vld [vmem:[%s7879_s5 + $0x1a08] sm:$0xff] }
 0x782   : > { %6003 = vmatpush.msrb.mxu2 %v1063_v52  ;;  %v7520_v28 = vld [vmem:[%s13554_s0 + $0xd08] sm:$0xff]  ;;  %v7529_v52 = vld [vmem:[%s13554_s0 + $0xf58] sm:$0xff] }
 0x783   : > { %5706 = vmatmul.f32.gmra.mxu1 %v7512_v35  ;;  %v999_v35 = vld [vmem:[%s7879_s5 + $0x1808] sm:$0xff] }
 0x784   : > { %5836 = vmatmul.f32.gmra.mxu3 %v7513_v60  ;;  %v5512_v26 = vpop.f32.mrf.mxu2  ;;  %v1095_v60 = vld [vmem:[%s7879_s5 + $0x1b08] sm:$0xff]  ;;  %5873 = vmatpush.msrb.mxu0 %v999_v35 }
 0x785   : > { %v5513_v20 = vadd.f32 %v5512_v26, %v5448_v50  ;;  %6068 = vmatpush.msrb.mxu3 %v1095_v60  ;;  %v1187_v35 = vld [vmem:[%s7879_s5 + $0x1de8] sm:$0xff] }
 0x786   : > { %v5385_v4 = vpop.f32.mrf.mxu0  ;;  %6184 = vmatpush.msra.mxu1 %v1187_v35 }
 0x787   : > { %v5386_v43 = vadd.f32 %v5385_v4, %v12041_v9  ;;  %v5577_v8 = vpop.f32.mrf.mxu3 }
 0x788   : > { %v12326_v53 = vadd.f32 %v5577_v8, %v5513_v20  ;;  %v5450_v2 = vpop.f32.mrf.mxu1  ;;  %v7522_v8 = vld [vmem:[%s13554_s0 + $0xe20] sm:$0xff] }
 0x789   : > { %5644 = vmatmul.f32.gmra.mxu0 %v7514_v55  ;;  %5774 = vmatmul.f32.gmra.mxu2 %v7515_v12  ;;  %v5451_v9 = vadd.f32 %v5450_v2, %v5386_v43  ;;  %v7523_v2 = vld [vmem:[%s13554_s0 + $0xe30] sm:$0xff]  ;;  %v1221_v55 = vld [vmem:[%s7879_s5 + $0x1ef8] sm:$0xff]  ;;  %v7524_v12 = vld [vmem:[%s13554_s0 + $0xe28] sm:$0xff] }
 0x78a   : > { %6248 = vmatpush.msra.mxu2 %v1221_v55  ;;  %v7533_v55 = vld [vmem:[%s13554_s0 + $0x1078] sm:$0xff] }
 0x78b   : > { %5709 = vmatmul.f32.gmra.mxu1 %v7516_v0  ;;  %v1157_v0 = vld [vmem:[%s7879_s5 + $0x1cf8] sm:$0xff] }
 0x78c   : > { %5839 = vmatmul.f32.gmra.mxu3 %v7517_v5  ;;  %v5515_v24 = vpop.f32.mrf.mxu2  ;;  %v1253_v5 = vld [vmem:[%s7879_s5 + $0x1ff8] sm:$0xff]  ;;  %6118 = vmatpush.msra.mxu0 %v1157_v0 }
 0x78d   : > { %v5516_v62 = vadd.f32 %v5515_v24, %v5451_v9  ;;  %6313 = vmatpush.msra.mxu3 %v1253_v5  ;;  %v1185_v0 = vld [vmem:[%s7879_s5 + $0x1dd8] sm:$0xff] }
 0x78e   : > { %v5388_v14 = vpop.f32.mrf.mxu0  ;;  %6185 = vmatpush.msra.mxu1 %v1185_v0 }
 0x78f   : > { %v5389_v19 = vadd.f32 %v5388_v14, %v12060_v34  ;;  %v5580_v15 = vpop.f32.mrf.mxu3 }
 0x790   : > { %v12345_v41 = vadd.f32 %v5580_v15, %v5516_v62  ;;  %v5453_v21 = vpop.f32.mrf.mxu1  ;;  %v7526_v15 = vld [vmem:[%s13554_s0 + $0xf40] sm:$0xff] }
 0x791   : > { %5647 = vmatmul.f32.gmra.mxu0 %v7518_v38  ;;  %5777 = vmatmul.f32.gmra.mxu2 %v7519_v44  ;;  %v5454_v34 = vadd.f32 %v5453_v21, %v5389_v19  ;;  %v7527_v21 = vld [vmem:[%s13554_s0 + $0xf50] sm:$0xff]  ;;  %v1219_v38 = vld [vmem:[%s7879_s5 + $0x1ee8] sm:$0xff] }
 0x792   : > { %6249 = vmatpush.msra.mxu2 %v1219_v38  ;;  %v7528_v44 = vld [vmem:[%s13554_s0 + $0xf48] sm:$0xff]  ;;  %v7537_v38 = vld [vmem:[%s13554_s0 + $0x1198] sm:$0xff] }
 0x793   : > { %5712 = vmatmul.f32.gmra.mxu1 %v7520_v28  ;;  %v1155_v28 = vld [vmem:[%s7879_s5 + $0x1ce8] sm:$0xff] }
 0x794   : > { %5842 = vmatmul.f32.gmra.mxu3 %v7521_v31  ;;  %v5518_v50 = vpop.f32.mrf.mxu2  ;;  %v1251_v31 = vld [vmem:[%s7879_s5 + $0x1fe8] sm:$0xff]  ;;  %6119 = vmatpush.msra.mxu0 %v1155_v28 }
 0x795   : > { %v5519_v26 = vadd.f32 %v5518_v50, %v5454_v34  ;;  %6314 = vmatpush.msra.mxu3 %v1251_v31  ;;  %v1183_v28 = vld [vmem:[%s7879_s5 + $0x1dc8] sm:$0xff] }
 0x796   : > { %v5391_v39 = vpop.f32.mrf.mxu0  ;;  %6186 = vmatpush.msra.mxu1 %v1183_v28 }
 0x797   : > { %v5392_v20 = vadd.f32 %v5391_v39, %v12079_v17  ;;  %v5583_v7 = vpop.f32.mrf.mxu3 }
 0x798   : > { %v12364_v4 = vadd.f32 %v5583_v7, %v5519_v26  ;;  %v5456_v43 = vpop.f32.mrf.mxu1  ;;  %v7530_v7 = vld [vmem:[%s13554_s0 + $0x1060] sm:$0xff] }
 0x799   : > { %5650 = vmatmul.f32.gmra.mxu0 %v7522_v8  ;;  %5780 = vmatmul.f32.gmra.mxu2 %v7523_v2  ;;  %v5457_v17 = vadd.f32 %v5456_v43, %v5392_v20  ;;  %v7531_v43 = vld [vmem:[%s13554_s0 + $0x1070] sm:$0xff]  ;;  %v1217_v8 = vld [vmem:[%s7879_s5 + $0x1ed8] sm:$0xff]  ;;  %v7532_v2 = vld [vmem:[%s13554_s0 + $0x1068] sm:$0xff] }
 0x79a   : > { %6250 = vmatpush.msra.mxu2 %v1217_v8  ;;  %v7541_v8 = vld [vmem:[%s13554_s0 + $0xd8] sm:$0xff] }
 0x79b   : > { %5715 = vmatmul.f32.gmra.mxu1 %v7524_v12  ;;  %v1153_v12 = vld [vmem:[%s7879_s5 + $0x1cd8] sm:$0xff] }
 0x79c   : > { %5845 = vmatmul.f32.gmra.mxu3 %v7525_v58  ;;  %v5521_v9 = vpop.f32.mrf.mxu2  ;;  %v1249_v58 = vld [vmem:[%s7879_s5 + $0x1fd8] sm:$0xff]  ;;  %6120 = vmatpush.msra.mxu0 %v1153_v12 }
 0x79d   : > { %v5522_v24 = vadd.f32 %v5521_v9, %v5457_v17  ;;  %6315 = vmatpush.msra.mxu3 %v1249_v58  ;;  %v1181_v12 = vld [vmem:[%s7879_s5 + $0x1db8] sm:$0xff] }
 0x79e   : > { %v5394_v27 = vpop.f32.mrf.mxu0  ;;  %6187 = vmatpush.msra.mxu1 %v1181_v12 }
 0x79f   : > { %v5395_v62 = vadd.f32 %v5394_v27, %v12098_v46  ;;  %v5586_v36 = vpop.f32.mrf.mxu3 }
 0x7a0   : > { %v12383_v14 = vadd.f32 %v5586_v36, %v5522_v24  ;;  %v5459_v19 = vpop.f32.mrf.mxu1  ;;  %v7534_v36 = vld [vmem:[%s13554_s0 + $0x1180] sm:$0xff] }
 0x7a1   : > { %5653 = vmatmul.f32.gmra.mxu0 %v7526_v15  ;;  %5783 = vmatmul.f32.gmra.mxu2 %v7527_v21  ;;  %v5460_v46 = vadd.f32 %v5459_v19, %v5395_v62  ;;  %v7535_v19 = vld [vmem:[%s13554_s0 + $0x1190] sm:$0xff]  ;;  %v1215_v15 = vld [vmem:[%s7879_s5 + $0x1ec8] sm:$0xff] }
 0x7a2   : > { %6251 = vmatpush.msra.mxu2 %v1215_v15  ;;  %v7536_v21 = vld [vmem:[%s13554_s0 + $0x1188] sm:$0xff]  ;;  %v7545_v15 = vld [vmem:[%s13554_s0 + $0x1f8] sm:$0xff] }
 0x7a3   : > { %5718 = vmatmul.f32.gmra.mxu1 %v7528_v44  ;;  %v1151_v44 = vld [vmem:[%s7879_s5 + $0x1cc8] sm:$0xff] }
 0x7a4   : > { %5848 = vmatmul.f32.gmra.mxu3 %v7529_v52  ;;  %v5524_v34 = vpop.f32.mrf.mxu2  ;;  %v1247_v52 = vld [vmem:[%s7879_s5 + $0x1fc8] sm:$0xff]  ;;  %6121 = vmatpush.msra.mxu0 %v1151_v44 }
 0x7a5   : > { %v5525_v50 = vadd.f32 %v5524_v34, %v5460_v46  ;;  %6316 = vmatpush.msra.mxu3 %v1247_v52  ;;  %v1179_v44 = vld [vmem:[%s7879_s5 + $0x1da8] sm:$0xff] }
 0x7a6   : > { %v5397_v60 = vpop.f32.mrf.mxu0  ;;  %6188 = vmatpush.msra.mxu1 %v1179_v44 }
 0x7a7   : > { %v5398_v26 = vadd.f32 %v5397_v60, %v12117_v51  ;;  %v5589_v1 = vpop.f32.mrf.mxu3 }
 0x7a8   : > { %v12402_v39 = vadd.f32 %v5589_v1, %v5525_v50  ;;  %v5462_v20 = vpop.f32.mrf.mxu1  ;;  %v7538_v1 = vld [vmem:[%s13554_s0 + $0xc0] sm:$0xff] }
 0x7a9   : > { %5656 = vmatmul.f32.gmra.mxu0 %v7530_v7  ;;  %5786 = vmatmul.f32.gmra.mxu2 %v7531_v43  ;;  %v5463_v51 = vadd.f32 %v5462_v20, %v5398_v26  ;;  %v7539_v20 = vld [vmem:[%s13554_s0 + $0xd0] sm:$0xff]  ;;  %v1213_v7 = vld [vmem:[%s7879_s5 + $0x1eb8] sm:$0xff] }
 0x7aa   : > { %6252 = vmatpush.msra.mxu2 %v1213_v7  ;;  %v7549_v7 = vld [vmem:[%s13554_s0 + $0x318] sm:$0xff] }
 0x7ab   : > { %5721 = vmatmul.f32.gmra.mxu1 %v7532_v2  ;;  %v1149_v2 = vld [vmem:[%s7879_s5 + $0x1cb8] sm:$0xff] }
 0x7ac   : > { %5851 = vmatmul.f32.gmra.mxu3 %v7533_v55  ;;  %v5527_v17 = vpop.f32.mrf.mxu2  ;;  %v1245_v55 = vld [vmem:[%s7879_s5 + $0x1fb8] sm:$0xff]  ;;  %6122 = vmatpush.msra.mxu0 %v1149_v2 }
 0x7ad   : > { %v5528_v9 = vadd.f32 %v5527_v17, %v5463_v51  ;;  %6317 = vmatpush.msra.mxu3 %v1245_v55  ;;  %v1177_v2 = vld [vmem:[%s7879_s5 + $0x1d98] sm:$0xff] }
 0x7ae   : > { %v5400_v5 = vpop.f32.mrf.mxu0  ;;  %6189 = vmatpush.msra.mxu1 %v1177_v2 }
 0x7af   : > { %v5401_v24 = vadd.f32 %v5400_v5, %v12136_v37  ;;  %v5592_v6 = vpop.f32.mrf.mxu3 }
 0x7b0   : > { %v12421_v27 = vadd.f32 %v5592_v6, %v5528_v9  ;;  %v5465_v62 = vpop.f32.mrf.mxu1  ;;  %v7542_v6 = vld [vmem:[%s13554_s0 + $0x1e0] sm:$0xff] }
 0x7b1   : > { %5659 = vmatmul.f32.gmra.mxu0 %v7534_v36  ;;  %5789 = vmatmul.f32.gmra.mxu2 %v7535_v19  ;;  %v5466_v37 = vadd.f32 %v5465_v62, %v5401_v24  ;;  %v7543_v62 = vld [vmem:[%s13554_s0 + $0x1f0] sm:$0xff]  ;;  %v1211_v36 = vld [vmem:[%s7879_s5 + $0x1ea8] sm:$0xff] }
 0x7b2   : > { %6253 = vmatpush.msra.mxu2 %v1211_v36  ;;  %v7544_v19 = vld [vmem:[%s13554_s0 + $0x1e8] sm:$0xff]  ;;  %v7553_v36 = vld [vmem:[%s13554_s0 + $0x438] sm:$0xff] }
 0x7b3   : > { %5724 = vmatmul.f32.gmra.mxu1 %v7536_v21  ;;  %v1147_v21 = vld [vmem:[%s7879_s5 + $0x1ca8] sm:$0xff] }
 0x7b4   : > { %5854 = vmatmul.f32.gmra.mxu3 %v7537_v38  ;;  %v5530_v46 = vpop.f32.mrf.mxu2  ;;  %v1243_v38 = vld [vmem:[%s7879_s5 + $0x1fa8] sm:$0xff]  ;;  %6123 = vmatpush.msra.mxu0 %v1147_v21 }
 0x7b5   : > { %v5531_v34 = vadd.f32 %v5530_v46, %v5466_v37  ;;  %6318 = vmatpush.msra.mxu3 %v1243_v38  ;;  %v1175_v21 = vld [vmem:[%s7879_s5 + $0x1d88] sm:$0xff] }
 0x7b6   : > { %v5615_v31 = vpop.f32.mrf.mxu0  ;;  %6190 = vmatpush.msra.mxu1 %v1175_v21 }
 0x7b7   : > { %v5595_v50 = vpop.f32.mrf.mxu3  ;;  %v5616_v35 = vadd.f32 %v5615_v31, %v12155_v3  ;;  %v7540_v3 = vld [vmem:[%s13554_s0 + $0xc8] sm:$0xff] }
 0x7b8   : > { %v12440_v60 = vadd.f32 %v5595_v50, %v5531_v34  ;;  %v5680_v26 = vpop.f32.mrf.mxu1 }
 0x7b9   : > { %5874 = vmatmul.f32.vlgmr.msrb.gmra.mxu0 %v7538_v1  ;;  %6004 = vmatmul.f32.vlgmr.msrb.gmra.mxu2 %v7539_v20  ;;  %v5681_v43 = vadd.f32 %v5680_v26, %v5616_v35  ;;  %v7546_v35 = vld [vmem:[%s13554_s0 + $0x300] sm:$0xff]  ;;  %v7547_v26 = vld [vmem:[%s13554_s0 + $0x310] sm:$0xff]  ;;  %v1209_v1 = vld [vmem:[%s7879_s5 + $0x1e98] sm:$0xff] }
 0x7ba   : > { %6254 = vmatpush.msra.mxu2 %v1209_v1  ;;  %v7548_v20 = vld [vmem:[%s13554_s0 + $0x308] sm:$0xff]  ;;  %v7557_v1 = vld [vmem:[%s13554_s0 + $0x558] sm:$0xff] }
 0x7bb   : > { %5939 = vmatmul.f32.vlgmr.msrb.gmra.mxu1 %v7540_v3  ;;  %v1145_v3 = vld [vmem:[%s7879_s5 + $0x1c98] sm:$0xff] }
 0x7bc   : > { %6069 = vmatmul.f32.vlgmr.msrb.gmra.mxu3 %v7541_v8  ;;  %v5745_v51 = vpop.f32.mrf.mxu2  ;;  %v1241_v8 = vld [vmem:[%s7879_s5 + $0x1f98] sm:$0xff]  ;;  %6124 = vmatpush.msra.mxu0 %v1145_v3 }
 0x7bd   : > { %v5746_v17 = vadd.f32 %v5745_v51, %v5681_v43  ;;  %6319 = vmatpush.msra.mxu3 %v1241_v8  ;;  %v1173_v3 = vld [vmem:[%s7879_s5 + $0x1d78] sm:$0xff] }
 0x7be   : > { %v5618_v58 = vpop.f32.mrf.mxu0  ;;  %6191 = vmatpush.msra.mxu1 %v1173_v3 }
 0x7bf   : > { %v5619_v9 = vadd.f32 %v5618_v58, %v12174_v10  ;;  %v5810_v0 = vpop.f32.mrf.mxu3 }
 0x7c0   : > { %v12459_v5 = vadd.f32 %v5810_v0, %v5746_v17  ;;  %v5683_v24 = vpop.f32.mrf.mxu1  ;;  %v7550_v0 = vld [vmem:[%s13554_s0 + $0x420] sm:$0xff] }
 0x7c1   : > { %5877 = vmatmul.f32.gmra.mxu0 %v7542_v6  ;;  %6007 = vmatmul.f32.gmra.mxu2 %v7543_v62  ;;  %v5684_v10 = vadd.f32 %v5683_v24, %v5619_v9  ;;  %v7551_v24 = vld [vmem:[%s13554_s0 + $0x430] sm:$0xff]  ;;  %v1207_v6 = vld [vmem:[%s7879_s5 + $0x1e88] sm:$0xff] }
 0x7c2   : > { %6255 = vmatpush.msra.mxu2 %v1207_v6  ;;  %v7552_v62 = vld [vmem:[%s13554_s0 + $0x428] sm:$0xff]  ;;  %v7561_v6 = vld [vmem:[%s13554_s0 + $0x678] sm:$0xff] }
 0x7c3   : > { %5942 = vmatmul.f32.gmra.mxu1 %v7544_v19  ;;  %v1143_v19 = vld [vmem:[%s7879_s5 + $0x1c88] sm:$0xff] }
 0x7c4   : > { %6072 = vmatmul.f32.gmra.mxu3 %v7545_v15  ;;  %v5748_v37 = vpop.f32.mrf.mxu2  ;;  %v1239_v15 = vld [vmem:[%s7879_s5 + $0x1f88] sm:$0xff]  ;;  %6125 = vmatpush.msra.mxu0 %v1143_v19 }
 0x7c5   : > { %v5749_v46 = vadd.f32 %v5748_v37, %v5684_v10  ;;  %6320 = vmatpush.msra.mxu3 %v1239_v15  ;;  %v1171_v19 = vld [vmem:[%s7879_s5 + $0x1d68] sm:$0xff] }
 0x7c6   : > { %v5621_v52 = vpop.f32.mrf.mxu0  ;;  %6192 = vmatpush.msra.mxu1 %v1171_v19 }
 0x7c7   : > { %v5622_v34 = vadd.f32 %v5621_v52, %v12193_v57  ;;  %v5813_v28 = vpop.f32.mrf.mxu3 }
 0x7c8   : > { %v12478_v31 = vadd.f32 %v5813_v28, %v5749_v46  ;;  %v5686_v50 = vpop.f32.mrf.mxu1  ;;  %v7554_v28 = vld [vmem:[%s13554_s0 + $0x540] sm:$0xff] }
 0x7c9   : > { %5880 = vmatmul.f32.gmra.mxu0 %v7546_v35  ;;  %6010 = vmatmul.f32.gmra.mxu2 %v7547_v26  ;;  %v5687_v57 = vadd.f32 %v5686_v50, %v5622_v34  ;;  %v7555_v50 = vld [vmem:[%s13554_s0 + $0x550] sm:$0xff]  ;;  %v1205_v35 = vld [vmem:[%s7879_s5 + $0x1e78] sm:$0xff]  ;;  %v7556_v26 = vld [vmem:[%s13554_s0 + $0x548] sm:$0xff] }
 0x7ca   : > { %6256 = vmatpush.msra.mxu2 %v1205_v35  ;;  %v7565_v35 = vld [vmem:[%s13554_s0 + $0x798] sm:$0xff] }
 0x7cb   : > { %5945 = vmatmul.f32.gmra.mxu1 %v7548_v20  ;;  %v1141_v20 = vld [vmem:[%s7879_s5 + $0x1c78] sm:$0xff] }
 0x7cc   : > { %6075 = vmatmul.f32.gmra.mxu3 %v7549_v7  ;;  %v5751_v43 = vpop.f32.mrf.mxu2  ;;  %v1237_v7 = vld [vmem:[%s7879_s5 + $0x1f78] sm:$0xff]  ;;  %6126 = vmatpush.msra.mxu0 %v1141_v20 }
 0x7cd   : > { %v5752_v51 = vadd.f32 %v5751_v43, %v5687_v57  ;;  %6321 = vmatpush.msra.mxu3 %v1237_v7  ;;  %v1169_v20 = vld [vmem:[%s7879_s5 + $0x1d58] sm:$0xff] }
 0x7ce   : > { %v5624_v55 = vpop.f32.mrf.mxu0  ;;  %6193 = vmatpush.msra.mxu1 %v1169_v20 }
 0x7cf   : > { %v5625_v17 = vadd.f32 %v5624_v55, %v12212_v23  ;;  %v5816_v12 = vpop.f32.mrf.mxu3 }
 0x7d0   : > { %v12497_v58 = vadd.f32 %v5816_v12, %v5752_v51  ;;  %v5689_v9 = vpop.f32.mrf.mxu1  ;;  %v7558_v12 = vld [vmem:[%s13554_s0 + $0x660] sm:$0xff] }
 0x7d1   : > { %5883 = vmatmul.f32.gmra.mxu0 %v7550_v0  ;;  %6013 = vmatmul.f32.gmra.mxu2 %v7551_v24  ;;  %v5690_v23 = vadd.f32 %v5689_v9, %v5625_v17  ;;  %v7559_v9 = vld [vmem:[%s13554_s0 + $0x670] sm:$0xff]  ;;  %v1203_v0 = vld [vmem:[%s7879_s5 + $0x1e68] sm:$0xff] }
 0x7d2   : > { %6257 = vmatpush.msra.mxu2 %v1203_v0  ;;  %v7560_v24 = vld [vmem:[%s13554_s0 + $0x668] sm:$0xff]  ;;  %v7569_v0 = vld [vmem:[%s13554_s0 + $0x8b8] sm:$0xff] }
 0x7d3   : > { %5948 = vmatmul.f32.gmra.mxu1 %v7552_v62  ;;  %v1139_v62 = vld [vmem:[%s7879_s5 + $0x1c68] sm:$0xff] }
 0x7d4   : > { %6078 = vmatmul.f32.gmra.mxu3 %v7553_v36  ;;  %v5754_v10 = vpop.f32.mrf.mxu2  ;;  %v1235_v36 = vld [vmem:[%s7879_s5 + $0x1f68] sm:$0xff]  ;;  %6127 = vmatpush.msra.mxu0 %v1139_v62 }
 0x7d5   : > { %v5755_v37 = vadd.f32 %v5754_v10, %v5690_v23  ;;  %6322 = vmatpush.msra.mxu3 %v1235_v36  ;;  %v1167_v62 = vld [vmem:[%s7879_s5 + $0x1d48] sm:$0xff] }
 0x7d6   : > { %v5627_v38 = vpop.f32.mrf.mxu0  ;;  %6194 = vmatpush.msra.mxu1 %v1167_v62 }
 0x7d7   : > { %v5628_v46 = vadd.f32 %v5627_v38, %v12231_v54  ;;  %v5819_v44 = vpop.f32.mrf.mxu3 }
 0x7d8   : > { %v12516_v52 = vadd.f32 %v5819_v44, %v5755_v37  ;;  %v5692_v34 = vpop.f32.mrf.mxu1  ;;  %v7562_v44 = vld [vmem:[%s13554_s0 + $0x780] sm:$0xff] }
 0x7d9   : > { %5886 = vmatmul.f32.gmra.mxu0 %v7554_v28  ;;  %6016 = vmatmul.f32.gmra.mxu2 %v7555_v50  ;;  %v5693_v54 = vadd.f32 %v5692_v34, %v5628_v46  ;;  %v7563_v34 = vld [vmem:[%s13554_s0 + $0x790] sm:$0xff]  ;;  %v1201_v28 = vld [vmem:[%s7879_s5 + $0x1e58] sm:$0xff]  ;;  %v7564_v50 = vld [vmem:[%s13554_s0 + $0x788] sm:$0xff] }
 0x7da   : > { %6258 = vmatpush.msra.mxu2 %v1201_v28  ;;  %v7573_v28 = vld [vmem:[%s13554_s0 + $0x9d8] sm:$0xff] }
 0x7db   : > { %5951 = vmatmul.f32.gmra.mxu1 %v7556_v26  ;;  %v1137_v26 = vld [vmem:[%s7879_s5 + $0x1c58] sm:$0xff] }
 0x7dc   : > { %6081 = vmatmul.f32.gmra.mxu3 %v7557_v1  ;;  %v5757_v57 = vpop.f32.mrf.mxu2  ;;  %v1233_v1 = vld [vmem:[%s7879_s5 + $0x1f58] sm:$0xff]  ;;  %6128 = vmatpush.msra.mxu0 %v1137_v26 }
 0x7dd   : > { %v5758_v43 = vadd.f32 %v5757_v57, %v5693_v54  ;;  %6323 = vmatpush.msra.mxu3 %v1233_v1  ;;  %v1165_v26 = vld [vmem:[%s7879_s5 + $0x1d38] sm:$0xff] }
 0x7de   : > { %v5630_v8 = vpop.f32.mrf.mxu0  ;;  %6195 = vmatpush.msra.mxu1 %v1165_v26 }
 0x7df   : > { %v5631_v51 = vadd.f32 %v5630_v8, %v12250_v22  ;;  %v5822_v2 = vpop.f32.mrf.mxu3 }
 0x7e0   : > { %v12535_v55 = vadd.f32 %v5822_v2, %v5758_v43  ;;  %v5695_v17 = vpop.f32.mrf.mxu1  ;;  %v7566_v2 = vld [vmem:[%s13554_s0 + $0x8a0] sm:$0xff] }
 0x7e1   : > { %5889 = vmatmul.f32.gmra.mxu0 %v7558_v12  ;;  %6019 = vmatmul.f32.gmra.mxu2 %v7559_v9  ;;  %v5696_v22 = vadd.f32 %v5695_v17, %v5631_v51  ;;  %v7567_v17 = vld [vmem:[%s13554_s0 + $0x8b0] sm:$0xff]  ;;  %v1199_v12 = vld [vmem:[%s7879_s5 + $0x1e48] sm:$0xff] }
 0x7e2   : > { %6259 = vmatpush.msra.mxu2 %v1199_v12  ;;  %v7568_v9 = vld [vmem:[%s13554_s0 + $0x8a8] sm:$0xff]  ;;  %v7577_v12 = vld [vmem:[%s13554_s0 + $0xaf8] sm:$0xff] }
 0x7e3   : > { %5954 = vmatmul.f32.gmra.mxu1 %v7560_v24  ;;  %v1135_v24 = vld [vmem:[%s7879_s5 + $0x1c48] sm:$0xff] }
 0x7e4   : > { %6084 = vmatmul.f32.gmra.mxu3 %v7561_v6  ;;  %v5760_v23 = vpop.f32.mrf.mxu2  ;;  %v1231_v6 = vld [vmem:[%s7879_s5 + $0x1f48] sm:$0xff]  ;;  %6129 = vmatpush.msra.mxu0 %v1135_v24 }
 0x7e5   : > { %v5761_v10 = vadd.f32 %v5760_v23, %v5696_v22  ;;  %6324 = vmatpush.msra.mxu3 %v1231_v6  ;;  %v1163_v24 = vld [vmem:[%s7879_s5 + $0x1d28] sm:$0xff] }
 0x7e6   : > { %v5633_v15 = vpop.f32.mrf.mxu0  ;;  %6196 = vmatpush.msra.mxu1 %v1163_v24 }
 0x7e7   : > { %v5634_v37 = vadd.f32 %v5633_v15, %v12269_v49  ;;  %v5825_v21 = vpop.f32.mrf.mxu3 }
 0x7e8   : > { %v12554_v38 = vadd.f32 %v5825_v21, %v5761_v10  ;;  %v5698_v46 = vpop.f32.mrf.mxu1  ;;  %v7570_v21 = vld [vmem:[%s13554_s0 + $0x9c0] sm:$0xff] }
 0x7e9   : > { %5892 = vmatmul.f32.gmra.mxu0 %v7562_v44  ;;  %6022 = vmatmul.f32.gmra.mxu2 %v7563_v34  ;;  %v5699_v49 = vadd.f32 %v5698_v46, %v5634_v37  ;;  %v7571_v46 = vld [vmem:[%s13554_s0 + $0x9d0] sm:$0xff]  ;;  %v1197_v44 = vld [vmem:[%s7879_s5 + $0x1e38] sm:$0xff]  ;;  %v7572_v34 = vld [vmem:[%s13554_s0 + $0x9c8] sm:$0xff] }
 0x7ea   : > { %6260 = vmatpush.msra.mxu2 %v1197_v44  ;;  %v7581_v44 = vld [vmem:[%s13554_s0 + $0xc18] sm:$0xff] }
 0x7eb   : > { %5957 = vmatmul.f32.gmra.mxu1 %v7564_v50  ;;  %v1133_v50 = vld [vmem:[%s7879_s5 + $0x1c38] sm:$0xff] }
 0x7ec   : > { %6087 = vmatmul.f32.gmra.mxu3 %v7565_v35  ;;  %v5763_v54 = vpop.f32.mrf.mxu2  ;;  %v1229_v35 = vld [vmem:[%s7879_s5 + $0x1f38] sm:$0xff]  ;;  %6130 = vmatpush.msra.mxu0 %v1133_v50 }
 0x7ed   : > { %v5764_v57 = vadd.f32 %v5763_v54, %v5699_v49  ;;  %6325 = vmatpush.msra.mxu3 %v1229_v35  ;;  %v1161_v50 = vld [vmem:[%s7879_s5 + $0x1d18] sm:$0xff] }
 0x7ee   : > { %v5636_v7 = vpop.f32.mrf.mxu0  ;;  %6197 = vmatpush.msra.mxu1 %v1161_v50 }
 0x7ef   : > { %v5637_v43 = vadd.f32 %v5636_v7, %v12288_v18  ;;  %v5828_v3 = vpop.f32.mrf.mxu3 }
 0x7f0   : > { %v12573_v8 = vadd.f32 %v5828_v3, %v5764_v57  ;;  %v5701_v51 = vpop.f32.mrf.mxu1  ;;  %v7574_v3 = vld [vmem:[%s13554_s0 + $0xae0] sm:$0xff] }
 0x7f1   : > { %5895 = vmatmul.f32.gmra.mxu0 %v7566_v2  ;;  %6025 = vmatmul.f32.gmra.mxu2 %v7567_v17  ;;  %v5702_v18 = vadd.f32 %v5701_v51, %v5637_v43  ;;  %v7575_v51 = vld [vmem:[%s13554_s0 + $0xaf0] sm:$0xff]  ;;  %v1195_v2 = vld [vmem:[%s7879_s5 + $0x1e28] sm:$0xff] }
 0x7f2   : > { %6261 = vmatpush.msra.mxu2 %v1195_v2  ;;  %v7576_v17 = vld [vmem:[%s13554_s0 + $0xae8] sm:$0xff]  ;;  %v7585_v2 = vld [vmem:[%s13554_s0 + $0xd38] sm:$0xff] }
 0x7f3   : > { %5960 = vmatmul.f32.gmra.mxu1 %v7568_v9  ;;  %v1131_v9 = vld [vmem:[%s7879_s5 + $0x1c28] sm:$0xff] }
 0x7f4   : > { %6090 = vmatmul.f32.gmra.mxu3 %v7569_v0  ;;  %v5766_v22 = vpop.f32.mrf.mxu2  ;;  %v1227_v0 = vld [vmem:[%s7879_s5 + $0x1f28] sm:$0xff]  ;;  %6131 = vmatpush.msra.mxu0 %v1131_v9 }
 0x7f5   : > { %v5767_v23 = vadd.f32 %v5766_v22, %v5702_v18  ;;  %6326 = vmatpush.msra.mxu3 %v1227_v0  ;;  %v1159_v9 = vld [vmem:[%s7879_s5 + $0x1d08] sm:$0xff] }
 0x7f6   : > { %v5639_v36 = vpop.f32.mrf.mxu0  ;;  %6198 = vmatpush.msra.mxu1 %v1159_v9 }
 0x7f7   : > { %v5640_v10 = vadd.f32 %v5639_v36, %v12307_v42  ;;  %v5831_v19 = vpop.f32.mrf.mxu3 }
 0x7f8   : > { %v12592_v15 = vadd.f32 %v5831_v19, %v5767_v23  ;;  %v5704_v37 = vpop.f32.mrf.mxu1  ;;  %v7578_v19 = vld [vmem:[%s13554_s0 + $0xc00] sm:$0xff] }
 0x7f9   : > { %5898 = vmatmul.f32.gmra.mxu0 %v7570_v21  ;;  %6028 = vmatmul.f32.gmra.mxu2 %v7571_v46  ;;  %v5705_v42 = vadd.f32 %v5704_v37, %v5640_v10  ;;  %v7579_v37 = vld [vmem:[%s13554_s0 + $0xc10] sm:$0xff]  ;;  %v1193_v21 = vld [vmem:[%s7879_s5 + $0x1e18] sm:$0xff]  ;;  %v7580_v46 = vld [vmem:[%s13554_s0 + $0xc08] sm:$0xff] }
 0x7fa   : > { %6262 = vmatpush.msra.mxu2 %v1193_v21  ;;  %v7589_v21 = vld [vmem:[%s13554_s0 + $0xe58] sm:$0xff] }
 0x7fb   : > { %5963 = vmatmul.f32.gmra.mxu1 %v7572_v34  ;;  %v1129_v34 = vld [vmem:[%s7879_s5 + $0x1c18] sm:$0xff] }
 0x7fc   : > { %6093 = vmatmul.f32.gmra.mxu3 %v7573_v28  ;;  %v5769_v49 = vpop.f32.mrf.mxu2  ;;  %v1225_v28 = vld [vmem:[%s7879_s5 + $0x1f18] sm:$0xff]  ;;  %6132 = vmatpush.msra.mxu0 %v1129_v34 }
 0x7fd   : > { %v5770_v54 = vadd.f32 %v5769_v49, %v5705_v42  ;;  %6327 = vmatpush.msra.mxu3 %v1225_v28  ;;  %v1317_v34 = vld [vmem:[%s7879_s5 + $0x21f8] sm:$0xff] }
 0x7fe   : > { %v5642_v1 = vpop.f32.mrf.mxu0  ;;  %6443 = vmatpush.msrb.mxu1 %v1317_v34 }
 0x7ff   : > { %v5643_v57 = vadd.f32 %v5642_v1, %v12326_v53  ;;  %v5834_v20 = vpop.f32.mrf.mxu3 }
 0x800   : > { %v12611_v7 = vadd.f32 %v5834_v20, %v5770_v54  ;;  %v5707_v43 = vpop.f32.mrf.mxu1  ;;  %v7582_v20 = vld [vmem:[%s13554_s0 + $0xd20] sm:$0xff] }
 0x801   : > { %5901 = vmatmul.f32.gmra.mxu0 %v7574_v3  ;;  %6031 = vmatmul.f32.gmra.mxu2 %v7575_v51  ;;  %v5708_v53 = vadd.f32 %v5707_v43, %v5643_v57  ;;  %v7583_v43 = vld [vmem:[%s13554_s0 + $0xd30] sm:$0xff]  ;;  %v1191_v3 = vld [vmem:[%s7879_s5 + $0x1e08] sm:$0xff] }
 0x802   : > { %6263 = vmatpush.msra.mxu2 %v1191_v3  ;;  %v7584_v51 = vld [vmem:[%s13554_s0 + $0xd28] sm:$0xff]  ;;  %v7593_v3 = vld [vmem:[%s13554_s0 + $0xf78] sm:$0xff] }
 0x803   : > { %5966 = vmatmul.f32.gmra.mxu1 %v7576_v17  ;;  %v1127_v17 = vld [vmem:[%s7879_s5 + $0x1c08] sm:$0xff] }
 0x804   : > { %6096 = vmatmul.f32.gmra.mxu3 %v7577_v12  ;;  %v5772_v18 = vpop.f32.mrf.mxu2  ;;  %v1223_v12 = vld [vmem:[%s7879_s5 + $0x1f08] sm:$0xff]  ;;  %6133 = vmatpush.msra.mxu0 %v1127_v17 }
 0x805   : > { %v5773_v22 = vadd.f32 %v5772_v18, %v5708_v53  ;;  %6328 = vmatpush.msra.mxu3 %v1223_v12  ;;  %v1315_v17 = vld [vmem:[%s7879_s5 + $0x21e8] sm:$0xff] }
 0x806   : > { %v5645_v6 = vpop.f32.mrf.mxu0  ;;  %6444 = vmatpush.msrb.mxu1 %v1315_v17 }
 0x807   : > { %v5646_v23 = vadd.f32 %v5645_v6, %v12345_v41  ;;  %v5837_v62 = vpop.f32.mrf.mxu3 }
 0x808   : > { %v12630_v36 = vadd.f32 %v5837_v62, %v5773_v22  ;;  %v5710_v10 = vpop.f32.mrf.mxu1  ;;  %v7586_v62 = vld [vmem:[%s13554_s0 + $0xe40] sm:$0xff] }
 0x809   : > { %5904 = vmatmul.f32.gmra.mxu0 %v7578_v19  ;;  %6034 = vmatmul.f32.gmra.mxu2 %v7579_v37  ;;  %v5711_v41 = vadd.f32 %v5710_v10, %v5646_v23  ;;  %v7587_v10 = vld [vmem:[%s13554_s0 + $0xe50] sm:$0xff]  ;;  %v1349_v19 = vld [vmem:[%s7879_s5 + $0x22f8] sm:$0xff]  ;;  %v7588_v37 = vld [vmem:[%s13554_s0 + $0xe48] sm:$0xff] }
 0x80a   : > { %6508 = vmatpush.msrb.mxu2 %v1349_v19  ;;  %v7597_v19 = vld [vmem:[%s13554_s0 + $0x1098] sm:$0xff] }
 0x80b   : > { %5969 = vmatmul.f32.gmra.mxu1 %v7580_v46  ;;  %v1285_v46 = vld [vmem:[%s7879_s5 + $0x20f8] sm:$0xff] }
 0x80c   : > { %6099 = vmatmul.f32.gmra.mxu3 %v7581_v44  ;;  %v5775_v42 = vpop.f32.mrf.mxu2  ;;  %v1381_v44 = vld [vmem:[%s7879_s5 + $0x23f8] sm:$0xff]  ;;  %6378 = vmatpush.msrb.mxu0 %v1285_v46 }
 0x80d   : > { %v5776_v49 = vadd.f32 %v5775_v42, %v5711_v41  ;;  %6573 = vmatpush.msrb.mxu3 %v1381_v44  ;;  %v1313_v46 = vld [vmem:[%s7879_s5 + $0x21d8] sm:$0xff] }
 0x80e   : > { %v5648_v35 = vpop.f32.mrf.mxu0  ;;  %6445 = vmatpush.msrb.mxu1 %v1313_v46 }
 0x80f   : > { %v5649_v54 = vadd.f32 %v5648_v35, %v12364_v4  ;;  %v5840_v26 = vpop.f32.mrf.mxu3 }
 0x810   : > { %v12649_v1 = vadd.f32 %v5840_v26, %v5776_v49  ;;  %v5713_v57 = vpop.f32.mrf.mxu1  ;;  %v7590_v26 = vld [vmem:[%s13554_s0 + $0xf60] sm:$0xff] }
 0x811   : > { %5907 = vmatmul.f32.gmra.mxu0 %v7582_v20  ;;  %6037 = vmatmul.f32.gmra.mxu2 %v7583_v43  ;;  %v5714_v4 = vadd.f32 %v5713_v57, %v5649_v54  ;;  %v7591_v57 = vld [vmem:[%s13554_s0 + $0xf70] sm:$0xff]  ;;  %v1347_v20 = vld [vmem:[%s7879_s5 + $0x22e8] sm:$0xff] }
 0x812   : > { %6509 = vmatpush.msrb.mxu2 %v1347_v20  ;;  %v7592_v43 = vld [vmem:[%s13554_s0 + $0xf68] sm:$0xff]  ;;  %v7601_v20 = vld [vmem:[%s13554_s0 + $0x11b8] sm:$0xff] }
 0x813   : > { %5972 = vmatmul.f32.gmra.mxu1 %v7584_v51  ;;  %v1283_v51 = vld [vmem:[%s7879_s5 + $0x20e8] sm:$0xff] }
 0x814   : > { %6102 = vmatmul.f32.gmra.mxu3 %v7585_v2  ;;  %v5778_v53 = vpop.f32.mrf.mxu2  ;;  %v1379_v2 = vld [vmem:[%s7879_s5 + $0x23e8] sm:$0xff]  ;;  %6379 = vmatpush.msrb.mxu0 %v1283_v51 }
 0x815   : > { %v5779_v18 = vadd.f32 %v5778_v53, %v5714_v4  ;;  %6574 = vmatpush.msrb.mxu3 %v1379_v2  ;;  %v1311_v51 = vld [vmem:[%s7879_s5 + $0x21c8] sm:$0xff] }
 0x816   : > { %v5651_v0 = vpop.f32.mrf.mxu0  ;;  %6446 = vmatpush.msrb.mxu1 %v1311_v51 }
 0x817   : > { %v5652_v22 = vadd.f32 %v5651_v0, %v12383_v14  ;;  %v5843_v24 = vpop.f32.mrf.mxu3 }
 0x818   : > { %v12668_v6 = vadd.f32 %v5843_v24, %v5779_v18  ;;  %v5716_v23 = vpop.f32.mrf.mxu1  ;;  %v7594_v24 = vld [vmem:[%s13554_s0 + $0x1080] sm:$0xff] }
 0x819   : > { %5910 = vmatmul.f32.gmra.mxu0 %v7586_v62  ;;  %6040 = vmatmul.f32.gmra.mxu2 %v7587_v10  ;;  %v5717_v14 = vadd.f32 %v5716_v23, %v5652_v22  ;;  %v7595_v23 = vld [vmem:[%s13554_s0 + $0x1090] sm:$0xff]  ;;  %v1345_v62 = vld [vmem:[%s7879_s5 + $0x22d8] sm:$0xff]  ;;  %v7596_v10 = vld [vmem:[%s13554_s0 + $0x1088] sm:$0xff] }
 0x81a   : > { %6510 = vmatpush.msrb.mxu2 %v1345_v62  ;;  %v7605_v62 = vld [vmem:[%s13554_s0 + $0xf8] sm:$0xff] }
 0x81b   : > { %5975 = vmatmul.f32.gmra.mxu1 %v7588_v37  ;;  %v1281_v37 = vld [vmem:[%s7879_s5 + $0x20d8] sm:$0xff] }
 0x81c   : > { %6105 = vmatmul.f32.gmra.mxu3 %v7589_v21  ;;  %v5781_v41 = vpop.f32.mrf.mxu2  ;;  %v1377_v21 = vld [vmem:[%s7879_s5 + $0x23d8] sm:$0xff]  ;;  %6380 = vmatpush.msrb.mxu0 %v1281_v37 }
 0x81d   : > { %v5782_v42 = vadd.f32 %v5781_v41, %v5717_v14  ;;  %6575 = vmatpush.msrb.mxu3 %v1377_v21  ;;  %v1309_v37 = vld [vmem:[%s7879_s5 + $0x21b8] sm:$0xff] }
 0x81e   : > { %v5654_v28 = vpop.f32.mrf.mxu0  ;;  %6447 = vmatpush.msrb.mxu1 %v1309_v37 }
 0x81f   : > { %v5655_v49 = vadd.f32 %v5654_v28, %v12402_v39  ;;  %v5846_v50 = vpop.f32.mrf.mxu3 }
 0x820   : > { %v12687_v35 = vadd.f32 %v5846_v50, %v5782_v42  ;;  %v5719_v54 = vpop.f32.mrf.mxu1  ;;  %v7598_v50 = vld [vmem:[%s13554_s0 + $0x11a0] sm:$0xff] }
 0x821   : > { %5913 = vmatmul.f32.gmra.mxu0 %v7590_v26  ;;  %6043 = vmatmul.f32.gmra.mxu2 %v7591_v57  ;;  %v5720_v39 = vadd.f32 %v5719_v54, %v5655_v49  ;;  %v7599_v54 = vld [vmem:[%s13554_s0 + $0x11b0] sm:$0xff]  ;;  %v1343_v26 = vld [vmem:[%s7879_s5 + $0x22c8] sm:$0xff] }
 0x822   : > { %6511 = vmatpush.msrb.mxu2 %v1343_v26  ;;  %v7600_v57 = vld [vmem:[%s13554_s0 + $0x11a8] sm:$0xff]  ;;  %v7609_v26 = vld [vmem:[%s13554_s0 + $0x218] sm:$0xff] }
 0x823   : > { %5978 = vmatmul.f32.gmra.mxu1 %v7592_v43  ;;  %v1279_v43 = vld [vmem:[%s7879_s5 + $0x20c8] sm:$0xff] }
 0x824   : > { %6108 = vmatmul.f32.gmra.mxu3 %v7593_v3  ;;  %v5784_v4 = vpop.f32.mrf.mxu2  ;;  %v1375_v3 = vld [vmem:[%s7879_s5 + $0x23c8] sm:$0xff]  ;;  %6381 = vmatpush.msrb.mxu0 %v1279_v43 }
 0x825   : > { %v5785_v53 = vadd.f32 %v5784_v4, %v5720_v39  ;;  %6576 = vmatpush.msrb.mxu3 %v1375_v3  ;;  %v1307_v43 = vld [vmem:[%s7879_s5 + $0x21a8] sm:$0xff] }
 0x826   : > { %v5657_v12 = vpop.f32.mrf.mxu0  ;;  %6448 = vmatpush.msrb.mxu1 %v1307_v43 }
 0x827   : > { %v5658_v18 = vadd.f32 %v5657_v12, %v12421_v27  ;;  %v5849_v9 = vpop.f32.mrf.mxu3 }
 0x828   : > { %v12706_v0 = vadd.f32 %v5849_v9, %v5785_v53  ;;  %v5722_v22 = vpop.f32.mrf.mxu1  ;;  %v7602_v9 = vld [vmem:[%s13554_s0 + $0xe0] sm:$0xff] }
 0x829   : > { %5916 = vmatmul.f32.gmra.mxu0 %v7594_v24  ;;  %6046 = vmatmul.f32.gmra.mxu2 %v7595_v23  ;;  %v5723_v27 = vadd.f32 %v5722_v22, %v5658_v18  ;;  %v7603_v22 = vld [vmem:[%s13554_s0 + $0xf0] sm:$0xff]  ;;  %v1341_v24 = vld [vmem:[%s7879_s5 + $0x22b8] sm:$0xff] }
 0x82a   : > { %6512 = vmatpush.msrb.mxu2 %v1341_v24  ;;  %v7613_v24 = vld [vmem:[%s13554_s0 + $0x338] sm:$0xff] }
 0x82b   : > { %5981 = vmatmul.f32.gmra.mxu1 %v7596_v10  ;;  %v1277_v10 = vld [vmem:[%s7879_s5 + $0x20b8] sm:$0xff] }
 0x82c   : > { %6111 = vmatmul.f32.gmra.mxu3 %v7597_v19  ;;  %v5787_v14 = vpop.f32.mrf.mxu2  ;;  %v1373_v19 = vld [vmem:[%s7879_s5 + $0x23b8] sm:$0xff]  ;;  %6382 = vmatpush.msrb.mxu0 %v1277_v10 }
 0x82d   : > { %v5788_v41 = vadd.f32 %v5787_v14, %v5723_v27  ;;  %6577 = vmatpush.msrb.mxu3 %v1373_v19  ;;  %v1305_v10 = vld [vmem:[%s7879_s5 + $0x2198] sm:$0xff] }
 0x82e   : > { %v5660_v44 = vpop.f32.mrf.mxu0  ;;  %6449 = vmatpush.msrb.mxu1 %v1305_v10 }
 0x82f   : > { %v5661_v42 = vadd.f32 %v5660_v44, %v12440_v60  ;;  %v5852_v34 = vpop.f32.mrf.mxu3 }
 0x830   : > { %v12725_v28 = vadd.f32 %v5852_v34, %v5788_v41  ;;  %v5725_v49 = vpop.f32.mrf.mxu1  ;;  %v7606_v34 = vld [vmem:[%s13554_s0 + $0x200] sm:$0xff] }
 0x831   : > { %5919 = vmatmul.f32.gmra.mxu0 %v7598_v50  ;;  %6049 = vmatmul.f32.gmra.mxu2 %v7599_v54  ;;  %v5726_v60 = vadd.f32 %v5725_v49, %v5661_v42  ;;  %v7607_v49 = vld [vmem:[%s13554_s0 + $0x210] sm:$0xff]  ;;  %v1339_v50 = vld [vmem:[%s7879_s5 + $0x22a8] sm:$0xff] }
 0x832   : > { %6513 = vmatpush.msrb.mxu2 %v1339_v50  ;;  %v7608_v54 = vld [vmem:[%s13554_s0 + $0x208] sm:$0xff]  ;;  %v7617_v50 = vld [vmem:[%s13554_s0 + $0x458] sm:$0xff] }
 0x833   : > { %5984 = vmatmul.f32.gmra.mxu1 %v7600_v57  ;;  %v1275_v57 = vld [vmem:[%s7879_s5 + $0x20a8] sm:$0xff] }
 0x834   : > { %6114 = vmatmul.f32.gmra.mxu3 %v7601_v20  ;;  %v5790_v39 = vpop.f32.mrf.mxu2  ;;  %v1371_v20 = vld [vmem:[%s7879_s5 + $0x23a8] sm:$0xff]  ;;  %6383 = vmatpush.msrb.mxu0 %v1275_v57 }
 0x835   : > { %v5791_v4 = vadd.f32 %v5790_v39, %v5726_v60  ;;  %6578 = vmatpush.msrb.mxu3 %v1371_v20  ;;  %v1303_v57 = vld [vmem:[%s7879_s5 + $0x2188] sm:$0xff] }
 0x836   : > { %v5875_v2 = vpop.f32.mrf.mxu0  ;;  %6450 = vmatpush.msrb.mxu1 %v1303_v57 }
 0x837   : > { %v5855_v53 = vpop.f32.mrf.mxu3  ;;  %v5876_v17 = vadd.f32 %v5875_v2, %v12459_v5  ;;  %v7604_v5 = vld [vmem:[%s13554_s0 + $0xe8] sm:$0xff] }
 0x838   : > { %v12744_v12 = vadd.f32 %v5855_v53, %v5791_v4  ;;  %v5940_v18 = vpop.f32.mrf.mxu1 }
 0x839   : > { %6134 = vmatmul.f32.vlgmr.msra.gmra.mxu0 %v7602_v9  ;;  %6264 = vmatmul.f32.vlgmr.msra.gmra.mxu2 %v7603_v22  ;;  %v5941_v23 = vadd.f32 %v5940_v18, %v5876_v17  ;;  %v7610_v17 = vld [vmem:[%s13554_s0 + $0x320] sm:$0xff]  ;;  %v7611_v18 = vld [vmem:[%s13554_s0 + $0x330] sm:$0xff]  ;;  %v1337_v9 = vld [vmem:[%s7879_s5 + $0x2298] sm:$0xff] }
 0x83a   : > { %6514 = vmatpush.msrb.mxu2 %v1337_v9  ;;  %v7612_v22 = vld [vmem:[%s13554_s0 + $0x328] sm:$0xff]  ;;  %v7621_v9 = vld [vmem:[%s13554_s0 + $0x578] sm:$0xff] }
 0x83b   : > { %6199 = vmatmul.f32.vlgmr.msra.gmra.mxu1 %v7604_v5  ;;  %v1273_v5 = vld [vmem:[%s7879_s5 + $0x2098] sm:$0xff] }
 0x83c   : > { %6329 = vmatmul.f32.vlgmr.msra.gmra.mxu3 %v7605_v62  ;;  %v6005_v27 = vpop.f32.mrf.mxu2  ;;  %v1369_v62 = vld [vmem:[%s7879_s5 + $0x2398] sm:$0xff]  ;;  %6384 = vmatpush.msrb.mxu0 %v1273_v5 }
 0x83d   : > { %v6006_v14 = vadd.f32 %v6005_v27, %v5941_v23  ;;  %6579 = vmatpush.msrb.mxu3 %v1369_v62  ;;  %v1301_v5 = vld [vmem:[%s7879_s5 + $0x2178] sm:$0xff] }
 0x83e   : > { %v5878_v21 = vpop.f32.mrf.mxu0  ;;  %6451 = vmatpush.msrb.mxu1 %v1301_v5 }
 0x83f   : > { %v5879_v41 = vadd.f32 %v5878_v21, %v12478_v31  ;;  %v6070_v46 = vpop.f32.mrf.mxu3 }
 0x840   : > { %v12763_v44 = vadd.f32 %v6070_v46, %v6006_v14  ;;  %v5943_v42 = vpop.f32.mrf.mxu1  ;;  %v7614_v46 = vld [vmem:[%s13554_s0 + $0x440] sm:$0xff] }
 0x841   : > { %6137 = vmatmul.f32.gmra.mxu0 %v7606_v34  ;;  %6267 = vmatmul.f32.gmra.mxu2 %v7607_v49  ;;  %v5944_v31 = vadd.f32 %v5943_v42, %v5879_v41  ;;  %v7615_v42 = vld [vmem:[%s13554_s0 + $0x450] sm:$0xff]  ;;  %v1335_v34 = vld [vmem:[%s7879_s5 + $0x2288] sm:$0xff] }
 0x842   : > { %6515 = vmatpush.msrb.mxu2 %v1335_v34  ;;  %v7616_v49 = vld [vmem:[%s13554_s0 + $0x448] sm:$0xff]  ;;  %v7625_v34 = vld [vmem:[%s13554_s0 + $0x698] sm:$0xff] }
 0x843   : > { %6202 = vmatmul.f32.gmra.mxu1 %v7608_v54  ;;  %v1271_v54 = vld [vmem:[%s7879_s5 + $0x2088] sm:$0xff] }
 0x844   : > { %6332 = vmatmul.f32.gmra.mxu3 %v7609_v26  ;;  %v6008_v60 = vpop.f32.mrf.mxu2  ;;  %v1367_v26 = vld [vmem:[%s7879_s5 + $0x2388] sm:$0xff]  ;;  %6385 = vmatpush.msrb.mxu0 %v1271_v54 }
 0x845   : > { %v6009_v39 = vadd.f32 %v6008_v60, %v5944_v31  ;;  %6580 = vmatpush.msrb.mxu3 %v1367_v26  ;;  %v1299_v54 = vld [vmem:[%s7879_s5 + $0x2168] sm:$0xff] }
 0x846   : > { %v5881_v3 = vpop.f32.mrf.mxu0  ;;  %6452 = vmatpush.msrb.mxu1 %v1299_v54 }
 0x847   : > { %v5882_v4 = vadd.f32 %v5881_v3, %v12497_v58  ;;  %v6073_v51 = vpop.f32.mrf.mxu3 }
 0x848   : > { %v12782_v2 = vadd.f32 %v6073_v51, %v6009_v39  ;;  %v5946_v53 = vpop.f32.mrf.mxu1  ;;  %v7618_v51 = vld [vmem:[%s13554_s0 + $0x560] sm:$0xff] }
 0x849   : > { %6140 = vmatmul.f32.gmra.mxu0 %v7610_v17  ;;  %6270 = vmatmul.f32.gmra.mxu2 %v7611_v18  ;;  %v5947_v58 = vadd.f32 %v5946_v53, %v5882_v4  ;;  %v7619_v53 = vld [vmem:[%s13554_s0 + $0x570] sm:$0xff]  ;;  %v1333_v17 = vld [vmem:[%s7879_s5 + $0x2278] sm:$0xff]  ;;  %v7620_v18 = vld [vmem:[%s13554_s0 + $0x568] sm:$0xff] }
 0x84a   : > { %6516 = vmatpush.msrb.mxu2 %v1333_v17  ;;  %v7629_v17 = vld [vmem:[%s13554_s0 + $0x7b8] sm:$0xff] }
 0x84b   : > { %6205 = vmatmul.f32.gmra.mxu1 %v7612_v22  ;;  %v1269_v22 = vld [vmem:[%s7879_s5 + $0x2078] sm:$0xff] }
 0x84c   : > { %6335 = vmatmul.f32.gmra.mxu3 %v7613_v24  ;;  %v6011_v23 = vpop.f32.mrf.mxu2  ;;  %v1365_v24 = vld [vmem:[%s7879_s5 + $0x2378] sm:$0xff]  ;;  %6386 = vmatpush.msrb.mxu0 %v1269_v22 }
 0x84d   : > { %v6012_v27 = vadd.f32 %v6011_v23, %v5947_v58  ;;  %6581 = vmatpush.msrb.mxu3 %v1365_v24  ;;  %v1297_v22 = vld [vmem:[%s7879_s5 + $0x2158] sm:$0xff] }
 0x84e   : > { %v5884_v19 = vpop.f32.mrf.mxu0  ;;  %6453 = vmatpush.msrb.mxu1 %v1297_v22 }
 0x84f   : > { %v5885_v14 = vadd.f32 %v5884_v19, %v12516_v52  ;;  %v6076_v37 = vpop.f32.mrf.mxu3 }
 0x850   : > { %v12801_v21 = vadd.f32 %v6076_v37, %v6012_v27  ;;  %v5949_v41 = vpop.f32.mrf.mxu1  ;;  %v7622_v37 = vld [vmem:[%s13554_s0 + $0x680] sm:$0xff] }
 0x851   : > { %6143 = vmatmul.f32.gmra.mxu0 %v7614_v46  ;;  %6273 = vmatmul.f32.gmra.mxu2 %v7615_v42  ;;  %v5950_v52 = vadd.f32 %v5949_v41, %v5885_v14  ;;  %v7623_v41 = vld [vmem:[%s13554_s0 + $0x690] sm:$0xff]  ;;  %v1331_v46 = vld [vmem:[%s7879_s5 + $0x2268] sm:$0xff] }
 0x852   : > { %6517 = vmatpush.msrb.mxu2 %v1331_v46  ;;  %v7624_v42 = vld [vmem:[%s13554_s0 + $0x688] sm:$0xff]  ;;  %v7633_v46 = vld [vmem:[%s13554_s0 + $0x8d8] sm:$0xff] }
 0x853   : > { %6208 = vmatmul.f32.gmra.mxu1 %v7616_v49  ;;  %v1267_v49 = vld [vmem:[%s7879_s5 + $0x2068] sm:$0xff] }
 0x854   : > { %6338 = vmatmul.f32.gmra.mxu3 %v7617_v50  ;;  %v6014_v31 = vpop.f32.mrf.mxu2  ;;  %v1363_v50 = vld [vmem:[%s7879_s5 + $0x2368] sm:$0xff]  ;;  %6387 = vmatpush.msrb.mxu0 %v1267_v49 }
 0x855   : > { %v6015_v60 = vadd.f32 %v6014_v31, %v5950_v52  ;;  %6582 = vmatpush.msrb.mxu3 %v1363_v50  ;;  %v1295_v49 = vld [vmem:[%s7879_s5 + $0x2148] sm:$0xff] }
 0x856   : > { %v5887_v20 = vpop.f32.mrf.mxu0  ;;  %6454 = vmatpush.msrb.mxu1 %v1295_v49 }
 0x857   : > { %v5888_v39 = vadd.f32 %v5887_v20, %v12535_v55  ;;  %v6079_v43 = vpop.f32.mrf.mxu3 }
 0x858   : > { %v12820_v3 = vadd.f32 %v6079_v43, %v6015_v60  ;;  %v5952_v4 = vpop.f32.mrf.mxu1  ;;  %v7626_v43 = vld [vmem:[%s13554_s0 + $0x7a0] sm:$0xff] }
 0x859   : > { %6146 = vmatmul.f32.gmra.mxu0 %v7618_v51  ;;  %6276 = vmatmul.f32.gmra.mxu2 %v7619_v53  ;;  %v5953_v55 = vadd.f32 %v5952_v4, %v5888_v39  ;;  %v7627_v4 = vld [vmem:[%s13554_s0 + $0x7b0] sm:$0xff]  ;;  %v1329_v51 = vld [vmem:[%s7879_s5 + $0x2258] sm:$0xff]  ;;  %v7628_v53 = vld [vmem:[%s13554_s0 + $0x7a8] sm:$0xff] }
 0x85a   : > { %6518 = vmatpush.msrb.mxu2 %v1329_v51  ;;  %v7637_v51 = vld [vmem:[%s13554_s0 + $0x9f8] sm:$0xff] }
 0x85b   : > { %6211 = vmatmul.f32.gmra.mxu1 %v7620_v18  ;;  %v1265_v18 = vld [vmem:[%s7879_s5 + $0x2058] sm:$0xff] }
 0x85c   : > { %6341 = vmatmul.f32.gmra.mxu3 %v7621_v9  ;;  %v6017_v58 = vpop.f32.mrf.mxu2  ;;  %v1361_v9 = vld [vmem:[%s7879_s5 + $0x2358] sm:$0xff]  ;;  %6388 = vmatpush.msrb.mxu0 %v1265_v18 }
 0x85d   : > { %v6018_v23 = vadd.f32 %v6017_v58, %v5953_v55  ;;  %6583 = vmatpush.msrb.mxu3 %v1361_v9  ;;  %v1293_v18 = vld [vmem:[%s7879_s5 + $0x2138] sm:$0xff] }
 0x85e   : > { %v5890_v62 = vpop.f32.mrf.mxu0  ;;  %6455 = vmatpush.msrb.mxu1 %v1293_v18 }
 0x85f   : > { %v5891_v27 = vadd.f32 %v5890_v62, %v12554_v38  ;;  %v6082_v10 = vpop.f32.mrf.mxu3 }
 0x860   : > { %v12839_v19 = vadd.f32 %v6082_v10, %v6018_v23  ;;  %v5955_v14 = vpop.f32.mrf.mxu1  ;;  %v7630_v10 = vld [vmem:[%s13554_s0 + $0x8c0] sm:$0xff] }
 0x861   : > { %6149 = vmatmul.f32.gmra.mxu0 %v7622_v37  ;;  %6279 = vmatmul.f32.gmra.mxu2 %v7623_v41  ;;  %v5956_v38 = vadd.f32 %v5955_v14, %v5891_v27  ;;  %v7631_v14 = vld [vmem:[%s13554_s0 + $0x8d0] sm:$0xff]  ;;  %v1327_v37 = vld [vmem:[%s7879_s5 + $0x2248] sm:$0xff] }
 0x862   : > { %6519 = vmatpush.msrb.mxu2 %v1327_v37  ;;  %v7632_v41 = vld [vmem:[%s13554_s0 + $0x8c8] sm:$0xff]  ;;  %v7641_v37 = vld [vmem:[%s13554_s0 + $0xb18] sm:$0xff] }
 0x863   : > { %6214 = vmatmul.f32.gmra.mxu1 %v7624_v42  ;;  %v1263_v42 = vld [vmem:[%s7879_s5 + $0x2048] sm:$0xff] }
 0x864   : > { %6344 = vmatmul.f32.gmra.mxu3 %v7625_v34  ;;  %v6020_v52 = vpop.f32.mrf.mxu2  ;;  %v1359_v34 = vld [vmem:[%s7879_s5 + $0x2348] sm:$0xff]  ;;  %6389 = vmatpush.msrb.mxu0 %v1263_v42 }
 0x865   : > { %v6021_v31 = vadd.f32 %v6020_v52, %v5956_v38  ;;  %6584 = vmatpush.msrb.mxu3 %v1359_v34  ;;  %v1291_v42 = vld [vmem:[%s7879_s5 + $0x2128] sm:$0xff] }
 0x866   : > { %v5893_v26 = vpop.f32.mrf.mxu0  ;;  %6456 = vmatpush.msrb.mxu1 %v1291_v42 }
 0x867   : > { %v5894_v60 = vadd.f32 %v5893_v26, %v12573_v8  ;;  %v6085_v57 = vpop.f32.mrf.mxu3 }
 0x868   : > { %v12858_v20 = vadd.f32 %v6085_v57, %v6021_v31  ;;  %v5958_v39 = vpop.f32.mrf.mxu1  ;;  %v7634_v57 = vld [vmem:[%s13554_s0 + $0x9e0] sm:$0xff] }
 0x869   : > { %6152 = vmatmul.f32.gmra.mxu0 %v7626_v43  ;;  %6282 = vmatmul.f32.gmra.mxu2 %v7627_v4  ;;  %v5959_v8 = vadd.f32 %v5958_v39, %v5894_v60  ;;  %v7635_v39 = vld [vmem:[%s13554_s0 + $0x9f0] sm:$0xff]  ;;  %v1325_v43 = vld [vmem:[%s7879_s5 + $0x2238] sm:$0xff]  ;;  %v7636_v4 = vld [vmem:[%s13554_s0 + $0x9e8] sm:$0xff] }
 0x86a   : > { %6520 = vmatpush.msrb.mxu2 %v1325_v43  ;;  %v7645_v43 = vld [vmem:[%s13554_s0 + $0xc38] sm:$0xff] }
 0x86b   : > { %6217 = vmatmul.f32.gmra.mxu1 %v7628_v53  ;;  %v1261_v53 = vld [vmem:[%s7879_s5 + $0x2038] sm:$0xff] }
 0x86c   : > { %6347 = vmatmul.f32.gmra.mxu3 %v7629_v17  ;;  %v6023_v55 = vpop.f32.mrf.mxu2  ;;  %v1357_v17 = vld [vmem:[%s7879_s5 + $0x2338] sm:$0xff]  ;;  %6390 = vmatpush.msrb.mxu0 %v1261_v53 }
 0x86d   : > { %v6024_v58 = vadd.f32 %v6023_v55, %v5959_v8  ;;  %6585 = vmatpush.msrb.mxu3 %v1357_v17  ;;  %v1289_v53 = vld [vmem:[%s7879_s5 + $0x2118] sm:$0xff] }
 0x86e   : > { %v5896_v24 = vpop.f32.mrf.mxu0  ;;  %6457 = vmatpush.msrb.mxu1 %v1289_v53  ;;  %v7655_v53 = vld [vmem:[%s13554_s0 + $0xf90] sm:$0xff] }
 0x86f   : > { %v5897_v23 = vadd.f32 %v5896_v24, %v12592_v15  ;;  %v6088_v5 = vpop.f32.mrf.mxu3 }
 0x870   : > { %v12877_v62 = vadd.f32 %v6088_v5, %v6024_v58  ;;  %v5961_v27 = vpop.f32.mrf.mxu1  ;;  %v7638_v5 = vld [vmem:[%s13554_s0 + $0xb00] sm:$0xff] }
 0x871   : > { %6155 = vmatmul.f32.gmra.mxu0 %v7630_v10  ;;  %6285 = vmatmul.f32.gmra.mxu2 %v7631_v14  ;;  %v5962_v15 = vadd.f32 %v5961_v27, %v5897_v23  ;;  %v7639_v27 = vld [vmem:[%s13554_s0 + $0xb10] sm:$0xff]  ;;  %v1323_v10 = vld [vmem:[%s7879_s5 + $0x2228] sm:$0xff] }
 0x872   : > { %6521 = vmatpush.msrb.mxu2 %v1323_v10  ;;  %v7640_v14 = vld [vmem:[%s13554_s0 + $0xb08] sm:$0xff]  ;;  %v7649_v10 = vld [vmem:[%s13554_s0 + $0xd58] sm:$0xff] }
 0x873   : > { %6220 = vmatmul.f32.gmra.mxu1 %v7632_v41  ;;  %v1259_v41 = vld [vmem:[%s7879_s5 + $0x2028] sm:$0xff] }
 0x874   : > { %6350 = vmatmul.f32.gmra.mxu3 %v7633_v46  ;;  %v6026_v38 = vpop.f32.mrf.mxu2  ;;  %v1355_v46 = vld [vmem:[%s7879_s5 + $0x2328] sm:$0xff]  ;;  %6391 = vmatpush.msrb.mxu0 %v1259_v41 }
 0x875   : > { %v6027_v52 = vadd.f32 %v6026_v38, %v5962_v15  ;;  %6586 = vmatpush.msrb.mxu3 %v1355_v46  ;;  %v1287_v41 = vld [vmem:[%s7879_s5 + $0x2108] sm:$0xff] }
 0x876   : > { %v5899_v50 = vpop.f32.mrf.mxu0  ;;  %6458 = vmatpush.msrb.mxu1 %v1287_v41 }
 0x877   : > { %v5900_v31 = vadd.f32 %v5899_v50, %v12611_v7  ;;  %v6091_v54 = vpop.f32.mrf.mxu3 }
 0x878   : > { %v12896_v26 = vadd.f32 %v6091_v54, %v6027_v52  ;;  %v5964_v60 = vpop.f32.mrf.mxu1  ;;  %v7642_v54 = vld [vmem:[%s13554_s0 + $0xc20] sm:$0xff] }
 0x879   : > { %6158 = vmatmul.f32.gmra.mxu0 %v7634_v57  ;;  %6288 = vmatmul.f32.gmra.mxu2 %v7635_v39  ;;  %v5965_v7 = vadd.f32 %v5964_v60, %v5900_v31  ;;  %v7643_v60 = vld [vmem:[%s13554_s0 + $0xc30] sm:$0xff]  ;;  %v1321_v57 = vld [vmem:[%s7879_s5 + $0x2218] sm:$0xff]  ;;  %v7644_v39 = vld [vmem:[%s13554_s0 + $0xc28] sm:$0xff] }
 0x87a   : > { %6522 = vmatpush.msrb.mxu2 %v1321_v57 }
 0x87b   : > { %6223 = vmatmul.f32.gmra.mxu1 %v7636_v4  ;;  %v1257_v4 = vld [vmem:[%s7879_s5 + $0x2018] sm:$0xff] }
 0x87c   : > { %6353 = vmatmul.f32.gmra.mxu3 %v7637_v51  ;;  %v6029_v8 = vpop.f32.mrf.mxu2  ;;  %v1353_v51 = vld [vmem:[%s7879_s5 + $0x2318] sm:$0xff]  ;;  %6392 = vmatpush.msrb.mxu0 %v1257_v4 }
 0x87d   : > { %v6030_v55 = vadd.f32 %v6029_v8, %v5965_v7  ;;  %6587 = vmatpush.msrb.mxu3 %v1353_v51 }
 0x87e   : > { %v5902_v9 = vpop.f32.mrf.mxu0 }
 0x87f   : > { %v5903_v58 = vadd.f32 %v5902_v9, %v12630_v36  ;;  %v6094_v22 = vpop.f32.mrf.mxu3 }
 0x880   : > { %v12915_v24 = vadd.f32 %v6094_v22, %v6030_v55  ;;  %v5967_v23 = vpop.f32.mrf.mxu1  ;;  %v7646_v22 = vld [vmem:[%s13554_s0 + $0xd40] sm:$0xff] }
 0x881   : > { %6161 = vmatmul.f32.gmra.mxu0 %v7638_v5  ;;  %6291 = vmatmul.f32.gmra.mxu2 %v7639_v27  ;;  %v5968_v36 = vadd.f32 %v5967_v23, %v5903_v58  ;;  %v7647_v23 = vld [vmem:[%s13554_s0 + $0xd50] sm:$0xff]  ;;  %v1319_v5 = vld [vmem:[%s7879_s5 + $0x2208] sm:$0xff] }
 0x882   : > { %6523 = vmatpush.msrb.mxu2 %v1319_v5  ;;  %v7648_v27 = vld [vmem:[%s13554_s0 + $0xd48] sm:$0xff] }
 0x883   : > { %6226 = vmatmul.f32.gmra.mxu1 %v7640_v14  ;;  %v1255_v14 = vld [vmem:[%s7879_s5 + $0x2008] sm:$0xff] }
 0x884   : > { %6356 = vmatmul.f32.gmra.mxu3 %v7641_v37  ;;  %v6032_v15 = vpop.f32.mrf.mxu2  ;;  %v1351_v37 = vld [vmem:[%s7879_s5 + $0x2308] sm:$0xff]  ;;  %6393 = vmatpush.msrb.mxu0 %v1255_v14 }
 0x885   : > { %v6033_v38 = vadd.f32 %v6032_v15, %v5968_v36  ;;  %6588 = vmatpush.msrb.mxu3 %v1351_v37  ;;  %v7660_v37 = vld [vmem:[%s13554_s0 + $0x10a8] sm:$0xff] }
 0x886   : > { %v5905_v34 = vpop.f32.mrf.mxu0 }
 0x887   : > { %v5906_v52 = vadd.f32 %v5905_v34, %v12649_v1  ;;  %v6097_v49 = vpop.f32.mrf.mxu3 }
 0x888   : > { %v12934_v50 = vadd.f32 %v6097_v49, %v6033_v38  ;;  %v5970_v31 = vpop.f32.mrf.mxu1  ;;  %v7650_v49 = vld [vmem:[%s13554_s0 + $0xe60] sm:$0xff] }
 0x889   : > { %6164 = vmatmul.f32.gmra.mxu0 %v7642_v54  ;;  %6294 = vmatmul.f32.gmra.mxu2 %v7643_v60  ;;  %v5971_v1 = vadd.f32 %v5970_v31, %v5906_v52  ;;  %v7651_v31 = vld [vmem:[%s13554_s0 + $0xe70] sm:$0xff]  ;;  %v7652_v60 = vld [vmem:[%s13554_s0 + $0xe68] sm:$0xff] }
 0x88b   : > { %6229 = vmatmul.f32.gmra.mxu1 %v7644_v39 }
 0x88c   : > { %6359 = vmatmul.f32.gmra.mxu3 %v7645_v43  ;;  %v6035_v7 = vpop.f32.mrf.mxu2 }
 0x88d   : > { %v6036_v8 = vadd.f32 %v6035_v7, %v5971_v1 }
 0x88e   : > { %v5908_v17 = vpop.f32.mrf.mxu0 }
 0x88f   : > { %v5909_v55 = vadd.f32 %v5908_v17, %v12668_v6  ;;  %v6100_v18 = vpop.f32.mrf.mxu3 }
 0x890   : > { %v12953_v9 = vadd.f32 %v6100_v18, %v6036_v8  ;;  %v5973_v58 = vpop.f32.mrf.mxu1  ;;  %v7654_v8 = vld [vmem:[%s13554_s0 + $0xf80] sm:$0xff] }
 0x891   : > { %6167 = vmatmul.f32.gmra.mxu0 %v7646_v22  ;;  %6297 = vmatmul.f32.gmra.mxu2 %v7647_v23  ;;  %v5974_v6 = vadd.f32 %v5973_v58, %v5909_v55  ;;  %v7656_v55 = vld [vmem:[%s13554_s0 + $0xf88] sm:$0xff] }
 0x893   : > { %6232 = vmatmul.f32.gmra.mxu1 %v7648_v27 }
 0x894   : > { %6362 = vmatmul.f32.gmra.mxu3 %v7649_v10  ;;  %v6038_v36 = vpop.f32.mrf.mxu2  ;;  %v7658_v10 = vld [vmem:[%s13554_s0 + $0x10a0] sm:$0xff] }
 0x895   : > { %v6039_v15 = vadd.f32 %v6038_v36, %v5974_v6  ;;  %v7659_v36 = vld [vmem:[%s13554_s0 + $0x10b0] sm:$0xff] }
 0x896   : > { %v5911_v46 = vpop.f32.mrf.mxu0 }
 0x897   : > { %v5912_v38 = vadd.f32 %v5911_v46, %v12687_v35  ;;  %v6103_v42 = vpop.f32.mrf.mxu3  ;;  %v7653_v35 = vld [vmem:[%s13554_s0 + $0xe78] sm:$0xff] }
 0x898   : > { %v12972_v34 = vadd.f32 %v6103_v42, %v6039_v15  ;;  %v5976_v52 = vpop.f32.mrf.mxu1 }
 0x899   : > { %6170 = vmatmul.f32.gmra.mxu0 %v7650_v49  ;;  %6300 = vmatmul.f32.gmra.mxu2 %v7651_v31  ;;  %v5977_v54 = vadd.f32 %v5976_v52, %v5912_v38  ;;  %v7662_v31 = vld [vmem:[%s13554_s0 + $0x11c0] sm:$0xff] }
 0x89b   : > { %6235 = vmatmul.f32.gmra.mxu1 %v7652_v60 }
 0x89c   : > { %6365 = vmatmul.f32.gmra.mxu3 %v7653_v35  ;;  %v6041_v57 = vpop.f32.mrf.mxu2  ;;  %v7664_v35 = vld [vmem:[%s13554_s0 + $0x11c8] sm:$0xff] }
 0x89d   : > { %v6042_v1 = vadd.f32 %v6041_v57, %v5977_v54  ;;  %v7663_v54 = vld [vmem:[%s13554_s0 + $0x11d0] sm:$0xff] }
 0x89e   : > { %v5914_v39 = vpop.f32.mrf.mxu0 }
 0x89f   : > { %v5915_v43 = vadd.f32 %v5914_v39, %v12706_v0  ;;  %v6106_v7 = vpop.f32.mrf.mxu3  ;;  %v7657_v0 = vld [vmem:[%s13554_s0 + $0xf98] sm:$0xff] }
 0x8a0   : > { %v12987_v4 = vadd.f32 %v6106_v7, %v6042_v1  ;;  %v5979_v51 = vpop.f32.mrf.mxu1 }
 0x8a1   : > { %6173 = vmatmul.f32.gmra.mxu0 %v7654_v8  ;;  %6303 = vmatmul.f32.gmra.mxu2 %v7655_v53  ;;  %v5980_v17 = vadd.f32 %v5979_v51, %v5915_v43  ;;  %v7666_v53 = vld [vmem:[%s13554_s0 + $0x100] sm:$0xff] }
 0x8a3   : > { %6238 = vmatmul.f32.gmra.mxu1 %v7656_v55 }
 0x8a4   : > { %6368 = vmatmul.f32.gmra.mxu3 %v7657_v0  ;;  %v6044_v18 = vpop.f32.mrf.mxu2  ;;  %v7668_v0 = vld [vmem:[%s13554_s0 + $0x108] sm:$0xff] }
 0x8a5   : > { %v6045_v58 = vadd.f32 %v6044_v18, %v5980_v17  ;;  %v7667_v17 = vld [vmem:[%s13554_s0 + $0x110] sm:$0xff] }
 0x8a6   : > { %v5917_v22 = vpop.f32.mrf.mxu0 }
 0x8a7   : > { %v5918_v23 = vadd.f32 %v5917_v22, %v12725_v28  ;;  %v6109_v5 = vpop.f32.mrf.mxu3  ;;  %v7661_v28 = vld [vmem:[%s13554_s0 + $0x10b8] sm:$0xff] }
 0x8a8   : > { %v13002_v6 = vadd.f32 %v6109_v5, %v6045_v58  ;;  %v5982_v27 = vpop.f32.mrf.mxu1 }
 0x8a9   : > { %6176 = vmatmul.f32.gmra.mxu0 %v7658_v10  ;;  %6306 = vmatmul.f32.gmra.mxu2 %v7659_v36  ;;  %v5983_v14 = vadd.f32 %v5982_v27, %v5918_v23  ;;  %v7670_v36 = vld [vmem:[%s13554_s0 + $0x220] sm:$0xff] }
 0x8ab   : > { %6241 = vmatmul.f32.gmra.mxu1 %v7660_v37 }
 0x8ac   : > { %6371 = vmatmul.f32.gmra.mxu3 %v7661_v28  ;;  %v6047_v15 = vpop.f32.mrf.mxu2  ;;  %v7672_v28 = vld [vmem:[%s13554_s0 + $0x228] sm:$0xff] }
 0x8ad   : > { %v6048_v41 = vadd.f32 %v6047_v15, %v5983_v14  ;;  %v7671_v14 = vld [vmem:[%s13554_s0 + $0x230] sm:$0xff] }
 0x8ae   : > { %v5920_v46 = vpop.f32.mrf.mxu0 }
 0x8af   : > { %v5921_v38 = vadd.f32 %v5920_v46, %v12744_v12  ;;  %v6112_v42 = vpop.f32.mrf.mxu3  ;;  %v7665_v12 = vld [vmem:[%s13554_s0 + $0x11d8] sm:$0xff] }
 0x8b0   : > { %v13017_v52 = vadd.f32 %v6112_v42, %v6048_v41  ;;  %v5985_v49 = vpop.f32.mrf.mxu1 }
 0x8b1   : > { %6179 = vmatmul.f32.gmra.mxu0 %v7662_v31  ;;  %6309 = vmatmul.f32.gmra.mxu2 %v7663_v54  ;;  %v5986_v60 = vadd.f32 %v5985_v49, %v5921_v38  ;;  %v7674_v54 = vld [vmem:[%s13554_s0 + $0x340] sm:$0xff] }
 0x8b3   : > { %6244 = vmatmul.f32.gmra.mxu1 %v7664_v35 }
 0x8b4   : > { %6374 = vmatmul.f32.gmra.mxu3 %v7665_v12  ;;  %v6050_v57 = vpop.f32.mrf.mxu2  ;;  %v7676_v12 = vld [vmem:[%s13554_s0 + $0x348] sm:$0xff] }
 0x8b5   : > { %v6051_v1 = vadd.f32 %v6050_v57, %v5986_v60  ;;  %v7675_v60 = vld [vmem:[%s13554_s0 + $0x350] sm:$0xff] }
 0x8b6   : > { %v6135_v39 = vpop.f32.mrf.mxu0 }
 0x8b7   : > { %v6115_v43 = vpop.f32.mrf.mxu3  ;;  %v6136_v7 = vadd.f32 %v6135_v39, %v12763_v44  ;;  %v7669_v44 = vld [vmem:[%s13554_s0 + $0x118] sm:$0xff] }
 0x8b8   : > { %v13032_v51 = vadd.f32 %v6115_v43, %v6051_v1  ;;  %v6200_v8 = vpop.f32.mrf.mxu1 }
 0x8b9   : > { %6394 = vmatmul.f32.vlgmr.msrb.gmra.mxu0 %v7666_v53  ;;  %6524 = vmatmul.f32.vlgmr.msrb.gmra.mxu2 %v7667_v17  ;;  %v6201_v55 = vadd.f32 %v6200_v8, %v6136_v7  ;;  %v7678_v17 = vld [vmem:[%s13554_s0 + $0x460] sm:$0xff] }
 0x8bb   : > { %6459 = vmatmul.f32.vlgmr.msrb.gmra.mxu1 %v7668_v0 }
 0x8bc   : > { %6589 = vmatmul.f32.vlgmr.msrb.gmra.mxu3 %v7669_v44  ;;  %v6265_v18 = vpop.f32.mrf.mxu2  ;;  %v7680_v44 = vld [vmem:[%s13554_s0 + $0x468] sm:$0xff] }
 0x8bd   : > { %v6266_v58 = vadd.f32 %v6265_v18, %v6201_v55  ;;  %v7679_v55 = vld [vmem:[%s13554_s0 + $0x470] sm:$0xff] }
 0x8be   : > { %v6138_v22 = vpop.f32.mrf.mxu0 }
 0x8bf   : > { %v6139_v23 = vadd.f32 %v6138_v22, %v12782_v2  ;;  %v6330_v5 = vpop.f32.mrf.mxu3  ;;  %v7673_v2 = vld [vmem:[%s13554_s0 + $0x238] sm:$0xff] }
 0x8c0   : > { %v13047_v27 = vadd.f32 %v6330_v5, %v6266_v58  ;;  %v6203_v10 = vpop.f32.mrf.mxu1 }
 0x8c1   : > { %6397 = vmatmul.f32.gmra.mxu0 %v7670_v36  ;;  %6527 = vmatmul.f32.gmra.mxu2 %v7671_v14  ;;  %v6204_v37 = vadd.f32 %v6203_v10, %v6139_v23  ;;  %v7682_v14 = vld [vmem:[%s13554_s0 + $0x580] sm:$0xff] }
 0x8c3   : > { %6462 = vmatmul.f32.gmra.mxu1 %v7672_v28 }
 0x8c4   : > { %6592 = vmatmul.f32.gmra.mxu3 %v7673_v2  ;;  %v6268_v15 = vpop.f32.mrf.mxu2  ;;  %v7684_v2 = vld [vmem:[%s13554_s0 + $0x588] sm:$0xff] }
 0x8c5   : > { %v6269_v41 = vadd.f32 %v6268_v15, %v6204_v37  ;;  %v7683_v37 = vld [vmem:[%s13554_s0 + $0x590] sm:$0xff] }
 0x8c6   : > { %v6141_v46 = vpop.f32.mrf.mxu0 }
 0x8c7   : > { %v6142_v38 = vadd.f32 %v6141_v46, %v12801_v21  ;;  %v6333_v42 = vpop.f32.mrf.mxu3  ;;  %v7677_v21 = vld [vmem:[%s13554_s0 + $0x358] sm:$0xff] }
 0x8c8   : > { %v13062_v49 = vadd.f32 %v6333_v42, %v6269_v41  ;;  %v6206_v31 = vpop.f32.mrf.mxu1 }
 0x8c9   : > { %6400 = vmatmul.f32.gmra.mxu0 %v7674_v54  ;;  %6530 = vmatmul.f32.gmra.mxu2 %v7675_v60  ;;  %v6207_v35 = vadd.f32 %v6206_v31, %v6142_v38  ;;  %v7686_v60 = vld [vmem:[%s13554_s0 + $0x6a0] sm:$0xff] }
 0x8cb   : > { %6465 = vmatmul.f32.gmra.mxu1 %v7676_v12 }
 0x8cc   : > { %6595 = vmatmul.f32.gmra.mxu3 %v7677_v21  ;;  %v6271_v57 = vpop.f32.mrf.mxu2  ;;  %v7688_v21 = vld [vmem:[%s13554_s0 + $0x6a8] sm:$0xff] }
 0x8cd   : > { %v6272_v1 = vadd.f32 %v6271_v57, %v6207_v35  ;;  %v7687_v35 = vld [vmem:[%s13554_s0 + $0x6b0] sm:$0xff] }
 0x8ce   : > { %v6144_v39 = vpop.f32.mrf.mxu0 }
 0x8cf   : > { %v6145_v43 = vadd.f32 %v6144_v39, %v12820_v3  ;;  %v6336_v7 = vpop.f32.mrf.mxu3  ;;  %v7681_v3 = vld [vmem:[%s13554_s0 + $0x478] sm:$0xff] }
 0x8d0   : > { %v13077_v8 = vadd.f32 %v6336_v7, %v6272_v1  ;;  %v6209_v53 = vpop.f32.mrf.mxu1 }
 0x8d1   : > { %6403 = vmatmul.f32.gmra.mxu0 %v7678_v17  ;;  %6533 = vmatmul.f32.gmra.mxu2 %v7679_v55  ;;  %v6210_v0 = vadd.f32 %v6209_v53, %v6145_v43  ;;  %v7690_v55 = vld [vmem:[%s13554_s0 + $0x7c0] sm:$0xff] }
 0x8d3   : > { %6468 = vmatmul.f32.gmra.mxu1 %v7680_v44 }
 0x8d4   : > { %6598 = vmatmul.f32.gmra.mxu3 %v7681_v3  ;;  %v6274_v18 = vpop.f32.mrf.mxu2  ;;  %v7692_v3 = vld [vmem:[%s13554_s0 + $0x7c8] sm:$0xff] }
 0x8d5   : > { %v6275_v58 = vadd.f32 %v6274_v18, %v6210_v0  ;;  %v7691_v0 = vld [vmem:[%s13554_s0 + $0x7d0] sm:$0xff] }
 0x8d6   : > { %v6147_v22 = vpop.f32.mrf.mxu0 }
 0x8d7   : > { %v6148_v23 = vadd.f32 %v6147_v22, %v12839_v19  ;;  %v6339_v5 = vpop.f32.mrf.mxu3  ;;  %v7685_v19 = vld [vmem:[%s13554_s0 + $0x598] sm:$0xff] }
 0x8d8   : > { %v13092_v10 = vadd.f32 %v6339_v5, %v6275_v58  ;;  %v6212_v36 = vpop.f32.mrf.mxu1 }
 0x8d9   : > { %6406 = vmatmul.f32.gmra.mxu0 %v7682_v14  ;;  %6536 = vmatmul.f32.gmra.mxu2 %v7683_v37  ;;  %v6213_v28 = vadd.f32 %v6212_v36, %v6148_v23  ;;  %v7694_v37 = vld [vmem:[%s13554_s0 + $0x8e0] sm:$0xff] }
 0x8db   : > { %6471 = vmatmul.f32.gmra.mxu1 %v7684_v2 }
 0x8dc   : > { %6601 = vmatmul.f32.gmra.mxu3 %v7685_v19  ;;  %v6277_v15 = vpop.f32.mrf.mxu2  ;;  %v7696_v19 = vld [vmem:[%s13554_s0 + $0x8e8] sm:$0xff] }
 0x8dd   : > { %v6278_v41 = vadd.f32 %v6277_v15, %v6213_v28  ;;  %v7695_v28 = vld [vmem:[%s13554_s0 + $0x8f0] sm:$0xff] }
 0x8de   : > { %v6150_v46 = vpop.f32.mrf.mxu0 }
 0x8df   : > { %v6151_v38 = vadd.f32 %v6150_v46, %v12858_v20  ;;  %v6342_v42 = vpop.f32.mrf.mxu3  ;;  %v7689_v20 = vld [vmem:[%s13554_s0 + $0x6b8] sm:$0xff] }
 0x8e0   : > { %v13107_v31 = vadd.f32 %v6342_v42, %v6278_v41  ;;  %v6215_v54 = vpop.f32.mrf.mxu1 }
 0x8e1   : > { %6409 = vmatmul.f32.gmra.mxu0 %v7686_v60  ;;  %6539 = vmatmul.f32.gmra.mxu2 %v7687_v35  ;;  %v6216_v12 = vadd.f32 %v6215_v54, %v6151_v38 }
 0x8e3   : > { %6474 = vmatmul.f32.gmra.mxu1 %v7688_v21  ;;  %v7699_v21 = vld [vmem:[%s13554_s0 + $0xa10] sm:$0xff] }
 0x8e4   : > { %6604 = vmatmul.f32.gmra.mxu3 %v7689_v20  ;;  %v6280_v57 = vpop.f32.mrf.mxu2  ;;  %v7700_v20 = vld [vmem:[%s13554_s0 + $0xa08] sm:$0xff] }
 0x8e5   : > { %v6281_v1 = vadd.f32 %v6280_v57, %v6216_v12  ;;  %v7698_v12 = vld [vmem:[%s13554_s0 + $0xa00] sm:$0xff] }
 0x8e6   : > { %v6153_v39 = vpop.f32.mrf.mxu0 }
 0x8e7   : > { %v6154_v43 = vadd.f32 %v6153_v39, %v12877_v62  ;;  %v6345_v7 = vpop.f32.mrf.mxu3  ;;  %v7693_v62 = vld [vmem:[%s13554_s0 + $0x7d8] sm:$0xff] }
 0x8e8   : > { %v13122_v53 = vadd.f32 %v6345_v7, %v6281_v1  ;;  %v6218_v17 = vpop.f32.mrf.mxu1 }
 0x8e9   : > { %6412 = vmatmul.f32.gmra.mxu0 %v7690_v55  ;;  %6542 = vmatmul.f32.gmra.mxu2 %v7691_v0  ;;  %v6219_v44 = vadd.f32 %v6218_v17, %v6154_v43 }
 0x8eb   : > { %6477 = vmatmul.f32.gmra.mxu1 %v7692_v3  ;;  %v7703_v3 = vld [vmem:[%s13554_s0 + $0xb30] sm:$0xff] }
 0x8ec   : > { %6607 = vmatmul.f32.gmra.mxu3 %v7693_v62  ;;  %v6283_v18 = vpop.f32.mrf.mxu2  ;;  %v7704_v62 = vld [vmem:[%s13554_s0 + $0xb28] sm:$0xff] }
 0x8ed   : > { %v6284_v58 = vadd.f32 %v6283_v18, %v6219_v44  ;;  %v7702_v44 = vld [vmem:[%s13554_s0 + $0xb20] sm:$0xff] }
 0x8ee   : > { %v6156_v22 = vpop.f32.mrf.mxu0 }
 0x8ef   : > { %v6157_v23 = vadd.f32 %v6156_v22, %v12896_v26  ;;  %v6348_v5 = vpop.f32.mrf.mxu3  ;;  %v7697_v26 = vld [vmem:[%s13554_s0 + $0x8f8] sm:$0xff] }
 0x8f0   : > { %v13137_v36 = vadd.f32 %v6348_v5, %v6284_v58  ;;  %v6221_v14 = vpop.f32.mrf.mxu1 }
 0x8f1   : > { %6415 = vmatmul.f32.gmra.mxu0 %v7694_v37  ;;  %6545 = vmatmul.f32.gmra.mxu2 %v7695_v28  ;;  %v6222_v2 = vadd.f32 %v6221_v14, %v6157_v23 }
 0x8f3   : > { %6480 = vmatmul.f32.gmra.mxu1 %v7696_v19  ;;  %v7707_v19 = vld [vmem:[%s13554_s0 + $0xc50] sm:$0xff] }
 0x8f4   : > { %6610 = vmatmul.f32.gmra.mxu3 %v7697_v26  ;;  %v6286_v15 = vpop.f32.mrf.mxu2  ;;  %v7708_v26 = vld [vmem:[%s13554_s0 + $0xc48] sm:$0xff] }
 0x8f5   : > { %v6287_v41 = vadd.f32 %v6286_v15, %v6222_v2  ;;  %v7706_v2 = vld [vmem:[%s13554_s0 + $0xc40] sm:$0xff] }
 0x8f6   : > { %v6159_v46 = vpop.f32.mrf.mxu0 }
 0x8f7   : > { %v6160_v38 = vadd.f32 %v6159_v46, %v12915_v24  ;;  %v6351_v42 = vpop.f32.mrf.mxu3  ;;  %v7701_v24 = vld [vmem:[%s13554_s0 + $0xa18] sm:$0xff] }
 0x8f8   : > { %v13152_v54 = vadd.f32 %v6351_v42, %v6287_v41  ;;  %v6224_v60 = vpop.f32.mrf.mxu1 }
 0x8f9   : > { %v6225_v35 = vadd.f32 %v6224_v60, %v6160_v38  ;;  %6418 = vmatmul.f32.gmra.mxu0 %v7698_v12  ;;  %6548 = vmatmul.f32.gmra.mxu2 %v7699_v21  ;;  %v7710_v21 = vld [vmem:[%s13554_s0 + $0xd60] sm:$0xff] }
 0x8fb   : > { %6483 = vmatmul.f32.gmra.mxu1 %v7700_v20  ;;  %v7711_v20 = vld [vmem:[%s13554_s0 + $0xd70] sm:$0xff] }
 0x8fc   : > { %6613 = vmatmul.f32.gmra.mxu3 %v7701_v24  ;;  %v6289_v57 = vpop.f32.mrf.mxu2  ;;  %v7712_v24 = vld [vmem:[%s13554_s0 + $0xd68] sm:$0xff] }
 0x8fd   : > { %v6290_v1 = vadd.f32 %v6289_v57, %v6225_v35 }
 0x8fe   : > { %v6162_v39 = vpop.f32.mrf.mxu0 }
 0x8ff   : > { %v6163_v43 = vadd.f32 %v6162_v39, %v12934_v50  ;;  %v6354_v7 = vpop.f32.mrf.mxu3  ;;  %v7705_v50 = vld [vmem:[%s13554_s0 + $0xb38] sm:$0xff] }
 0x900   : > { %v13167_v17 = vadd.f32 %v6354_v7, %v6290_v1  ;;  %v6227_v55 = vpop.f32.mrf.mxu1 }
 0x901   : > { %v6228_v0 = vadd.f32 %v6227_v55, %v6163_v43  ;;  %6421 = vmatmul.f32.gmra.mxu0 %v7702_v44  ;;  %6551 = vmatmul.f32.gmra.mxu2 %v7703_v3  ;;  %v7714_v3 = vld [vmem:[%s13554_s0 + $0xe80] sm:$0xff] }
 0x903   : > { %6486 = vmatmul.f32.gmra.mxu1 %v7704_v62  ;;  %v7715_v62 = vld [vmem:[%s13554_s0 + $0xe90] sm:$0xff] }
 0x904   : > { %6616 = vmatmul.f32.gmra.mxu3 %v7705_v50  ;;  %v6292_v18 = vpop.f32.mrf.mxu2  ;;  %v7716_v50 = vld [vmem:[%s13554_s0 + $0xe88] sm:$0xff] }
 0x905   : > { %v6293_v58 = vadd.f32 %v6292_v18, %v6228_v0 }
 0x906   : > { %v6165_v22 = vpop.f32.mrf.mxu0 }
 0x907   : > { %v6166_v23 = vadd.f32 %v6165_v22, %v12953_v9  ;;  %v6357_v5 = vpop.f32.mrf.mxu3  ;;  %v7709_v9 = vld [vmem:[%s13554_s0 + $0xc58] sm:$0xff] }
 0x908   : > { %v13182_v14 = vadd.f32 %v6357_v5, %v6293_v58  ;;  %v6230_v37 = vpop.f32.mrf.mxu1 }
 0x909   : > { %v6231_v28 = vadd.f32 %v6230_v37, %v6166_v23  ;;  %6424 = vmatmul.f32.gmra.mxu0 %v7706_v2  ;;  %6554 = vmatmul.f32.gmra.mxu2 %v7707_v19  ;;  %v7718_v19 = vld [vmem:[%s13554_s0 + $0xfa0] sm:$0xff] }
 0x90b   : > { %6489 = vmatmul.f32.gmra.mxu1 %v7708_v26  ;;  %v7719_v26 = vld [vmem:[%s13554_s0 + $0xfb0] sm:$0xff] }
 0x90c   : > { %6619 = vmatmul.f32.gmra.mxu3 %v7709_v9  ;;  %v6295_v15 = vpop.f32.mrf.mxu2  ;;  %v7720_v9 = vld [vmem:[%s13554_s0 + $0xfa8] sm:$0xff] }
 0x90d   : > { %v6296_v41 = vadd.f32 %v6295_v15, %v6231_v28 }
 0x90e   : > { %v6168_v46 = vpop.f32.mrf.mxu0 }
 0x90f   : > { %v6169_v38 = vadd.f32 %v6168_v46, %v12972_v34  ;;  %v6360_v42 = vpop.f32.mrf.mxu3  ;;  %v7713_v34 = vld [vmem:[%s13554_s0 + $0xd78] sm:$0xff] }
 0x910   : > { %v13197_v60 = vadd.f32 %v6360_v42, %v6296_v41  ;;  %v6233_v35 = vpop.f32.mrf.mxu1 }
 0x911   : > { %v6234_v12 = vadd.f32 %v6233_v35, %v6169_v38  ;;  %6427 = vmatmul.f32.gmra.mxu0 %v7710_v21  ;;  %6557 = vmatmul.f32.gmra.mxu2 %v7711_v20  ;;  %v7722_v20 = vld [vmem:[%s13554_s0 + $0x10c0] sm:$0xff] }
 0x913   : > { %6492 = vmatmul.f32.gmra.mxu1 %v7712_v24  ;;  %v7723_v24 = vld [vmem:[%s13554_s0 + $0x10d0] sm:$0xff] }
 0x914   : > { %6622 = vmatmul.f32.gmra.mxu3 %v7713_v34  ;;  %v6298_v57 = vpop.f32.mrf.mxu2  ;;  %v7724_v34 = vld [vmem:[%s13554_s0 + $0x10c8] sm:$0xff] }
 0x915   : > { %v6299_v1 = vadd.f32 %v6298_v57, %v6234_v12 }
 0x916   : > { %v6171_v39 = vpop.f32.mrf.mxu0 }
 0x917   : > { %v6172_v43 = vadd.f32 %v6171_v39, %v12987_v4  ;;  %v6363_v7 = vpop.f32.mrf.mxu3  ;;  %v7717_v4 = vld [vmem:[%s13554_s0 + $0xe98] sm:$0xff] }
 0x918   : > { %v13212_v55 = vadd.f32 %v6363_v7, %v6299_v1  ;;  %v6236_v0 = vpop.f32.mrf.mxu1 }
 0x919   : > { %v6237_v44 = vadd.f32 %v6236_v0, %v6172_v43  ;;  %6430 = vmatmul.f32.gmra.mxu0 %v7714_v3  ;;  %6560 = vmatmul.f32.gmra.mxu2 %v7715_v62  ;;  %v7726_v62 = vld [vmem:[%s13554_s0 + $0x11e0] sm:$0xff] }
 0x91b   : > { %6495 = vmatmul.f32.gmra.mxu1 %v7716_v50  ;;  %v7727_v50 = vld [vmem:[%s13554_s0 + $0x11f0] sm:$0xff] }
 0x91c   : > { %6625 = vmatmul.f32.gmra.mxu3 %v7717_v4  ;;  %v6301_v18 = vpop.f32.mrf.mxu2  ;;  %v7729_v4 = vld [vmem:[%s13554_s0 + $0x11f8] sm:$0xff] }
 0x91d   : > { %v6302_v58 = vadd.f32 %v6301_v18, %v6237_v44 }
 0x91e   : > { %v6174_v22 = vpop.f32.mrf.mxu0 }
 0x91f   : > { %v6175_v23 = vadd.f32 %v6174_v22, %v13002_v6  ;;  %v6366_v5 = vpop.f32.mrf.mxu3  ;;  %v7721_v6 = vld [vmem:[%s13554_s0 + $0xfb8] sm:$0xff] }
 0x920   : > { %v13227_v37 = vadd.f32 %v6366_v5, %v6302_v58  ;;  %v6239_v28 = vpop.f32.mrf.mxu1 }
 0x921   : > { %v6240_v2 = vadd.f32 %v6239_v28, %v6175_v23  ;;  %6433 = vmatmul.f32.gmra.mxu0 %v7718_v19  ;;  %6563 = vmatmul.f32.gmra.mxu2 %v7719_v26 }
 0x923   : > { %6498 = vmatmul.f32.gmra.mxu1 %v7720_v9 }
 0x924   : > { %6628 = vmatmul.f32.gmra.mxu3 %v7721_v6  ;;  %v6304_v15 = vpop.f32.mrf.mxu2 }
 0x925   : > { %v6305_v41 = vadd.f32 %v6304_v15, %v6240_v2 }
 0x926   : > { %v6177_v46 = vpop.f32.mrf.mxu0 }
 0x927   : > { %v6178_v38 = vadd.f32 %v6177_v46, %v13017_v52  ;;  %v6369_v42 = vpop.f32.mrf.mxu3  ;;  %v7725_v52 = vld [vmem:[%s13554_s0 + $0x10d8] sm:$0xff] }
 0x928   : > { %v13242_v35 = vadd.f32 %v6369_v42, %v6305_v41  ;;  %v6242_v12 = vpop.f32.mrf.mxu1 }
 0x929   : > { %v6243_v21 = vadd.f32 %v6242_v12, %v6178_v38  ;;  %6436 = vmatmul.f32.gmra.mxu0 %v7722_v20  ;;  %6566 = vmatmul.f32.gmra.mxu2 %v7723_v24  ;;  %v13279_v38 = vld [vmem:[%s225_s8] sm:$0x3]  ;;  %s7750_s8 = scalar_lea.hbm %s13558_s4, 512 }
 0x92a   : > { %v13285_v12 = vperm.slane %v13279_v38, 1  ;;  %v13287_v24 = vld [vmem:[%s229_s10] sm:$0x3]  ;;  %p7752_p1 = scmp.lt.s32.totalorder %s7750_s8, %s7746_s30 }
 0x92b   : > { %6501 = vmatmul.f32.gmra.mxu1 %v7724_v34 }
 0x92c   : > { %6631 = vmatmul.f32.gmra.mxu3 %v7725_v52  ;;  %v6307_v57 = vpop.f32.mrf.mxu2  ;;  %p7753_p2 = por %p7752_p1, %p7751_p0 }
 0x92d   : > { %v6308_v1 = vadd.f32 %v6307_v57, %v6243_v21 }
 0x92e   : > { %v6180_v39 = vpop.f32.mrf.mxu0  ;;  %p7754_p3 = pnand %p7753_p2, %p7749_p13 }
 0x92f   : > { %v6181_v43 = vadd.f32 %v6180_v39, %v13032_v51  ;;  %v6372_v7 = vpop.f32.mrf.mxu3  ;;  %v7728_v51 = vld [vmem:[%s13554_s0 + $0x11e8] sm:$0xff] }
 0x930   : > { %v13257_v0 = vadd.f32 %v6372_v7, %v6308_v1  ;;  %v6245_v44 = vpop.f32.mrf.mxu1  ;;  %v13292_v1 = vperm.slane %v13287_v24, 1 }
 0x931   : > { %v6246_v3 = vadd.f32 %v6245_v44, %v6181_v43  ;;  %6439 = vmatmul.f32.gmra.mxu0 %v7726_v62  ;;  %6569 = vmatmul.f32.gmra.mxu2 %v7727_v50 }
 0x933   : > { %6504 = vmatmul.f32.gmra.mxu1 %v7728_v51 }
 0x934   : > { %6634 = vmatmul.f32.gmra.mxu3 %v7729_v4  ;;  %v6310_v18 = vpop.f32.mrf.mxu2 }
 0x935   : > { %v6311_v58 = vadd.f32 %v6310_v18, %v6246_v3 }
 0x936   : > { %v6395_v22 = vpop.f32.mrf.mxu0 }
 0x937   : > { %v6375_v23 = vpop.f32.mrf.mxu3  ;;  %v6396_v2 = vadd.f32 %v6395_v22, %v13047_v27 }
 0x938   : > { %v13271_v5 = vadd.f32 %v6375_v23, %v6311_v58  ;;  %v6460_v28 = vpop.f32.mrf.mxu1 }
 0x939   : > { %v6461_v26 = vadd.f32 %v6460_v28, %v6396_v2 }
 0x93c   : > { %v6525_v19 = vpop.f32.mrf.mxu2 }
 0x93d   : > { %v6526_v41 = vadd.f32 %v6525_v19, %v6461_v26 }
 0x93e   : > { %v6398_v9 = vpop.f32.mrf.mxu0 }
 0x93f   : > { %v6399_v6 = vadd.f32 %v6398_v9, %v13062_v49  ;;  %v6590_v15 = vpop.f32.mrf.mxu3 }
 0x940   : > { %v6463_v46 = vpop.f32.mrf.mxu1  ;;  %v6591_v27 = vadd.f32 %v6590_v15, %v6526_v41 }
 0x941   : > { %v6464_v42 = vadd.f32 %v6463_v46, %v6399_v6 }
 0x942   : > { %v6645_v57 = vmul.f32 %v13285_v12, %v6591_v27 }
 0x944   : > { %v6528_v21 = vpop.f32.mrf.mxu2  ;;  %v13296_v3 = vadd.f32 %v13292_v1, %v6645_v57 }
 0x945   : > { %v6529_v49 = vadd.f32 %v6528_v21, %v6464_v42 }
 0x946   : > { %v6401_v20 = vpop.f32.mrf.mxu0 }
 0x947   : > { %v6402_v34 = vadd.f32 %v6401_v20, %v13077_v8  ;;  %v6593_v52 = vpop.f32.mrf.mxu3 }
 0x948   : > { %v6594_v39 = vadd.f32 %v6593_v52, %v6529_v49  ;;  %v6466_v43 = vpop.f32.mrf.mxu1 }
 0x949   : > { %v6467_v44 = vadd.f32 %v6466_v43, %v6402_v34 }
 0x94a   : > { %v6647_v7 = vmul.f32 %v13285_v12, %v6594_v39 }
 0x94c   : > { %v13299_v62 = vadd.f32 %v13292_v1, %v6647_v7  ;;  %v6531_v50 = vpop.f32.mrf.mxu2 }
 0x94d   : > { %v6532_v51 = vadd.f32 %v6531_v50, %v6467_v44 }
 0x94e   : > { %v6714_v8 = vadd.f32 %v13299_v62, %v13296_v3  ;;  %v6404_v4 = vpop.f32.mrf.mxu0 }
 0x94f   : > { %v6405_v18 = vadd.f32 %v6404_v4, %v13092_v10  ;;  %v6596_v58 = vpop.f32.mrf.mxu3 }
 0x950   : > { %v6597_v22 = vadd.f32 %v6596_v58, %v6532_v51  ;;  %v6469_v23 = vpop.f32.mrf.mxu1 }
 0x951   : > { %v6470_v2 = vadd.f32 %v6469_v23, %v6405_v18 }
 0x952   : > { %v6649_v28 = vmul.f32 %v13285_v12, %v6597_v22 }
 0x954   : > { %v13306_v19 = vadd.f32 %v13292_v1, %v6649_v28  ;;  %v6534_v26 = vpop.f32.mrf.mxu2 }
 0x955   : > { %v6535_v9 = vadd.f32 %v6534_v26, %v6470_v2 }
 0x956   : > { %v6715_v6 = vadd.f32 %v6714_v8, %v13306_v19  ;;  %v6407_v15 = vpop.f32.mrf.mxu0 }
 0x957   : > { %v6408_v41 = vadd.f32 %v6407_v15, %v13107_v31  ;;  %v6599_v46 = vpop.f32.mrf.mxu3 }
 0x958   : > { %v6600_v42 = vadd.f32 %v6599_v46, %v6535_v9  ;;  %v6472_v27 = vpop.f32.mrf.mxu1 }
 0x959   : > { %v6473_v21 = vadd.f32 %v6472_v27, %v6408_v41 }
 0x95a   : > { %v6651_v10 = vmul.f32 %v13285_v12, %v6600_v42 }
 0x95c   : > { %v13312_v49 = vadd.f32 %v13292_v1, %v6651_v10  ;;  %v6537_v20 = vpop.f32.mrf.mxu2 }
 0x95d   : > { %v6538_v34 = vadd.f32 %v6537_v20, %v6473_v21 }
 0x95e   : > { %v6716_v52 = vadd.f32 %v6715_v6, %v13312_v49  ;;  %v6410_v57 = vpop.f32.mrf.mxu0 }
 0x95f   : > { %v6411_v39 = vadd.f32 %v6410_v57, %v13122_v53  ;;  %v6602_v43 = vpop.f32.mrf.mxu3 }
 0x960   : > { %v6603_v7 = vadd.f32 %v6602_v43, %v6538_v34  ;;  %v6475_v44 = vpop.f32.mrf.mxu1 }
 0x961   : > { %v6476_v50 = vadd.f32 %v6475_v44, %v6411_v39 }
 0x962   : > { %v6653_v31 = vmul.f32 %v13285_v12, %v6603_v7 }
 0x964   : > { %v13318_v51 = vadd.f32 %v13292_v1, %v6653_v31  ;;  %v6540_v8 = vpop.f32.mrf.mxu2 }
 0x965   : > { %v6541_v4 = vadd.f32 %v6540_v8, %v6476_v50 }
 0x966   : > { %v6717_v18 = vadd.f32 %v6716_v52, %v13318_v51  ;;  %v6413_v58 = vpop.f32.mrf.mxu0 }
 0x967   : > { %v6414_v22 = vadd.f32 %v6413_v58, %v13137_v36  ;;  %v6605_v23 = vpop.f32.mrf.mxu3  ;;  %v7794_v36 = vmov 64.0  }
 0x968   : > { %v6606_v28 = vadd.f32 %v6605_v23, %v6541_v4  ;;  %v6478_v2 = vpop.f32.mrf.mxu1  ;;  %7116 = vrcp.f32 %v7794_v36 }
 0x969   : > { %v6479_v26 = vadd.f32 %v6478_v2, %v6414_v22 }
 0x96a   : > { %v6655_v53 = vmul.f32 %v13285_v12, %v6606_v28 }
 0x96c   : > { %v13324_v9 = vadd.f32 %v13292_v1, %v6655_v53  ;;  %v6543_v6 = vpop.f32.mrf.mxu2 }
 0x96d   : > { %v6544_v15 = vadd.f32 %v6543_v6, %v6479_v26 }
 0x96e   : > { %v6718_v41 = vadd.f32 %v6717_v18, %v13324_v9  ;;  %v6416_v46 = vpop.f32.mrf.mxu0  ;;  %v7117_v43 = vpop.eup %7116 }
 0x96f   : > { %v6417_v42 = vadd.f32 %v6416_v46, %v13152_v54  ;;  %v6608_v27 = vpop.f32.mrf.mxu3  ;;  %v6741_v4 = vmul.f32 64.0, %v7117_v43  ;;  %vm6745_vm0 = vweird.f32 %v7117_v43 }
 0x970   : > { %v6609_v10 = vadd.f32 %v6608_v27, %v6544_v15  ;;  %v6481_v21 = vpop.f32.mrf.mxu1 }
 0x971   : > { %v6482_v34 = vadd.f32 %v6481_v21, %v6417_v42  ;;  %v6742_v22 = vsub.f32 1.0, %v6741_v4 }
 0x972   : > { %v6657_v20 = vmul.f32 %v13285_v12, %v6609_v10 }
 0x974   : > { %v6695_v52 = vadd.f32 %v13292_v1, %v6657_v20  ;;  %v6546_v57 = vpop.f32.mrf.mxu2 }
 0x975   : > { %v6547_v39 = vadd.f32 %v6546_v57, %v6482_v34 }
 0x976   : > { %v6719_v7 = vadd.f32 %v6718_v41, %v6695_v52  ;;  %v6419_v44 = vpop.f32.mrf.mxu0  ;;  %v6743_v41 = vmul.f32 %v7117_v43, %v6742_v22 }
 0x977   : > { %v6611_v31 = vpop.f32.mrf.mxu3  ;;  %v6420_v23 = vadd.f32 %v6419_v44, %v13167_v17 }
 0x978   : > { %v6612_v50 = vadd.f32 %v6611_v31, %v6547_v39  ;;  %v6484_v8 = vpop.f32.mrf.mxu1  ;;  %v6744_v20 = vadd.f32 %v7117_v43, %v6743_v41 }
 0x979   : > { %v6485_v42 = vadd.f32 %v6484_v8, %v6420_v23 }
 0x97a   : > { %v6659_v54 = vmul.f32 %v13285_v12, %v6612_v50  ;;  %v13335_v4 = vsel %vm6745_vm0, %v7117_v43, %v6744_v20 }
 0x97c   : > { %v6697_v18 = vadd.f32 %v13292_v1, %v6659_v54  ;;  %v6549_v58 = vpop.f32.mrf.mxu2 }
 0x97d   : > { %v6550_v21 = vadd.f32 %v6549_v58, %v6485_v42 }
 0x97e   : > { %v6720_v28 = vadd.f32 %v6719_v7, %v6697_v18  ;;  %v6422_v2 = vpop.f32.mrf.mxu0 }
 0x97f   : > { %v6423_v53 = vadd.f32 %v6422_v2, %v13182_v14  ;;  %v6614_v26 = vpop.f32.mrf.mxu3 }
 0x980   : > { %v6721_v6 = vrot.slane %v6720_v28, 4  ;;  %v6487_v15 = vpop.f32.mrf.mxu1  ;;  %v6615_v14 = vadd.f32 %v6614_v26, %v6550_v21 }
 0x981   : > { %v6488_v27 = vadd.f32 %v6487_v15, %v6423_v53 }
 0x982   : > { %v6722_v46 = vadd.f32 %v6721_v6, %v6720_v28  ;;  %v6661_v23 = vmul.f32 %v13285_v12, %v6615_v14 }
 0x984   : > { %v6723_v10 = vrot.slane %v6722_v46, 2  ;;  %v6552_v36 = vpop.f32.mrf.mxu2 }
 0x985   : > { %v6553_v34 = vadd.f32 %v6552_v36, %v6488_v27 }
 0x986   : > { %v6724_v57 = vadd.f32 %v6723_v10, %v6722_v46  ;;  %v6425_v39 = vpop.f32.mrf.mxu0 }
 0x987   : > { %v6426_v17 = vadd.f32 %v6425_v39, %v13197_v60  ;;  %v6617_v7 = vpop.f32.mrf.mxu3 }
 0x988   : > { %v6725_v44 = vrot.slane %v6724_v57, 1  ;;  %v6618_v31 = vadd.f32 %v6617_v7, %v6553_v34  ;;  %v6490_v50 = vpop.f32.mrf.mxu1 }
 0x989   : > { %v6491_v22 = vadd.f32 %v6490_v50, %v6426_v17 }
 0x98a   : > { %v6726_v54 = vadd.f32 %v6725_v44, %v6724_v57  ;;  %v6663_v8 = vmul.f32 %v13285_v12, %v6618_v31 }
 0x98c   : > { %v6747_v58 = vmul.f32 %v13335_v4, %v6726_v54  ;;  %v6555_v28 = vpop.f32.mrf.mxu2  ;;  %v13341_v2 = vadd.f32 %v13292_v1, %v6663_v8 }
 0x98d   : > { %v6556_v60 = vadd.f32 %v6555_v28, %v6491_v22 }
 0x98e   : > { %v13344_v53 = vsub.f32 %v13296_v3, %v6747_v58  ;;  %v13347_v26 = vsub.f32 %v13299_v62, %v6747_v58  ;;  %v13350_v43 = vsub.f32 %v13306_v19, %v6747_v58  ;;  %v13353_v6 = vsub.f32 %v13312_v49, %v6747_v58  ;;  %v6428_v15 = vpop.f32.mrf.mxu0 }
 0x98f   : > { %v13356_v41 = vsub.f32 %v13318_v51, %v6747_v58  ;;  %v13359_v46 = vsub.f32 %v13324_v9, %v6747_v58  ;;  %v13361_v42 = vsub.f32 %v6695_v52, %v6747_v58  ;;  %v13363_v3 = vsub.f32 %v6697_v18, %v6747_v58  ;;  %v6620_v27 = vpop.f32.mrf.mxu3 }
 0x990   : > { %v6765_v62 = vmul.f32 %v13344_v53, %v13344_v53  ;;  %v6766_v19 = vmul.f32 %v13347_v26, %v13347_v26  ;;  %v13370_v49 = vadd.f32 %v13292_v1, %v6661_v23  ;;  %v6493_v10 = vpop.f32.mrf.mxu1  ;;  %v6767_v51 = vmul.f32 %v13350_v43, %v13350_v43 }
 0x991   : > { %v6429_v18 = vadd.f32 %v6428_v15, %v13212_v55  ;;  %v6621_v21 = vadd.f32 %v6620_v27, %v6556_v60  ;;  %v6768_v36 = vmul.f32 %v13353_v6, %v13353_v6  ;;  %v6769_v17 = vmul.f32 %v13356_v41, %v13356_v41 }
 0x992   : > { %v6781_v9 = vadd.f32 %v6766_v19, %v6765_v62  ;;  %v6727_v52 = vadd.f32 %v13341_v2, %v13370_v49  ;;  %v6770_v54 = vmul.f32 %v13359_v46, %v13359_v46  ;;  %v6771_v28 = vmul.f32 %v13361_v42, %v13361_v42 }
 0x993   : > { %v6665_v34 = vmul.f32 %v13285_v12, %v6621_v21  ;;  %v6494_v57 = vadd.f32 %v6493_v10, %v6429_v18  ;;  %v6772_v62 = vmul.f32 %v13363_v3, %v13363_v3 }
 0x994   : > { %v6782_v20 = vadd.f32 %v6781_v9, %v6767_v51  ;;  %v6558_v39 = vpop.f32.mrf.mxu2 }
 0x995   : > { %v13383_v44 = vadd.f32 %v13292_v1, %v6665_v34  ;;  %v6559_v14 = vadd.f32 %v6558_v39, %v6494_v57 }
 0x996   : > { %v6783_v7 = vadd.f32 %v6782_v20, %v6768_v36  ;;  %v6431_v31 = vpop.f32.mrf.mxu0 }
 0x997   : > { %v6432_v55 = vadd.f32 %v6431_v31, %v13227_v37  ;;  %v6623_v50 = vpop.f32.mrf.mxu3  ;;  %v6728_v22 = vadd.f32 %v6727_v52, %v13383_v44 }
 0x998   : > { %v6784_v8 = vadd.f32 %v6783_v7, %v6769_v17  ;;  %v6624_v58 = vadd.f32 %v6623_v50, %v6559_v14  ;;  %v6496_v23 = vpop.f32.mrf.mxu1 }
 0x999   : > { %v6497_v27 = vadd.f32 %v6496_v23, %v6432_v55 }
 0x99a   : > { %v6785_v60 = vadd.f32 %v6784_v8, %v6770_v54  ;;  %v6667_v15 = vmul.f32 %v13285_v12, %v6624_v58 }
 0x99c   : > { %v6786_v37 = vadd.f32 %v6785_v60, %v6771_v28  ;;  %v13395_v19 = vadd.f32 %v13292_v1, %v6667_v15  ;;  %v6561_v10 = vpop.f32.mrf.mxu2 }
 0x99d   : > { %v6562_v51 = vadd.f32 %v6561_v10, %v6497_v27 }
 0x99e   : > { %v6787_v9 = vadd.f32 %v6786_v37, %v6772_v62  ;;  %v6729_v52 = vadd.f32 %v6728_v22, %v13395_v19  ;;  %v6434_v18 = vpop.f32.mrf.mxu0 }
 0x99f   : > { %v6435_v21 = vadd.f32 %v6434_v18, %v13242_v35  ;;  %v6626_v36 = vpop.f32.mrf.mxu3 }
 0x9a0   : > { %v6788_v20 = vrot.slane %v6787_v9, 4  ;;  %v6627_v34 = vadd.f32 %v6626_v36, %v6562_v51  ;;  %v6499_v57 = vpop.f32.mrf.mxu1 }
 0x9a1   : > { %v6500_v7 = vadd.f32 %v6499_v57, %v6435_v21 }
 0x9a2   : > { %v6789_v39 = vadd.f32 %v6788_v20, %v6787_v9  ;;  %v6669_v17 = vmul.f32 %v13285_v12, %v6627_v34 }
 0x9a4   : > { %v6790_v14 = vrot.slane %v6789_v39, 2  ;;  %v13401_v31 = vadd.f32 %v13292_v1, %v6669_v17  ;;  %v6564_v55 = vpop.f32.mrf.mxu2 }
 0x9a5   : > { %v6565_v50 = vadd.f32 %v6564_v55, %v6500_v7 }
 0x9a6   : > { %v6791_v54 = vadd.f32 %v6790_v14, %v6789_v39  ;;  %v6730_v8 = vadd.f32 %v6729_v52, %v13401_v31  ;;  %v6437_v22 = vpop.f32.mrf.mxu0 }
 0x9a7   : > { %v6438_v35 = vadd.f32 %v6437_v22, %v13257_v0  ;;  %v6629_v58 = vpop.f32.mrf.mxu3 }
 0x9a8   : > { %v6792_v23 = vrot.slane %v6791_v54, 1  ;;  %v6630_v28 = vadd.f32 %v6629_v58, %v6565_v50  ;;  %v6502_v60 = vpop.f32.mrf.mxu1 }
 0x9a9   : > { %v6503_v62 = vadd.f32 %v6502_v60, %v6438_v35 }
 0x9aa   : > { %v6793_v15 = vadd.f32 %v6792_v23, %v6791_v54  ;;  %v6671_v27 = vmul.f32 %v13285_v12, %v6630_v28 }
 0x9ac   : > { %v6807_v37 = vmul.f32 %v6793_v15, %v13335_v4  ;;  %v13408_v10 = vadd.f32 %v13292_v1, %v6671_v27  ;;  %v6567_v51 = vpop.f32.mrf.mxu2 }
 0x9ad   : > { %v6568_v9 = vadd.f32 %v6567_v51, %v6503_v62 }
 0x9ae   : > { %v6809_v18 = vadd.f32 1e-05, %v6807_v37  ;;  %v6731_v52 = vadd.f32 %v6730_v8, %v13408_v10  ;;  %v6440_v21 = vpop.f32.mrf.mxu0 }
 0x9af   : > { %v6441_v0 = vadd.f32 %v6440_v21, %v13271_v5  ;;  %v6632_v36 = vpop.f32.mrf.mxu3 }
 0x9b0   : > { %7118 = vrsqrt.f32 %v6809_v18  ;;  %v6633_v20 = vadd.f32 %v6632_v36, %v6568_v9  ;;  %v6505_v34 = vpop.f32.mrf.mxu1  ;;  %vm6817_vm2 = vweird.f32 %v6809_v18 }
 0x9b1   : > { %v6506_v39 = vadd.f32 %v6505_v34, %v6441_v0 }
 0x9b2   : > { %v6673_v57 = vmul.f32 %v13285_v12, %v6633_v20 }
 0x9b4   : > { %v13414_v17 = vadd.f32 %v13292_v1, %v6673_v57  ;;  %v6570_v7 = vpop.f32.mrf.mxu2 }
 0x9b5   : > { %v6571_v14 = vadd.f32 %v6570_v7, %v6506_v39 }
 0x9b6   : > { %v7119_v55 = vpop.eup %7118  ;;  %v6732_v50 = vadd.f32 %v6731_v52, %v13414_v17 }
 0x9b7   : > { %v6812_v54 = vmul.f32 %v7119_v55, %v6809_v18  ;;  %v6635_v8 = vpop.f32.mrf.mxu3  ;;  %vm6818_vm1 = vweird.f32 %v7119_v55  ;;  %v13431_v18 = vperm.slane %v13279_v38, 0 }
 0x9b8   : > { %v6636_v22 = vadd.f32 %v6635_v8, %v6571_v14  ;;  %vm6819_vm3 = vmor %vm6817_vm2, %vm6818_vm1 }
 0x9b9   : > { %v6813_v35 = vmul.f32 %v7119_v55, %v6812_v54  ;;  %v6648_v39 = vmul.f32 %v13431_v18, %v10689_v61  ;;  %v6654_v14 = vmul.f32 %v13431_v18, %v10746_v47 }
 0x9ba   : > { %v6675_v5 = vmul.f32 %v13285_v12, %v6636_v22 }
 0x9bb   : > { %v6814_v58 = vmul.f32 0.5, %v6813_v35 }
 0x9bc   : > { %v13419_v23 = vadd.f32 %v13292_v1, %v6675_v5 }
 0x9bd   : > { %v6815_v28 = vsub.f32 1.5, %v6814_v58 }
 0x9be   : > { %v6733_v60 = vadd.f32 %v6732_v50, %v13419_v23  ;;  %v6656_v50 = vmul.f32 %v13431_v18, %v10765_v40 }
 0x9bf   : > { %v6816_v15 = vmul.f32 %v7119_v55, %v6815_v28 }
 0x9c0   : > { %v6734_v62 = vrot.slane %v6733_v60, 4 }
 0x9c1   : > { %v6820_v27 = vsel %vm6819_vm3, %v7119_v55, %v6816_v15 }
 0x9c2   : > { %v6831_v37 = vmul.f32 %v6820_v27, %v13344_v53  ;;  %v6832_v51 = vmul.f32 %v6820_v27, %v13347_v26  ;;  %v6833_v9 = vmul.f32 %v6820_v27, %v13350_v43  ;;  %v6834_v12 = vmul.f32 %v6820_v27, %v13353_v6 }
 0x9c3   : > { %v6835_v1 = vmul.f32 %v6820_v27, %v13356_v41  ;;  %v6836_v52 = vmul.f32 %v6820_v27, %v13359_v46  ;;  %v6837_v21 = vmul.f32 %v6820_v27, %v13361_v42  ;;  %v6838_v0 = vmul.f32 %v6820_v27, %v13363_v3 }
 0x9c4   : > { %v6847_v36 = vmul.f32 0.5, %v6831_v37  ;;  %v6848_v20 = vmul.f32 0.5, %v6832_v51  ;;  %v6849_v53 = vmul.f32 0.5, %v6833_v9  ;;  %v6850_v34 = vmul.f32 0.5, %v6834_v12 }
 0x9c5   : > { %v6851_v26 = vmul.f32 0.5, %v6835_v1  ;;  %v6735_v43 = vadd.f32 %v6734_v62, %v6733_v60  ;;  %v13434_v6 = vperm.slane %v13287_v24, 0  ;;  %v6852_v41 = vmul.f32 0.5, %v6836_v52 }
 0x9c6   : > { %7120 = vtanh.f32 %v6847_v36  ;;  %v6644_v46 = vmul.f32 %v13431_v18, %v10651_v29  ;;  %v6853_v42 = vmul.f32 0.5, %v6837_v21  ;;  %v6646_v3 = vmul.f32 %v13431_v18, %v10670_v45 }
 0x9c7   : > { %7122 = vtanh.f32 %v6848_v20  ;;  %v6736_v38 = vrot.slane %v6735_v43, 2  ;;  %v6854_v57 = vmul.f32 0.5, %v6838_v0  ;;  %v6650_v24 = vmul.f32 %v13431_v18, %v10708_v13 }
 0x9c8   : > { %7124 = vtanh.f32 %v6849_v53  ;;  %v6652_v29 = vmul.f32 %v13431_v18, %v10727_v30  ;;  %v6682_v45 = vadd.f32 %v13434_v6, %v6644_v46  ;;  %v6684_v54 = vadd.f32 %v13434_v6, %v6646_v3 }
 0x9c9   : > { %7126 = vtanh.f32 %v6850_v34  ;;  %v6737_v7 = vadd.f32 %v6736_v38, %v6735_v43  ;;  %v6658_v30 = vmul.f32 %v13431_v18, %v10784_v59  ;;  %v6686_v22 = vadd.f32 %v13434_v6, %v6648_v39 }
 0x9ca   : > { %7128 = vtanh.f32 %v6851_v26  ;;  %v6688_v35 = vadd.f32 %v13434_v6, %v6650_v24  ;;  %v6690_v28 = vadd.f32 %v13434_v6, %v6652_v29  ;;  %v6692_v60 = vadd.f32 %v13434_v6, %v6654_v14 }
 0x9cb   : > { %7130 = vtanh.f32 %v6852_v41  ;;  %v6738_v61 = vrot.slane %v6737_v7, 1  ;;  %v6694_v59 = vadd.f32 %v13434_v6, %v6656_v50  ;;  %v6696_v1 = vadd.f32 %v13434_v6, %v6658_v30 }
 0x9cc   : > { %v7121_v55 = vpop.eup %7120  ;;  %7132 = vtanh.f32 %v6853_v42 }
 0x9cd   : > { %v7123_v13 = vpop.eup %7122  ;;  %7134 = vtanh.f32 %v6854_v57  ;;  %v6879_v8 = vmul.f32 0.5, %v7121_v55  ;;  %v6739_v58 = vadd.f32 %v6738_v61, %v6737_v7 }
 0x9ce   : > { %v7125_v47 = vpop.eup %7124  ;;  %v6880_v5 = vmul.f32 0.5, %v7123_v13 }
 0x9cf   : > { %v7127_v40 = vpop.eup %7126  ;;  %v6881_v15 = vmul.f32 0.5, %v7125_v47  ;;  %v6895_v27 = vadd.f32 0.5, %v6879_v8  ;;  %v6748_v9 = vmul.f32 %v13335_v4, %v6739_v58 }
 0x9d0   : > { %v7129_v62 = vpop.eup %7128  ;;  %v6882_v37 = vmul.f32 0.5, %v7127_v40  ;;  %v6896_v51 = vadd.f32 0.5, %v6880_v5 }
 0x9d1   : > { %v7131_v12 = vpop.eup %7130  ;;  %v6883_v52 = vmul.f32 0.5, %v7129_v62  ;;  %v6897_v21 = vadd.f32 0.5, %v6881_v15  ;;  %v6911_v0 = vmul.f32 %v6895_v27, %v6682_v45  ;;  %v13465_v26 = vsub.f32 %v13370_v49, %v6748_v9 }
 0x9d2   : > { %v7133_v36 = vpop.eup %7132  ;;  %v6884_v20 = vmul.f32 0.5, %v7131_v12  ;;  %v6898_v53 = vadd.f32 0.5, %v6882_v37  ;;  %v6912_v34 = vmul.f32 %v6896_v51, %v6684_v54  ;;  %v6758_v49 = vsub.f32 %v13341_v2, %v6748_v9 }
 0x9d3   : > { %v7135_v43 = vpop.eup %7134  ;;  %v6885_v41 = vmul.f32 0.5, %v7133_v36  ;;  %v6899_v46 = vadd.f32 0.5, %v6883_v52  ;;  %v6913_v42 = vmul.f32 %v6897_v21, %v6686_v22  ;;  %v6927_v38 = vmax.f32 %v6911_v0, 0.0 }
 0x9d4   : > { %v6886_v3 = vmul.f32 0.5, %v7135_v43  ;;  %v6900_v57 = vadd.f32 0.5, %v6884_v20  ;;  %v6914_v39 = vmul.f32 %v6898_v53, %v6688_v35  ;;  %v6928_v24 = vmax.f32 %v6912_v34, 0.0 }
 0x9d5   : > { %v6901_v7 = vadd.f32 0.5, %v6885_v41  ;;  %v6915_v29 = vmul.f32 %v6899_v46, %v6690_v28  ;;  %v6929_v14 = vmax.f32 %v6913_v42, 0.0  ;;  %6943 = vst [vmem:[%s13467_s12] sm:$0xff] %v6927_v38  ;;  %v6759_v61 = vsub.f32 %v13383_v44, %v6748_v9 }
 0x9d6   : > { %v6902_v55 = vadd.f32 0.5, %v6886_v3  ;;  %v6916_v45 = vmul.f32 %v6900_v57, %v6692_v60  ;;  %v6930_v50 = vmax.f32 %v6914_v39, 0.0  ;;  %6944 = vst [vmem:[%s13467_s12 + $0x8] sm:$0xff] %v6928_v24  ;;  %v6760_v30 = vsub.f32 %v13395_v19, %v6748_v9 }
 0x9d7   : > { %v6917_v13 = vmul.f32 %v6901_v7, %v6694_v59  ;;  %v6931_v54 = vmax.f32 %v6915_v29, 0.0  ;;  %6945 = vst [vmem:[%s13467_s12 + $0x10] sm:$0xff] %v6929_v14  ;;  %v6761_v8 = vsub.f32 %v13401_v31, %v6748_v9  ;;  %v6762_v2 = vsub.f32 %v13408_v10, %v6748_v9 }
 0x9d8   : > { %v6918_v47 = vmul.f32 %v6902_v55, %v6696_v1  ;;  %v6932_v22 = vmax.f32 %v6916_v45, 0.0  ;;  %6946 = vst [vmem:[%s13467_s12 + $0x18] sm:$0xff] %v6930_v50  ;;  %v6763_v35 = vsub.f32 %v13414_v17, %v6748_v9  ;;  %v6764_v44 = vsub.f32 %v13419_v23, %v6748_v9 }
 0x9d9   : > { %v6933_v5 = vmax.f32 %v6917_v13, 0.0  ;;  %6947 = vst [vmem:[%s13467_s12 + $0x20] sm:$0xff] %v6931_v54  ;;  %v6773_v58 = vmul.f32 %v13465_v26, %v13465_v26  ;;  %v6774_v40 = vmul.f32 %v6758_v49, %v6758_v49  ;;  %v6775_v19 = vmul.f32 %v6759_v61, %v6759_v61 }
 0x9da   : > { %v6934_v28 = vmax.f32 %v6918_v47, 0.0  ;;  %6948 = vst [vmem:[%s13467_s12 + $0x28] sm:$0xff] %v6932_v22  ;;  %v6776_v60 = vmul.f32 %v6760_v30, %v6760_v30  ;;  %v6777_v27 = vmul.f32 %v6761_v8, %v6761_v8  ;;  %v6778_v62 = vmul.f32 %v6762_v2, %v6762_v2 }
 0x9db   : > { %6949 = vst [vmem:[%s13467_s12 + $0x30] sm:$0xff] %v6933_v5  ;;  %v6794_v31 = vadd.f32 %v6774_v40, %v6773_v58  ;;  %v6779_v59 = vmul.f32 %v6763_v35, %v6763_v35  ;;  %v6780_v51 = vmul.f32 %v6764_v44, %v6764_v44 }
 0x9dc   : > { %6950 = vst [vmem:[%s13467_s12 + $0x38] sm:$0xff] %v6934_v28 }
 0x9dd   : > { %v6795_v15 = vadd.f32 %v6794_v31, %v6775_v19 }
 0x9df   : > { %v6796_v10 = vadd.f32 %v6795_v15, %v6776_v60 }
 0x9e1   : > { %v6797_v17 = vadd.f32 %v6796_v10, %v6777_v27 }
 0x9e3   : > { %v6798_v37 = vadd.f32 %v6797_v17, %v6778_v62 }
 0x9e5   : > { %v6799_v23 = vadd.f32 %v6798_v37, %v6779_v59  ;;  %v6672_v59 = vmul.f32 %v13431_v18, %v10917_v32 }
 0x9e7   : > { %v6800_v9 = vadd.f32 %v6799_v23, %v6780_v51 }
 0x9e9   : > { %v6801_v12 = vrot.slane %v6800_v9, 4 }
 0x9eb   : > { %v6802_v1 = vadd.f32 %v6801_v12, %v6800_v9  ;;  %v6674_v12 = vmul.f32 %v13431_v18, %v10935_v25 }
 0x9ed   : > { %v6803_v52 = vrot.slane %v6802_v1, 2 }
 0x9ef   : > { %v6804_v21 = vadd.f32 %v6803_v52, %v6802_v1 }
 0x9f1   : > { %v6805_v0 = vrot.slane %v6804_v21, 1 }
 0x9f3   : > { %v6806_v36 = vadd.f32 %v6805_v0, %v6804_v21 }
 0x9f5   : > { %v6808_v20 = vmul.f32 %v6806_v36, %v13335_v4 }
 0x9f7   : > { %v6810_v53 = vadd.f32 1e-05, %v6808_v20 }
 0x9f9   : > { %7136 = vrsqrt.f32 %v6810_v53  ;;  %vm6827_vm5 = vweird.f32 %v6810_v53 }
 0x9ff   : > { %v7137_v34 = vpop.eup %7136 }
 0xa00   : > { %v6822_v43 = vmul.f32 %v7137_v34, %v6810_v53  ;;  %vm6828_vm4 = vweird.f32 %v7137_v34 }
 0xa01   : > { %vm6829_vm6 = vmor %vm6827_vm5, %vm6828_vm4 }
 0xa02   : > { %v6823_v41 = vmul.f32 %v7137_v34, %v6822_v43 }
 0xa04   : > { %v6824_v46 = vmul.f32 0.5, %v6823_v41 }
 0xa06   : > { %v6825_v42 = vsub.f32 1.5, %v6824_v46 }
 0xa08   : > { %v6826_v38 = vmul.f32 %v7137_v34, %v6825_v42 }
 0xa0a   : > { %v6830_v3 = vsel %vm6829_vm6, %v7137_v34, %v6826_v38 }
 0xa0b   : > { %v6839_v57 = vmul.f32 %v6830_v3, %v13465_v26  ;;  %v6840_v39 = vmul.f32 %v6830_v3, %v6758_v49  ;;  %v6841_v24 = vmul.f32 %v6830_v3, %v6759_v61  ;;  %v6842_v7 = vmul.f32 %v6830_v3, %v6760_v30 }
 0xa0c   : > { %v6843_v29 = vmul.f32 %v6830_v3, %v6761_v8  ;;  %v6844_v14 = vmul.f32 %v6830_v3, %v6762_v2  ;;  %v6845_v4 = vmul.f32 %v6830_v3, %v6763_v35  ;;  %v6846_v55 = vmul.f32 %v6830_v3, %v6764_v44 }
 0xa0d   : > { %v6855_v45 = vmul.f32 0.5, %v6839_v57  ;;  %v6856_v50 = vmul.f32 0.5, %v6840_v39  ;;  %v6857_v13 = vmul.f32 0.5, %v6841_v24  ;;  %v6858_v54 = vmul.f32 0.5, %v6842_v7 }
 0xa0e   : > { %v6859_v47 = vmul.f32 0.5, %v6843_v29  ;;  %v6860_v22 = vmul.f32 0.5, %v6844_v14  ;;  %v6861_v5 = vmul.f32 0.5, %v6845_v4  ;;  %v6862_v58 = vmul.f32 0.5, %v6846_v55 }
 0xa0f   : > { %7138 = vtanh.f32 %v6855_v45  ;;  %v6660_v26 = vmul.f32 %v13431_v18, %v10803_v16  ;;  %v6662_v49 = vmul.f32 %v13431_v18, %v10822_v33  ;;  %v6664_v61 = vmul.f32 %v13431_v18, %v10841_v48 }
 0xa10   : > { %7140 = vtanh.f32 %v6856_v50  ;;  %v6666_v30 = vmul.f32 %v13431_v18, %v10860_v63  ;;  %v6668_v2 = vmul.f32 %v13431_v18, %v10879_v56  ;;  %v6670_v35 = vmul.f32 %v13431_v18, %v10898_v11 }
 0xa11   : > { %7142 = vtanh.f32 %v6857_v13  ;;  %v6698_v40 = vadd.f32 %v13434_v6, %v6660_v26  ;;  %v6700_v48 = vadd.f32 %v13434_v6, %v6662_v49  ;;  %v6702_v19 = vadd.f32 %v13434_v6, %v6664_v61 }
 0xa12   : > { %7144 = vtanh.f32 %v6858_v54  ;;  %v6704_v31 = vadd.f32 %v13434_v6, %v6666_v30  ;;  %v6706_v11 = vadd.f32 %v13434_v6, %v6668_v2  ;;  %v6708_v27 = vadd.f32 %v13434_v6, %v6670_v35 }
 0xa13   : > { %7146 = vtanh.f32 %v6859_v47  ;;  %v6710_v18 = vadd.f32 %v13434_v6, %v6672_v59  ;;  %v6712_v3 = vadd.f32 %v13434_v6, %v6674_v12 }
 0xa14   : > { %7148 = vtanh.f32 %v6860_v22 }
 0xa15   : > { %v7139_v8 = vpop.eup %7138  ;;  %7150 = vtanh.f32 %v6861_v5 }
 0xa16   : > { %v7141_v16 = vpop.eup %7140  ;;  %7152 = vtanh.f32 %v6862_v58  ;;  %v6887_v33 = vmul.f32 0.5, %v7139_v8 }
 0xa17   : > { %v7143_v44 = vpop.eup %7142  ;;  %v6888_v28 = vmul.f32 0.5, %v7141_v16 }
 0xa18   : > { %v7145_v63 = vpop.eup %7144  ;;  %v6889_v56 = vmul.f32 0.5, %v7143_v44  ;;  %v6903_v60 = vadd.f32 0.5, %v6887_v33 }
 0xa19   : > { %v7147_v15 = vpop.eup %7146  ;;  %v6890_v10 = vmul.f32 0.5, %v7145_v63  ;;  %v6904_v62 = vadd.f32 0.5, %v6888_v28 }
 0xa1a   : > { %v7149_v17 = vpop.eup %7148  ;;  %v6891_v37 = vmul.f32 0.5, %v7147_v15  ;;  %v6905_v51 = vadd.f32 0.5, %v6889_v56  ;;  %v6919_v23 = vmul.f32 %v6903_v60, %v6698_v40 }
 0xa1b   : > { %v7151_v9 = vpop.eup %7150  ;;  %v6892_v1 = vmul.f32 0.5, %v7149_v17  ;;  %v6906_v52 = vadd.f32 0.5, %v6890_v10  ;;  %v6920_v21 = vmul.f32 %v6904_v62, %v6700_v48 }
 0xa1c   : > { %v7153_v0 = vpop.eup %7152  ;;  %v6893_v36 = vmul.f32 0.5, %v7151_v9  ;;  %v6907_v20 = vadd.f32 0.5, %v6891_v37  ;;  %v6921_v53 = vmul.f32 %v6905_v51, %v6702_v19  ;;  %v6935_v34 = vmax.f32 %v6919_v23, 0.0 }
 0xa1d   : > { %v6894_v32 = vmul.f32 0.5, %v7153_v0  ;;  %v6908_v43 = vadd.f32 0.5, %v6892_v1  ;;  %v6922_v41 = vmul.f32 %v6906_v52, %v6704_v31  ;;  %v6936_v25 = vmax.f32 %v6920_v21, 0.0 }
 0xa1e   : > { %v6909_v46 = vadd.f32 0.5, %v6893_v36  ;;  %v6923_v42 = vmul.f32 %v6907_v20, %v6706_v11  ;;  %v6937_v38 = vmax.f32 %v6921_v53, 0.0  ;;  %6951 = vst [vmem:[%s13467_s12 + $0x40] sm:$0xff] %v6935_v34 }
 0xa1f   : > { %v6910_v57 = vadd.f32 0.5, %v6894_v32  ;;  %v6924_v39 = vmul.f32 %v6908_v43, %v6708_v27  ;;  %v6938_v24 = vmax.f32 %v6922_v41, 0.0  ;;  %6952 = vst [vmem:[%s13467_s12 + $0x48] sm:$0xff] %v6936_v25 }
 0xa20   : > { %v6925_v7 = vmul.f32 %v6909_v46, %v6710_v18  ;;  %v6939_v29 = vmax.f32 %v6923_v42, 0.0  ;;  %6953 = vst [vmem:[%s13467_s12 + $0x50] sm:$0xff] %v6937_v38 }
 0xa21   : > { %v6926_v14 = vmul.f32 %v6910_v57, %v6712_v3  ;;  %v6940_v4 = vmax.f32 %v6924_v39, 0.0  ;;  %6954 = vst [vmem:[%s13467_s12 + $0x58] sm:$0xff] %v6938_v24 }
 0xa22   : > { %v6941_v55 = vmax.f32 %v6925_v7, 0.0  ;;  %6955 = vst [vmem:[%s13467_s12 + $0x60] sm:$0xff] %v6939_v29 }
 0xa23   : > { %v6942_v6 = vmax.f32 %v6926_v14, 0.0  ;;  %6956 = vst [vmem:[%s13467_s12 + $0x68] sm:$0xff] %v6940_v4 }
 0xa24   : > { %6957 = vst [vmem:[%s13467_s12 + $0x70] sm:$0xff] %v6941_v55 }
 0xa25   : > { %6958 = vst [vmem:[%s13467_s12 + $0x78] sm:$0xff] %v6942_v6 }
 0xa26   : > { %7757 = shalt.err (!%p7754_p3)
}
 0xa27   : > { %s7795_s10 = smov 128   ;;  %s7796_s27 = smov 512  }
 0xa28   : > { %s7797_s11 = smov 8  }
 0xa29   : > { %7073 = dma.vmem_to_hbm [thread:$0]  (%p7861_p5), %s6972_s22, 2048, %s6974_s23, %s6960_s28, %s7795_s10, %s7796_s27, %s7797_s11  }
 0xa2a PF: > { %p7079_p4 = scmp.ge.s32.totalorder %s7792_s18, 2  ;;  %s6988_s12 = sand.u32 1, %s7780_s15  }
 0xa2b   : > { %s6989_s13 = scalar_lea.sflag [#allocation3], %s6988_s12 }
 0xa2c   : > { %p7076_p7 = pnand %p7079_p4, %p7865_p6 }
 0xa2e   : > { %p7077_p8 = pneg %p7076_p7 }
 0xa30   : > { %7775 = dma.done.wait (%p7077_p8), %s6989_s13, 2048  }
 0xa31   : > { %7777 = vsyncadd (%p7077_p8), %s6989_s13, 4294965248  ;;  %p14_p9 = scmp.ge.s32.totalorder %s7848_s21, 6   ;;  %s13561_s15 = smov %s7784_s16 }
 0xa32   : > { %s13562_s16 = smov %s7788_s17  ;;  %s13563_s17 = smov %s7859_s24 }
 0xa33   : > { %s13564_s18 = smov %s7848_s21  ;;  %16 = sbr.rel (!%p14_p9) target bundleno = 3 (0x3), region = 77 }
 0xa38   :  { %6995 = vsyncpa [#allocation3], 1 }
 0xa39   :  { %6997 = vsyncpa [#allocation3 + $0x1], 1 }

</bundles_post_ra>
